<compile_context>
chip_gen: v7x
topology: tpu7x:2x2x1
jax: 0.10.0
libtpu: 0.0.40
codegen_flags: <defaults>
</compile_context>

<pallas_src>
import functools

import jax
import jax.numpy as jnp
from jax.experimental import pallas as pl
from jax.experimental.pallas import tpu as pltpu

EPS = 1e-5
LANE = 128


def _conv3x3_from_padded(pad_ref, w_ref, N, H, W, Cp, matmul_dtype):
    """3x3 / stride-1 / pad-1 conv as 9 slab GEMMs on the MXU.

    pad_ref: (N, H+2, W+2, Cp) VMEM ref, zero border, activation in the interior.
    w_ref:   (9, Cp, Cp) ref (tap-major: index = kh*3 + kw, each tap (Cin, Cout)).
    Returns the raw conv output as an (N*H*W, Cp) float32 slab.
    """
    M = N * H * W
    acc = jnp.zeros((M, Cp), jnp.float32)
    for kh in range(3):
        for kw in range(3):
            xs = pad_ref[:, kh:kh + H, kw:kw + W, :].reshape(M, Cp)
            acc = acc + jnp.dot(xs.astype(matmul_dtype),
                                w_ref[kh * 3 + kw].astype(matmul_dtype),
                                preferred_element_type=jnp.float32)
    return acc


def _bn_train(y, gamma, beta, inv_cnt):
    """Training-mode BatchNorm over an (M, Cp) slab (per-channel batch stats).

    Centered (two-pass) variance to avoid E[x^2]-E[x]^2 cancellation.
    """
    mean = jnp.sum(y, axis=0, keepdims=True) * inv_cnt
    d = y - mean
    var = jnp.sum(d * d, axis=0, keepdims=True) * inv_cnt      # biased variance
    scale = gamma * jax.lax.rsqrt(var + EPS)
    return d * scale + beta


def basicblock_kernel(x_ref, wa_ref, wb_ref, ga_ref, ba_ref, gb_ref, bb_ref,
                      out_ref, pad_ref, *, matmul_dtype):
    """Whole-block forward for the full (small) batch.

    x_ref  : (N, H, W, Cp)       unpadded NHWC input, channels parked to Cp lanes
    wa/wb  : (9, Cp, Cp)         conv weights, tap-major, (Cin, Cout) per tap
    ga..bb : (1, Cp)             BN affine parameters
    out_ref: (N, H, W, Cp)
    pad_ref: (N, H+2, W+2, Cp)   scratch: zero-bordered conv input staging buffer
    """
    N, H, W, Cp = x_ref.shape
    M = N * H * W
    inv_cnt = 1.0 / float(M)

    # Zero only the 1-pixel border strips of the scratch (interior is overwritten).
    pad_ref[:, 0:1, :, :] = jnp.zeros((N, 1, W + 2, Cp), jnp.float32)
    pad_ref[:, H + 1:H + 2, :, :] = jnp.zeros((N, 1, W + 2, Cp), jnp.float32)
    pad_ref[:, :, 0:1, :] = jnp.zeros((N, H + 2, 1, Cp), jnp.float32)
    pad_ref[:, :, W + 1:W + 2, :] = jnp.zeros((N, H + 2, 1, Cp), jnp.float32)

    # ---------------- conv_a -> bn_a (batch stats) -> relu ----------------
    pad_ref[:, 1:H + 1, 1:W + 1, :] = x_ref[...]        # single slab write
    ya = _conv3x3_from_padded(pad_ref, wa_ref, N, H, W, Cp, matmul_dtype)
    ya = jnp.maximum(_bn_train(ya, ga_ref[...], ba_ref[...], inv_cnt), 0.0)

    # -------- conv_b -> bn_b -> +residual -> relu (single store to out) ----
    pad_ref[:, 1:H + 1, 1:W + 1, :] = ya.reshape(N, H, W, Cp)
    yb = _conv3x3_from_padded(pad_ref, wb_ref, N, H, W, Cp, matmul_dtype)
    yb = _bn_train(yb, gb_ref[...], bb_ref[...], inv_cnt)
    res = x_ref[...].reshape(M, Cp)
    out_ref[...] = jnp.maximum(yb + res, 0.0).reshape(N, H, W, Cp)


def resnet_basicblock(x_nhwc, wa, wb, ga, ba, gb, bb, *, use_bf16_matmul=False):
    """ResNetBasicblock forward (stride=1, downsample=None).

    x_nhwc: (N, H, W, C) float32; wa/wb: HWIO (3, 3, C, C); ga/ba/gb/bb: (C,).
    use_bf16_matmul: cast MXU operands to bf16 (recommended on v6e/v7x at scale);
    kept off by default so the tight f32 correctness check against the f32
    reference passes.
    """
    N, H, W, C = x_nhwc.shape
    Cp = ((C + LANE - 1) // LANE) * LANE

    # Lane-dense channel padding: padded channels stay exactly zero end-to-end
    # (zero weights, zero residual) and are sliced off after the kernel.
    xp = jnp.pad(x_nhwc, ((0, 0), (0, 0), (0, 0), (0, Cp - C)))

    def pad_w(w):                       # (3,3,C,C) HWIO -> (9, Cp, Cp), tap-major
        wp = jnp.pad(w, ((0, 0), (0, 0), (0, Cp - C), (0, Cp - C)))
        return wp.reshape(9, Cp, Cp)

    def pad_v(v):                       # (C,) -> (1, Cp)
        return jnp.pad(v, (0, Cp - C)).reshape(1, Cp)

    matmul_dtype = jnp.bfloat16 if use_bf16_matmul else jnp.float32
    kernel = functools.partial(basicblock_kernel, matmul_dtype=matmul_dtype)

    out = pl.pallas_call(
        kernel,
        out_shape=jax.ShapeDtypeStruct((N, H, W, Cp), jnp.float32),
        in_specs=[pl.BlockSpec(memory_space=pltpu.MemorySpace.VMEM)] * 7,
        out_specs=pl.BlockSpec(memory_space=pltpu.MemorySpace.VMEM),
        scratch_shapes=[pltpu.VMEM((N, H + 2, W + 2, Cp), jnp.float32)],
    )(xp, pad_w(wa), pad_w(wb), pad_v(ga), pad_v(ba), pad_v(gb), pad_v(bb))
    return out[..., :C]


def reference(x_nhwc, wa, wb, ga, ba, gb, bb):
    """Pure-JAX reference (train-mode BN), for correctness checking."""
    def conv3x3(x, w):
        return jax.lax.conv_general_dilated(
            x, w, window_strides=(1, 1), padding=((1, 1), (1, 1)),
            dimension_numbers=("NHWC", "HWIO", "NHWC"))

    def bn_train(x, g, b):
        m = jnp.mean(x, axis=(0, 1, 2))
        v = jnp.mean((x - m) ** 2, axis=(0, 1, 2))       # biased variance
        return (x - m) * (g / jnp.sqrt(v + EPS)) + b

    y = jnp.maximum(bn_train(conv3x3(x_nhwc, wa), ga, ba), 0.0)
    y = bn_train(conv3x3(y, wb), gb, bb)
    return jnp.maximum(y + x_nhwc, 0.0)


if __name__ == "__main__":
    # Small deterministic config: inplanes = planes = 8, stride = 1, no downsample.
    N, H, W, C = 2, 16, 16, 8

    key = jax.random.PRNGKey(0)
    kx, kwa, kwb, kga, kba, kgb, kbb = jax.random.split(key, 7)

    # PyTorch-equivalent input would be NCHW (N, C, H, W); kernel uses NHWC.
    x_nchw = jax.random.normal(kx, (N, C, H, W), jnp.float32)
    x_nhwc = jnp.transpose(x_nchw, (0, 2, 3, 1))

    fan_in = C * 3 * 3
    # Conv weights in HWIO (KH, KW, Cin, Cout); PyTorch layout would be OIHW.
    wa = jax.random.normal(kwa, (3, 3, C, C), jnp.float32) / jnp.sqrt(fan_in)
    wb = jax.random.normal(kwb, (3, 3, C, C), jnp.float32) / jnp.sqrt(fan_in)
    # BN affine params (non-trivial but deterministic).
    ga = 1.0 + 0.1 * jax.random.normal(kga, (C,), jnp.float32)
    ba = 0.1 * jax.random.normal(kba, (C,), jnp.float32)
    gb = 1.0 + 0.1 * jax.random.normal(kgb, (C,), jnp.float32)
    bb = 0.1 * jax.random.normal(kbb, (C,), jnp.float32)

    out = jax.block_until_ready(resnet_basicblock(x_nhwc, wa, wb, ga, ba, gb, bb))
    ref = jax.block_until_ready(reference(x_nhwc, wa, wb, ga, ba, gb, bb))

    assert out.shape == (N, H, W, C)
    if not jnp.allclose(out, ref, atol=2e-3, rtol=2e-3):
        err = float(jnp.max(jnp.abs(out - ref)))
        raise AssertionError(
            f"Pallas kernel does not match JAX reference (max abs err = {err})")

    print("KERNEL_OK")
</pallas_src>

<mosaic_0001>
module attributes {stable_mosaic.version = 11 : i64} {
  func.func @basicblock_kernel(%arg0: memref<2x16x16x128xf32, #tpu.memory_space<vmem>>, %arg1: memref<9x128x128xf32, #tpu.memory_space<vmem>>, %arg2: memref<9x128x128xf32, #tpu.memory_space<vmem>>, %arg3: memref<1x128xf32, #tpu.memory_space<vmem>>, %arg4: memref<1x128xf32, #tpu.memory_space<vmem>>, %arg5: memref<1x128xf32, #tpu.memory_space<vmem>>, %arg6: memref<1x128xf32, #tpu.memory_space<vmem>>, %arg7: memref<2x16x16x128xf32, #tpu.memory_space<vmem>>, %arg8: memref<2x18x18x128xf32, #tpu.memory_space<vmem>>) attributes {dimension_semantics = [], scalar_prefetch = 0 : i64, scratch_operands = 1 : i64, tpu.core_type = #tpu.core_type<tc>} {
    %cst = arith.constant 0.000000e+00 : f32
    %0 = vector.broadcast %cst : f32 to vector<2x1x18x128xf32>
    %c0 = arith.constant 0 : index
    %c0_0 = arith.constant 0 : index
    %c0_1 = arith.constant 0 : index
    %c0_2 = arith.constant 0 : index
    %1 = vector.load %arg8[%c0, %c0_0, %c0_1, %c0_2] : memref<2x18x18x128xf32, #tpu.memory_space<vmem>>, vector<2x1x18x128xf32>
    tpu.vector_store %arg8[%c0, %c0_0, %c0_1, %c0_2], %0 {strides = array<i32>} : memref<2x18x18x128xf32, #tpu.memory_space<vmem>>, vector<2x1x18x128xf32>,
    %cst_3 = arith.constant 0.000000e+00 : f32
    %2 = vector.broadcast %cst_3 : f32 to vector<2x1x18x128xf32>
    %c0_4 = arith.constant 0 : index
    %c17 = arith.constant 17 : index
    %c0_5 = arith.constant 0 : index
    %c0_6 = arith.constant 0 : index
    %3 = vector.load %arg8[%c0_4, %c17, %c0_5, %c0_6] : memref<2x18x18x128xf32, #tpu.memory_space<vmem>>, vector<2x1x18x128xf32>
    tpu.vector_store %arg8[%c0_4, %c17, %c0_5, %c0_6], %2 {strides = array<i32>} : memref<2x18x18x128xf32, #tpu.memory_space<vmem>>, vector<2x1x18x128xf32>,
    %cst_7 = arith.constant 0.000000e+00 : f32
    %4 = vector.broadcast %cst_7 : f32 to vector<2x18x1x128xf32>
    %c0_8 = arith.constant 0 : index
    %c0_9 = arith.constant 0 : index
    %c0_10 = arith.constant 0 : index
    %c0_11 = arith.constant 0 : index
    %5 = vector.load %arg8[%c0_8, %c0_9, %c0_10, %c0_11] : memref<2x18x18x128xf32, #tpu.memory_space<vmem>>, vector<2x18x1x128xf32>
    tpu.vector_store %arg8[%c0_8, %c0_9, %c0_10, %c0_11], %4 {strides = array<i32>} : memref<2x18x18x128xf32, #tpu.memory_space<vmem>>, vector<2x18x1x128xf32>,
    %cst_12 = arith.constant 0.000000e+00 : f32
    %6 = vector.broadcast %cst_12 : f32 to vector<2x18x1x128xf32>
    %c0_13 = arith.constant 0 : index
    %c0_14 = arith.constant 0 : index
    %c17_15 = arith.constant 17 : index
    %c0_16 = arith.constant 0 : index
    %7 = vector.load %arg8[%c0_13, %c0_14, %c17_15, %c0_16] : memref<2x18x18x128xf32, #tpu.memory_space<vmem>>, vector<2x18x1x128xf32>
    tpu.vector_store %arg8[%c0_13, %c0_14, %c17_15, %c0_16], %6 {strides = array<i32>} : memref<2x18x18x128xf32, #tpu.memory_space<vmem>>, vector<2x18x1x128xf32>,
    %c0_17 = arith.constant 0 : index
    %c0_18 = arith.constant 0 : index
    %c0_19 = arith.constant 0 : index
    %c0_20 = arith.constant 0 : index
    %8 = vector.load %arg0[%c0_17, %c0_18, %c0_19, %c0_20] : memref<2x16x16x128xf32, #tpu.memory_space<vmem>>, vector<2x16x16x128xf32>
    %c0_21 = arith.constant 0 : index
    %c1 = arith.constant 1 : index
    %c1_22 = arith.constant 1 : index
    %c0_23 = arith.constant 0 : index
    %9 = vector.load %arg8[%c0_21, %c1, %c1_22, %c0_23] : memref<2x18x18x128xf32, #tpu.memory_space<vmem>>, vector<2x16x16x128xf32>
    tpu.vector_store %arg8[%c0_21, %c1, %c1_22, %c0_23], %8 {strides = array<i32>} : memref<2x18x18x128xf32, #tpu.memory_space<vmem>>, vector<2x16x16x128xf32>,
    %cst_24 = arith.constant 0.000000e+00 : f32
    %10 = vector.broadcast %cst_24 : f32 to vector<512x128xf32>
    %c0_25 = arith.constant 0 : index
    %c0_26 = arith.constant 0 : index
    %c0_27 = arith.constant 0 : index
    %c0_28 = arith.constant 0 : index
    %11 = vector.load %arg8[%c0_25, %c0_26, %c0_27, %c0_28] : memref<2x18x18x128xf32, #tpu.memory_space<vmem>>, vector<2x16x16x128xf32>
    %12 = vector.shape_cast %11 : vector<2x16x16x128xf32> to vector<512x128xf32>
    %c0_29 = arith.constant 0 : index
    %c0_30 = arith.constant 0 : index
    %c0_31 = arith.constant 0 : index
    %13 = vector.load %arg1[%c0_29, %c0_30, %c0_31] : memref<9x128x128xf32, #tpu.memory_space<vmem>>, vector<1x128x128xf32>
    %14 = vector.shape_cast %13 : vector<1x128x128xf32> to vector<128x128xf32>
    %cst_32 = arith.constant dense<0.000000e+00> : vector<512x128xf32>
    %15 = tpu.matmul %12, %14, %cst_32 {dimension_numbers = #tpu.dot_dimension_numbers<[1], [0], [0], [1], [0, 0, 1, 1], [], []>} : vector<512x128xf32>, vector<128x128xf32>, vector<512x128xf32> -> vector<512x128xf32>
    %16 = arith.addf %10, %15 : vector<512x128xf32>
    %c0_33 = arith.constant 0 : index
    %c0_34 = arith.constant 0 : index
    %c1_35 = arith.constant 1 : index
    %c0_36 = arith.constant 0 : index
    %17 = vector.load %arg8[%c0_33, %c0_34, %c1_35, %c0_36] : memref<2x18x18x128xf32, #tpu.memory_space<vmem>>, vector<2x16x16x128xf32>
    %18 = vector.shape_cast %17 : vector<2x16x16x128xf32> to vector<512x128xf32>
    %c1_37 = arith.constant 1 : index
    %c0_38 = arith.constant 0 : index
    %c0_39 = arith.constant 0 : index
    %19 = vector.load %arg1[%c1_37, %c0_38, %c0_39] : memref<9x128x128xf32, #tpu.memory_space<vmem>>, vector<1x128x128xf32>
    %20 = vector.shape_cast %19 : vector<1x128x128xf32> to vector<128x128xf32>
    %cst_40 = arith.constant dense<0.000000e+00> : vector<512x128xf32>
    %21 = tpu.matmul %18, %20, %cst_40 {dimension_numbers = #tpu.dot_dimension_numbers<[1], [0], [0], [1], [0, 0, 1, 1], [], []>} : vector<512x128xf32>, vector<128x128xf32>, vector<512x128xf32> -> vector<512x128xf32>
    %22 = arith.addf %16, %21 : vector<512x128xf32>
    %c0_41 = arith.constant 0 : index
    %c0_42 = arith.constant 0 : index
    %c2 = arith.constant 2 : index
    %c0_43 = arith.constant 0 : index
    %23 = vector.load %arg8[%c0_41, %c0_42, %c2, %c0_43] : memref<2x18x18x128xf32, #tpu.memory_space<vmem>>, vector<2x16x16x128xf32>
    %24 = vector.shape_cast %23 : vector<2x16x16x128xf32> to vector<512x128xf32>
    %c2_44 = arith.constant 2 : index
    %c0_45 = arith.constant 0 : index
    %c0_46 = arith.constant 0 : index
    %25 = vector.load %arg1[%c2_44, %c0_45, %c0_46] : memref<9x128x128xf32, #tpu.memory_space<vmem>>, vector<1x128x128xf32>
    %26 = vector.shape_cast %25 : vector<1x128x128xf32> to vector<128x128xf32>
    %cst_47 = arith.constant dense<0.000000e+00> : vector<512x128xf32>
    %27 = tpu.matmul %24, %26, %cst_47 {dimension_numbers = #tpu.dot_dimension_numbers<[1], [0], [0], [1], [0, 0, 1, 1], [], []>} : vector<512x128xf32>, vector<128x128xf32>, vector<512x128xf32> -> vector<512x128xf32>
    %28 = arith.addf %22, %27 : vector<512x128xf32>
    %c0_48 = arith.constant 0 : index
    %c1_49 = arith.constant 1 : index
    %c0_50 = arith.constant 0 : index
    %c0_51 = arith.constant 0 : index
    %29 = vector.load %arg8[%c0_48, %c1_49, %c0_50, %c0_51] : memref<2x18x18x128xf32, #tpu.memory_space<vmem>>, vector<2x16x16x128xf32>
    %30 = vector.shape_cast %29 : vector<2x16x16x128xf32> to vector<512x128xf32>
    %c3 = arith.constant 3 : index
    %c0_52 = arith.constant 0 : index
    %c0_53 = arith.constant 0 : index
    %31 = vector.load %arg1[%c3, %c0_52, %c0_53] : memref<9x128x128xf32, #tpu.memory_space<vmem>>, vector<1x128x128xf32>
    %32 = vector.shape_cast %31 : vector<1x128x128xf32> to vector<128x128xf32>
    %cst_54 = arith.constant dense<0.000000e+00> : vector<512x128xf32>
    %33 = tpu.matmul %30, %32, %cst_54 {dimension_numbers = #tpu.dot_dimension_numbers<[1], [0], [0], [1], [0, 0, 1, 1], [], []>} : vector<512x128xf32>, vector<128x128xf32>, vector<512x128xf32> -> vector<512x128xf32>
    %34 = arith.addf %28, %33 : vector<512x128xf32>
    %c0_55 = arith.constant 0 : index
    %c1_56 = arith.constant 1 : index
    %c1_57 = arith.constant 1 : index
    %c0_58 = arith.constant 0 : index
    %35 = vector.load %arg8[%c0_55, %c1_56, %c1_57, %c0_58] : memref<2x18x18x128xf32, #tpu.memory_space<vmem>>, vector<2x16x16x128xf32>
    %36 = vector.shape_cast %35 : vector<2x16x16x128xf32> to vector<512x128xf32>
    %c4 = arith.constant 4 : index
    %c0_59 = arith.constant 0 : index
    %c0_60 = arith.constant 0 : index
    %37 = vector.load %arg1[%c4, %c0_59, %c0_60] : memref<9x128x128xf32, #tpu.memory_space<vmem>>, vector<1x128x128xf32>
    %38 = vector.shape_cast %37 : vector<1x128x128xf32> to vector<128x128xf32>
    %cst_61 = arith.constant dense<0.000000e+00> : vector<512x128xf32>
    %39 = tpu.matmul %36, %38, %cst_61 {dimension_numbers = #tpu.dot_dimension_numbers<[1], [0], [0], [1], [0, 0, 1, 1], [], []>} : vector<512x128xf32>, vector<128x128xf32>, vector<512x128xf32> -> vector<512x128xf32>
    %40 = arith.addf %34, %39 : vector<512x128xf32>
    %c0_62 = arith.constant 0 : index
    %c1_63 = arith.constant 1 : index
    %c2_64 = arith.constant 2 : index
    %c0_65 = arith.constant 0 : index
    %41 = vector.load %arg8[%c0_62, %c1_63, %c2_64, %c0_65] : memref<2x18x18x128xf32, #tpu.memory_space<vmem>>, vector<2x16x16x128xf32>
    %42 = vector.shape_cast %41 : vector<2x16x16x128xf32> to vector<512x128xf32>
    %c5 = arith.constant 5 : index
    %c0_66 = arith.constant 0 : index
    %c0_67 = arith.constant 0 : index
    %43 = vector.load %arg1[%c5, %c0_66, %c0_67] : memref<9x128x128xf32, #tpu.memory_space<vmem>>, vector<1x128x128xf32>
    %44 = vector.shape_cast %43 : vector<1x128x128xf32> to vector<128x128xf32>
    %cst_68 = arith.constant dense<0.000000e+00> : vector<512x128xf32>
    %45 = tpu.matmul %42, %44, %cst_68 {dimension_numbers = #tpu.dot_dimension_numbers<[1], [0], [0], [1], [0, 0, 1, 1], [], []>} : vector<512x128xf32>, vector<128x128xf32>, vector<512x128xf32> -> vector<512x128xf32>
    %46 = arith.addf %40, %45 : vector<512x128xf32>
    %c0_69 = arith.constant 0 : index
    %c2_70 = arith.constant 2 : index
    %c0_71 = arith.constant 0 : index
    %c0_72 = arith.constant 0 : index
    %47 = vector.load %arg8[%c0_69, %c2_70, %c0_71, %c0_72] : memref<2x18x18x128xf32, #tpu.memory_space<vmem>>, vector<2x16x16x128xf32>
    %48 = vector.shape_cast %47 : vector<2x16x16x128xf32> to vector<512x128xf32>
    %c6 = arith.constant 6 : index
    %c0_73 = arith.constant 0 : index
    %c0_74 = arith.constant 0 : index
    %49 = vector.load %arg1[%c6, %c0_73, %c0_74] : memref<9x128x128xf32, #tpu.memory_space<vmem>>, vector<1x128x128xf32>
    %50 = vector.shape_cast %49 : vector<1x128x128xf32> to vector<128x128xf32>
    %cst_75 = arith.constant dense<0.000000e+00> : vector<512x128xf32>
    %51 = tpu.matmul %48, %50, %cst_75 {dimension_numbers = #tpu.dot_dimension_numbers<[1], [0], [0], [1], [0, 0, 1, 1], [], []>} : vector<512x128xf32>, vector<128x128xf32>, vector<512x128xf32> -> vector<512x128xf32>
    %52 = arith.addf %46, %51 : vector<512x128xf32>
    %c0_76 = arith.constant 0 : index
    %c2_77 = arith.constant 2 : index
    %c1_78 = arith.constant 1 : index
    %c0_79 = arith.constant 0 : index
    %53 = vector.load %arg8[%c0_76, %c2_77, %c1_78, %c0_79] : memref<2x18x18x128xf32, #tpu.memory_space<vmem>>, vector<2x16x16x128xf32>
    %54 = vector.shape_cast %53 : vector<2x16x16x128xf32> to vector<512x128xf32>
    %c7 = arith.constant 7 : index
    %c0_80 = arith.constant 0 : index
    %c0_81 = arith.constant 0 : index
    %55 = vector.load %arg1[%c7, %c0_80, %c0_81] : memref<9x128x128xf32, #tpu.memory_space<vmem>>, vector<1x128x128xf32>
    %56 = vector.shape_cast %55 : vector<1x128x128xf32> to vector<128x128xf32>
    %cst_82 = arith.constant dense<0.000000e+00> : vector<512x128xf32>
    %57 = tpu.matmul %54, %56, %cst_82 {dimension_numbers = #tpu.dot_dimension_numbers<[1], [0], [0], [1], [0, 0, 1, 1], [], []>} : vector<512x128xf32>, vector<128x128xf32>, vector<512x128xf32> -> vector<512x128xf32>
    %58 = arith.addf %52, %57 : vector<512x128xf32>
    %c0_83 = arith.constant 0 : index
    %c2_84 = arith.constant 2 : index
    %c2_85 = arith.constant 2 : index
    %c0_86 = arith.constant 0 : index
    %59 = vector.load %arg8[%c0_83, %c2_84, %c2_85, %c0_86] : memref<2x18x18x128xf32, #tpu.memory_space<vmem>>, vector<2x16x16x128xf32>
    %60 = vector.shape_cast %59 : vector<2x16x16x128xf32> to vector<512x128xf32>
    %c8 = arith.constant 8 : index
    %c0_87 = arith.constant 0 : index
    %c0_88 = arith.constant 0 : index
    %61 = vector.load %arg1[%c8, %c0_87, %c0_88] : memref<9x128x128xf32, #tpu.memory_space<vmem>>, vector<1x128x128xf32>
    %62 = vector.shape_cast %61 : vector<1x128x128xf32> to vector<128x128xf32>
    %cst_89 = arith.constant dense<0.000000e+00> : vector<512x128xf32>
    %63 = tpu.matmul %60, %62, %cst_89 {dimension_numbers = #tpu.dot_dimension_numbers<[1], [0], [0], [1], [0, 0, 1, 1], [], []>} : vector<512x128xf32>, vector<128x128xf32>, vector<512x128xf32> -> vector<512x128xf32>
    %64 = arith.addf %58, %63 : vector<512x128xf32>
    %c0_90 = arith.constant 0 : index
    %c0_91 = arith.constant 0 : index
    %65 = vector.load %arg3[%c0_90, %c0_91] : memref<1x128xf32, #tpu.memory_space<vmem>>, vector<1x128xf32>
    %c0_92 = arith.constant 0 : index
    %c0_93 = arith.constant 0 : index
    %66 = vector.load %arg4[%c0_92, %c0_93] : memref<1x128xf32, #tpu.memory_space<vmem>>, vector<1x128xf32>
    %cst_94 = arith.constant dense<0.000000e+00> : vector<128xf32>
    %67 = vector.multi_reduction <add>, %64, %cst_94 [0] : vector<512x128xf32> to vector<128xf32>
    %68 = vector.shape_cast %67 : vector<128xf32> to vector<1x128xf32>
    %cst_95 = arith.constant 0.001953125 : f32
    %69 = vector.broadcast %cst_95 : f32 to vector<1x128xf32>
    %70 = arith.mulf %68, %69 : vector<1x128xf32>
    %71 = vector.broadcast %70 : vector<1x128xf32> to vector<512x128xf32>
    %72 = arith.subf %64, %71 : vector<512x128xf32>
    %73 = arith.mulf %72, %72 : vector<512x128xf32>
    %cst_96 = arith.constant dense<0.000000e+00> : vector<128xf32>
    %74 = vector.multi_reduction <add>, %73, %cst_96 [0] : vector<512x128xf32> to vector<128xf32>
    %75 = vector.shape_cast %74 : vector<128xf32> to vector<1x128xf32>
    %cst_97 = arith.constant 0.001953125 : f32
    %76 = vector.broadcast %cst_97 : f32 to vector<1x128xf32>
    %77 = arith.mulf %75, %76 : vector<1x128xf32>
    %cst_98 = arith.constant 9.99999974E-6 : f32
    %78 = vector.broadcast %cst_98 : f32 to vector<1x128xf32>
    %79 = arith.addf %77, %78 : vector<1x128xf32>
    %80 = math.rsqrt %79 : vector<1x128xf32>
    %81 = arith.mulf %65, %80 : vector<1x128xf32>
    %82 = vector.broadcast %81 : vector<1x128xf32> to vector<512x128xf32>
    %83 = arith.mulf %72, %82 : vector<512x128xf32>
    %84 = vector.broadcast %66 : vector<1x128xf32> to vector<512x128xf32>
    %85 = arith.addf %83, %84 : vector<512x128xf32>
    %cst_99 = arith.constant 0.000000e+00 : f32
    %86 = vector.broadcast %cst_99 : f32 to vector<512x128xf32>
    %87 = arith.maximumf %85, %86 : vector<512x128xf32>
    %88 = vector.shape_cast %87 : vector<512x128xf32> to vector<2x16x16x128xf32>
    %c0_100 = arith.constant 0 : index
    %c1_101 = arith.constant 1 : index
    %c1_102 = arith.constant 1 : index
    %c0_103 = arith.constant 0 : index
    %89 = vector.load %arg8[%c0_100, %c1_101, %c1_102, %c0_103] : memref<2x18x18x128xf32, #tpu.memory_space<vmem>>, vector<2x16x16x128xf32>
    tpu.vector_store %arg8[%c0_100, %c1_101, %c1_102, %c0_103], %88 {strides = array<i32>} : memref<2x18x18x128xf32, #tpu.memory_space<vmem>>, vector<2x16x16x128xf32>,
    %cst_104 = arith.constant 0.000000e+00 : f32
    %90 = vector.broadcast %cst_104 : f32 to vector<512x128xf32>
    %c0_105 = arith.constant 0 : index
    %c0_106 = arith.constant 0 : index
    %c0_107 = arith.constant 0 : index
    %c0_108 = arith.constant 0 : index
    %91 = vector.load %arg8[%c0_105, %c0_106, %c0_107, %c0_108] : memref<2x18x18x128xf32, #tpu.memory_space<vmem>>, vector<2x16x16x128xf32>
    %92 = vector.shape_cast %91 : vector<2x16x16x128xf32> to vector<512x128xf32>
    %c0_109 = arith.constant 0 : index
    %c0_110 = arith.constant 0 : index
    %c0_111 = arith.constant 0 : index
    %93 = vector.load %arg2[%c0_109, %c0_110, %c0_111] : memref<9x128x128xf32, #tpu.memory_space<vmem>>, vector<1x128x128xf32>
    %94 = vector.shape_cast %93 : vector<1x128x128xf32> to vector<128x128xf32>
    %cst_112 = arith.constant dense<0.000000e+00> : vector<512x128xf32>
    %95 = tpu.matmul %92, %94, %cst_112 {dimension_numbers = #tpu.dot_dimension_numbers<[1], [0], [0], [1], [0, 0, 1, 1], [], []>} : vector<512x128xf32>, vector<128x128xf32>, vector<512x128xf32> -> vector<512x128xf32>
    %96 = arith.addf %90, %95 : vector<512x128xf32>
    %c0_113 = arith.constant 0 : index
    %c0_114 = arith.constant 0 : index
    %c1_115 = arith.constant 1 : index
    %c0_116 = arith.constant 0 : index
    %97 = vector.load %arg8[%c0_113, %c0_114, %c1_115, %c0_116] : memref<2x18x18x128xf32, #tpu.memory_space<vmem>>, vector<2x16x16x128xf32>
    %98 = vector.shape_cast %97 : vector<2x16x16x128xf32> to vector<512x128xf32>
    %c1_117 = arith.constant 1 : index
    %c0_118 = arith.constant 0 : index
    %c0_119 = arith.constant 0 : index
    %99 = vector.load %arg2[%c1_117, %c0_118, %c0_119] : memref<9x128x128xf32, #tpu.memory_space<vmem>>, vector<1x128x128xf32>
    %100 = vector.shape_cast %99 : vector<1x128x128xf32> to vector<128x128xf32>
    %cst_120 = arith.constant dense<0.000000e+00> : vector<512x128xf32>
    %101 = tpu.matmul %98, %100, %cst_120 {dimension_numbers = #tpu.dot_dimension_numbers<[1], [0], [0], [1], [0, 0, 1, 1], [], []>} : vector<512x128xf32>, vector<128x128xf32>, vector<512x128xf32> -> vector<512x128xf32>
    %102 = arith.addf %96, %101 : vector<512x128xf32>
    %c0_121 = arith.constant 0 : index
    %c0_122 = arith.constant 0 : index
    %c2_123 = arith.constant 2 : index
    %c0_124 = arith.constant 0 : index
    %103 = vector.load %arg8[%c0_121, %c0_122, %c2_123, %c0_124] : memref<2x18x18x128xf32, #tpu.memory_space<vmem>>, vector<2x16x16x128xf32>
    %104 = vector.shape_cast %103 : vector<2x16x16x128xf32> to vector<512x128xf32>
    %c2_125 = arith.constant 2 : index
    %c0_126 = arith.constant 0 : index
    %c0_127 = arith.constant 0 : index
    %105 = vector.load %arg2[%c2_125, %c0_126, %c0_127] : memref<9x128x128xf32, #tpu.memory_space<vmem>>, vector<1x128x128xf32>
    %106 = vector.shape_cast %105 : vector<1x128x128xf32> to vector<128x128xf32>
    %cst_128 = arith.constant dense<0.000000e+00> : vector<512x128xf32>
    %107 = tpu.matmul %104, %106, %cst_128 {dimension_numbers = #tpu.dot_dimension_numbers<[1], [0], [0], [1], [0, 0, 1, 1], [], []>} : vector<512x128xf32>, vector<128x128xf32>, vector<512x128xf32> -> vector<512x128xf32>
    %108 = arith.addf %102, %107 : vector<512x128xf32>
    %c0_129 = arith.constant 0 : index
    %c1_130 = arith.constant 1 : index
    %c0_131 = arith.constant 0 : index
    %c0_132 = arith.constant 0 : index
    %109 = vector.load %arg8[%c0_129, %c1_130, %c0_131, %c0_132] : memref<2x18x18x128xf32, #tpu.memory_space<vmem>>, vector<2x16x16x128xf32>
    %110 = vector.shape_cast %109 : vector<2x16x16x128xf32> to vector<512x128xf32>
    %c3_133 = arith.constant 3 : index
    %c0_134 = arith.constant 0 : index
    %c0_135 = arith.constant 0 : index
    %111 = vector.load %arg2[%c3_133, %c0_134, %c0_135] : memref<9x128x128xf32, #tpu.memory_space<vmem>>, vector<1x128x128xf32>
    %112 = vector.shape_cast %111 : vector<1x128x128xf32> to vector<128x128xf32>
    %cst_136 = arith.constant dense<0.000000e+00> : vector<512x128xf32>
    %113 = tpu.matmul %110, %112, %cst_136 {dimension_numbers = #tpu.dot_dimension_numbers<[1], [0], [0], [1], [0, 0, 1, 1], [], []>} : vector<512x128xf32>, vector<128x128xf32>, vector<512x128xf32> -> vector<512x128xf32>
    %114 = arith.addf %108, %113 : vector<512x128xf32>
    %c0_137 = arith.constant 0 : index
    %c1_138 = arith.constant 1 : index
    %c1_139 = arith.constant 1 : index
    %c0_140 = arith.constant 0 : index
    %115 = vector.load %arg8[%c0_137, %c1_138, %c1_139, %c0_140] : memref<2x18x18x128xf32, #tpu.memory_space<vmem>>, vector<2x16x16x128xf32>
    %116 = vector.shape_cast %115 : vector<2x16x16x128xf32> to vector<512x128xf32>
    %c4_141 = arith.constant 4 : index
    %c0_142 = arith.constant 0 : index
    %c0_143 = arith.constant 0 : index
    %117 = vector.load %arg2[%c4_141, %c0_142, %c0_143] : memref<9x128x128xf32, #tpu.memory_space<vmem>>, vector<1x128x128xf32>
    %118 = vector.shape_cast %117 : vector<1x128x128xf32> to vector<128x128xf32>
    %cst_144 = arith.constant dense<0.000000e+00> : vector<512x128xf32>
    %119 = tpu.matmul %116, %118, %cst_144 {dimension_numbers = #tpu.dot_dimension_numbers<[1], [0], [0], [1], [0, 0, 1, 1], [], []>} : vector<512x128xf32>, vector<128x128xf32>, vector<512x128xf32> -> vector<512x128xf32>
    %120 = arith.addf %114, %119 : vector<512x128xf32>
    %c0_145 = arith.constant 0 : index
    %c1_146 = arith.constant 1 : index
    %c2_147 = arith.constant 2 : index
    %c0_148 = arith.constant 0 : index
    %121 = vector.load %arg8[%c0_145, %c1_146, %c2_147, %c0_148] : memref<2x18x18x128xf32, #tpu.memory_space<vmem>>, vector<2x16x16x128xf32>
    %122 = vector.shape_cast %121 : vector<2x16x16x128xf32> to vector<512x128xf32>
    %c5_149 = arith.constant 5 : index
    %c0_150 = arith.constant 0 : index
    %c0_151 = arith.constant 0 : index
    %123 = vector.load %arg2[%c5_149, %c0_150, %c0_151] : memref<9x128x128xf32, #tpu.memory_space<vmem>>, vector<1x128x128xf32>
    %124 = vector.shape_cast %123 : vector<1x128x128xf32> to vector<128x128xf32>
    %cst_152 = arith.constant dense<0.000000e+00> : vector<512x128xf32>
    %125 = tpu.matmul %122, %124, %cst_152 {dimension_numbers = #tpu.dot_dimension_numbers<[1], [0], [0], [1], [0, 0, 1, 1], [], []>} : vector<512x128xf32>, vector<128x128xf32>, vector<512x128xf32> -> vector<512x128xf32>
    %126 = arith.addf %120, %125 : vector<512x128xf32>
    %c0_153 = arith.constant 0 : index
    %c2_154 = arith.constant 2 : index
    %c0_155 = arith.constant 0 : index
    %c0_156 = arith.constant 0 : index
    %127 = vector.load %arg8[%c0_153, %c2_154, %c0_155, %c0_156] : memref<2x18x18x128xf32, #tpu.memory_space<vmem>>, vector<2x16x16x128xf32>
    %128 = vector.shape_cast %127 : vector<2x16x16x128xf32> to vector<512x128xf32>
    %c6_157 = arith.constant 6 : index
    %c0_158 = arith.constant 0 : index
    %c0_159 = arith.constant 0 : index
    %129 = vector.load %arg2[%c6_157, %c0_158, %c0_159] : memref<9x128x128xf32, #tpu.memory_space<vmem>>, vector<1x128x128xf32>
    %130 = vector.shape_cast %129 : vector<1x128x128xf32> to vector<128x128xf32>
    %cst_160 = arith.constant dense<0.000000e+00> : vector<512x128xf32>
    %131 = tpu.matmul %128, %130, %cst_160 {dimension_numbers = #tpu.dot_dimension_numbers<[1], [0], [0], [1], [0, 0, 1, 1], [], []>} : vector<512x128xf32>, vector<128x128xf32>, vector<512x128xf32> -> vector<512x128xf32>
    %132 = arith.addf %126, %131 : vector<512x128xf32>
    %c0_161 = arith.constant 0 : index
    %c2_162 = arith.constant 2 : index
    %c1_163 = arith.constant 1 : index
    %c0_164 = arith.constant 0 : index
    %133 = vector.load %arg8[%c0_161, %c2_162, %c1_163, %c0_164] : memref<2x18x18x128xf32, #tpu.memory_space<vmem>>, vector<2x16x16x128xf32>
    %134 = vector.shape_cast %133 : vector<2x16x16x128xf32> to vector<512x128xf32>
    %c7_165 = arith.constant 7 : index
    %c0_166 = arith.constant 0 : index
    %c0_167 = arith.constant 0 : index
    %135 = vector.load %arg2[%c7_165, %c0_166, %c0_167] : memref<9x128x128xf32, #tpu.memory_space<vmem>>, vector<1x128x128xf32>
    %136 = vector.shape_cast %135 : vector<1x128x128xf32> to vector<128x128xf32>
    %cst_168 = arith.constant dense<0.000000e+00> : vector<512x128xf32>
    %137 = tpu.matmul %134, %136, %cst_168 {dimension_numbers = #tpu.dot_dimension_numbers<[1], [0], [0], [1], [0, 0, 1, 1], [], []>} : vector<512x128xf32>, vector<128x128xf32>, vector<512x128xf32> -> vector<512x128xf32>
    %138 = arith.addf %132, %137 : vector<512x128xf32>
    %c0_169 = arith.constant 0 : index
    %c2_170 = arith.constant 2 : index
    %c2_171 = arith.constant 2 : index
    %c0_172 = arith.constant 0 : index
    %139 = vector.load %arg8[%c0_169, %c2_170, %c2_171, %c0_172] : memref<2x18x18x128xf32, #tpu.memory_space<vmem>>, vector<2x16x16x128xf32>
    %140 = vector.shape_cast %139 : vector<2x16x16x128xf32> to vector<512x128xf32>
    %c8_173 = arith.constant 8 : index
    %c0_174 = arith.constant 0 : index
    %c0_175 = arith.constant 0 : index
    %141 = vector.load %arg2[%c8_173, %c0_174, %c0_175] : memref<9x128x128xf32, #tpu.memory_space<vmem>>, vector<1x128x128xf32>
    %142 = vector.shape_cast %141 : vector<1x128x128xf32> to vector<128x128xf32>
    %cst_176 = arith.constant dense<0.000000e+00> : vector<512x128xf32>
    %143 = tpu.matmul %140, %142, %cst_176 {dimension_numbers = #tpu.dot_dimension_numbers<[1], [0], [0], [1], [0, 0, 1, 1], [], []>} : vector<512x128xf32>, vector<128x128xf32>, vector<512x128xf32> -> vector<512x128xf32>
    %144 = arith.addf %138, %143 : vector<512x128xf32>
    %c0_177 = arith.constant 0 : index
    %c0_178 = arith.constant 0 : index
    %145 = vector.load %arg5[%c0_177, %c0_178] : memref<1x128xf32, #tpu.memory_space<vmem>>, vector<1x128xf32>
    %c0_179 = arith.constant 0 : index
    %c0_180 = arith.constant 0 : index
    %146 = vector.load %arg6[%c0_179, %c0_180] : memref<1x128xf32, #tpu.memory_space<vmem>>, vector<1x128xf32>
    %cst_181 = arith.constant dense<0.000000e+00> : vector<128xf32>
    %147 = vector.multi_reduction <add>, %144, %cst_181 [0] : vector<512x128xf32> to vector<128xf32>
    %148 = vector.shape_cast %147 : vector<128xf32> to vector<1x128xf32>
    %cst_182 = arith.constant 0.001953125 : f32
    %149 = vector.broadcast %cst_182 : f32 to vector<1x128xf32>
    %150 = arith.mulf %148, %149 : vector<1x128xf32>
    %151 = vector.broadcast %150 : vector<1x128xf32> to vector<512x128xf32>
    %152 = arith.subf %144, %151 : vector<512x128xf32>
    %153 = arith.mulf %152, %152 : vector<512x128xf32>
    %cst_183 = arith.constant dense<0.000000e+00> : vector<128xf32>
    %154 = vector.multi_reduction <add>, %153, %cst_183 [0] : vector<512x128xf32> to vector<128xf32>
    %155 = vector.shape_cast %154 : vector<128xf32> to vector<1x128xf32>
    %cst_184 = arith.constant 0.001953125 : f32
    %156 = vector.broadcast %cst_184 : f32 to vector<1x128xf32>
    %157 = arith.mulf %155, %156 : vector<1x128xf32>
    %cst_185 = arith.constant 9.99999974E-6 : f32
    %158 = vector.broadcast %cst_185 : f32 to vector<1x128xf32>
    %159 = arith.addf %157, %158 : vector<1x128xf32>
    %160 = math.rsqrt %159 : vector<1x128xf32>
    %161 = arith.mulf %145, %160 : vector<1x128xf32>
    %162 = vector.broadcast %161 : vector<1x128xf32> to vector<512x128xf32>
    %163 = arith.mulf %152, %162 : vector<512x128xf32>
    %164 = vector.broadcast %146 : vector<1x128xf32> to vector<512x128xf32>
    %165 = arith.addf %163, %164 : vector<512x128xf32>
    %c0_186 = arith.constant 0 : index
    %c0_187 = arith.constant 0 : index
    %c0_188 = arith.constant 0 : index
    %c0_189 = arith.constant 0 : index
    %166 = vector.load %arg0[%c0_186, %c0_187, %c0_188, %c0_189] : memref<2x16x16x128xf32, #tpu.memory_space<vmem>>, vector<2x16x16x128xf32>
    %167 = vector.shape_cast %166 : vector<2x16x16x128xf32> to vector<512x128xf32>
    %168 = arith.addf %165, %167 : vector<512x128xf32>
    %cst_190 = arith.constant 0.000000e+00 : f32
    %169 = vector.broadcast %cst_190 : f32 to vector<512x128xf32>
    %170 = arith.maximumf %168, %169 : vector<512x128xf32>
    %171 = vector.shape_cast %170 : vector<512x128xf32> to vector<2x16x16x128xf32>
    %c0_191 = arith.constant 0 : index
    %c0_192 = arith.constant 0 : index
    %c0_193 = arith.constant 0 : index
    %c0_194 = arith.constant 0 : index
    %172 = vector.load %arg7[%c0_191, %c0_192, %c0_193, %c0_194] : memref<2x16x16x128xf32, #tpu.memory_space<vmem>>, vector<2x16x16x128xf32>
    tpu.vector_store %arg7[%c0_191, %c0_192, %c0_193, %c0_194], %171 {strides = array<i32>} : memref<2x16x16x128xf32, #tpu.memory_space<vmem>>, vector<2x16x16x128xf32>,
    return
  }
}

</mosaic_0001>

<bundles_post_ra>
// kernel: tpu_custom_call.1
= control target key start
LH: loop header
LB: loop body
LE: loop exit
PB: predicated region body
PF: predicated region fallthrough
CT: control target
= control target key end

     0   :  { %12 = vsyncpa [#allocation4], 0  ;;  %s20983_s0 = inlined_call_operand.hbm [shape: f32[2,16,16,128], index: 0, kind: input, shape index: {}]   ;;  %s20984_s1 = inlined_call_operand.hbm [shape: f32[9,128,128], index: 1, kind: input, shape index: {}]   ;;  %s20985_s2 = inlined_call_operand.hbm [shape: f32[9,128,128], index: 2, kind: input, shape index: {}]   ;;  %s20986_s3 = inlined_call_operand.vmem [shape: f32[1,128], index: 3, kind: input, shape index: {}]   ;;  %s20987_s4 = inlined_call_operand.vmem [shape: f32[1,128], index: 4, kind: input, shape index: {}]   ;;  %s20988_s5 = inlined_call_operand.vmem [shape: f32[1,128], index: 5, kind: input, shape index: {}]   ;;  %s20989_s6 = inlined_call_operand.vmem [shape: f32[1,128], index: 6, kind: input, shape index: {}]   ;;  %s20990_s7 = inlined_call_operand.hbm [shape: f32[2,16,16,128], index: 7, kind: output, shape index: {}]  }
   0x1   :  { %13 = vsyncpa [#allocation7], 0 }
   0x2   :  { %14 = vsyncpa [#allocation5], 0  ;;  %s16247_s24 = smov [#allocation6]   ;;  %s16248_s26 = smov [#allocation3]  }
   0x3   :  { %s32_s25 = sshll.u32 %s16247_s24, 4  ;;  %s20_s27 = sshll.u32 %s16248_s26, 4  ;;  %s33_s25 = int_to_ptr.vmem [resolvable:$true] %s32_s25  ;;  %s16294_s27 = int_to_ptr.vmem [resolvable:$true] %s20_s27 }
   0x4   :  { %s16153_s30 = scalar_lea.hbm %s20984_s1, 18432 }
   0x5   :  { %p16154_p0 = scmp.ne.s32.totalorder %s20984_s1, %s16153_s30  ;;  %p16157_p1 = scmp.lt.u32.totalorder %s16153_s30, %s20984_s1 }
   0x7   :  { %p16159_p2 = pnand %p16157_p1, %p16154_p0 }
   0x9   :  { %16162 = shalt.err (!%p16159_p2)
}
   0xa   :  { %s16163_s12 = scalar_lea.vmem %s33_s25, 18432  ;;  %p16168_p4 = scmp.lt.s32.totalorder %s33_s25, %s33_s25 }
   0xb   :  { %p16164_p3 = scmp.ne.s32.totalorder %s33_s25, %s16163_s12  ;;  %p16169_p5 = scmp.lt.s32.totalorder %s16163_s12, %s16163_s12 }
   0xd   :  { %p16170_p6 = por %p16169_p5, %p16168_p4 }
   0xf   :  { %p16171_p7 = pnand %p16170_p6, %p16164_p3 }
  0x11   :  { %16174 = shalt.err (!%p16171_p7)
}
  0x12   :  { %s16249_s13 = smov 128   ;;  %s16250_s14 = smov 8  }
  0x13   :  { %38 = dma.hbm_to_vmem [thread:$0]  %s20984_s1, 18432, %s33_s25, [#allocation7], %s16249_s13, %s16249_s13, %s16250_s14  }
  0x14   :  { %s16175_s19 = scalar_lea.hbm %s20983_s0, 8192 }
  0x15   :  { %p16176_p8 = scmp.ne.s32.totalorder %s20983_s0, %s16175_s19  ;;  %p16179_p9 = scmp.lt.u32.totalorder %s16175_s19, %s20983_s0 }
  0x17   :  { %p16181_p10 = pnand %p16179_p9, %p16176_p8 }
  0x19   :  { %16184 = shalt.err (!%p16181_p10)
}
  0x1a   :  { %s16185_s24 = scalar_lea.vmem %s16294_s27, 8192  ;;  %p16190_p12 = scmp.lt.s32.totalorder %s16294_s27, %s16294_s27 }
  0x1b   :  { %p16186_p11 = scmp.ne.s32.totalorder %s16294_s27, %s16185_s24  ;;  %p16191_p13 = scmp.lt.s32.totalorder %s16185_s24, %s16185_s24 }
  0x1d   :  { %p16192_p0 = por %p16191_p13, %p16190_p12 }
  0x1f   :  { %p16193_p1 = pnand %p16192_p0, %p16186_p11 }
  0x21   :  { %16196 = shalt.err (!%p16193_p1)
}
  0x22   :  { %26 = dma.hbm_to_vmem [thread:$0]  %s20983_s0, 8192, %s16294_s27, [#allocation4], %s16249_s13, %s16249_s13, %s16250_s14  }
  0x23   :  { %s16251_s26 = smov [#allocation8]   ;;  %s16197_s8 = scalar_lea.hbm %s20985_s2, 18432 }
  0x24   :  { %s44_s28 = sshll.u32 %s16251_s26, 4  ;;  %p16198_p2 = scmp.ne.s32.totalorder %s20985_s2, %s16197_s8  ;;  %s45_s28 = int_to_ptr.vmem [resolvable:$true] %s44_s28 }
  0x25   :  { %p16201_p3 = scmp.lt.u32.totalorder %s16197_s8, %s20985_s2 }
  0x27   :  { %p16203_p4 = pnand %p16201_p3, %p16198_p2 }
  0x29   :  { %16206 = shalt.err (!%p16203_p4)
}
  0x2a   :  { %s16207_s15 = scalar_lea.vmem %s45_s28, 18432  ;;  %p16212_p6 = scmp.lt.s32.totalorder %s45_s28, %s45_s28 }
  0x2b   :  { %p16208_p5 = scmp.ne.s32.totalorder %s45_s28, %s16207_s15  ;;  %p16213_p7 = scmp.lt.s32.totalorder %s16207_s15, %s16207_s15 }
  0x2d   :  { %p16214_p8 = por %p16213_p7, %p16212_p6 }
  0x2f   :  { %p16215_p9 = pnand %p16214_p8, %p16208_p5 }
  0x31   :  { %16218 = shalt.err (!%p16215_p9)
}
  0x32   :  { %50 = dma.hbm_to_vmem [thread:$0]  %s20985_s2, 18432, %s45_s28, [#allocation7], %s16249_s13, %s16249_s13, %s16250_s14  }
  0x33   :  { %16241 = dma.done.wait [#allocation4], 8192  }
  0x34   :  { %16242 = vsyncadd [#allocation4], 4294959104 }
  0x35   :  { %16243 = dma.done.wait [#allocation7], 36864  }
  0x36   :  { %16244 = vsyncadd [#allocation7], 4294930432  ;;  %v20991_v0 = vmov 0.0   ;;  %v427_v1 = vld [vmem:[#allocation6 + $0x80] sm:$0xff]  ;;  %v428_v2 = vld [vmem:[#allocation6 + $0x88] sm:$0xff] }
  0x37   :  { %68 = vst [vmem:[#allocation2] sm:$0xff] %v20991_v0  ;;  %69 = vst [vmem:[#allocation2 + $0x8] sm:$0xff] %v20991_v0  ;;  %v429_v3 = vld [vmem:[#allocation6 + $0x90] sm:$0xff]  ;;  %v14539_v4 = vpack.c.bf16 %v428_v2, %v427_v1  ;;  %v430_v5 = vld [vmem:[#allocation6 + $0x98] sm:$0xff] }
  0x38   :  { %70 = vst [vmem:[#allocation2 + $0x10] sm:$0x3] %v20991_v0  ;;  %71 = vst [vmem:[#allocation2 + $0x1b0] sm:$0xff] %v20991_v0  ;;  %v14543_v6 = vpack.c.bf16 %v430_v5, %v429_v3  ;;  %v431_v7 = vld [vmem:[#allocation6 + $0xa0] sm:$0xff]  ;;  %v432_v8 = vld [vmem:[#allocation6 + $0xa8] sm:$0xff] }
  0x39   :  { %72 = vst [vmem:[#allocation2 + $0x1b8] sm:$0xff] %v20991_v0  ;;  %73 = vst [vmem:[#allocation2 + $0x1c0] sm:$0x3] %v20991_v0  ;;  %14540 = vmatprep.subr.bf16.mxu0 %v14539_v4  ;;  %v14547_v9 = vpack.c.bf16 %v432_v8, %v431_v7  ;;  %v433_v11 = vld [vmem:[#allocation6 + $0xb0] sm:$0xff]  ;;  %v434_v12 = vld [vmem:[#allocation6 + $0xb8] sm:$0xff] }
  0x3a   :  { %75 = vst [vmem:[#allocation2 + $0x198] sm:$0xff] %v20991_v0  ;;  %76 = vst [vmem:[#allocation2 + $0x1a0] sm:$0xff] %v20991_v0  ;;  %14542 = vmatpush3.bf16.msra.mxu0 %v14539_v4  ;;  %v16430_v13 = vld [vmem:[#allocation3] sm:$0xff]  ;;  %v16433_v14 = vld [vmem:[#allocation3 + $0x8] sm:$0xff]  ;;  %v14551_v20 = vpack.c.bf16 %v434_v12, %v433_v11 }
  0x3b   :  { %77 = vst [vmem:[#allocation2 + $0x1a8] sm:$0x3] %v20991_v0  ;;  %78 = vst [vmem:[#allocation2 + $0x348] sm:$0xff] %v20991_v0  ;;  %14544 = vmatprep.subr.bf16.mxu0 %v14543_v6  ;;  %v16435_v15 = vld [vmem:[#allocation3 + $0x10] sm:$0xff]  ;;  %v16437_v16 = vld [vmem:[#allocation3 + $0x18] sm:$0xff] }
  0x3c   :  { %79 = vst [vmem:[#allocation2 + $0x350] sm:$0xff] %v20991_v0  ;;  %80 = vst [vmem:[#allocation2 + $0x358] sm:$0x3] %v20991_v0  ;;  %v16442_v17 = vld [vmem:[#allocation3 + $0x20] sm:$0xff]  ;;  %v16444_v18 = vld [vmem:[#allocation3 + $0x28] sm:$0xff] }
  0x3d   :  { %82 = vst [vmem:[#allocation2 + $0x18] sm:$0x1] %v20991_v0  ;;  %83 = vst [vmem:[#allocation2 + $0x30] sm:$0x1] %v20991_v0  ;;  %v16446_v19 = vld [vmem:[#allocation3 + $0x30] sm:$0xff]  ;;  %v435_v21 = vld [vmem:[#allocation6 + $0xc0] sm:$0xff] }
  0x3e   :  { %84 = vst [vmem:[#allocation2 + $0x48] sm:$0x1] %v20991_v0  ;;  %85 = vst [vmem:[#allocation2 + $0x60] sm:$0x1] %v20991_v0  ;;  %v362_v10 = vld [vmem:[#allocation2 + $0x1] sm:$0xff]  ;;  %14546 = vmatpush3.bf16.msra.mxu0 %v14543_v6  ;;  %v16451_v23 = vld [vmem:[#allocation3 + $0x38] sm:$0xff] }
  0x3f   :  { %86 = vst [vmem:[#allocation2 + $0x78] sm:$0x1] %v20991_v0  ;;  %87 = vst [vmem:[#allocation2 + $0x90] sm:$0x1] %v20991_v0  ;;  %12267 = vmatprep.mubr.f32.mxu0 %v362_v10  ;;  %14548 = vmatprep.subr.bf16.mxu0 %v14547_v9  ;;  %v436_v22 = vld [vmem:[#allocation6 + $0xc8] sm:$0xff]  ;;  %v16454_v24 = vld [vmem:[#allocation3 + $0x40] sm:$0xff] }
  0x40   :  { %88 = vst [vmem:[#allocation2 + $0xa8] sm:$0x1] %v20991_v0  ;;  %89 = vst [vmem:[#allocation2 + $0xc0] sm:$0x1] %v20991_v0  ;;  %v16456_v25 = vld [vmem:[#allocation3 + $0x48] sm:$0xff]  ;;  %v16458_v26 = vld [vmem:[#allocation3 + $0x50] sm:$0xff]  ;;  %v14555_v33 = vpack.c.bf16 %v436_v22, %v435_v21 }
  0x41   :  { %90 = vst [vmem:[#allocation2 + $0xd8] sm:$0x1] %v20991_v0  ;;  %91 = vst [vmem:[#allocation2 + $0xf0] sm:$0x1] %v20991_v0  ;;  %v16463_v27 = vld [vmem:[#allocation3 + $0x58] sm:$0xff]  ;;  %v16465_v28 = vld [vmem:[#allocation3 + $0x60] sm:$0xff] }
  0x42   :  { %92 = vst [vmem:[#allocation2 + $0x108] sm:$0x1] %v20991_v0  ;;  %93 = vst [vmem:[#allocation2 + $0x120] sm:$0x1] %v20991_v0  ;;  %v16467_v29 = vld [vmem:[#allocation3 + $0x68] sm:$0xff]  ;;  %14550 = vmatpush3.bf16.msra.mxu0 %v14547_v9  ;;  %v437_v30 = vld [vmem:[#allocation6 + $0xd0] sm:$0xff] }
  0x43   :  { %94 = vst [vmem:[#allocation2 + $0x138] sm:$0x1] %v20991_v0  ;;  %95 = vst [vmem:[#allocation2 + $0x150] sm:$0x1] %v20991_v0  ;;  %v16472_v31 = vld [vmem:[#allocation3 + $0x70] sm:$0xff]  ;;  %v16474_v32 = vld [vmem:[#allocation3 + $0x78] sm:$0xff]  ;;  %14552 = vmatprep.subr.bf16.mxu0 %v14551_v20 }
  0x44   :  { %96 = vst [vmem:[#allocation2 + $0x168] sm:$0x1] %v20991_v0  ;;  %97 = vst [vmem:[#allocation2 + $0x180] sm:$0x1] %v20991_v0  ;;  %v438_v34 = vld [vmem:[#allocation6 + $0xd8] sm:$0xff]  ;;  %v16478_v35 = vld [vmem:[#allocation3 + $0x80] sm:$0xff] }
  0x45   :  { %100 = vst [vmem:[#allocation2 + $0x1c8] sm:$0x1] %v20991_v0  ;;  %101 = vst [vmem:[#allocation2 + $0x1e0] sm:$0x1] %v20991_v0  ;;  %v16480_v36 = vld [vmem:[#allocation3 + $0x88] sm:$0xff]  ;;  %v16484_v37 = vld [vmem:[#allocation3 + $0x90] sm:$0xff]  ;;  %v14559_v45 = vpack.c.bf16 %v438_v34, %v437_v30 }
  0x46   :  { %102 = vst [vmem:[#allocation2 + $0x1f8] sm:$0x1] %v20991_v0  ;;  %103 = vst [vmem:[#allocation2 + $0x210] sm:$0x1] %v20991_v0  ;;  %v16486_v38 = vld [vmem:[#allocation3 + $0x98] sm:$0xff]  ;;  %v16488_v39 = vld [vmem:[#allocation3 + $0xa0] sm:$0xff]  ;;  %14554 = vmatpush3.bf16.msra.mxu0 %v14551_v20 }
  0x47   :  { %104 = vst [vmem:[#allocation2 + $0x228] sm:$0x1] %v20991_v0  ;;  %105 = vst [vmem:[#allocation2 + $0x240] sm:$0x1] %v20991_v0  ;;  %v16493_v40 = vld [vmem:[#allocation3 + $0xa8] sm:$0xff]  ;;  %v16495_v41 = vld [vmem:[#allocation3 + $0xb0] sm:$0xff]  ;;  %14556 = vmatprep.subr.bf16.mxu0 %v14555_v33 }
  0x48   :  { %106 = vst [vmem:[#allocation2 + $0x258] sm:$0x1] %v20991_v0  ;;  %107 = vst [vmem:[#allocation2 + $0x270] sm:$0x1] %v20991_v0  ;;  %v16497_v42 = vld [vmem:[#allocation3 + $0xb8] sm:$0xff]  ;;  %v439_v43 = vld [vmem:[#allocation6 + $0xe0] sm:$0xff] }
  0x49   :  { %108 = vst [vmem:[#allocation2 + $0x288] sm:$0x1] %v20991_v0  ;;  %109 = vst [vmem:[#allocation2 + $0x2a0] sm:$0x1] %v20991_v0  ;;  %v16502_v44 = vld [vmem:[#allocation3 + $0xc0] sm:$0xff]  ;;  %v16505_v46 = vld [vmem:[#allocation3 + $0xc8] sm:$0xff] }
  0x4a   :  { %110 = vst [vmem:[#allocation2 + $0x2b8] sm:$0x1] %v20991_v0  ;;  %111 = vst [vmem:[#allocation2 + $0x2d0] sm:$0x1] %v20991_v0  ;;  %v16507_v47 = vld [vmem:[#allocation3 + $0xd0] sm:$0xff]  ;;  %v16509_v48 = vld [vmem:[#allocation3 + $0xd8] sm:$0xff]  ;;  %14558 = vmatpush3.bf16.msra.mxu0 %v14555_v33 }
  0x4b   :  { %112 = vst [vmem:[#allocation2 + $0x2e8] sm:$0x1] %v20991_v0  ;;  %113 = vst [vmem:[#allocation2 + $0x300] sm:$0x1] %v20991_v0  ;;  %v440_v49 = vld [vmem:[#allocation6 + $0xe8] sm:$0xff]  ;;  %v16514_v50 = vld [vmem:[#allocation3 + $0xe0] sm:$0xff]  ;;  %14560 = vmatprep.subr.bf16.mxu0 %v14559_v45 }
  0x4c   :  { %114 = vst [vmem:[#allocation2 + $0x318] sm:$0x1] %v20991_v0  ;;  %115 = vst [vmem:[#allocation2 + $0x330] sm:$0x1] %v20991_v0  ;;  %v16516_v51 = vld [vmem:[#allocation3 + $0xe8] sm:$0xff]  ;;  %v441_v52 = vld [vmem:[#allocation6 + $0xf0] sm:$0xff]  ;;  %v14563_v56 = vpack.c.bf16 %v440_v49, %v439_v43 }
  0x4d   :  { %118 = vst [vmem:[#allocation2 + $0x29] sm:$0x1] %v20991_v0  ;;  %119 = vst [vmem:[#allocation2 + $0x41] sm:$0x1] %v20991_v0  ;;  %v16520_v53 = vld [vmem:[#allocation3 + $0x100] sm:$0xff]  ;;  %v16522_v54 = vld [vmem:[#allocation3 + $0x108] sm:$0xff] }
  0x4e   :  { %120 = vst [vmem:[#allocation2 + $0x59] sm:$0x1] %v20991_v0  ;;  %121 = vst [vmem:[#allocation2 + $0x71] sm:$0x1] %v20991_v0  ;;  %v16524_v55 = vld [vmem:[#allocation3 + $0x110] sm:$0xff]  ;;  %v16529_v57 = vld [vmem:[#allocation3 + $0x118] sm:$0xff]  ;;  %14562 = vmatpush3.bf16.msra.mxu0 %v14559_v45 }
  0x4f   :  { %122 = vst [vmem:[#allocation2 + $0x89] sm:$0x1] %v20991_v0  ;;  %123 = vst [vmem:[#allocation2 + $0xa1] sm:$0x1] %v20991_v0  ;;  %v16531_v58 = vld [vmem:[#allocation3 + $0x120] sm:$0xff]  ;;  %v16533_v59 = vld [vmem:[#allocation3 + $0x128] sm:$0xff]  ;;  %14564 = vmatprep.subr.bf16.mxu0 %v14563_v56 }
  0x50   :  { %124 = vst [vmem:[#allocation2 + $0xb9] sm:$0x1] %v20991_v0  ;;  %125 = vst [vmem:[#allocation2 + $0xd1] sm:$0x1] %v20991_v0  ;;  %v442_v60 = vld [vmem:[#allocation6 + $0xf8] sm:$0xff]  ;;  %v16538_v61 = vld [vmem:[#allocation3 + $0x130] sm:$0xff] }
  0x51   :  { %126 = vst [vmem:[#allocation2 + $0xe9] sm:$0x1] %v20991_v0  ;;  %127 = vst [vmem:[#allocation2 + $0x101] sm:$0x1] %v20991_v0  ;;  %v16540_v62 = vld [vmem:[#allocation3 + $0x138] sm:$0xff]  ;;  %v16544_v63 = vld [vmem:[#allocation3 + $0x140] sm:$0xff]  ;;  %v14567_v5 = vpack.c.bf16 %v442_v60, %v441_v52 }
  0x52   :  { %128 = vst [vmem:[#allocation2 + $0x119] sm:$0x1] %v20991_v0  ;;  %129 = vst [vmem:[#allocation2 + $0x131] sm:$0x1] %v20991_v0  ;;  %v16546_v1 = vld [vmem:[#allocation3 + $0x148] sm:$0xff]  ;;  %v16550_v2 = vld [vmem:[#allocation3 + $0x150] sm:$0xff]  ;;  %14566 = vmatpush3.bf16.msra.mxu0 %v14563_v56 }
  0x53   :  { %130 = vst [vmem:[#allocation2 + $0x149] sm:$0x1] %v20991_v0  ;;  %131 = vst [vmem:[#allocation2 + $0x161] sm:$0x1] %v20991_v0  ;;  %v16552_v3 = vld [vmem:[#allocation3 + $0x158] sm:$0xff]  ;;  %v16554_v4 = vld [vmem:[#allocation3 + $0x160] sm:$0xff]  ;;  %14568 = vmatprep.subr.bf16.mxu0 %v14567_v5 }
  0x54   :  { %132 = vst [vmem:[#allocation2 + $0x179] sm:$0x1] %v20991_v0  ;;  %133 = vst [vmem:[#allocation2 + $0x191] sm:$0x1] %v20991_v0  ;;  %v16559_v6 = vld [vmem:[#allocation3 + $0x168] sm:$0xff]  ;;  %v16561_v7 = vld [vmem:[#allocation3 + $0x170] sm:$0xff] }
  0x55   :  { %136 = vst [vmem:[#allocation2 + $0x1d9] sm:$0x1] %v20991_v0  ;;  %137 = vst [vmem:[#allocation2 + $0x1f1] sm:$0x1] %v20991_v0  ;;  %v16563_v8 = vld [vmem:[#allocation3 + $0x178] sm:$0xff]  ;;  %v346_v9 = vld [vmem:[#allocation6] sm:$0xff] }
  0x56   :  { %138 = vst [vmem:[#allocation2 + $0x209] sm:$0x1] %v20991_v0  ;;  %139 = vst [vmem:[#allocation2 + $0x221] sm:$0x1] %v20991_v0  ;;  %v347_v10 = vld [vmem:[#allocation6 + $0x8] sm:$0xff]  ;;  %v16568_v11 = vld [vmem:[#allocation3 + $0x180] sm:$0xff]  ;;  %14570 = vmatpush3.bf16.msra.mxu0 %v14567_v5 }
  0x57   :  { %140 = vst [vmem:[#allocation2 + $0x239] sm:$0x1] %v20991_v0  ;;  %141 = vst [vmem:[#allocation2 + $0x251] sm:$0x1] %v20991_v0  ;;  %v16571_v12 = vld [vmem:[#allocation3 + $0x188] sm:$0xff]  ;;  %v16573_v20 = vld [vmem:[#allocation3 + $0x190] sm:$0xff]  ;;  %v14571_v34 = vpack.c.bf16 %v347_v10, %v346_v9 }
  0x58   :  { %142 = vst [vmem:[#allocation2 + $0x269] sm:$0x1] %v20991_v0  ;;  %143 = vst [vmem:[#allocation2 + $0x281] sm:$0x1] %v20991_v0  ;;  %v16575_v21 = vld [vmem:[#allocation3 + $0x198] sm:$0xff]  ;;  %v16580_v22 = vld [vmem:[#allocation3 + $0x1a0] sm:$0xff] }
  0x59   :  { %144 = vst [vmem:[#allocation2 + $0x299] sm:$0x1] %v20991_v0  ;;  %145 = vst [vmem:[#allocation2 + $0x2b1] sm:$0x1] %v20991_v0  ;;  %v16582_v30 = vld [vmem:[#allocation3 + $0x1a8] sm:$0xff]  ;;  %v16584_v33 = vld [vmem:[#allocation3 + $0x1b0] sm:$0xff]  ;;  %14572 = vmatprep.subr.bf16.mxu0 %v14571_v34 }
  0x5a   :  { %146 = vst [vmem:[#allocation2 + $0x2c9] sm:$0x1] %v20991_v0  ;;  %147 = vst [vmem:[#allocation2 + $0x2e1] sm:$0x1] %v20991_v0  ;;  %v348_v43 = vld [vmem:[#allocation6 + $0x10] sm:$0xff]  ;;  %v349_v45 = vld [vmem:[#allocation6 + $0x18] sm:$0xff] }
  0x5b   :  { %148 = vst [vmem:[#allocation2 + $0x2f9] sm:$0x1] %v20991_v0  ;;  %149 = vst [vmem:[#allocation2 + $0x311] sm:$0x1] %v20991_v0  ;;  %v16589_v49 = vld [vmem:[#allocation3 + $0x1b8] sm:$0xff]  ;;  %v16592_v52 = vld [vmem:[#allocation3 + $0x1c0] sm:$0xff] }
  0x5c   :  { %150 = vst [vmem:[#allocation2 + $0x329] sm:$0x1] %v20991_v0  ;;  %151 = vst [vmem:[#allocation2 + $0x341] sm:$0x1] %v20991_v0  ;;  %v16594_v56 = vld [vmem:[#allocation3 + $0x1c8] sm:$0xff]  ;;  %v16596_v60 = vld [vmem:[#allocation3 + $0x1d0] sm:$0xff] }
  0x5d   :  { %81 = vst [vmem:[#allocation2] sm:$0x1] %v20991_v0  ;;  %98 = vst [vmem:[#allocation2 + $0x198] sm:$0x1] %v20991_v0  ;;  %v16601_v9 = vld [vmem:[#allocation3 + $0x1d8] sm:$0xff]  ;;  %v16603_v10 = vld [vmem:[#allocation3 + $0x1e0] sm:$0xff] }
  0x5e   :  { %99 = vst [vmem:[#allocation2 + $0x1b0] sm:$0x1] %v20991_v0  ;;  %116 = vst [vmem:[#allocation2 + $0x348] sm:$0x1] %v20991_v0 }
  0x5f   :  { %117 = vst [vmem:[#allocation2 + $0x11] sm:$0x1] %v20991_v0  ;;  %134 = vst [vmem:[#allocation2 + $0x1a9] sm:$0x1] %v20991_v0 }
  0x60   :  { %135 = vst [vmem:[#allocation2 + $0x1c1] sm:$0x1] %v20991_v0  ;;  %152 = vst [vmem:[#allocation2 + $0x359] sm:$0x1] %v20991_v0  ;;  %v16605_v0 = vld [vmem:[#allocation3 + $0x1e8] sm:$0xff] }
  0x61   :  { %218 = vst [vmem:[#allocation2 + $0x19] sm:$0xff] %v16430_v13  ;;  %219 = vst [vmem:[#allocation2 + $0x21] sm:$0xff] %v16433_v14 }
  0x62   :  { %220 = vst [vmem:[#allocation2 + $0x31] sm:$0xff] %v16435_v15  ;;  %221 = vst [vmem:[#allocation2 + $0x39] sm:$0xff] %v16437_v16 }
  0x63   :  { %222 = vst [vmem:[#allocation2 + $0x49] sm:$0xff] %v16442_v17  ;;  %223 = vst [vmem:[#allocation2 + $0x51] sm:$0xff] %v16444_v18 }
  0x64   :  { %224 = vst [vmem:[#allocation2 + $0x61] sm:$0xff] %v16446_v19  ;;  %225 = vst [vmem:[#allocation2 + $0x69] sm:$0xff] %v16451_v23 }
  0x65   :  { %226 = vst [vmem:[#allocation2 + $0x79] sm:$0xff] %v16454_v24  ;;  %227 = vst [vmem:[#allocation2 + $0x81] sm:$0xff] %v16456_v25 }
  0x66   :  { %228 = vst [vmem:[#allocation2 + $0x91] sm:$0xff] %v16458_v26  ;;  %229 = vst [vmem:[#allocation2 + $0x99] sm:$0xff] %v16463_v27 }
  0x67   :  { %230 = vst [vmem:[#allocation2 + $0xa9] sm:$0xff] %v16465_v28  ;;  %231 = vst [vmem:[#allocation2 + $0xb1] sm:$0xff] %v16467_v29 }
  0x68   :  { %232 = vst [vmem:[#allocation2 + $0xc1] sm:$0xff] %v16472_v31  ;;  %233 = vst [vmem:[#allocation2 + $0xc9] sm:$0xff] %v16474_v32 }
  0x69   :  { %234 = vst [vmem:[#allocation2 + $0xd9] sm:$0xff] %v16478_v35  ;;  %235 = vst [vmem:[#allocation2 + $0xe1] sm:$0xff] %v16480_v36 }
  0x6a   :  { %236 = vst [vmem:[#allocation2 + $0xf1] sm:$0xff] %v16484_v37  ;;  %237 = vst [vmem:[#allocation2 + $0xf9] sm:$0xff] %v16486_v38 }
  0x6b   :  { %238 = vst [vmem:[#allocation2 + $0x109] sm:$0xff] %v16488_v39  ;;  %239 = vst [vmem:[#allocation2 + $0x111] sm:$0xff] %v16493_v40 }
  0x6c   :  { %240 = vst [vmem:[#allocation2 + $0x121] sm:$0xff] %v16495_v41  ;;  %241 = vst [vmem:[#allocation2 + $0x129] sm:$0xff] %v16497_v42 }
  0x6d   :  { %242 = vst [vmem:[#allocation2 + $0x139] sm:$0xff] %v16502_v44  ;;  %243 = vst [vmem:[#allocation2 + $0x141] sm:$0xff] %v16505_v46 }
  0x6e   :  { %244 = vst [vmem:[#allocation2 + $0x151] sm:$0xff] %v16507_v47  ;;  %245 = vst [vmem:[#allocation2 + $0x159] sm:$0xff] %v16509_v48 }
  0x6f   :  { %246 = vst [vmem:[#allocation2 + $0x169] sm:$0xff] %v16514_v50  ;;  %247 = vst [vmem:[#allocation2 + $0x171] sm:$0xff] %v16516_v51 }
  0x70   :  { %250 = vst [vmem:[#allocation2 + $0x1c9] sm:$0xff] %v16520_v53  ;;  %251 = vst [vmem:[#allocation2 + $0x1d1] sm:$0xff] %v16522_v54 }
  0x71   :  { %252 = vst [vmem:[#allocation2 + $0x1e1] sm:$0xff] %v16524_v55  ;;  %253 = vst [vmem:[#allocation2 + $0x1e9] sm:$0xff] %v16529_v57 }
  0x72   :  { %254 = vst [vmem:[#allocation2 + $0x1f9] sm:$0xff] %v16531_v58  ;;  %255 = vst [vmem:[#allocation2 + $0x201] sm:$0xff] %v16533_v59 }
  0x73   :  { %256 = vst [vmem:[#allocation2 + $0x211] sm:$0xff] %v16538_v61  ;;  %257 = vst [vmem:[#allocation2 + $0x219] sm:$0xff] %v16540_v62 }
  0x74   :  { %258 = vst [vmem:[#allocation2 + $0x229] sm:$0xff] %v16544_v63  ;;  %259 = vst [vmem:[#allocation2 + $0x231] sm:$0xff] %v16546_v1 }
  0x75   :  { %260 = vst [vmem:[#allocation2 + $0x241] sm:$0xff] %v16550_v2  ;;  %261 = vst [vmem:[#allocation2 + $0x249] sm:$0xff] %v16552_v3 }
  0x76   :  { %262 = vst [vmem:[#allocation2 + $0x259] sm:$0xff] %v16554_v4  ;;  %263 = vst [vmem:[#allocation2 + $0x261] sm:$0xff] %v16559_v6 }
  0x77   :  { %264 = vst [vmem:[#allocation2 + $0x271] sm:$0xff] %v16561_v7  ;;  %265 = vst [vmem:[#allocation2 + $0x279] sm:$0xff] %v16563_v8 }
  0x78   :  { %266 = vst [vmem:[#allocation2 + $0x289] sm:$0xff] %v16568_v11  ;;  %267 = vst [vmem:[#allocation2 + $0x291] sm:$0xff] %v16571_v12 }
  0x79   :  { %268 = vst [vmem:[#allocation2 + $0x2a1] sm:$0xff] %v16573_v20  ;;  %269 = vst [vmem:[#allocation2 + $0x2a9] sm:$0xff] %v16575_v21 }
  0x7a   :  { %21294 = vst [vmem:[#allocation13_spill] sm:$0xff] %v16580_v22  ;;  %21295 = vst [vmem:[#allocation14_spill] sm:$0xff] %v16582_v30 }
  0x7b   :  { %21296 = vst [vmem:[#allocation15_spill] sm:$0xff] %v16584_v33  ;;  %270 = vst [vmem:[#allocation2 + $0x2b9] sm:$0xff] %v16580_v22  ;;  %v353_v22 = vld [vmem:[#allocation6 + $0x38] sm:$0xff] }
  0x7c   :  { %271 = vst [vmem:[#allocation2 + $0x2c1] sm:$0xff] %v16582_v30  ;;  %272 = vst [vmem:[#allocation2 + $0x2d1] sm:$0xff] %v16584_v33  ;;  %v350_v33 = vld [vmem:[#allocation6 + $0x20] sm:$0xff]  ;;  %v352_v30 = vld [vmem:[#allocation6 + $0x30] sm:$0xff] }
  0x7d   :  { %21297 = vst [vmem:[#allocation16_spill] sm:$0xff] %v16589_v49  ;;  %273 = vst [vmem:[#allocation2 + $0x2d9] sm:$0xff] %v16589_v49  ;;  %v363_v49 = vld [vmem:[#allocation2 + $0x9] sm:$0xff]  ;;  %v14583_v5 = vpack.c.bf16 %v353_v22, %v352_v30 }
  0x7e   :  { %21298 = vst [vmem:[#allocation17_spill] sm:$0xff] %v16592_v52  ;;  %21299 = vst [vmem:[#allocation18_spill] sm:$0xff] %v16594_v56  ;;  %12268 = vmatmul.mubr.f32.vlgmr.msra.gmra.mrb[0].mxu0 %v363_v49  ;;  %v359_v22 = vld [vmem:[#allocation6 + $0x68] sm:$0xff]  ;;  %v16704_v49 = vld [vmem:[#allocation2 + $0x98] sm:$0xff] }
  0x7f   :  { %21300 = vst [vmem:[#allocation19_spill] sm:$0xff] %v16596_v60  ;;  %274 = vst [vmem:[#allocation2 + $0x2e9] sm:$0xff] %v16592_v52  ;;  %v14575_v52 = vpack.c.bf16 %v349_v45, %v348_v43  ;;  %14574 = vmatpush3.bf16.msra.mxu0 %v14571_v34  ;;  %12270 = vmatprep.mubr.f32.mxu0 %v16430_v13  ;;  %v356_v34 = vld [vmem:[#allocation6 + $0x50] sm:$0xff]  ;;  %v1279_v30 = vld [vmem:[#allocation6 + $0x108] sm:$0xff] }
  0x80   :  { %275 = vst [vmem:[#allocation2 + $0x2f1] sm:$0xff] %v16594_v56  ;;  %276 = vst [vmem:[#allocation2 + $0x301] sm:$0xff] %v16596_v60  ;;  %v351_v56 = vld [vmem:[#allocation6 + $0x28] sm:$0xff]  ;;  %v1292_v43 = vld [vmem:[#allocation6 + $0x170] sm:$0xff] }
  0x81   :  { %21301 = vst [vmem:[#allocation20_spill] sm:$0xff] %v16603_v10  ;;  %21302 = vst [vmem:[#allocation21_spill] sm:$0xff] %v16605_v0  ;;  %14576 = vmatprep.subr.bf16.mxu0 %v14575_v52  ;;  %v14579_v60 = vpack.c.bf16 %v351_v56, %v350_v33  ;;  %v357_v33 = vld [vmem:[#allocation6 + $0x58] sm:$0xff] }
  0x82   :  { %277 = vst [vmem:[#allocation2 + $0x309] sm:$0xff] %v16601_v9  ;;  %278 = vst [vmem:[#allocation2 + $0x319] sm:$0xff] %v16603_v10  ;;  %12271 = vmatmul.mubr.f32.gmra.mrb[2].mxu0 %v16433_v14  ;;  %v355_v10 = vld [vmem:[#allocation6 + $0x48] sm:$0xff]  ;;  %v14591_v14 = vpack.c.bf16 %v357_v33, %v356_v34  ;;  %v1293_v45 = vld [vmem:[#allocation6 + $0x178] sm:$0xff] }
  0x83   :  { %279 = vst [vmem:[#allocation2 + $0x321] sm:$0xff] %v16605_v0  ;;  %12273 = vmatprep.mubr.f32.mxu0 %v16435_v15  ;;  %14578 = vmatpush3.bf16.msra.mxu0 %v14575_v52  ;;  %v354_v0 = vld [vmem:[#allocation6 + $0x40] sm:$0xff]  ;;  %v16706_v52 = vld [vmem:[#allocation2 + $0xa8] sm:$0xff]  ;;  %v14631_v56 = vpack.c.bf16 %v1293_v45, %v1292_v43  ;;  %v16720_v33 = vld [vmem:[#allocation2 + $0xd8] sm:$0xff] }
  0x84   :  { %14580 = vmatprep.subr.bf16.mxu0 %v14579_v60  ;;  %v14587_v13 = vpack.c.bf16 %v355_v10, %v354_v0  ;;  %v358_v15 = vld [vmem:[#allocation6 + $0x60] sm:$0xff]  ;;  %v361_v0 = vld [vmem:[#allocation6 + $0x78] sm:$0xff]  ;;  %v16710_v10 = vld [vmem:[#allocation2 + $0xb0] sm:$0xff] }
  0x85   :  { %v16718_v34 = vld [vmem:[#allocation2 + $0xc8] sm:$0xff] }
  0x86   :  { %12274 = vmatmul.mubr.f32.gmra.mrb[4].mxu0 %v16437_v16  ;;  %v14595_v16 = vpack.c.bf16 %v359_v22, %v358_v15  ;;  %v16727_v15 = vld [vmem:[#allocation2 + $0xf0] sm:$0xff]  ;;  %v16731_v22 = vld [vmem:[#allocation2 + $0xf8] sm:$0xff] }
  0x87   :  { %12276 = vmatprep.mubr.f32.mxu0 %v16442_v17  ;;  %14582 = vmatpush3.bf16.msra.mxu0 %v14579_v60  ;;  %v360_v17 = vld [vmem:[#allocation6 + $0x70] sm:$0xff]  ;;  %v1808_v60 = vld [vmem:[#allocation6 + $0x180] sm:$0xff] }
  0x88   :  { %14584 = vmatprep.subr.bf16.mxu0 %v14583_v5 }
  0x89   :  { %v16846_v43 = vld [vmem:[#allocation2 + $0x308] sm:$0xff]  ;;  %v16848_v45 = vld [vmem:[#allocation2 + $0x318] sm:$0xff] }
  0x8a   :  { %12277 = vmatmul.mubr.f32.gmra.mrb[6].mxu0 %v16444_v18  ;;  %v14599_v18 = vpack.c.bf16 %v361_v0, %v360_v17  ;;  %v16737_v17 = vld [vmem:[#allocation2 + $0x110] sm:$0xff]  ;;  %v16739_v0 = vld [vmem:[#allocation2 + $0x120] sm:$0xff] }
  0x8b   :  { %12279 = vmatprep.mubr.f32.mxu0 %v16446_v19  ;;  %14586 = vmatpush3.bf16.msra.mxu0 %v14583_v5  ;;  %v1278_v19 = vld [vmem:[#allocation6 + $0x100] sm:$0xff] }
  0x8c   :  { %14588 = vmatprep.subr.bf16.mxu0 %v14587_v13  ;;  %v16712_v5 = vld [vmem:[#allocation2 + $0xc0] sm:$0xff] }
  0x8e   :  { %12280 = vmatmul.mubr.f32.gmra.mrb[8].mxu0 %v16451_v23  ;;  %v14603_v23 = vpack.c.bf16 %v1279_v30, %v1278_v19  ;;  %v16745_v19 = vld [vmem:[#allocation2 + $0x138] sm:$0xff]  ;;  %v16749_v30 = vld [vmem:[#allocation2 + $0x140] sm:$0xff] }
  0x8f   :  { %12282 = vmatprep.mubr.f32.mxu0 %v16454_v24  ;;  %14590 = vmatpush3.bf16.msra.mxu0 %v14587_v13  ;;  %v394_v24 = vld [vmem:[#allocation2 + $0x1b1] sm:$0xff] }
  0x90   :  { %14592 = vmatprep.subr.bf16.mxu0 %v14591_v14 }
  0x92   :  { %12283 = vmatmul.mubr.f32.gmra.mrb[10].mxu0 %v16456_v25  ;;  %v395_v25 = vld [vmem:[#allocation2 + $0x1b9] sm:$0xff] }
  0x93   :  { %12285 = vmatprep.mubr.f32.mxu0 %v16458_v26  ;;  %14594 = vmatpush3.bf16.msra.mxu0 %v14591_v14  ;;  %v21303_v26 = vld [vmem:[#allocation13_spill] sm:$0xff] }
  0x94   :  { %14596 = vmatprep.subr.bf16.mxu0 %v14595_v16  ;;  %v16725_v14 = vld [vmem:[#allocation2 + $0xe0] sm:$0xff] }
  0x96   :  { %12286 = vmatmul.mubr.f32.gmra.mrb[12].mxu0 %v16463_v27  ;;  %v21304_v27 = vld [vmem:[#allocation14_spill] sm:$0xff] }
  0x97   :  { %12288 = vmatprep.mubr.f32.mxu0 %v16465_v28  ;;  %14598 = vmatpush3.bf16.msra.mxu0 %v14595_v16  ;;  %v21305_v28 = vld [vmem:[#allocation15_spill] sm:$0xff]  ;;  %v16733_v16 = vld [vmem:[#allocation2 + $0x108] sm:$0xff] }
  0x98   :  { %14600 = vmatprep.subr.bf16.mxu0 %v14599_v18 }
  0x9a   :  { %12289 = vmatmul.mubr.f32.gmra.mrb[14].mxu0 %v16467_v29  ;;  %v21306_v29 = vld [vmem:[#allocation16_spill] sm:$0xff] }
  0x9b   :  { %12291 = vmatprep.mubr.f32.mxu0 %v16472_v31  ;;  %14602 = vmatpush3.bf16.msra.mxu0 %v14599_v18  ;;  %v21307_v31 = vld [vmem:[#allocation17_spill] sm:$0xff]  ;;  %v16743_v18 = vld [vmem:[#allocation2 + $0x128] sm:$0xff] }
  0x9c   :  { %14604 = vmatprep.subr.bf16.mxu0 %v14603_v23 }
  0x9e   :  { %12292 = vmatmul.mubr.f32.gmra.mrb[16].mxu0 %v16474_v32  ;;  %v21308_v32 = vld [vmem:[#allocation18_spill] sm:$0xff] }
  0x9f   :  { %12294 = vmatprep.mubr.f32.mxu0 %v16478_v35  ;;  %v21309_v35 = vld [vmem:[#allocation19_spill] sm:$0xff] }
  0xa2   :  { %12295 = vmatmul.mubr.f32.gmra.mrb[18].mxu0 %v16480_v36  ;;  %v21310_v36 = vld [vmem:[#allocation20_spill] sm:$0xff] }
  0xa3   :  { %12297 = vmatprep.mubr.f32.mxu0 %v16484_v37  ;;  %v282_v37 = vld [vmem:[#allocation2] sm:$0xff]  ;;  %21320 = vst [vmem:[#allocation20_spill] sm:$0xff] %v16846_v43 }
  0xa6   :  { %12298 = vmatmul.mubr.f32.gmra.mrb[20].mxu0 %v16486_v38  ;;  %v1280_v38 = vld [vmem:[#allocation6 + $0x110] sm:$0xff] }
  0xa7   :  { %12300 = vmatprep.mubr.f32.mxu0 %v16488_v39  ;;  %v1281_v39 = vld [vmem:[#allocation6 + $0x118] sm:$0xff] }
  0xaa   :  { %12301 = vmatmul.mubr.f32.gmra.mrb[22].mxu0 %v16493_v40  ;;  %v21311_v40 = vld [vmem:[#allocation21_spill] sm:$0xff] }
  0xab   :  { %12303 = vmatprep.mubr.f32.mxu0 %v16495_v41  ;;  %v16670_v41 = vld [vmem:[#allocation2 + $0x18] sm:$0xff]  ;;  %21321 = vst [vmem:[#allocation21_spill] sm:$0xff] %v16848_v45 }
  0xae   :  { %12304 = vmatmul.mubr.f32.gmra.mrb[24].mxu0 %v16497_v42  ;;  %v14607_v42 = vpack.c.bf16 %v1281_v39, %v1280_v38  ;;  %v16786_v38 = vld [vmem:[#allocation2 + $0x218] sm:$0xff]  ;;  %v16788_v39 = vld [vmem:[#allocation2 + $0x228] sm:$0xff] }
  0xaf   :  { %12306 = vmatprep.mubr.f32.mxu0 %v16502_v44  ;;  %v1282_v44 = vld [vmem:[#allocation6 + $0x120] sm:$0xff] }
  0xb2   :  { %12307 = vmatmul.mubr.f32.gmra.mrb[26].mxu0 %v16505_v46  ;;  %v1283_v46 = vld [vmem:[#allocation6 + $0x128] sm:$0xff] }
  0xb3   :  { %12309 = vmatprep.mubr.f32.mxu0 %v16507_v47  ;;  %v21312_v47 = vmov 0.0  }
  0xb6   :  { %12310 = vmatmul.mubr.f32.gmra.mrb[28].mxu0 %v16509_v48  ;;  %v16674_v48 = vld [vmem:[#allocation2 + $0x20] sm:$0xff] }
  0xb7   :  { %12312 = vmatprep.mubr.f32.mxu0 %v16514_v50  ;;  %v16676_v50 = vld [vmem:[#allocation2 + $0x30] sm:$0xff] }
  0xba   :  { %12313 = vmatmul.mubr.f32.gmra.mrb[30].mxu0 %v16516_v51  ;;  %v14611_v51 = vpack.c.bf16 %v1283_v46, %v1282_v44  ;;  %v16798_v44 = vld [vmem:[#allocation2 + $0x248] sm:$0xff]  ;;  %v16800_v46 = vld [vmem:[#allocation2 + $0x258] sm:$0xff] }
  0xbb   :  { %12315 = vmatprep.mubr.f32.mxu0 %v394_v24  ;;  %v16755_v24 = vld [vmem:[#allocation2 + $0x158] sm:$0xff] }
  0xbe   :  { %12316 = vmatmul.mubr.f32.gmra.mrb[32].mxu0 %v395_v25  ;;  %v16757_v25 = vld [vmem:[#allocation2 + $0x168] sm:$0xff] }
  0xbf   :  { %12318 = vmatprep.mubr.f32.mxu0 %v16520_v53  ;;  %v1284_v53 = vld [vmem:[#allocation6 + $0x130] sm:$0xff] }
  0xc2   :  { %12319 = vmatmul.mubr.f32.gmra.mrb[34].mxu0 %v16522_v54  ;;  %v1285_v54 = vld [vmem:[#allocation6 + $0x138] sm:$0xff] }
  0xc3   :  { %12321 = vmatprep.mubr.f32.mxu0 %v16524_v55  ;;  %v16680_v55 = vld [vmem:[#allocation2 + $0x38] sm:$0xff] }
  0xc6   :  { %12322 = vmatmul.mubr.f32.gmra.mrb[36].mxu0 %v16529_v57  ;;  %v16682_v57 = vld [vmem:[#allocation2 + $0x48] sm:$0xff] }
  0xc7   :  { %12324 = vmatprep.mubr.f32.mxu0 %v16531_v58  ;;  %v14615_v58 = vpack.c.bf16 %v1285_v54, %v1284_v53  ;;  %v16810_v53 = vld [vmem:[#allocation2 + $0x278] sm:$0xff]  ;;  %v16812_v54 = vld [vmem:[#allocation2 + $0x288] sm:$0xff] }
  0xca   :  { %12325 = vmatmul.mubr.f32.gmra.mrb[38].mxu0 %v16533_v59  ;;  %v1286_v59 = vld [vmem:[#allocation6 + $0x140] sm:$0xff] }
  0xcb   :  { %12327 = vmatprep.mubr.f32.mxu0 %v16538_v61  ;;  %v1287_v61 = vld [vmem:[#allocation6 + $0x148] sm:$0xff] }
  0xce   :  { %12328 = vmatmul.mubr.f32.gmra.mrb[40].mxu0 %v16540_v62  ;;  %v16686_v62 = vld [vmem:[#allocation2 + $0x50] sm:$0xff] }
  0xcf   :  { %12330 = vmatprep.mubr.f32.mxu0 %v16544_v63  ;;  %v16688_v63 = vld [vmem:[#allocation2 + $0x60] sm:$0xff] }
  0xd2   :  { %12331 = vmatmul.mubr.f32.gmra.mrb[42].mxu0 %v16546_v1  ;;  %v14619_v1 = vpack.c.bf16 %v1287_v61, %v1286_v59  ;;  %v16818_v59 = vld [vmem:[#allocation2 + $0x2a0] sm:$0xff]  ;;  %v16822_v61 = vld [vmem:[#allocation2 + $0x2a8] sm:$0xff] }
  0xd3   :  { %12333 = vmatprep.mubr.f32.mxu0 %v16550_v2  ;;  %v1288_v2 = vld [vmem:[#allocation6 + $0x150] sm:$0xff] }
  0xd6   :  { %12334 = vmatmul.mubr.f32.gmra.mrb[44].mxu0 %v16552_v3  ;;  %v1289_v3 = vld [vmem:[#allocation6 + $0x158] sm:$0xff] }
  0xd7   :  { %12336 = vmatprep.mubr.f32.mxu0 %v16554_v4  ;;  %v16692_v4 = vld [vmem:[#allocation2 + $0x68] sm:$0xff] }
  0xda   :  { %12337 = vmatmul.mubr.f32.gmra.mrb[46].mxu0 %v16559_v6  ;;  %v16694_v6 = vld [vmem:[#allocation2 + $0x78] sm:$0xff] }
  0xdb   :  { %12339 = vmatprep.mubr.f32.mxu0 %v16561_v7  ;;  %v14623_v7 = vpack.c.bf16 %v1289_v3, %v1288_v2  ;;  %v16828_v2 = vld [vmem:[#allocation2 + $0x2c0] sm:$0xff]  ;;  %v16830_v3 = vld [vmem:[#allocation2 + $0x2d0] sm:$0xff] }
  0xdc   :  { %21314 = vst [vmem:[#allocation14_spill] sm:$0xff] %v16828_v2  ;;  %21315 = vst [vmem:[#allocation15_spill] sm:$0xff] %v16830_v3 }
  0xde   :  { %12340 = vmatmul.mubr.f32.gmra.mrb[48].mxu0 %v16563_v8  ;;  %v1290_v8 = vld [vmem:[#allocation6 + $0x160] sm:$0xff] }
  0xdf   :  { %12342 = vmatprep.mubr.f32.mxu0 %v16568_v11  ;;  %v1291_v11 = vld [vmem:[#allocation6 + $0x168] sm:$0xff] }
  0xe2   :  { %12343 = vmatmul.mubr.f32.gmra.mrb[50].mxu0 %v16571_v12  ;;  %v16698_v12 = vld [vmem:[#allocation2 + $0x80] sm:$0xff] }
  0xe3   :  { %12345 = vmatprep.mubr.f32.mxu0 %v16573_v20  ;;  %v16700_v20 = vld [vmem:[#allocation2 + $0x90] sm:$0xff] }
  0xe6   :  { %12346 = vmatmul.mubr.f32.gmra.mrb[52].mxu0 %v16575_v21  ;;  %v14627_v21 = vpack.c.bf16 %v1291_v11, %v1290_v8  ;;  %v16836_v8 = vld [vmem:[#allocation2 + $0x2e8] sm:$0xff]  ;;  %v16840_v11 = vld [vmem:[#allocation2 + $0x2f0] sm:$0xff] }
  0xe7   :  { %12348 = vmatprep.mubr.f32.mxu0 %v21303_v26  ;;  %v16761_v26 = vld [vmem:[#allocation2 + $0x170] sm:$0xff]  ;;  %21317 = vst [vmem:[#allocation17_spill] sm:$0xff] %v16836_v8  ;;  %21318 = vst [vmem:[#allocation18_spill] sm:$0xff] %v16840_v11 }
  0xea   :  { %12349 = vmatmul.mubr.f32.gmra.mrb[54].mxu0 %v21304_v27  ;;  %v314_v27 = vld [vmem:[#allocation2 + $0x1b0] sm:$0xff] }
  0xeb   :  { %12351 = vmatprep.mubr.f32.mxu0 %v21305_v28  ;;  %v16764_v28 = vld [vmem:[#allocation2 + $0x1c8] sm:$0xff] }
  0xee   :  { %12352 = vmatmul.mubr.f32.gmra.mrb[56].mxu0 %v21306_v29  ;;  %v16768_v29 = vld [vmem:[#allocation2 + $0x1d0] sm:$0xff] }
  0xef   :  { %12354 = vmatprep.mubr.f32.mxu0 %v21307_v31  ;;  %v16770_v31 = vld [vmem:[#allocation2 + $0x1e0] sm:$0xff] }
  0xf2   :  { %12355 = vmatmul.mubr.f32.gmra.mrb[58].mxu0 %v21308_v32  ;;  %v16774_v32 = vld [vmem:[#allocation2 + $0x1e8] sm:$0xff] }
  0xf3   :  { %12357 = vmatprep.mubr.f32.mxu0 %v21309_v35  ;;  %v16776_v35 = vld [vmem:[#allocation2 + $0x1f8] sm:$0xff] }
  0xf6   :  { %12358 = vmatmul.mubr.f32.gmra.mrb[60].mxu0 %v16601_v9  ;;  %v1809_v9 = vld [vmem:[#allocation6 + $0x188] sm:$0xff] }
  0xf7   :  { %12360 = vmatprep.mubr.f32.mxu0 %v21310_v36  ;;  %v16714_v13 = vpack.c.bf16 %v1809_v9, %v1808_v60  ;;  %v16780_v36 = vld [vmem:[#allocation2 + $0x200] sm:$0xff]  ;;  %v1810_v9 = vld [vmem:[#allocation6 + $0x190] sm:$0xff] }
  0xf8   :  { %v1213_v60 = vld [vmem:[#allocation2 + $0x2] sm:$0xff] }
  0xfa   :  { %12361 = vmatmul.mubr.f32.gmra.mrb[62].mxu0 %v21311_v40  ;;  %v16792_v40 = vld [vmem:[#allocation2 + $0x230] sm:$0xff] }
  0xfb   :  { %12395 = vmatprep.mubr.f32.mxu0 %v282_v37  ;;  %v16782_v37 = vld [vmem:[#allocation2 + $0x210] sm:$0xff] }
  0xfe   :  { %12396 = vmatmul.mubr.f32.vlgmr.msra.gmra.mrb[0].mxu0 %v21312_v47 }
  0xff   :  { %14606 = vmatpush3.bf16.msra.mxu0 %v14603_v23  ;;  %12398 = vmatprep.mubr.f32.mxu0 %v16670_v41  ;;  %v16751_v23 = vld [vmem:[#allocation2 + $0x150] sm:$0xff] }
 0x100   :  { %14608 = vmatprep.subr.bf16.mxu0 %v14607_v42 }
 0x102   :  { %12399 = vmatmul.mubr.f32.gmra.mrb[2].mxu0 %v16674_v48 }
 0x103   :  { %12401 = vmatprep.mubr.f32.mxu0 %v16676_v50  ;;  %14610 = vmatpush3.bf16.msra.mxu0 %v14607_v42  ;;  %v16794_v42 = vld [vmem:[#allocation2 + $0x240] sm:$0xff] }
 0x104   :  { %14612 = vmatprep.subr.bf16.mxu0 %v14611_v51 }
 0x106   :  { %12402 = vmatmul.mubr.f32.gmra.mrb[4].mxu0 %v16680_v55 }
 0x107   :  { %12404 = vmatprep.mubr.f32.mxu0 %v16682_v57  ;;  %14614 = vmatpush3.bf16.msra.mxu0 %v14611_v51  ;;  %v16806_v51 = vld [vmem:[#allocation2 + $0x270] sm:$0xff] }
 0x108   :  { %14616 = vmatprep.subr.bf16.mxu0 %v14615_v58 }
 0x10a   :  { %12405 = vmatmul.mubr.f32.gmra.mrb[6].mxu0 %v16686_v62 }
 0x10b   :  { %12407 = vmatprep.mubr.f32.mxu0 %v16688_v63  ;;  %14618 = vmatpush3.bf16.msra.mxu0 %v14615_v58  ;;  %v16816_v58 = vld [vmem:[#allocation2 + $0x290] sm:$0xff] }
 0x10c   :  { %14620 = vmatprep.subr.bf16.mxu0 %v14619_v1 }
 0x10e   :  { %12408 = vmatmul.mubr.f32.gmra.mrb[8].mxu0 %v16692_v4 }
 0x10f   :  { %12410 = vmatprep.mubr.f32.mxu0 %v16694_v6  ;;  %14622 = vmatpush3.bf16.msra.mxu0 %v14619_v1  ;;  %v16824_v1 = vld [vmem:[#allocation2 + $0x2b8] sm:$0xff] }
 0x110   :  { %14624 = vmatprep.subr.bf16.mxu0 %v14623_v7  ;;  %21313 = vst [vmem:[#allocation13_spill] sm:$0xff] %v16824_v1 }
 0x112   :  { %12411 = vmatmul.mubr.f32.gmra.mrb[10].mxu0 %v16698_v12 }
 0x113   :  { %12413 = vmatprep.mubr.f32.mxu0 %v16700_v20  ;;  %14626 = vmatpush3.bf16.msra.mxu0 %v14623_v7  ;;  %v16834_v7 = vld [vmem:[#allocation2 + $0x2d8] sm:$0xff] }
 0x114   :  { %14628 = vmatprep.subr.bf16.mxu0 %v14627_v21  ;;  %21316 = vst [vmem:[#allocation16_spill] sm:$0xff] %v16834_v7 }
 0x116   :  { %12414 = vmatmul.mubr.f32.gmra.mrb[12].mxu0 %v16704_v49 }
 0x117   :  { %12416 = vmatprep.mubr.f32.mxu0 %v16706_v52  ;;  %14630 = vmatpush3.bf16.msra.mxu0 %v14627_v21  ;;  %v16842_v21 = vld [vmem:[#allocation2 + $0x300] sm:$0xff] }
 0x118   :  { %14632 = vmatprep.subr.bf16.mxu0 %v14631_v56  ;;  %21319 = vst [vmem:[#allocation19_spill] sm:$0xff] %v16842_v21 }
 0x11a   :  { %12417 = vmatmul.mubr.f32.gmra.mrb[14].mxu0 %v16710_v10 }
 0x11b   :  { %12419 = vmatprep.mubr.f32.mxu0 %v16712_v5  ;;  %14634 = vmatpush3.bf16.msra.mxu0 %v14631_v56  ;;  %v16852_v56 = vld [vmem:[#allocation2 + $0x320] sm:$0xff] }
 0x11c   :  { %14636 = vmatprep.subr.bf16.mxu0 %v16714_v13  ;;  %21322 = vst [vmem:[#allocation22_spill] sm:$0xff] %v16852_v56 }
 0x11e   :  { %12420 = vmatmul.mubr.f32.gmra.mrb[16].mxu0 %v16718_v34 }
 0x11f   :  { %12422 = vmatprep.mubr.f32.mxu0 %v16720_v33 }
 0x122   :  { %12423 = vmatmul.mubr.f32.gmra.mrb[18].mxu0 %v16725_v14 }
 0x123   :  { %12425 = vmatprep.mubr.f32.mxu0 %v16727_v15 }
 0x126   :  { %12426 = vmatmul.mubr.f32.gmra.mrb[20].mxu0 %v16731_v22 }
 0x127   :  { %12428 = vmatprep.mubr.f32.mxu0 %v16733_v16 }
 0x12a   :  { %12429 = vmatmul.mubr.f32.gmra.mrb[22].mxu0 %v16737_v17 }
 0x12b   :  { %12431 = vmatprep.mubr.f32.mxu0 %v16739_v0 }
 0x12e   :  { %12432 = vmatmul.mubr.f32.gmra.mrb[24].mxu0 %v16743_v18 }
 0x12f   :  { %12434 = vmatprep.mubr.f32.mxu0 %v16745_v19 }
 0x132   :  { %12435 = vmatmul.mubr.f32.gmra.mrb[26].mxu0 %v16749_v30 }
 0x133   :  { %12437 = vmatprep.mubr.f32.mxu0 %v16751_v23 }
 0x136   :  { %12438 = vmatmul.mubr.f32.gmra.mrb[28].mxu0 %v16755_v24 }
 0x137   :  { %12440 = vmatprep.mubr.f32.mxu0 %v16757_v25 }
 0x13a   :  { %12441 = vmatmul.mubr.f32.gmra.mrb[30].mxu0 %v16761_v26 }
 0x13b   :  { %12443 = vmatprep.mubr.f32.mxu0 %v314_v27  ;;  %v1811_v27 = vld [vmem:[#allocation6 + $0x198] sm:$0xff] }
 0x13e   :  { %12444 = vmatmul.mubr.f32.gmra.mrb[32].mxu0 %v21312_v47  ;;  %v16804_v47 = vld [vmem:[#allocation2 + $0x260] sm:$0xff] }
 0x13f   :  { %12446 = vmatprep.mubr.f32.mxu0 %v16764_v28 }
 0x142   :  { %12447 = vmatmul.mubr.f32.gmra.mrb[34].mxu0 %v16768_v29 }
 0x143   :  { %12449 = vmatprep.mubr.f32.mxu0 %v16770_v31 }
 0x146   :  { %12450 = vmatmul.mubr.f32.gmra.mrb[36].mxu0 %v16774_v32 }
 0x147   :  { %12452 = vmatprep.mubr.f32.mxu0 %v16776_v35 }
 0x14a   :  { %12453 = vmatmul.mubr.f32.gmra.mrb[38].mxu0 %v16780_v36 }
 0x14b   :  { %12455 = vmatprep.mubr.f32.mxu0 %v16782_v37 }
 0x14e   :  { %12456 = vmatmul.mubr.f32.gmra.mrb[40].mxu0 %v16786_v38 }
 0x14f   :  { %12458 = vmatprep.mubr.f32.mxu0 %v16788_v39 }
 0x152   :  { %12459 = vmatmul.mubr.f32.gmra.mrb[42].mxu0 %v16792_v40 }
 0x153   :  { %12461 = vmatprep.mubr.f32.mxu0 %v16794_v42 }
 0x156   :  { %12462 = vmatmul.mubr.f32.gmra.mrb[44].mxu0 %v16798_v44 }
 0x157   :  { %12464 = vmatprep.mubr.f32.mxu0 %v16800_v46 }
 0x15a   :  { %12465 = vmatmul.mubr.f32.gmra.mrb[46].mxu0 %v16804_v47 }
 0x15b   :  { %12467 = vmatprep.mubr.f32.mxu0 %v16806_v51 }
 0x15e   :  { %12468 = vmatmul.mubr.f32.gmra.mrb[48].mxu0 %v16810_v53 }
 0x15f   :  { %12470 = vmatprep.mubr.f32.mxu0 %v16812_v54 }
 0x162   :  { %12471 = vmatmul.mubr.f32.gmra.mrb[50].mxu0 %v16816_v58 }
 0x163   :  { %12473 = vmatprep.mubr.f32.mxu0 %v16818_v59 }
 0x166   :  { %12474 = vmatmul.mubr.f32.gmra.mrb[52].mxu0 %v16822_v61 }
 0x167   :  { %12476 = vmatprep.mubr.f32.mxu0 %v16824_v1  ;;  %v1814_v1 = vld [vmem:[#allocation6 + $0x1b0] sm:$0xff] }
 0x16a   :  { %12477 = vmatmul.mubr.f32.gmra.mrb[54].mxu0 %v16828_v2 }
 0x16b   :  { %12479 = vmatprep.mubr.f32.mxu0 %v16830_v3  ;;  %v1813_v3 = vld [vmem:[#allocation6 + $0x1a8] sm:$0xff] }
 0x16e   :  { %12480 = vmatmul.mubr.f32.gmra.mrb[56].mxu0 %v16834_v7  ;;  %v1812_v7 = vld [vmem:[#allocation6 + $0x1a0] sm:$0xff] }
 0x16f   :  { %12482 = vmatprep.mubr.f32.mxu0 %v16836_v8  ;;  %v1214_v8 = vld [vmem:[#allocation2 + $0xa] sm:$0xff]  ;;  %v14643_v2 = vpack.c.bf16 %v1813_v3, %v1812_v7  ;;  %v16871_v3 = vld [vmem:[#allocation2 + $0x52] sm:$0xff]  ;;  %v16873_v7 = vld [vmem:[#allocation2 + $0x62] sm:$0xff] }
 0x170   :  { %21328 = vst [vmem:[#allocation28_spill] sm:$0xff] %v16871_v3  ;;  %21329 = vst [vmem:[#allocation29_spill] sm:$0xff] %v16873_v7 }
 0x172   :  { %12483 = vmatmul.mubr.f32.gmra.mrb[58].mxu0 %v16840_v11  ;;  %v16855_v11 = vld [vmem:[#allocation2 + $0x1a] sm:$0xff] }
 0x173   :  { %12485 = vmatprep.mubr.f32.mxu0 %v16842_v21  ;;  %21323 = vst [vmem:[#allocation23_spill] sm:$0xff] %v16855_v11  ;;  %v14639_v21 = vpack.c.bf16 %v1811_v27, %v1810_v9  ;;  %v1816_v9 = vld [vmem:[#allocation6 + $0x1c0] sm:$0xff]  ;;  %v1817_v27 = vld [vmem:[#allocation6 + $0x1c8] sm:$0xff] }
 0x176   :  { %12486 = vmatmul.mubr.f32.gmra.mrb[60].mxu0 %v16846_v43  ;;  %v16861_v43 = vld [vmem:[#allocation2 + $0x32] sm:$0xff] }
 0x177   :  { %12488 = vmatprep.mubr.f32.mxu0 %v16848_v45  ;;  %v16859_v45 = vld [vmem:[#allocation2 + $0x22] sm:$0xff]  ;;  %21325 = vst [vmem:[#allocation25_spill] sm:$0xff] %v16861_v43 }
 0x178   :  { %21324 = vst [vmem:[#allocation24_spill] sm:$0xff] %v16859_v45 }
 0x17a   :  { %12489 = vmatmul.mubr.f32.gmra.mrb[62].mxu0 %v16852_v56  ;;  %v1815_v56 = vld [vmem:[#allocation6 + $0x1b8] sm:$0xff] }
 0x17b   :  { %12523 = vmatprep.mubr.f32.mxu0 %v1213_v60  ;;  %v16865_v60 = vld [vmem:[#allocation2 + $0x3a] sm:$0xff] }
 0x17c   :  { %21326 = vst [vmem:[#allocation26_spill] sm:$0xff] %v16865_v60 }
 0x17e   :  { %12524 = vmatmul.mubr.f32.vlgmr.msra.gmra.mrb[0].mxu0 %v1214_v8  ;;  %v16867_v8 = vld [vmem:[#allocation2 + $0x4a] sm:$0xff] }
 0x17f   :  { %14638 = vmatpush3.bf16.msra.mxu0 %v16714_v13  ;;  %12526 = vmatprep.mubr.f32.mxu0 %v16855_v11  ;;  %21327 = vst [vmem:[#allocation27_spill] sm:$0xff] %v16867_v8  ;;  %v14647_v13 = vpack.c.bf16 %v1815_v56, %v1814_v1  ;;  %v1819_v11 = vld [vmem:[#allocation6 + $0x1d8] sm:$0xff]  ;;  %v16877_v1 = vld [vmem:[#allocation2 + $0x6a] sm:$0xff] }
 0x180   :  { %14640 = vmatprep.subr.bf16.mxu0 %v14639_v21  ;;  %21330 = vst [vmem:[#allocation30_spill] sm:$0xff] %v16877_v1 }
 0x182   :  { %12527 = vmatmul.mubr.f32.gmra.mrb[2].mxu0 %v16859_v45  ;;  %v1818_v45 = vld [vmem:[#allocation6 + $0x1d0] sm:$0xff] }
 0x183   :  { %12529 = vmatprep.mubr.f32.mxu0 %v16861_v43  ;;  %14642 = vmatpush3.bf16.msra.mxu0 %v14639_v21  ;;  %v14651_v43 = vpack.c.bf16 %v1817_v27, %v1816_v9  ;;  %v16879_v21 = vld [vmem:[#allocation2 + $0x7a] sm:$0xff]  ;;  %v14655_v56 = vpack.c.bf16 %v1819_v11, %v1818_v45  ;;  %v16885_v9 = vld [vmem:[#allocation2 + $0x92] sm:$0xff]  ;;  %v16891_v45 = vld [vmem:[#allocation2 + $0xaa] sm:$0xff] }
 0x184   :  { %14644 = vmatprep.subr.bf16.mxu0 %v14643_v2  ;;  %21331 = vst [vmem:[#allocation31_spill] sm:$0xff] %v16879_v21  ;;  %21333 = vst [vmem:[#allocation33_spill] sm:$0xff] %v16885_v9  ;;  %v16889_v11 = vld [vmem:[#allocation2 + $0x9a] sm:$0xff] }
 0x185   :  { %21334 = vst [vmem:[#allocation34_spill] sm:$0xff] %v16889_v11  ;;  %21335 = vst [vmem:[#allocation35_spill] sm:$0xff] %v16891_v45 }
 0x186   :  { %12530 = vmatmul.mubr.f32.gmra.mrb[4].mxu0 %v16865_v60  ;;  %v1821_v60 = vld [vmem:[#allocation6 + $0x1e8] sm:$0xff] }
 0x187   :  { %12532 = vmatprep.mubr.f32.mxu0 %v16867_v8  ;;  %14646 = vmatpush3.bf16.msra.mxu0 %v14643_v2  ;;  %v1820_v8 = vld [vmem:[#allocation6 + $0x1e0] sm:$0xff] }
 0x188   :  { %14648 = vmatprep.subr.bf16.mxu0 %v14647_v13  ;;  %v16883_v2 = vld [vmem:[#allocation2 + $0x82] sm:$0xff]  ;;  %v14659_v27 = vpack.c.bf16 %v1821_v60, %v1820_v8 }
 0x189   :  { %21332 = vst [vmem:[#allocation32_spill] sm:$0xff] %v16883_v2  ;;  %v16897_v60 = vld [vmem:[#allocation2 + $0xc2] sm:$0xff] }
 0x18a   :  { %12533 = vmatmul.mubr.f32.gmra.mrb[6].mxu0 %v16871_v3  ;;  %v1823_v3 = vld [vmem:[#allocation6 + $0x1f8] sm:$0xff]  ;;  %21337 = vst [vmem:[#allocation37_spill] sm:$0xff] %v16897_v60 }
 0x18b   :  { %12535 = vmatprep.mubr.f32.mxu0 %v16873_v7  ;;  %14650 = vmatpush3.bf16.msra.mxu0 %v14647_v13  ;;  %v1822_v7 = vld [vmem:[#allocation6 + $0x1f0] sm:$0xff] }
 0x18c   :  { %14652 = vmatprep.subr.bf16.mxu0 %v14651_v43  ;;  %v14663_v13 = vpack.c.bf16 %v1823_v3, %v1822_v7  ;;  %v16905_v3 = vld [vmem:[#allocation2 + $0xda] sm:$0xff]  ;;  %v16910_v7 = vld [vmem:[#allocation2 + $0xe2] sm:$0xff] }
 0x18d   :  { %21339 = vst [vmem:[#allocation39_spill] sm:$0xff] %v16905_v3  ;;  %21340 = vst [vmem:[#allocation40_spill] sm:$0xff] %v16910_v7 }
 0x18e   :  { %12536 = vmatmul.mubr.f32.gmra.mrb[8].mxu0 %v16877_v1  ;;  %v2339_v1 = vld [vmem:[#allocation6 + $0x208] sm:$0xff] }
 0x18f   :  { %12538 = vmatprep.mubr.f32.mxu0 %v16879_v21  ;;  %14654 = vmatpush3.bf16.msra.mxu0 %v14651_v43  ;;  %v2338_v21 = vld [vmem:[#allocation6 + $0x200] sm:$0xff]  ;;  %v16895_v43 = vld [vmem:[#allocation2 + $0xb2] sm:$0xff] }
 0x190   :  { %14656 = vmatprep.subr.bf16.mxu0 %v14655_v56  ;;  %21336 = vst [vmem:[#allocation36_spill] sm:$0xff] %v16895_v43  ;;  %v16899_v8 = vpack.c.bf16 %v2339_v1, %v2338_v21  ;;  %v16916_v1 = vld [vmem:[#allocation2 + $0xfa] sm:$0xff]  ;;  %v16918_v21 = vld [vmem:[#allocation2 + $0x10a] sm:$0xff] }
 0x191   :  { %21342 = vst [vmem:[#allocation42_spill] sm:$0xff] %v16916_v1  ;;  %21343 = vst [vmem:[#allocation43_spill] sm:$0xff] %v16918_v21 }
 0x192   :  { %12539 = vmatmul.mubr.f32.gmra.mrb[10].mxu0 %v16883_v2  ;;  %v2343_v2 = vld [vmem:[#allocation6 + $0x228] sm:$0xff] }
 0x193   :  { %12541 = vmatprep.mubr.f32.mxu0 %v16885_v9  ;;  %14658 = vmatpush3.bf16.msra.mxu0 %v14655_v56  ;;  %v16903_v56 = vld [vmem:[#allocation2 + $0xca] sm:$0xff]  ;;  %v2342_v9 = vld [vmem:[#allocation6 + $0x220] sm:$0xff] }
 0x194   :  { %14660 = vmatprep.subr.bf16.mxu0 %v14659_v27  ;;  %21338 = vst [vmem:[#allocation38_spill] sm:$0xff] %v16903_v56 }
 0x196   :  { %12542 = vmatmul.mubr.f32.gmra.mrb[12].mxu0 %v16889_v11  ;;  %v2341_v11 = vld [vmem:[#allocation6 + $0x218] sm:$0xff] }
 0x197   :  { %12544 = vmatprep.mubr.f32.mxu0 %v16891_v45  ;;  %14662 = vmatpush3.bf16.msra.mxu0 %v14659_v27  ;;  %v16912_v27 = vld [vmem:[#allocation2 + $0xf2] sm:$0xff]  ;;  %v16960_v45 = vld [vmem:[#allocation2 + $0x1e2] sm:$0xff] }
 0x198   :  { %14664 = vmatprep.subr.bf16.mxu0 %v14663_v13  ;;  %21341 = vst [vmem:[#allocation41_spill] sm:$0xff] %v16912_v27  ;;  %21355 = vst [vmem:[#allocation55_spill] sm:$0xff] %v16960_v45 }
 0x19a   :  { %12545 = vmatmul.mubr.f32.gmra.mrb[14].mxu0 %v16895_v43  ;;  %v1246_v43 = vld [vmem:[#allocation2 + $0x1ba] sm:$0xff] }
 0x19b   :  { %12547 = vmatprep.mubr.f32.mxu0 %v16897_v60  ;;  %14666 = vmatpush3.bf16.msra.mxu0 %v14663_v13  ;;  %v16922_v13 = vld [vmem:[#allocation2 + $0x112] sm:$0xff] }
 0x19c   :  { %14668 = vmatprep.subr.bf16.mxu0 %v16899_v8  ;;  %21344 = vst [vmem:[#allocation44_spill] sm:$0xff] %v16922_v13  ;;  %v16941_v60 = vld [vmem:[#allocation3 + $0xf8] sm:$0xff] }
 0x19d   :  { %249 = vst [vmem:[#allocation2 + $0x189] sm:$0xff] %v16941_v60 }
 0x19e   :  { %12548 = vmatmul.mubr.f32.gmra.mrb[16].mxu0 %v16903_v56  ;;  %v16924_v56 = vld [vmem:[#allocation2 + $0x122] sm:$0xff] }
 0x19f   :  { %12550 = vmatprep.mubr.f32.mxu0 %v16905_v3  ;;  %21345 = vst [vmem:[#allocation45_spill] sm:$0xff] %v16924_v56  ;;  %v16928_v3 = vld [vmem:[#allocation2 + $0x12a] sm:$0xff] }
 0x1a0   :  { %21346 = vst [vmem:[#allocation46_spill] sm:$0xff] %v16928_v3 }
 0x1a2   :  { %12551 = vmatmul.mubr.f32.gmra.mrb[18].mxu0 %v16910_v7  ;;  %v16930_v7 = vld [vmem:[#allocation2 + $0x13a] sm:$0xff] }
 0x1a3   :  { %12553 = vmatprep.mubr.f32.mxu0 %v16912_v27  ;;  %21347 = vst [vmem:[#allocation47_spill] sm:$0xff] %v16930_v7  ;;  %v16934_v27 = vld [vmem:[#allocation2 + $0x142] sm:$0xff] }
 0x1a4   :  { %21348 = vst [vmem:[#allocation48_spill] sm:$0xff] %v16934_v27 }
 0x1a6   :  { %12554 = vmatmul.mubr.f32.gmra.mrb[20].mxu0 %v16916_v1  ;;  %v16936_v1 = vld [vmem:[#allocation2 + $0x152] sm:$0xff] }
 0x1a7   :  { %12556 = vmatprep.mubr.f32.mxu0 %v16918_v21  ;;  %21349 = vst [vmem:[#allocation49_spill] sm:$0xff] %v16936_v1  ;;  %v16938_v21 = vld [vmem:[#allocation3 + $0xf0] sm:$0xff] }
 0x1a8   :  { %248 = vst [vmem:[#allocation2 + $0x181] sm:$0xff] %v16938_v21 }
 0x1aa   :  { %12557 = vmatmul.mubr.f32.gmra.mrb[22].mxu0 %v16922_v13  ;;  %v1245_v13 = vld [vmem:[#allocation2 + $0x1b2] sm:$0xff] }
 0x1ab   :  { %12559 = vmatprep.mubr.f32.mxu0 %v16924_v56  ;;  %v16946_v56 = vld [vmem:[#allocation2 + $0x15a] sm:$0xff] }
 0x1ac   :  { %21350 = vst [vmem:[#allocation50_spill] sm:$0xff] %v16946_v56 }
 0x1ae   :  { %12560 = vmatmul.mubr.f32.gmra.mrb[24].mxu0 %v16928_v3  ;;  %v16948_v3 = vld [vmem:[#allocation2 + $0x16a] sm:$0xff] }
 0x1af   :  { %12562 = vmatprep.mubr.f32.mxu0 %v16930_v7  ;;  %21351 = vst [vmem:[#allocation51_spill] sm:$0xff] %v16948_v3  ;;  %v16952_v7 = vld [vmem:[#allocation2 + $0x172] sm:$0xff] }
 0x1b0   :  { %21352 = vst [vmem:[#allocation52_spill] sm:$0xff] %v16952_v7 }
 0x1b2   :  { %12563 = vmatmul.mubr.f32.gmra.mrb[26].mxu0 %v16934_v27  ;;  %v16955_v27 = vld [vmem:[#allocation2 + $0x1ca] sm:$0xff] }
 0x1b3   :  { %12565 = vmatprep.mubr.f32.mxu0 %v16936_v1  ;;  %21353 = vst [vmem:[#allocation53_spill] sm:$0xff] %v16955_v27  ;;  %v16958_v1 = vld [vmem:[#allocation2 + $0x1d2] sm:$0xff] }
 0x1b4   :  { %21354 = vst [vmem:[#allocation54_spill] sm:$0xff] %v16958_v1 }
 0x1b6   :  { %12566 = vmatmul.mubr.f32.gmra.mrb[28].mxu0 %v16946_v56  ;;  %v16966_v56 = vld [vmem:[#allocation2 + $0x1fa] sm:$0xff] }
 0x1b7   :  { %12568 = vmatprep.mubr.f32.mxu0 %v16948_v3  ;;  %v16964_v3 = vld [vmem:[#allocation2 + $0x1ea] sm:$0xff]  ;;  %21357 = vst [vmem:[#allocation57_spill] sm:$0xff] %v16966_v56 }
 0x1b8   :  { %21356 = vst [vmem:[#allocation56_spill] sm:$0xff] %v16964_v3 }
 0x1ba   :  { %12569 = vmatmul.mubr.f32.gmra.mrb[30].mxu0 %v16952_v7  ;;  %v17037_v7 = vld [vmem:[#allocation3 + $0x1f8] sm:$0xff] }
 0x1bb   :  { %12571 = vmatprep.mubr.f32.mxu0 %v1245_v13  ;;  %v16970_v13 = vld [vmem:[#allocation2 + $0x202] sm:$0xff]  ;;  %281 = vst [vmem:[#allocation2 + $0x339] sm:$0xff] %v17037_v7 }
 0x1bc   :  { %21358 = vst [vmem:[#allocation58_spill] sm:$0xff] %v16970_v13 }
 0x1be   :  { %12572 = vmatmul.mubr.f32.gmra.mrb[32].mxu0 %v1246_v43  ;;  %v16972_v43 = vld [vmem:[#allocation2 + $0x212] sm:$0xff] }
 0x1bf   :  { %12574 = vmatprep.mubr.f32.mxu0 %v16955_v27  ;;  %21359 = vst [vmem:[#allocation59_spill] sm:$0xff] %v16972_v43  ;;  %v16976_v27 = vld [vmem:[#allocation2 + $0x21a] sm:$0xff] }
 0x1c0   :  { %21360 = vst [vmem:[#allocation60_spill] sm:$0xff] %v16976_v27 }
 0x1c2   :  { %12575 = vmatmul.mubr.f32.gmra.mrb[34].mxu0 %v16958_v1  ;;  %v16978_v1 = vld [vmem:[#allocation2 + $0x22a] sm:$0xff] }
 0x1c3   :  { %12577 = vmatprep.mubr.f32.mxu0 %v16960_v45  ;;  %21361 = vst [vmem:[#allocation61_spill] sm:$0xff] %v16978_v1  ;;  %v16982_v45 = vld [vmem:[#allocation2 + $0x232] sm:$0xff] }
 0x1c4   :  { %21362 = vst [vmem:[#allocation62_spill] sm:$0xff] %v16982_v45 }
 0x1c6   :  { %12578 = vmatmul.mubr.f32.gmra.mrb[36].mxu0 %v16964_v3  ;;  %v16984_v3 = vld [vmem:[#allocation2 + $0x242] sm:$0xff] }
 0x1c7   :  { %12580 = vmatprep.mubr.f32.mxu0 %v16966_v56  ;;  %21363 = vst [vmem:[#allocation63_spill] sm:$0xff] %v16984_v3  ;;  %v16988_v56 = vld [vmem:[#allocation2 + $0x24a] sm:$0xff] }
 0x1c8   :  { %21364 = vst [vmem:[#allocation64_spill] sm:$0xff] %v16988_v56 }
 0x1ca   :  { %12581 = vmatmul.mubr.f32.gmra.mrb[38].mxu0 %v16970_v13  ;;  %v16990_v13 = vld [vmem:[#allocation2 + $0x25a] sm:$0xff] }
 0x1cb   :  { %12583 = vmatprep.mubr.f32.mxu0 %v16972_v43  ;;  %21365 = vst [vmem:[#allocation65_spill] sm:$0xff] %v16990_v13  ;;  %v16994_v43 = vld [vmem:[#allocation2 + $0x262] sm:$0xff] }
 0x1cc   :  { %21366 = vst [vmem:[#allocation66_spill] sm:$0xff] %v16994_v43 }
 0x1ce   :  { %12584 = vmatmul.mubr.f32.gmra.mrb[40].mxu0 %v16976_v27  ;;  %v16996_v27 = vld [vmem:[#allocation2 + $0x272] sm:$0xff] }
 0x1cf   :  { %12586 = vmatprep.mubr.f32.mxu0 %v16978_v1  ;;  %21367 = vst [vmem:[#allocation67_spill] sm:$0xff] %v16996_v27  ;;  %v17000_v1 = vld [vmem:[#allocation2 + $0x27a] sm:$0xff] }
 0x1d0   :  { %21368 = vst [vmem:[#allocation68_spill] sm:$0xff] %v17000_v1 }
 0x1d2   :  { %12587 = vmatmul.mubr.f32.gmra.mrb[42].mxu0 %v16982_v45  ;;  %v17002_v45 = vld [vmem:[#allocation2 + $0x28a] sm:$0xff] }
 0x1d3   :  { %12589 = vmatprep.mubr.f32.mxu0 %v16984_v3  ;;  %21369 = vst [vmem:[#allocation69_spill] sm:$0xff] %v17002_v45  ;;  %v17006_v3 = vld [vmem:[#allocation2 + $0x292] sm:$0xff] }
 0x1d4   :  { %21370 = vst [vmem:[#allocation70_spill] sm:$0xff] %v17006_v3 }
 0x1d6   :  { %12590 = vmatmul.mubr.f32.gmra.mrb[44].mxu0 %v16988_v56  ;;  %v17008_v56 = vld [vmem:[#allocation2 + $0x2a2] sm:$0xff] }
 0x1d7   :  { %12592 = vmatprep.mubr.f32.mxu0 %v16990_v13  ;;  %21371 = vst [vmem:[#allocation71_spill] sm:$0xff] %v17008_v56  ;;  %v17012_v13 = vld [vmem:[#allocation2 + $0x2aa] sm:$0xff] }
 0x1d8   :  { %21372 = vst [vmem:[#allocation72_spill] sm:$0xff] %v17012_v13 }
 0x1da   :  { %12593 = vmatmul.mubr.f32.gmra.mrb[46].mxu0 %v16994_v43  ;;  %v17014_v43 = vld [vmem:[#allocation2 + $0x2ba] sm:$0xff] }
 0x1db   :  { %12595 = vmatprep.mubr.f32.mxu0 %v16996_v27  ;;  %21373 = vst [vmem:[#allocation73_spill] sm:$0xff] %v17014_v43  ;;  %v17018_v27 = vld [vmem:[#allocation2 + $0x2c2] sm:$0xff] }
 0x1dc   :  { %21374 = vst [vmem:[#allocation74_spill] sm:$0xff] %v17018_v27 }
 0x1de   :  { %12596 = vmatmul.mubr.f32.gmra.mrb[48].mxu0 %v17000_v1  ;;  %v17020_v1 = vld [vmem:[#allocation2 + $0x2d2] sm:$0xff] }
 0x1df   :  { %12598 = vmatprep.mubr.f32.mxu0 %v17002_v45  ;;  %21375 = vst [vmem:[#allocation75_spill] sm:$0xff] %v17020_v1  ;;  %v17024_v45 = vld [vmem:[#allocation2 + $0x2da] sm:$0xff] }
 0x1e0   :  { %21376 = vst [vmem:[#allocation76_spill] sm:$0xff] %v17024_v45 }
 0x1e2   :  { %12599 = vmatmul.mubr.f32.gmra.mrb[50].mxu0 %v17006_v3  ;;  %v17026_v3 = vld [vmem:[#allocation2 + $0x2ea] sm:$0xff] }
 0x1e3   :  { %12601 = vmatprep.mubr.f32.mxu0 %v17008_v56  ;;  %21377 = vst [vmem:[#allocation77_spill] sm:$0xff] %v17026_v3  ;;  %v17030_v56 = vld [vmem:[#allocation2 + $0x2f2] sm:$0xff] }
 0x1e4   :  { %21378 = vst [vmem:[#allocation78_spill] sm:$0xff] %v17030_v56 }
 0x1e6   :  { %12602 = vmatmul.mubr.f32.gmra.mrb[52].mxu0 %v17012_v13  ;;  %v17032_v13 = vld [vmem:[#allocation2 + $0x302] sm:$0xff] }
 0x1e7   :  { %12604 = vmatprep.mubr.f32.mxu0 %v17014_v43  ;;  %21379 = vst [vmem:[#allocation79_spill] sm:$0xff] %v17032_v13  ;;  %v17034_v43 = vld [vmem:[#allocation3 + $0x1f0] sm:$0xff] }
 0x1e8   :  { %280 = vst [vmem:[#allocation2 + $0x331] sm:$0xff] %v17034_v43 }
 0x1ea   :  { %12605 = vmatmul.mubr.f32.gmra.mrb[54].mxu0 %v17018_v27  ;;  %v2340_v27 = vld [vmem:[#allocation6 + $0x210] sm:$0xff] }
 0x1eb   :  { %12607 = vmatprep.mubr.f32.mxu0 %v17020_v1  ;;  %v17042_v1 = vld [vmem:[#allocation2 + $0x30a] sm:$0xff] }
 0x1ec   :  { %21380 = vst [vmem:[#allocation80_spill] sm:$0xff] %v17042_v1 }
 0x1ee   :  { %12608 = vmatmul.mubr.f32.gmra.mrb[56].mxu0 %v17024_v45  ;;  %v17044_v45 = vld [vmem:[#allocation2 + $0x31a] sm:$0xff] }
 0x1ef   :  { %12610 = vmatprep.mubr.f32.mxu0 %v17026_v3  ;;  %21381 = vst [vmem:[#allocation81_spill] sm:$0xff] %v17044_v45  ;;  %v17048_v3 = vld [vmem:[#allocation2 + $0x322] sm:$0xff] }
 0x1f2   :  { %12611 = vmatmul.mubr.f32.gmra.mrb[58].mxu0 %v17030_v56  ;;  %v14671_v56 = vpack.c.bf16 %v2341_v11, %v2340_v27  ;;  %v2346_v11 = vld [vmem:[#allocation6 + $0x240] sm:$0xff]  ;;  %v2347_v27 = vld [vmem:[#allocation6 + $0x248] sm:$0xff] }
 0x1f3   :  { %12613 = vmatprep.mubr.f32.mxu0 %v17032_v13  ;;  %v2345_v13 = vld [vmem:[#allocation6 + $0x238] sm:$0xff] }
 0x1f6   :  { %12614 = vmatmul.mubr.f32.gmra.mrb[60].mxu0 %v17042_v1  ;;  %v14675_v1 = vpack.c.bf16 %v2343_v2, %v2342_v9  ;;  %v2349_v2 = vld [vmem:[#allocation6 + $0x258] sm:$0xff]  ;;  %v2351_v9 = vld [vmem:[#allocation6 + $0x268] sm:$0xff] }
 0x1f7   :  { %12616 = vmatprep.mubr.f32.mxu0 %v17044_v45  ;;  %v2344_v45 = vld [vmem:[#allocation6 + $0x230] sm:$0xff] }
 0x1fa   :  { %12617 = vmatmul.mubr.f32.gmra.mrb[62].mxu0 %v17048_v3 }
 0x1fb   :  { %12651 = vmatprep.mubr.f32.mxu0 %v16670_v41  ;;  %v14679_v41 = vpack.c.bf16 %v2345_v13, %v2344_v45  ;;  %v2353_v45 = vld [vmem:[#allocation6 + $0x278] sm:$0xff] }
 0x1fc   :  { %v17155_v13 = vld [vmem:[#allocation2 + $0x99] sm:$0xff] }
 0x1fe   :  { %12652 = vmatmul.mubr.f32.vlgmr.msra.gmra.mrb[0].mxu0 %v16674_v48  ;;  %v14683_v48 = vpack.c.bf16 %v2347_v27, %v2346_v11  ;;  %v2882_v27 = vld [vmem:[#allocation6 + $0x2f0] sm:$0xff] }
 0x1ff   :  { %14670 = vmatpush3.bf16.msra.mxu0 %v16899_v8  ;;  %12654 = vmatprep.mubr.f32.mxu0 %v16676_v50  ;;  %v2348_v50 = vld [vmem:[#allocation6 + $0x250] sm:$0xff]  ;;  %v2869_v8 = vld [vmem:[#allocation6 + $0x288] sm:$0xff] }
 0x200   :  { %14672 = vmatprep.subr.bf16.mxu0 %v14671_v56 }
 0x202   :  { %12655 = vmatmul.mubr.f32.gmra.mrb[2].mxu0 %v16680_v55  ;;  %v14687_v55 = vpack.c.bf16 %v2349_v2, %v2348_v50  ;;  %v17161_v50 = vld [vmem:[#allocation2 + $0xb1] sm:$0xff]  ;;  %v17163_v2 = vld [vmem:[#allocation2 + $0xc1] sm:$0xff] }
 0x203   :  { %12657 = vmatprep.mubr.f32.mxu0 %v16682_v57  ;;  %14674 = vmatpush3.bf16.msra.mxu0 %v14671_v56  ;;  %v2350_v57 = vld [vmem:[#allocation6 + $0x260] sm:$0xff] }
 0x204   :  { %14676 = vmatprep.subr.bf16.mxu0 %v14675_v1  ;;  %v2880_v56 = vld [vmem:[#allocation6 + $0x2e0] sm:$0xff] }
 0x206   :  { %12658 = vmatmul.mubr.f32.gmra.mrb[4].mxu0 %v16686_v62  ;;  %v14691_v62 = vpack.c.bf16 %v2351_v9, %v2350_v57  ;;  %v3399_v57 = vld [vmem:[#allocation6 + $0x300] sm:$0xff]  ;;  %v3400_v9 = vld [vmem:[#allocation6 + $0x308] sm:$0xff] }
 0x207   :  { %12660 = vmatprep.mubr.f32.mxu0 %v16688_v63  ;;  %14678 = vmatpush3.bf16.msra.mxu0 %v14675_v1  ;;  %v2352_v63 = vld [vmem:[#allocation6 + $0x270] sm:$0xff]  ;;  %v2881_v1 = vld [vmem:[#allocation6 + $0x2e8] sm:$0xff] }
 0x208   :  { %14680 = vmatprep.subr.bf16.mxu0 %v14679_v41  ;;  %v14723_v11 = vpack.c.bf16 %v2881_v1, %v2880_v56  ;;  %v17270_v56 = vld [vmem:[#allocation2 + $0x2b9] sm:$0xff]  ;;  %v17274_v1 = vld [vmem:[#allocation2 + $0x2c1] sm:$0xff] }
 0x20a   :  { %12661 = vmatmul.mubr.f32.gmra.mrb[6].mxu0 %v16692_v4  ;;  %v14695_v4 = vpack.c.bf16 %v2353_v45, %v2352_v63  ;;  %v17169_v63 = vld [vmem:[#allocation2 + $0xd9] sm:$0xff]  ;;  %v17171_v45 = vpack.c.bf16 %v3400_v9, %v3399_v57  ;;  %v17288_v57 = vld [vmem:[#allocation2 + $0x301] sm:$0xff]  ;;  %v17292_v9 = vld [vmem:[#allocation2 + $0x309] sm:$0xff] }
 0x20b   :  { %12663 = vmatprep.mubr.f32.mxu0 %v16694_v6  ;;  %14682 = vmatpush3.bf16.msra.mxu0 %v14679_v41  ;;  %v2868_v6 = vld [vmem:[#allocation6 + $0x280] sm:$0xff]  ;;  %v17157_v41 = vld [vmem:[#allocation2 + $0xa9] sm:$0xff]  ;;  %21402 = vst [vmem:[#allocation82_spill] sm:$0xff] %v17292_v9 }
 0x20c   :  { %14684 = vmatprep.subr.bf16.mxu0 %v14683_v48 }
 0x20e   :  { %12664 = vmatmul.mubr.f32.gmra.mrb[8].mxu0 %v16698_v12  ;;  %v17067_v12 = vpack.c.bf16 %v2869_v8, %v2868_v6  ;;  %v17177_v6 = vld [vmem:[#allocation2 + $0xf1] sm:$0xff]  ;;  %v17182_v8 = vld [vmem:[#allocation2 + $0xf9] sm:$0xff] }
 0x20f   :  { %12666 = vmatprep.mubr.f32.mxu0 %v16700_v20  ;;  %14686 = vmatpush3.bf16.msra.mxu0 %v14683_v48  ;;  %v17084_v20 = vld [vmem:[#allocation2 + $0x180] sm:$0xff]  ;;  %v2883_v48 = vld [vmem:[#allocation6 + $0x2f8] sm:$0xff] }
 0x210   :  { %14688 = vmatprep.subr.bf16.mxu0 %v14687_v55 }
 0x212   :  { %12667 = vmatmul.mubr.f32.gmra.mrb[10].mxu0 %v16704_v49  ;;  %v17088_v49 = vld [vmem:[#allocation2 + $0x188] sm:$0xff] }
 0x213   :  { %12669 = vmatprep.mubr.f32.mxu0 %v16706_v52  ;;  %14690 = vmatpush3.bf16.msra.mxu0 %v14687_v55  ;;  %v21382_v52 = vld [vmem:[#allocation13_spill] sm:$0xff]  ;;  %v14727_v55 = vpack.c.bf16 %v2883_v48, %v2882_v27  ;;  %v17282_v48 = vld [vmem:[#allocation2 + $0x2e9] sm:$0xff] }
 0x214   :  { %14692 = vmatprep.subr.bf16.mxu0 %v14691_v62  ;;  %v17280_v27 = vld [vmem:[#allocation2 + $0x2d9] sm:$0xff] }
 0x216   :  { %12670 = vmatmul.mubr.f32.gmra.mrb[12].mxu0 %v16710_v10  ;;  %v21383_v10 = vld [vmem:[#allocation14_spill] sm:$0xff] }
 0x217   :  { %12672 = vmatprep.mubr.f32.mxu0 %v16712_v5  ;;  %14694 = vmatpush3.bf16.msra.mxu0 %v14691_v62  ;;  %v21384_v5 = vld [vmem:[#allocation15_spill] sm:$0xff] }
 0x218   :  { %14696 = vmatprep.subr.bf16.mxu0 %v14695_v4  ;;  %v17167_v62 = vld [vmem:[#allocation2 + $0xc9] sm:$0xff] }
 0x21a   :  { %12673 = vmatmul.mubr.f32.gmra.mrb[14].mxu0 %v16718_v34  ;;  %v21385_v34 = vld [vmem:[#allocation16_spill] sm:$0xff] }
 0x21b   :  { %12675 = vmatprep.mubr.f32.mxu0 %v16720_v33  ;;  %14698 = vmatpush3.bf16.msra.mxu0 %v14695_v4  ;;  %v21386_v33 = vld [vmem:[#allocation17_spill] sm:$0xff]  ;;  %21395 = vst [vmem:[#allocation16_spill] sm:$0xff] %v17270_v56 }
 0x21c   :  { %14700 = vmatprep.subr.bf16.mxu0 %v17067_v12  ;;  %v17175_v4 = vld [vmem:[#allocation2 + $0xe1] sm:$0xff]  ;;  %21396 = vst [vmem:[#allocation17_spill] sm:$0xff] %v17274_v1 }
 0x21e   :  { %12676 = vmatmul.mubr.f32.gmra.mrb[16].mxu0 %v16725_v14  ;;  %v21387_v14 = vld [vmem:[#allocation18_spill] sm:$0xff] }
 0x21f   :  { %12678 = vmatprep.mubr.f32.mxu0 %v16727_v15  ;;  %v21388_v15 = vld [vmem:[#allocation19_spill] sm:$0xff] }
 0x220   :  { %21398 = vst [vmem:[#allocation19_spill] sm:$0xff] %v17280_v27 }
 0x222   :  { %12679 = vmatmul.mubr.f32.gmra.mrb[18].mxu0 %v16731_v22  ;;  %v21389_v22 = vld [vmem:[#allocation20_spill] sm:$0xff] }
 0x223   :  { %12681 = vmatprep.mubr.f32.mxu0 %v16733_v16  ;;  %v21390_v16 = vld [vmem:[#allocation21_spill] sm:$0xff]  ;;  %21399 = vst [vmem:[#allocation20_spill] sm:$0xff] %v17282_v48 }
 0x226   :  { %12682 = vmatmul.mubr.f32.gmra.mrb[20].mxu0 %v16737_v17  ;;  %v17120_v17 = vld [vmem:[#allocation2 + $0x330] sm:$0xff] }
 0x227   :  { %12684 = vmatprep.mubr.f32.mxu0 %v16739_v0  ;;  %v21391_v0 = vld [vmem:[#allocation22_spill] sm:$0xff] }
 0x228   :  { %21401 = vst [vmem:[#allocation22_spill] sm:$0xff] %v17288_v57 }
 0x22a   :  { %12685 = vmatmul.mubr.f32.gmra.mrb[22].mxu0 %v16743_v18  ;;  %v17124_v18 = vld [vmem:[#allocation2 + $0x338] sm:$0xff] }
 0x22b   :  { %12687 = vmatprep.mubr.f32.mxu0 %v16745_v19  ;;  %v2273_v19 = vld [vmem:[#allocation2 + $0x19] sm:$0xff] }
 0x22e   :  { %12688 = vmatmul.mubr.f32.gmra.mrb[24].mxu0 %v16749_v30  ;;  %v2870_v30 = vld [vmem:[#allocation6 + $0x290] sm:$0xff] }
 0x22f   :  { %12690 = vmatprep.mubr.f32.mxu0 %v16751_v23  ;;  %v2871_v23 = vld [vmem:[#allocation6 + $0x298] sm:$0xff] }
 0x232   :  { %12691 = vmatmul.mubr.f32.gmra.mrb[26].mxu0 %v16755_v24  ;;  %v2274_v24 = vld [vmem:[#allocation2 + $0x21] sm:$0xff] }
 0x233   :  { %12693 = vmatprep.mubr.f32.mxu0 %v16757_v25  ;;  %v17127_v25 = vld [vmem:[#allocation2 + $0x31] sm:$0xff] }
 0x236   :  { %12694 = vmatmul.mubr.f32.gmra.mrb[28].mxu0 %v16761_v26  ;;  %v14703_v26 = vpack.c.bf16 %v2871_v23, %v2870_v30  ;;  %v17217_v30 = vld [vmem:[#allocation2 + $0x1e1] sm:$0xff]  ;;  %v17220_v23 = vld [vmem:[#allocation2 + $0x1e9] sm:$0xff] }
 0x237   :  { %12696 = vmatprep.mubr.f32.mxu0 %v17084_v20 }
 0x23a   :  { %12697 = vmatmul.mubr.f32.gmra.mrb[30].mxu0 %v17088_v49 }
 0x23b   :  { %12699 = vmatprep.mubr.f32.mxu0 %v16764_v28  ;;  %v2872_v28 = vld [vmem:[#allocation6 + $0x2a0] sm:$0xff] }
 0x23e   :  { %12700 = vmatmul.mubr.f32.gmra.mrb[32].mxu0 %v16768_v29  ;;  %v2873_v29 = vld [vmem:[#allocation6 + $0x2a8] sm:$0xff] }
 0x23f   :  { %12702 = vmatprep.mubr.f32.mxu0 %v16770_v31  ;;  %v17131_v31 = vld [vmem:[#allocation2 + $0x39] sm:$0xff] }
 0x242   :  { %12703 = vmatmul.mubr.f32.gmra.mrb[34].mxu0 %v16774_v32  ;;  %v17133_v32 = vld [vmem:[#allocation2 + $0x49] sm:$0xff] }
 0x243   :  { %12705 = vmatprep.mubr.f32.mxu0 %v16776_v35  ;;  %v14707_v35 = vpack.c.bf16 %v2873_v29, %v2872_v28  ;;  %v17234_v28 = vld [vmem:[#allocation2 + $0x229] sm:$0xff]  ;;  %v17238_v29 = vld [vmem:[#allocation2 + $0x231] sm:$0xff] }
 0x246   :  { %12706 = vmatmul.mubr.f32.gmra.mrb[36].mxu0 %v16780_v36  ;;  %v2874_v36 = vld [vmem:[#allocation6 + $0x2b0] sm:$0xff] }
 0x247   :  { %12708 = vmatprep.mubr.f32.mxu0 %v16782_v37  ;;  %v2875_v37 = vld [vmem:[#allocation6 + $0x2b8] sm:$0xff] }
 0x24a   :  { %12709 = vmatmul.mubr.f32.gmra.mrb[38].mxu0 %v16786_v38  ;;  %v17137_v38 = vld [vmem:[#allocation2 + $0x51] sm:$0xff] }
 0x24b   :  { %12711 = vmatprep.mubr.f32.mxu0 %v16788_v39  ;;  %v17139_v39 = vld [vmem:[#allocation2 + $0x61] sm:$0xff] }
 0x24e   :  { %12712 = vmatmul.mubr.f32.gmra.mrb[40].mxu0 %v16792_v40  ;;  %v14711_v40 = vpack.c.bf16 %v2875_v37, %v2874_v36  ;;  %v17244_v36 = vld [vmem:[#allocation2 + $0x249] sm:$0xff]  ;;  %v17246_v37 = vld [vmem:[#allocation2 + $0x259] sm:$0xff] }
 0x24f   :  { %12714 = vmatprep.mubr.f32.mxu0 %v16794_v42  ;;  %v2876_v42 = vld [vmem:[#allocation6 + $0x2c0] sm:$0xff] }
 0x252   :  { %12715 = vmatmul.mubr.f32.gmra.mrb[42].mxu0 %v16798_v44  ;;  %v2877_v44 = vld [vmem:[#allocation6 + $0x2c8] sm:$0xff] }
 0x253   :  { %12717 = vmatprep.mubr.f32.mxu0 %v16800_v46  ;;  %v17143_v46 = vld [vmem:[#allocation2 + $0x69] sm:$0xff] }
 0x256   :  { %12718 = vmatmul.mubr.f32.gmra.mrb[44].mxu0 %v16804_v47  ;;  %v17145_v47 = vld [vmem:[#allocation2 + $0x79] sm:$0xff] }
 0x257   :  { %12720 = vmatprep.mubr.f32.mxu0 %v16806_v51  ;;  %v14715_v51 = vpack.c.bf16 %v2877_v44, %v2876_v42  ;;  %v17252_v42 = vld [vmem:[#allocation2 + $0x271] sm:$0xff]  ;;  %v17256_v44 = vld [vmem:[#allocation2 + $0x279] sm:$0xff] }
 0x25a   :  { %12721 = vmatmul.mubr.f32.gmra.mrb[46].mxu0 %v16810_v53  ;;  %v2878_v53 = vld [vmem:[#allocation6 + $0x2d0] sm:$0xff] }
 0x25b   :  { %12723 = vmatprep.mubr.f32.mxu0 %v16812_v54  ;;  %v2879_v54 = vld [vmem:[#allocation6 + $0x2d8] sm:$0xff] }
 0x25e   :  { %12724 = vmatmul.mubr.f32.gmra.mrb[48].mxu0 %v16816_v58  ;;  %v17149_v58 = vld [vmem:[#allocation2 + $0x81] sm:$0xff] }
 0x25f   :  { %12726 = vmatprep.mubr.f32.mxu0 %v16818_v59  ;;  %v17151_v59 = vld [vmem:[#allocation2 + $0x91] sm:$0xff] }
 0x262   :  { %12727 = vmatmul.mubr.f32.gmra.mrb[50].mxu0 %v16822_v61  ;;  %v14719_v61 = vpack.c.bf16 %v2879_v54, %v2878_v53  ;;  %v17262_v53 = vld [vmem:[#allocation2 + $0x291] sm:$0xff]  ;;  %v17264_v54 = vld [vmem:[#allocation2 + $0x2a1] sm:$0xff] }
 0x263   :  { %12729 = vmatprep.mubr.f32.mxu0 %v21382_v52  ;;  %v17188_v52 = vld [vmem:[#allocation2 + $0x111] sm:$0xff]  ;;  %21392 = vst [vmem:[#allocation13_spill] sm:$0xff] %v17262_v53  ;;  %21393 = vst [vmem:[#allocation14_spill] sm:$0xff] %v17264_v54 }
 0x266   :  { %12730 = vmatmul.mubr.f32.gmra.mrb[52].mxu0 %v21383_v10  ;;  %v17190_v10 = vld [vmem:[#allocation2 + $0x121] sm:$0xff] }
 0x267   :  { %12732 = vmatprep.mubr.f32.mxu0 %v21384_v5  ;;  %v17194_v5 = vld [vmem:[#allocation2 + $0x129] sm:$0xff] }
 0x26a   :  { %12733 = vmatmul.mubr.f32.gmra.mrb[54].mxu0 %v21385_v34  ;;  %v17196_v34 = vld [vmem:[#allocation2 + $0x139] sm:$0xff] }
 0x26b   :  { %12735 = vmatprep.mubr.f32.mxu0 %v21386_v33  ;;  %v17200_v33 = vld [vmem:[#allocation2 + $0x141] sm:$0xff] }
 0x26e   :  { %12736 = vmatmul.mubr.f32.gmra.mrb[56].mxu0 %v21387_v14  ;;  %v17202_v14 = vld [vmem:[#allocation2 + $0x151] sm:$0xff] }
 0x26f   :  { %12738 = vmatprep.mubr.f32.mxu0 %v21388_v15  ;;  %v17206_v15 = vld [vmem:[#allocation2 + $0x159] sm:$0xff] }
 0x272   :  { %12739 = vmatmul.mubr.f32.gmra.mrb[58].mxu0 %v21389_v22  ;;  %v17208_v22 = vld [vmem:[#allocation2 + $0x169] sm:$0xff] }
 0x273   :  { %12741 = vmatprep.mubr.f32.mxu0 %v21390_v16  ;;  %v17212_v16 = vld [vmem:[#allocation2 + $0x171] sm:$0xff] }
 0x276   :  { %12742 = vmatmul.mubr.f32.gmra.mrb[60].mxu0 %v21391_v0  ;;  %v2305_v0 = vld [vmem:[#allocation2 + $0x1c9] sm:$0xff] }
 0x277   :  { %12744 = vmatprep.mubr.f32.mxu0 %v17120_v17 }
 0x27a   :  { %12745 = vmatmul.mubr.f32.gmra.mrb[62].mxu0 %v17124_v18 }
 0x27b   :  { %12779 = vmatprep.mubr.f32.mxu0 %v2273_v19  ;;  %v2306_v19 = vld [vmem:[#allocation2 + $0x1d1] sm:$0xff] }
 0x27e   :  { %12780 = vmatmul.mubr.f32.vlgmr.msra.gmra.mrb[0].mxu0 %v2274_v24  ;;  %v17222_v24 = vld [vmem:[#allocation2 + $0x1f9] sm:$0xff] }
 0x27f   :  { %14702 = vmatpush3.bf16.msra.mxu0 %v17067_v12  ;;  %12782 = vmatprep.mubr.f32.mxu0 %v17127_v25  ;;  %v17184_v12 = vld [vmem:[#allocation2 + $0x109] sm:$0xff] }
 0x280   :  { %14704 = vmatprep.subr.bf16.mxu0 %v14703_v26 }
 0x282   :  { %12783 = vmatmul.mubr.f32.gmra.mrb[2].mxu0 %v17131_v31 }
 0x283   :  { %12785 = vmatprep.mubr.f32.mxu0 %v17133_v32  ;;  %14706 = vmatpush3.bf16.msra.mxu0 %v14703_v26  ;;  %v17226_v26 = vld [vmem:[#allocation2 + $0x201] sm:$0xff] }
 0x284   :  { %14708 = vmatprep.subr.bf16.mxu0 %v14707_v35 }
 0x286   :  { %12786 = vmatmul.mubr.f32.gmra.mrb[4].mxu0 %v17137_v38 }
 0x287   :  { %12788 = vmatprep.mubr.f32.mxu0 %v17139_v39  ;;  %14710 = vmatpush3.bf16.msra.mxu0 %v14707_v35  ;;  %v17240_v35 = vld [vmem:[#allocation2 + $0x241] sm:$0xff] }
 0x288   :  { %14712 = vmatprep.subr.bf16.mxu0 %v14711_v40 }
 0x28a   :  { %12789 = vmatmul.mubr.f32.gmra.mrb[6].mxu0 %v17143_v46 }
 0x28b   :  { %12791 = vmatprep.mubr.f32.mxu0 %v17145_v47  ;;  %14714 = vmatpush3.bf16.msra.mxu0 %v14711_v40  ;;  %v17250_v40 = vld [vmem:[#allocation2 + $0x261] sm:$0xff] }
 0x28c   :  { %14716 = vmatprep.subr.bf16.mxu0 %v14715_v51 }
 0x28e   :  { %12792 = vmatmul.mubr.f32.gmra.mrb[8].mxu0 %v17149_v58 }
 0x28f   :  { %12794 = vmatprep.mubr.f32.mxu0 %v17151_v59  ;;  %14718 = vmatpush3.bf16.msra.mxu0 %v14715_v51  ;;  %v17258_v51 = vld [vmem:[#allocation2 + $0x289] sm:$0xff] }
 0x290   :  { %14720 = vmatprep.subr.bf16.mxu0 %v14719_v61 }
 0x292   :  { %12795 = vmatmul.mubr.f32.gmra.mrb[10].mxu0 %v17155_v13 }
 0x293   :  { %12797 = vmatprep.mubr.f32.mxu0 %v17157_v41  ;;  %14722 = vmatpush3.bf16.msra.mxu0 %v14719_v61  ;;  %v17268_v61 = vld [vmem:[#allocation2 + $0x2a9] sm:$0xff] }
 0x294   :  { %14724 = vmatprep.subr.bf16.mxu0 %v14723_v11  ;;  %21394 = vst [vmem:[#allocation15_spill] sm:$0xff] %v17268_v61 }
 0x296   :  { %12798 = vmatmul.mubr.f32.gmra.mrb[12].mxu0 %v17161_v50 }
 0x297   :  { %12800 = vmatprep.mubr.f32.mxu0 %v17163_v2  ;;  %14726 = vmatpush3.bf16.msra.mxu0 %v14723_v11  ;;  %v17276_v11 = vld [vmem:[#allocation2 + $0x2d1] sm:$0xff] }
 0x298   :  { %14728 = vmatprep.subr.bf16.mxu0 %v14727_v55  ;;  %21397 = vst [vmem:[#allocation18_spill] sm:$0xff] %v17276_v11 }
 0x29a   :  { %12801 = vmatmul.mubr.f32.gmra.mrb[14].mxu0 %v17167_v62 }
 0x29b   :  { %12803 = vmatprep.mubr.f32.mxu0 %v17169_v63  ;;  %14730 = vmatpush3.bf16.msra.mxu0 %v14727_v55  ;;  %v17286_v55 = vld [vmem:[#allocation2 + $0x2f1] sm:$0xff] }
 0x29c   :  { %14732 = vmatprep.subr.bf16.mxu0 %v17171_v45  ;;  %21400 = vst [vmem:[#allocation21_spill] sm:$0xff] %v17286_v55 }
 0x29e   :  { %12804 = vmatmul.mubr.f32.gmra.mrb[16].mxu0 %v17175_v4 }
 0x29f   :  { %12806 = vmatprep.mubr.f32.mxu0 %v17177_v6 }
 0x2a2   :  { %12807 = vmatmul.mubr.f32.gmra.mrb[18].mxu0 %v17182_v8 }
 0x2a3   :  { %12809 = vmatprep.mubr.f32.mxu0 %v17184_v12 }
 0x2a6   :  { %12810 = vmatmul.mubr.f32.gmra.mrb[20].mxu0 %v17188_v52 }
 0x2a7   :  { %12812 = vmatprep.mubr.f32.mxu0 %v17190_v10 }
 0x2aa   :  { %12813 = vmatmul.mubr.f32.gmra.mrb[22].mxu0 %v17194_v5 }
 0x2ab   :  { %12815 = vmatprep.mubr.f32.mxu0 %v17196_v34 }
 0x2ae   :  { %12816 = vmatmul.mubr.f32.gmra.mrb[24].mxu0 %v17200_v33 }
 0x2af   :  { %12818 = vmatprep.mubr.f32.mxu0 %v17202_v14 }
 0x2b2   :  { %12819 = vmatmul.mubr.f32.gmra.mrb[26].mxu0 %v17206_v15 }
 0x2b3   :  { %12821 = vmatprep.mubr.f32.mxu0 %v17208_v22 }
 0x2b6   :  { %12822 = vmatmul.mubr.f32.gmra.mrb[28].mxu0 %v17212_v16 }
 0x2b7   :  { %12824 = vmatprep.mubr.f32.mxu0 %v16938_v21  ;;  %v17228_v21 = vld [vmem:[#allocation2 + $0x211] sm:$0xff] }
 0x2ba   :  { %12825 = vmatmul.mubr.f32.gmra.mrb[30].mxu0 %v16941_v60  ;;  %v17232_v60 = vld [vmem:[#allocation2 + $0x219] sm:$0xff] }
 0x2bb   :  { %12827 = vmatprep.mubr.f32.mxu0 %v2305_v0  ;;  %v17294_v0 = vld [vmem:[#allocation2 + $0x319] sm:$0xff] }
 0x2bc   :  { %21403 = vst [vmem:[#allocation83_spill] sm:$0xff] %v17294_v0 }
 0x2be   :  { %12828 = vmatmul.mubr.f32.gmra.mrb[32].mxu0 %v2306_v19  ;;  %v17298_v19 = vld [vmem:[#allocation2 + $0x321] sm:$0xff] }
 0x2bf   :  { %12830 = vmatprep.mubr.f32.mxu0 %v17217_v30  ;;  %21404 = vst [vmem:[#allocation84_spill] sm:$0xff] %v17298_v19 }
 0x2c2   :  { %12831 = vmatmul.mubr.f32.gmra.mrb[34].mxu0 %v17220_v23 }
 0x2c3   :  { %12833 = vmatprep.mubr.f32.mxu0 %v17222_v24 }
 0x2c6   :  { %12834 = vmatmul.mubr.f32.gmra.mrb[36].mxu0 %v17226_v26 }
 0x2c7   :  { %12836 = vmatprep.mubr.f32.mxu0 %v17228_v21 }
 0x2ca   :  { %12837 = vmatmul.mubr.f32.gmra.mrb[38].mxu0 %v17232_v60 }
 0x2cb   :  { %12839 = vmatprep.mubr.f32.mxu0 %v17234_v28 }
 0x2ce   :  { %12840 = vmatmul.mubr.f32.gmra.mrb[40].mxu0 %v17238_v29 }
 0x2cf   :  { %12842 = vmatprep.mubr.f32.mxu0 %v17240_v35 }
 0x2d2   :  { %12843 = vmatmul.mubr.f32.gmra.mrb[42].mxu0 %v17244_v36 }
 0x2d3   :  { %12845 = vmatprep.mubr.f32.mxu0 %v17246_v37 }
 0x2d6   :  { %12846 = vmatmul.mubr.f32.gmra.mrb[44].mxu0 %v17250_v40 }
 0x2d7   :  { %12848 = vmatprep.mubr.f32.mxu0 %v17252_v42 }
 0x2da   :  { %12849 = vmatmul.mubr.f32.gmra.mrb[46].mxu0 %v17256_v44 }
 0x2db   :  { %12851 = vmatprep.mubr.f32.mxu0 %v17258_v51 }
 0x2de   :  { %12852 = vmatmul.mubr.f32.gmra.mrb[48].mxu0 %v17262_v53  ;;  %v21413_v53 = vld [vmem:[#allocation31_spill] sm:$0xff] }
 0x2df   :  { %12854 = vmatprep.mubr.f32.mxu0 %v17264_v54  ;;  %v21409_v54 = vld [vmem:[#allocation27_spill] sm:$0xff] }
 0x2e2   :  { %12855 = vmatmul.mubr.f32.gmra.mrb[50].mxu0 %v17268_v61  ;;  %v3406_v61 = vld [vmem:[#allocation6 + $0x338] sm:$0xff] }
 0x2e3   :  { %12857 = vmatprep.mubr.f32.mxu0 %v17270_v56  ;;  %v21406_v56 = vld [vmem:[#allocation24_spill] sm:$0xff] }
 0x2e6   :  { %12858 = vmatmul.mubr.f32.gmra.mrb[52].mxu0 %v17274_v1  ;;  %v3404_v1 = vld [vmem:[#allocation6 + $0x328] sm:$0xff] }
 0x2e7   :  { %12860 = vmatprep.mubr.f32.mxu0 %v17276_v11  ;;  %v3403_v11 = vld [vmem:[#allocation6 + $0x320] sm:$0xff] }
 0x2ea   :  { %12861 = vmatmul.mubr.f32.gmra.mrb[54].mxu0 %v17280_v27  ;;  %v3402_v27 = vld [vmem:[#allocation6 + $0x318] sm:$0xff] }
 0x2eb   :  { %12863 = vmatprep.mubr.f32.mxu0 %v17282_v48  ;;  %v3401_v48 = vld [vmem:[#allocation6 + $0x310] sm:$0xff] }
 0x2ee   :  { %12864 = vmatmul.mubr.f32.gmra.mrb[56].mxu0 %v17286_v55  ;;  %v21405_v55 = vld [vmem:[#allocation23_spill] sm:$0xff] }
 0x2ef   :  { %12866 = vmatprep.mubr.f32.mxu0 %v17288_v57  ;;  %v14735_v57 = vpack.c.bf16 %v3402_v27, %v3401_v48  ;;  %v3407_v27 = vld [vmem:[#allocation6 + $0x340] sm:$0xff]  ;;  %v3408_v48 = vld [vmem:[#allocation6 + $0x348] sm:$0xff] }
 0x2f2   :  { %12867 = vmatmul.mubr.f32.gmra.mrb[58].mxu0 %v17292_v9  ;;  %v14739_v9 = vpack.c.bf16 %v3404_v1, %v3403_v11  ;;  %v3410_v1 = vld [vmem:[#allocation6 + $0x358] sm:$0xff]  ;;  %v21412_v11 = vld [vmem:[#allocation30_spill] sm:$0xff] }
 0x2f3   :  { %12869 = vmatprep.mubr.f32.mxu0 %v17294_v0  ;;  %v21407_v0 = vld [vmem:[#allocation25_spill] sm:$0xff] }
 0x2f6   :  { %12870 = vmatmul.mubr.f32.gmra.mrb[60].mxu0 %v17298_v19  ;;  %v3405_v19 = vld [vmem:[#allocation6 + $0x330] sm:$0xff] }
 0x2f7   :  { %12872 = vmatprep.mubr.f32.mxu0 %v17034_v43  ;;  %v21408_v43 = vld [vmem:[#allocation26_spill] sm:$0xff] }
 0x2fa   :  { %12873 = vmatmul.mubr.f32.gmra.mrb[62].mxu0 %v17037_v7  ;;  %v14743_v7 = vpack.c.bf16 %v3406_v61, %v3405_v19  ;;  %v3412_v61 = vld [vmem:[#allocation6 + $0x368] sm:$0xff]  ;;  %v21414_v19 = vld [vmem:[#allocation32_spill] sm:$0xff] }
 0x2fb   :  { %12907 = vmatprep.mubr.f32.mxu0 %v21405_v55  ;;  %v21410_v55 = vld [vmem:[#allocation28_spill] sm:$0xff] }
 0x2fe   :  { %12908 = vmatmul.mubr.f32.vlgmr.msra.gmra.mrb[0].mxu0 %v21406_v56  ;;  %v21411_v56 = vld [vmem:[#allocation29_spill] sm:$0xff] }
 0x2ff   :  { %14734 = vmatpush3.bf16.msra.mxu0 %v17171_v45  ;;  %12910 = vmatprep.mubr.f32.mxu0 %v21407_v0  ;;  %v14747_v45 = vpack.c.bf16 %v3408_v48, %v3407_v27  ;;  %v3409_v0 = vld [vmem:[#allocation6 + $0x350] sm:$0xff]  ;;  %v3414_v27 = vld [vmem:[#allocation6 + $0x378] sm:$0xff]  ;;  %v21416_v48 = vld [vmem:[#allocation34_spill] sm:$0xff] }
 0x300   :  { %14736 = vmatprep.subr.bf16.mxu0 %v14735_v57 }
 0x302   :  { %12911 = vmatmul.mubr.f32.gmra.mrb[2].mxu0 %v21408_v43  ;;  %v21415_v43 = vld [vmem:[#allocation33_spill] sm:$0xff] }
 0x303   :  { %12913 = vmatprep.mubr.f32.mxu0 %v21409_v54  ;;  %14738 = vmatpush3.bf16.msra.mxu0 %v14735_v57  ;;  %v14751_v54 = vpack.c.bf16 %v3410_v1, %v3409_v0  ;;  %v3411_v57 = vld [vmem:[#allocation6 + $0x360] sm:$0xff]  ;;  %v3930_v0 = vld [vmem:[#allocation6 + $0x388] sm:$0xff]  ;;  %v21418_v1 = vld [vmem:[#allocation36_spill] sm:$0xff] }
 0x304   :  { %14740 = vmatprep.subr.bf16.mxu0 %v14739_v9 }
 0x306   :  { %12914 = vmatmul.mubr.f32.gmra.mrb[4].mxu0 %v21410_v55  ;;  %v3413_v55 = vld [vmem:[#allocation6 + $0x370] sm:$0xff] }
 0x307   :  { %12916 = vmatprep.mubr.f32.mxu0 %v21411_v56  ;;  %14742 = vmatpush3.bf16.msra.mxu0 %v14739_v9  ;;  %v14755_v9 = vpack.c.bf16 %v3412_v61, %v3411_v57  ;;  %v21417_v56 = vld [vmem:[#allocation35_spill] sm:$0xff]  ;;  %v21420_v57 = vld [vmem:[#allocation38_spill] sm:$0xff] }
 0x308   :  { %14744 = vmatprep.subr.bf16.mxu0 %v14743_v7  ;;  %v21421_v61 = vld [vmem:[#allocation39_spill] sm:$0xff] }
 0x30a   :  { %12917 = vmatmul.mubr.f32.gmra.mrb[6].mxu0 %v21412_v11  ;;  %v21419_v11 = vld [vmem:[#allocation37_spill] sm:$0xff] }
 0x30b   :  { %12919 = vmatprep.mubr.f32.mxu0 %v21413_v53  ;;  %14746 = vmatpush3.bf16.msra.mxu0 %v14743_v7  ;;  %v14759_v53 = vpack.c.bf16 %v3414_v27, %v3413_v55  ;;  %v3929_v7 = vld [vmem:[#allocation6 + $0x380] sm:$0xff]  ;;  %v21425_v55 = vld [vmem:[#allocation43_spill] sm:$0xff]  ;;  %v21426_v27 = vld [vmem:[#allocation44_spill] sm:$0xff] }
 0x30c   :  { %14748 = vmatprep.subr.bf16.mxu0 %v14747_v45 }
 0x30e   :  { %12920 = vmatmul.mubr.f32.gmra.mrb[8].mxu0 %v21414_v19  ;;  %v21423_v19 = vld [vmem:[#allocation41_spill] sm:$0xff] }
 0x30f   :  { %12922 = vmatprep.mubr.f32.mxu0 %v21415_v43  ;;  %14750 = vmatpush3.bf16.msra.mxu0 %v14747_v45  ;;  %v17319_v45 = vpack.c.bf16 %v3930_v0, %v3929_v7  ;;  %v21424_v43 = vld [vmem:[#allocation42_spill] sm:$0xff]  ;;  %v21430_v7 = vld [vmem:[#allocation48_spill] sm:$0xff] }
 0x310   :  { %14752 = vmatprep.subr.bf16.mxu0 %v14751_v54  ;;  %v21432_v0 = vld [vmem:[#allocation50_spill] sm:$0xff] }
 0x312   :  { %12923 = vmatmul.mubr.f32.gmra.mrb[10].mxu0 %v21416_v48  ;;  %v21428_v48 = vld [vmem:[#allocation46_spill] sm:$0xff] }
 0x313   :  { %12925 = vmatprep.mubr.f32.mxu0 %v21417_v56  ;;  %14754 = vmatpush3.bf16.msra.mxu0 %v14751_v54  ;;  %v21422_v54 = vld [vmem:[#allocation40_spill] sm:$0xff]  ;;  %v21429_v56 = vld [vmem:[#allocation47_spill] sm:$0xff] }
 0x314   :  { %14756 = vmatprep.subr.bf16.mxu0 %v14755_v9 }
 0x316   :  { %12926 = vmatmul.mubr.f32.gmra.mrb[12].mxu0 %v21418_v1  ;;  %v21433_v1 = vld [vmem:[#allocation51_spill] sm:$0xff] }
 0x317   :  { %12928 = vmatprep.mubr.f32.mxu0 %v21419_v11  ;;  %14758 = vmatpush3.bf16.msra.mxu0 %v14755_v9  ;;  %v21427_v9 = vld [vmem:[#allocation45_spill] sm:$0xff] }
 0x318   :  { %14760 = vmatprep.subr.bf16.mxu0 %v14759_v53  ;;  %v17336_v11 = vld [vmem:[#allocation2 + $0x182] sm:$0xff] }
 0x319   :  { %21434 = vst [vmem:[#allocation23_spill] sm:$0xff] %v17336_v11 }
 0x31a   :  { %12929 = vmatmul.mubr.f32.gmra.mrb[14].mxu0 %v21420_v57  ;;  %v21435_v57 = vld [vmem:[#allocation52_spill] sm:$0xff] }
 0x31b   :  { %12931 = vmatprep.mubr.f32.mxu0 %v21421_v61  ;;  %14762 = vmatpush3.bf16.msra.mxu0 %v14759_v53  ;;  %v21431_v53 = vld [vmem:[#allocation49_spill] sm:$0xff]  ;;  %v17340_v61 = vld [vmem:[#allocation2 + $0x18a] sm:$0xff] }
 0x31c   :  { %14764 = vmatprep.subr.bf16.mxu0 %v17319_v45  ;;  %21436 = vst [vmem:[#allocation24_spill] sm:$0xff] %v17340_v61 }
 0x31e   :  { %12932 = vmatmul.mubr.f32.gmra.mrb[16].mxu0 %v21422_v54  ;;  %v21437_v54 = vld [vmem:[#allocation53_spill] sm:$0xff] }
 0x31f   :  { %12934 = vmatprep.mubr.f32.mxu0 %v21423_v19  ;;  %v21438_v19 = vld [vmem:[#allocation54_spill] sm:$0xff] }
 0x322   :  { %12935 = vmatmul.mubr.f32.gmra.mrb[18].mxu0 %v21424_v43  ;;  %v21439_v43 = vld [vmem:[#allocation55_spill] sm:$0xff] }
 0x323   :  { %12937 = vmatprep.mubr.f32.mxu0 %v21425_v55  ;;  %v21440_v55 = vld [vmem:[#allocation56_spill] sm:$0xff] }
 0x326   :  { %12938 = vmatmul.mubr.f32.gmra.mrb[20].mxu0 %v21426_v27  ;;  %v21441_v27 = vld [vmem:[#allocation57_spill] sm:$0xff] }
 0x327   :  { %12940 = vmatprep.mubr.f32.mxu0 %v21427_v9  ;;  %v21442_v9 = vld [vmem:[#allocation58_spill] sm:$0xff] }
 0x32a   :  { %12941 = vmatmul.mubr.f32.gmra.mrb[22].mxu0 %v21428_v48  ;;  %v21443_v48 = vld [vmem:[#allocation59_spill] sm:$0xff] }
 0x32b   :  { %12943 = vmatprep.mubr.f32.mxu0 %v21429_v56  ;;  %v21444_v56 = vld [vmem:[#allocation60_spill] sm:$0xff] }
 0x32e   :  { %12944 = vmatmul.mubr.f32.gmra.mrb[24].mxu0 %v21430_v7  ;;  %v21445_v7 = vld [vmem:[#allocation61_spill] sm:$0xff] }
 0x32f   :  { %12946 = vmatprep.mubr.f32.mxu0 %v21431_v53  ;;  %v21446_v53 = vld [vmem:[#allocation62_spill] sm:$0xff] }
 0x332   :  { %12947 = vmatmul.mubr.f32.gmra.mrb[26].mxu0 %v21432_v0  ;;  %v21447_v0 = vld [vmem:[#allocation63_spill] sm:$0xff] }
 0x333   :  { %12949 = vmatprep.mubr.f32.mxu0 %v21433_v1  ;;  %v21448_v1 = vld [vmem:[#allocation64_spill] sm:$0xff] }
 0x336   :  { %12950 = vmatmul.mubr.f32.gmra.mrb[28].mxu0 %v21435_v57  ;;  %v21449_v57 = vld [vmem:[#allocation65_spill] sm:$0xff] }
 0x337   :  { %12952 = vmatprep.mubr.f32.mxu0 %v17336_v11  ;;  %v3939_v11 = vld [vmem:[#allocation6 + $0x3d0] sm:$0xff] }
 0x33a   :  { %12953 = vmatmul.mubr.f32.gmra.mrb[30].mxu0 %v17340_v61  ;;  %v3339_v61 = vld [vmem:[#allocation2 + $0x68] sm:$0xff] }
 0x33b   :  { %12955 = vmatprep.mubr.f32.mxu0 %v21437_v54  ;;  %v21450_v54 = vld [vmem:[#allocation66_spill] sm:$0xff] }
 0x33e   :  { %12956 = vmatmul.mubr.f32.gmra.mrb[32].mxu0 %v21438_v19  ;;  %v21451_v19 = vld [vmem:[#allocation67_spill] sm:$0xff] }
 0x33f   :  { %12958 = vmatprep.mubr.f32.mxu0 %v21439_v43  ;;  %v21452_v43 = vld [vmem:[#allocation68_spill] sm:$0xff] }
 0x342   :  { %12959 = vmatmul.mubr.f32.gmra.mrb[34].mxu0 %v21440_v55  ;;  %v21453_v55 = vld [vmem:[#allocation69_spill] sm:$0xff] }
 0x343   :  { %12961 = vmatprep.mubr.f32.mxu0 %v21441_v27  ;;  %v21454_v27 = vld [vmem:[#allocation70_spill] sm:$0xff] }
 0x346   :  { %12962 = vmatmul.mubr.f32.gmra.mrb[36].mxu0 %v21442_v9  ;;  %v21455_v9 = vld [vmem:[#allocation71_spill] sm:$0xff] }
 0x347   :  { %12964 = vmatprep.mubr.f32.mxu0 %v21443_v48  ;;  %v21456_v48 = vld [vmem:[#allocation72_spill] sm:$0xff] }
 0x34a   :  { %12965 = vmatmul.mubr.f32.gmra.mrb[38].mxu0 %v21444_v56  ;;  %v21457_v56 = vld [vmem:[#allocation73_spill] sm:$0xff] }
 0x34b   :  { %12967 = vmatprep.mubr.f32.mxu0 %v21445_v7  ;;  %v21458_v7 = vld [vmem:[#allocation74_spill] sm:$0xff] }
 0x34e   :  { %12968 = vmatmul.mubr.f32.gmra.mrb[40].mxu0 %v21446_v53  ;;  %v21459_v53 = vld [vmem:[#allocation75_spill] sm:$0xff] }
 0x34f   :  { %12970 = vmatprep.mubr.f32.mxu0 %v21447_v0  ;;  %v21460_v0 = vld [vmem:[#allocation76_spill] sm:$0xff] }
 0x352   :  { %12971 = vmatmul.mubr.f32.gmra.mrb[42].mxu0 %v21448_v1  ;;  %v21461_v1 = vld [vmem:[#allocation77_spill] sm:$0xff] }
 0x353   :  { %12973 = vmatprep.mubr.f32.mxu0 %v21449_v57  ;;  %v21462_v57 = vld [vmem:[#allocation78_spill] sm:$0xff] }
 0x356   :  { %12974 = vmatmul.mubr.f32.gmra.mrb[44].mxu0 %v21450_v54  ;;  %v21463_v54 = vld [vmem:[#allocation79_spill] sm:$0xff] }
 0x357   :  { %12976 = vmatprep.mubr.f32.mxu0 %v21451_v19  ;;  %v21464_v19 = vld [vmem:[#allocation80_spill] sm:$0xff] }
 0x35a   :  { %12977 = vmatmul.mubr.f32.gmra.mrb[46].mxu0 %v21452_v43  ;;  %v21465_v43 = vld [vmem:[#allocation81_spill] sm:$0xff] }
 0x35b   :  { %12979 = vmatprep.mubr.f32.mxu0 %v21453_v55  ;;  %v17372_v55 = vld [vmem:[#allocation2 + $0x332] sm:$0xff] }
 0x35c   :  { %21466 = vst [vmem:[#allocation25_spill] sm:$0xff] %v17372_v55 }
 0x35e   :  { %12980 = vmatmul.mubr.f32.gmra.mrb[48].mxu0 %v21454_v27  ;;  %v17376_v27 = vld [vmem:[#allocation2 + $0x33a] sm:$0xff] }
 0x35f   :  { %12982 = vmatprep.mubr.f32.mxu0 %v21455_v9  ;;  %21467 = vst [vmem:[#allocation26_spill] sm:$0xff] %v17376_v27  ;;  %v3334_v9 = vld [vmem:[#allocation2 + $0x30] sm:$0xff] }
 0x362   :  { %12983 = vmatmul.mubr.f32.gmra.mrb[50].mxu0 %v21456_v48  ;;  %v3931_v48 = vld [vmem:[#allocation6 + $0x390] sm:$0xff] }
 0x363   :  { %12985 = vmatprep.mubr.f32.mxu0 %v21457_v56  ;;  %v3932_v56 = vld [vmem:[#allocation6 + $0x398] sm:$0xff] }
 0x366   :  { %12986 = vmatmul.mubr.f32.gmra.mrb[52].mxu0 %v21458_v7  ;;  %v3335_v7 = vld [vmem:[#allocation2 + $0x38] sm:$0xff] }
 0x367   :  { %12988 = vmatprep.mubr.f32.mxu0 %v21459_v53  ;;  %v3336_v53 = vld [vmem:[#allocation2 + $0x48] sm:$0xff] }
 0x36a   :  { %12989 = vmatmul.mubr.f32.gmra.mrb[54].mxu0 %v21460_v0  ;;  %v14767_v0 = vpack.c.bf16 %v3932_v56, %v3931_v48  ;;  %v3937_v48 = vld [vmem:[#allocation6 + $0x3c0] sm:$0xff]  ;;  %v3938_v56 = vld [vmem:[#allocation6 + $0x3c8] sm:$0xff] }
 0x36b   :  { %12991 = vmatprep.mubr.f32.mxu0 %v21461_v1  ;;  %v3933_v1 = vld [vmem:[#allocation6 + $0x3a0] sm:$0xff] }
 0x36e   :  { %12992 = vmatmul.mubr.f32.gmra.mrb[56].mxu0 %v21462_v57  ;;  %v3934_v57 = vld [vmem:[#allocation6 + $0x3a8] sm:$0xff] }
 0x36f   :  { %12994 = vmatprep.mubr.f32.mxu0 %v21463_v54  ;;  %v3338_v54 = vld [vmem:[#allocation2 + $0x60] sm:$0xff] }
 0x372   :  { %12995 = vmatmul.mubr.f32.gmra.mrb[58].mxu0 %v21464_v19  ;;  %v14771_v19 = vpack.c.bf16 %v3934_v57, %v3933_v1  ;;  %v3940_v1 = vld [vmem:[#allocation6 + $0x3d8] sm:$0xff] }
 0x373   :  { %12997 = vmatprep.mubr.f32.mxu0 %v21465_v43  ;;  %v3935_v43 = vld [vmem:[#allocation6 + $0x3b0] sm:$0xff]  ;;  %v3343_v57 = vld [vmem:[#allocation2 + $0x98] sm:$0xff] }
 0x376   :  { %12998 = vmatmul.mubr.f32.gmra.mrb[60].mxu0 %v17048_v3  ;;  %v3337_v3 = vld [vmem:[#allocation2 + $0x50] sm:$0xff] }
 0x377   :  { %13000 = vmatprep.mubr.f32.mxu0 %v17372_v55  ;;  %v3936_v55 = vld [vmem:[#allocation6 + $0x3b8] sm:$0xff] }
 0x37a   :  { %13001 = vmatmul.mubr.f32.gmra.mrb[62].mxu0 %v17376_v27  ;;  %v14775_v27 = vpack.c.bf16 %v3936_v55, %v3935_v43  ;;  %v3942_v55 = vld [vmem:[#allocation6 + $0x3e8] sm:$0xff]  ;;  %v3346_v43 = vld [vmem:[#allocation2 + $0xc0] sm:$0xff] }
 0x37b   :  { %13035 = vmatprep.mubr.f32.mxu0 %v3334_v9  ;;  %v3340_v9 = vld [vmem:[#allocation2 + $0x78] sm:$0xff] }
 0x37e   :  { %13036 = vmatmul.mubr.f32.vlgmr.msra.gmra.mrb[0].mxu0 %v3335_v7  ;;  %v3341_v7 = vld [vmem:[#allocation2 + $0x80] sm:$0xff] }
 0x37f   :  { %14766 = vmatpush3.bf16.msra.mxu0 %v17319_v45  ;;  %13038 = vmatprep.mubr.f32.mxu0 %v3336_v53  ;;  %v3342_v45 = vld [vmem:[#allocation2 + $0x90] sm:$0xff]  ;;  %v14779_v53 = vpack.c.bf16 %v3938_v56, %v3937_v48  ;;  %v3944_v48 = vld [vmem:[#allocation6 + $0x3f8] sm:$0xff]  ;;  %v3347_v56 = vld [vmem:[#allocation2 + $0xc8] sm:$0xff] }
 0x380   :  { %14768 = vmatprep.subr.bf16.mxu0 %v14767_v0 }
 0x382   :  { %13039 = vmatmul.mubr.f32.gmra.mrb[2].mxu0 %v3337_v3  ;;  %v3344_v3 = vld [vmem:[#allocation2 + $0xa8] sm:$0xff] }
 0x383   :  { %13041 = vmatprep.mubr.f32.mxu0 %v3338_v54  ;;  %14770 = vmatpush3.bf16.msra.mxu0 %v14767_v0  ;;  %v14783_v0 = vpack.c.bf16 %v3940_v1, %v3939_v11  ;;  %v3941_v54 = vld [vmem:[#allocation6 + $0x3e0] sm:$0xff]  ;;  %v4460_v11 = vld [vmem:[#allocation6 + $0x408] sm:$0xff] }
 0x384   :  { %14772 = vmatprep.subr.bf16.mxu0 %v14771_v19  ;;  %v3349_v1 = vld [vmem:[#allocation2 + $0xe0] sm:$0xff] }
 0x386   :  { %13042 = vmatmul.mubr.f32.gmra.mrb[4].mxu0 %v3339_v61  ;;  %v3345_v61 = vld [vmem:[#allocation2 + $0xb0] sm:$0xff] }
 0x387   :  { %13044 = vmatprep.mubr.f32.mxu0 %v3340_v9  ;;  %14774 = vmatpush3.bf16.msra.mxu0 %v14771_v19  ;;  %v14787_v19 = vpack.c.bf16 %v3942_v55, %v3941_v54  ;;  %v3943_v9 = vld [vmem:[#allocation6 + $0x3f0] sm:$0xff]  ;;  %v3352_v54 = vld [vmem:[#allocation2 + $0x108] sm:$0xff]  ;;  %v3354_v55 = vld [vmem:[#allocation2 + $0x120] sm:$0xff] }
 0x388   :  { %14776 = vmatprep.subr.bf16.mxu0 %v14775_v27 }
 0x38a   :  { %13045 = vmatmul.mubr.f32.gmra.mrb[6].mxu0 %v3341_v7  ;;  %v3348_v7 = vld [vmem:[#allocation2 + $0xd8] sm:$0xff] }
 0x38b   :  { %13047 = vmatprep.mubr.f32.mxu0 %v3342_v45  ;;  %14778 = vmatpush3.bf16.msra.mxu0 %v14775_v27  ;;  %v14791_v27 = vpack.c.bf16 %v3944_v48, %v3943_v9  ;;  %v4459_v45 = vld [vmem:[#allocation6 + $0x400] sm:$0xff]  ;;  %v3358_v9 = vld [vmem:[#allocation2 + $0x150] sm:$0xff]  ;;  %v3359_v48 = vld [vmem:[#allocation2 + $0x158] sm:$0xff] }
 0x38c   :  { %14780 = vmatprep.subr.bf16.mxu0 %v14779_v53 }
 0x38e   :  { %13048 = vmatmul.mubr.f32.gmra.mrb[8].mxu0 %v3343_v57  ;;  %v3350_v57 = vld [vmem:[#allocation2 + $0xf0] sm:$0xff] }
 0x38f   :  { %13050 = vmatprep.mubr.f32.mxu0 %v3344_v3  ;;  %14782 = vmatpush3.bf16.msra.mxu0 %v14779_v53  ;;  %v17380_v53 = vpack.c.bf16 %v4460_v11, %v4459_v45  ;;  %v3351_v3 = vld [vmem:[#allocation2 + $0xf8] sm:$0xff]  ;;  %v3366_v45 = vld [vmem:[#allocation2 + $0x1e0] sm:$0xff]  ;;  %v16150_v11 = vld [vmem:[#allocation2 + $0x8] sm:$0xff] }
 0x390   :  { %14784 = vmatprep.subr.bf16.mxu0 %v14783_v0 }
 0x392   :  { %13051 = vmatmul.mubr.f32.gmra.mrb[10].mxu0 %v3345_v61  ;;  %v3355_v61 = vld [vmem:[#allocation2 + $0x128] sm:$0xff] }
 0x393   :  { %13053 = vmatprep.mubr.f32.mxu0 %v3346_v43  ;;  %14786 = vmatpush3.bf16.msra.mxu0 %v14783_v0  ;;  %v3353_v0 = vld [vmem:[#allocation2 + $0x110] sm:$0xff]  ;;  %v3356_v43 = vld [vmem:[#allocation2 + $0x138] sm:$0xff] }
 0x394   :  { %14788 = vmatprep.subr.bf16.mxu0 %v14787_v19 }
 0x396   :  { %13054 = vmatmul.mubr.f32.gmra.mrb[12].mxu0 %v3347_v56  ;;  %v3360_v56 = vld [vmem:[#allocation2 + $0x168] sm:$0xff] }
 0x397   :  { %13056 = vmatprep.mubr.f32.mxu0 %v3348_v7  ;;  %14790 = vmatpush3.bf16.msra.mxu0 %v14787_v19  ;;  %v3357_v19 = vld [vmem:[#allocation2 + $0x140] sm:$0xff]  ;;  %v3361_v7 = vld [vmem:[#allocation2 + $0x170] sm:$0xff] }
 0x398   :  { %14792 = vmatprep.subr.bf16.mxu0 %v14791_v27 }
 0x39a   :  { %13057 = vmatmul.mubr.f32.gmra.mrb[14].mxu0 %v3349_v1  ;;  %v3367_v1 = vld [vmem:[#allocation2 + $0x1e8] sm:$0xff] }
 0x39b   :  { %13059 = vmatprep.mubr.f32.mxu0 %v3350_v57  ;;  %14794 = vmatpush3.bf16.msra.mxu0 %v14791_v27  ;;  %v3364_v27 = vld [vmem:[#allocation2 + $0x198] sm:$0xff] }
 0x39c   :  { %14796 = vmatprep.subr.bf16.mxu0 %v17380_v53  ;;  %v3368_v57 = vld [vmem:[#allocation2 + $0x1f8] sm:$0xff] }
 0x39e   :  { %13060 = vmatmul.mubr.f32.gmra.mrb[16].mxu0 %v3351_v3  ;;  %v3369_v3 = vld [vmem:[#allocation2 + $0x200] sm:$0xff] }
 0x39f   :  { %13062 = vmatprep.mubr.f32.mxu0 %v3352_v54  ;;  %v3370_v54 = vld [vmem:[#allocation2 + $0x210] sm:$0xff] }
 0x3a2   :  { %13063 = vmatmul.mubr.f32.gmra.mrb[18].mxu0 %v3353_v0  ;;  %v3371_v0 = vld [vmem:[#allocation2 + $0x218] sm:$0xff] }
 0x3a3   :  { %13065 = vmatprep.mubr.f32.mxu0 %v3354_v55  ;;  %v3372_v55 = vld [vmem:[#allocation2 + $0x228] sm:$0xff] }
 0x3a6   :  { %13066 = vmatmul.mubr.f32.gmra.mrb[20].mxu0 %v3355_v61  ;;  %v3374_v61 = vld [vmem:[#allocation2 + $0x240] sm:$0xff] }
 0x3a7   :  { %13068 = vmatprep.mubr.f32.mxu0 %v3356_v43  ;;  %v3376_v43 = vld [vmem:[#allocation2 + $0x258] sm:$0xff] }
 0x3aa   :  { %13069 = vmatmul.mubr.f32.gmra.mrb[22].mxu0 %v3357_v19  ;;  %v3377_v19 = vld [vmem:[#allocation2 + $0x260] sm:$0xff] }
 0x3ab   :  { %13071 = vmatprep.mubr.f32.mxu0 %v3358_v9  ;;  %v3378_v9 = vld [vmem:[#allocation2 + $0x270] sm:$0xff] }
 0x3ae   :  { %13072 = vmatmul.mubr.f32.gmra.mrb[24].mxu0 %v3359_v48  ;;  %v3379_v48 = vld [vmem:[#allocation2 + $0x278] sm:$0xff] }
 0x3af   :  { %13074 = vmatprep.mubr.f32.mxu0 %v3360_v56  ;;  %v3380_v56 = vld [vmem:[#allocation2 + $0x288] sm:$0xff] }
 0x3b2   :  { %13075 = vmatmul.mubr.f32.gmra.mrb[26].mxu0 %v3361_v7  ;;  %v3381_v7 = vld [vmem:[#allocation2 + $0x290] sm:$0xff] }
 0x3b3   :  { %13077 = vmatprep.mubr.f32.mxu0 %v17084_v20  ;;  %v3373_v20 = vld [vmem:[#allocation2 + $0x230] sm:$0xff] }
 0x3b6   :  { %13078 = vmatmul.mubr.f32.gmra.mrb[28].mxu0 %v17088_v49  ;;  %v3375_v49 = vld [vmem:[#allocation2 + $0x248] sm:$0xff] }
 0x3b7   :  { %13080 = vmatprep.mubr.f32.mxu0 %v3364_v27  ;;  %v3382_v27 = vld [vmem:[#allocation2 + $0x2a0] sm:$0xff] }
 0x3ba   :  { %13081 = vmatmul.mubr.f32.gmra.mrb[30].mxu0 %v16150_v11 }
 0x3bb   :  { %13083 = vmatprep.mubr.f32.mxu0 %v3366_v45  ;;  %v3383_v45 = vld [vmem:[#allocation2 + $0x2a8] sm:$0xff] }
 0x3be   :  { %13084 = vmatmul.mubr.f32.gmra.mrb[32].mxu0 %v3367_v1  ;;  %v3384_v1 = vld [vmem:[#allocation2 + $0x2b8] sm:$0xff] }
 0x3bf   :  { %13086 = vmatprep.mubr.f32.mxu0 %v3368_v57  ;;  %v3385_v57 = vld [vmem:[#allocation2 + $0x2c0] sm:$0xff] }
 0x3c2   :  { %13087 = vmatmul.mubr.f32.gmra.mrb[34].mxu0 %v3369_v3  ;;  %v3386_v3 = vld [vmem:[#allocation2 + $0x2d0] sm:$0xff] }
 0x3c3   :  { %13089 = vmatprep.mubr.f32.mxu0 %v3370_v54  ;;  %v3387_v54 = vld [vmem:[#allocation2 + $0x2d8] sm:$0xff] }
 0x3c6   :  { %13090 = vmatmul.mubr.f32.gmra.mrb[36].mxu0 %v3371_v0  ;;  %v3388_v0 = vld [vmem:[#allocation2 + $0x2e8] sm:$0xff] }
 0x3c7   :  { %13092 = vmatprep.mubr.f32.mxu0 %v3372_v55  ;;  %v3389_v55 = vld [vmem:[#allocation2 + $0x2f0] sm:$0xff] }
 0x3ca   :  { %13093 = vmatmul.mubr.f32.gmra.mrb[38].mxu0 %v3373_v20  ;;  %v3390_v20 = vld [vmem:[#allocation2 + $0x300] sm:$0xff] }
 0x3cb   :  { %13095 = vmatprep.mubr.f32.mxu0 %v3374_v61  ;;  %v3391_v61 = vld [vmem:[#allocation2 + $0x308] sm:$0xff] }
 0x3ce   :  { %13096 = vmatmul.mubr.f32.gmra.mrb[40].mxu0 %v3375_v49  ;;  %v3392_v49 = vld [vmem:[#allocation2 + $0x318] sm:$0xff] }
 0x3cf   :  { %13098 = vmatprep.mubr.f32.mxu0 %v3376_v43  ;;  %v3393_v43 = vld [vmem:[#allocation2 + $0x320] sm:$0xff] }
 0x3d2   :  { %13099 = vmatmul.mubr.f32.gmra.mrb[42].mxu0 %v3377_v19  ;;  %v3396_v19 = vld [vmem:[#allocation2 + $0x348] sm:$0xff] }
 0x3d3   :  { %13101 = vmatprep.mubr.f32.mxu0 %v3378_v9  ;;  %v4461_v9 = vld [vmem:[#allocation6 + $0x410] sm:$0xff] }
 0x3d6   :  { %13102 = vmatmul.mubr.f32.gmra.mrb[44].mxu0 %v3379_v48  ;;  %v4462_v48 = vld [vmem:[#allocation6 + $0x418] sm:$0xff] }
 0x3d7   :  { %13104 = vmatprep.mubr.f32.mxu0 %v3380_v56  ;;  %v14799_v56 = vpack.c.bf16 %v4462_v48, %v4461_v9  ;;  %v4416_v9 = vld [vmem:[#allocation2 + $0x13a] sm:$0xff]  ;;  %v4417_v48 = vld [vmem:[#allocation2 + $0x142] sm:$0xff] }
 0x3da   :  { %13105 = vmatmul.mubr.f32.gmra.mrb[46].mxu0 %v3381_v7  ;;  %v4463_v7 = vld [vmem:[#allocation6 + $0x420] sm:$0xff] }
 0x3db   :  { %13107 = vmatprep.mubr.f32.mxu0 %v3382_v27  ;;  %v4464_v27 = vld [vmem:[#allocation6 + $0x428] sm:$0xff] }
 0x3de   :  { %13108 = vmatmul.mubr.f32.gmra.mrb[48].mxu0 %v3383_v45  ;;  %v4465_v45 = vld [vmem:[#allocation6 + $0x430] sm:$0xff] }
 0x3df   :  { %13110 = vmatprep.mubr.f32.mxu0 %v3384_v1  ;;  %v4466_v1 = vld [vmem:[#allocation6 + $0x438] sm:$0xff] }
 0x3e2   :  { %13111 = vmatmul.mubr.f32.gmra.mrb[50].mxu0 %v3385_v57  ;;  %v4472_v57 = vld [vmem:[#allocation6 + $0x468] sm:$0xff] }
 0x3e3   :  { %13113 = vmatprep.mubr.f32.mxu0 %v3386_v3  ;;  %v4474_v3 = vld [vmem:[#allocation6 + $0x478] sm:$0xff] }
 0x3e6   :  { %13114 = vmatmul.mubr.f32.gmra.mrb[52].mxu0 %v3387_v54  ;;  %v4408_v54 = vld [vmem:[#allocation2 + $0xda] sm:$0xff] }
 0x3e7   :  { %13116 = vmatprep.mubr.f32.mxu0 %v3388_v0  ;;  %v4409_v0 = vld [vmem:[#allocation2 + $0xe2] sm:$0xff] }
 0x3ea   :  { %13117 = vmatmul.mubr.f32.gmra.mrb[54].mxu0 %v3389_v55  ;;  %v4410_v55 = vld [vmem:[#allocation2 + $0xf2] sm:$0xff] }
 0x3eb   :  { %13119 = vmatprep.mubr.f32.mxu0 %v3390_v20  ;;  %v4411_v20 = vld [vmem:[#allocation2 + $0xfa] sm:$0xff] }
 0x3ee   :  { %13120 = vmatmul.mubr.f32.gmra.mrb[56].mxu0 %v3391_v61  ;;  %v4412_v61 = vld [vmem:[#allocation2 + $0x10a] sm:$0xff] }
 0x3ef   :  { %13122 = vmatprep.mubr.f32.mxu0 %v3392_v49  ;;  %v4413_v49 = vld [vmem:[#allocation2 + $0x112] sm:$0xff] }
 0x3f2   :  { %13123 = vmatmul.mubr.f32.gmra.mrb[58].mxu0 %v3393_v43  ;;  %v4414_v43 = vld [vmem:[#allocation2 + $0x122] sm:$0xff] }
 0x3f3   :  { %13125 = vmatprep.mubr.f32.mxu0 %v17120_v17  ;;  %v14803_v17 = vpack.c.bf16 %v4464_v27, %v4463_v7  ;;  %v4419_v7 = vld [vmem:[#allocation2 + $0x15a] sm:$0xff]  ;;  %v4420_v27 = vld [vmem:[#allocation2 + $0x16a] sm:$0xff] }
 0x3f6   :  { %13126 = vmatmul.mubr.f32.gmra.mrb[60].mxu0 %v17124_v18  ;;  %v14807_v18 = vpack.c.bf16 %v4466_v1, %v4465_v45  ;;  %v21481_v45 = vld [vmem:[#allocation23_spill] sm:$0xff]  ;;  %v4424_v1 = vld [vmem:[#allocation2 + $0x19a] sm:$0xff] }
 0x3f7   :  { %13128 = vmatprep.mubr.f32.mxu0 %v3396_v19  ;;  %v4415_v19 = vld [vmem:[#allocation2 + $0x12a] sm:$0xff] }
 0x3fa   :  { %13129 = vmatmul.mubr.f32.gmra.mrb[62].mxu0 %v16150_v11  ;;  %v4468_v11 = vld [vmem:[#allocation6 + $0x448] sm:$0xff] }
 0x3fb   :  { %13163 = vmatprep.mubr.f32.mxu0 %v17127_v25  ;;  %v4467_v25 = vld [vmem:[#allocation6 + $0x440] sm:$0xff] }
 0x3fe   :  { %13164 = vmatmul.mubr.f32.vlgmr.msra.gmra.mrb[0].mxu0 %v17131_v31  ;;  %v14811_v31 = vpack.c.bf16 %v4468_v11, %v4467_v25  ;;  %v4425_v25 = vld [vmem:[#allocation2 + $0x1a2] sm:$0xff] }
 0x3ff   :  { %14798 = vmatpush3.bf16.msra.mxu0 %v17380_v53  ;;  %13166 = vmatprep.mubr.f32.mxu0 %v17133_v32  ;;  %v4469_v32 = vld [vmem:[#allocation6 + $0x450] sm:$0xff]  ;;  %v4470_v53 = vld [vmem:[#allocation6 + $0x458] sm:$0xff]  ;;  %v4426_v11 = vld [vmem:[#allocation2 + $0x1e2] sm:$0xff] }
 0x400   :  { %14800 = vmatprep.subr.bf16.mxu0 %v14799_v56 }
 0x402   :  { %13167 = vmatmul.mubr.f32.gmra.mrb[2].mxu0 %v17137_v38  ;;  %v14815_v38 = vpack.c.bf16 %v4470_v53, %v4469_v32  ;;  %v4428_v32 = vld [vmem:[#allocation2 + $0x1fa] sm:$0xff]  ;;  %v4429_v53 = vld [vmem:[#allocation2 + $0x202] sm:$0xff] }
 0x403   :  { %13169 = vmatprep.mubr.f32.mxu0 %v17139_v39  ;;  %14802 = vmatpush3.bf16.msra.mxu0 %v14799_v56  ;;  %v4471_v39 = vld [vmem:[#allocation6 + $0x460] sm:$0xff]  ;;  %v4418_v56 = vld [vmem:[#allocation2 + $0x152] sm:$0xff] }
 0x404   :  { %14804 = vmatprep.subr.bf16.mxu0 %v14803_v17 }
 0x406   :  { %13170 = vmatmul.mubr.f32.gmra.mrb[4].mxu0 %v17143_v46  ;;  %v14819_v46 = vpack.c.bf16 %v4472_v57, %v4471_v39  ;;  %v4431_v39 = vld [vmem:[#allocation2 + $0x21a] sm:$0xff]  ;;  %v4432_v57 = vld [vmem:[#allocation2 + $0x22a] sm:$0xff] }
 0x407   :  { %13172 = vmatprep.mubr.f32.mxu0 %v17145_v47  ;;  %14806 = vmatpush3.bf16.msra.mxu0 %v14803_v17  ;;  %v4473_v47 = vld [vmem:[#allocation6 + $0x470] sm:$0xff] }
 0x408   :  { %14808 = vmatprep.subr.bf16.mxu0 %v14807_v18  ;;  %v4421_v17 = vld [vmem:[#allocation2 + $0x172] sm:$0xff] }
 0x40a   :  { %13173 = vmatmul.mubr.f32.gmra.mrb[6].mxu0 %v17149_v58  ;;  %v14823_v58 = vpack.c.bf16 %v4474_v3, %v4473_v47  ;;  %v4434_v47 = vld [vmem:[#allocation2 + $0x242] sm:$0xff]  ;;  %v4435_v3 = vld [vmem:[#allocation2 + $0x24a] sm:$0xff] }
 0x40b   :  { %13175 = vmatprep.mubr.f32.mxu0 %v17151_v59  ;;  %14810 = vmatpush3.bf16.msra.mxu0 %v14807_v18  ;;  %v3892_v59 = vld [vmem:[#allocation2 + $0x181] sm:$0xff]  ;;  %v21482_v18 = vld [vmem:[#allocation24_spill] sm:$0xff] }
 0x40c   :  { %14812 = vmatprep.subr.bf16.mxu0 %v14811_v31 }
 0x40e   :  { %13176 = vmatmul.mubr.f32.gmra.mrb[8].mxu0 %v17155_v13  ;;  %v3893_v13 = vld [vmem:[#allocation2 + $0x189] sm:$0xff] }
 0x40f   :  { %13178 = vmatprep.mubr.f32.mxu0 %v17157_v41  ;;  %14814 = vmatpush3.bf16.msra.mxu0 %v14811_v31  ;;  %v3894_v41 = vld [vmem:[#allocation2 + $0x199] sm:$0xff]  ;;  %v4427_v31 = vld [vmem:[#allocation2 + $0x1ea] sm:$0xff] }
 0x410   :  { %14816 = vmatprep.subr.bf16.mxu0 %v14815_v38 }
 0x412   :  { %13179 = vmatmul.mubr.f32.gmra.mrb[10].mxu0 %v17161_v50  ;;  %v3895_v50 = vld [vmem:[#allocation2 + $0x1a1] sm:$0xff] }
 0x413   :  { %13181 = vmatprep.mubr.f32.mxu0 %v17163_v2  ;;  %14818 = vmatpush3.bf16.msra.mxu0 %v14815_v38  ;;  %v21468_v2 = vld [vmem:[#allocation13_spill] sm:$0xff]  ;;  %v4430_v38 = vld [vmem:[#allocation2 + $0x212] sm:$0xff] }
 0x414   :  { %14820 = vmatprep.subr.bf16.mxu0 %v14819_v46 }
 0x416   :  { %13182 = vmatmul.mubr.f32.gmra.mrb[12].mxu0 %v17167_v62  ;;  %v21469_v62 = vld [vmem:[#allocation14_spill] sm:$0xff] }
 0x417   :  { %13184 = vmatprep.mubr.f32.mxu0 %v17169_v63  ;;  %14822 = vmatpush3.bf16.msra.mxu0 %v14819_v46  ;;  %v21470_v63 = vld [vmem:[#allocation15_spill] sm:$0xff] }
 0x418   :  { %14824 = vmatprep.subr.bf16.mxu0 %v14823_v58  ;;  %v4433_v46 = vld [vmem:[#allocation2 + $0x232] sm:$0xff] }
 0x41a   :  { %13185 = vmatmul.mubr.f32.gmra.mrb[14].mxu0 %v17175_v4  ;;  %v21471_v4 = vld [vmem:[#allocation16_spill] sm:$0xff] }
 0x41b   :  { %13187 = vmatprep.mubr.f32.mxu0 %v17177_v6  ;;  %14826 = vmatpush3.bf16.msra.mxu0 %v14823_v58  ;;  %v21472_v6 = vld [vmem:[#allocation17_spill] sm:$0xff] }
 0x41c   :  { %v4436_v58 = vld [vmem:[#allocation2 + $0x25a] sm:$0xff] }
 0x41e   :  { %13188 = vmatmul.mubr.f32.gmra.mrb[16].mxu0 %v17182_v8  ;;  %v21473_v8 = vld [vmem:[#allocation18_spill] sm:$0xff] }
 0x41f   :  { %13190 = vmatprep.mubr.f32.mxu0 %v17184_v12  ;;  %v21474_v12 = vld [vmem:[#allocation19_spill] sm:$0xff] }
 0x422   :  { %13191 = vmatmul.mubr.f32.gmra.mrb[18].mxu0 %v17188_v52  ;;  %v21475_v52 = vld [vmem:[#allocation20_spill] sm:$0xff] }
 0x423   :  { %13193 = vmatprep.mubr.f32.mxu0 %v17190_v10  ;;  %v21476_v10 = vld [vmem:[#allocation21_spill] sm:$0xff] }
 0x426   :  { %13194 = vmatmul.mubr.f32.gmra.mrb[20].mxu0 %v17194_v5  ;;  %v21477_v5 = vld [vmem:[#allocation22_spill] sm:$0xff] }
 0x427   :  { %13196 = vmatprep.mubr.f32.mxu0 %v17196_v34  ;;  %v21478_v34 = vld [vmem:[#allocation82_spill] sm:$0xff] }
 0x42a   :  { %13197 = vmatmul.mubr.f32.gmra.mrb[22].mxu0 %v17200_v33  ;;  %v21479_v33 = vld [vmem:[#allocation83_spill] sm:$0xff] }
 0x42b   :  { %13199 = vmatprep.mubr.f32.mxu0 %v17202_v14  ;;  %v3924_v14 = vld [vmem:[#allocation2 + $0x331] sm:$0xff] }
 0x42e   :  { %13200 = vmatmul.mubr.f32.gmra.mrb[24].mxu0 %v17206_v15  ;;  %v21480_v15 = vld [vmem:[#allocation84_spill] sm:$0xff] }
 0x42f   :  { %13202 = vmatprep.mubr.f32.mxu0 %v17208_v22  ;;  %v3925_v22 = vld [vmem:[#allocation2 + $0x339] sm:$0xff] }
 0x432   :  { %13203 = vmatmul.mubr.f32.gmra.mrb[26].mxu0 %v17212_v16  ;;  %v3926_v16 = vld [vmem:[#allocation2 + $0x349] sm:$0xff] }
 0x433   :  { %13205 = vmatprep.mubr.f32.mxu0 %v3892_v59  ;;  %v4437_v59 = vld [vmem:[#allocation2 + $0x262] sm:$0xff] }
 0x436   :  { %13206 = vmatmul.mubr.f32.gmra.mrb[28].mxu0 %v3893_v13  ;;  %v4438_v13 = vld [vmem:[#allocation2 + $0x272] sm:$0xff] }
 0x437   :  { %13208 = vmatprep.mubr.f32.mxu0 %v3894_v41  ;;  %v4439_v41 = vld [vmem:[#allocation2 + $0x27a] sm:$0xff] }
 0x43a   :  { %13209 = vmatmul.mubr.f32.gmra.mrb[30].mxu0 %v3895_v50  ;;  %v4440_v50 = vld [vmem:[#allocation2 + $0x28a] sm:$0xff] }
 0x43b   :  { %13211 = vmatprep.mubr.f32.mxu0 %v17217_v30  ;;  %v3927_v30 = vld [vmem:[#allocation2 + $0x351] sm:$0xff] }
 0x43e   :  { %13212 = vmatmul.mubr.f32.gmra.mrb[32].mxu0 %v17220_v23  ;;  %v4394_v23 = vld [vmem:[#allocation2 + $0x32] sm:$0xff] }
 0x43f   :  { %13214 = vmatprep.mubr.f32.mxu0 %v17222_v24  ;;  %v4395_v24 = vld [vmem:[#allocation2 + $0x3a] sm:$0xff] }
 0x442   :  { %13215 = vmatmul.mubr.f32.gmra.mrb[34].mxu0 %v17226_v26  ;;  %v4396_v26 = vld [vmem:[#allocation2 + $0x4a] sm:$0xff] }
 0x443   :  { %13217 = vmatprep.mubr.f32.mxu0 %v17228_v21  ;;  %v4397_v21 = vld [vmem:[#allocation2 + $0x52] sm:$0xff] }
 0x446   :  { %13218 = vmatmul.mubr.f32.gmra.mrb[36].mxu0 %v17232_v60  ;;  %v4398_v60 = vld [vmem:[#allocation2 + $0x62] sm:$0xff] }
 0x447   :  { %13220 = vmatprep.mubr.f32.mxu0 %v17234_v28  ;;  %v4399_v28 = vld [vmem:[#allocation2 + $0x6a] sm:$0xff] }
 0x44a   :  { %13221 = vmatmul.mubr.f32.gmra.mrb[38].mxu0 %v17238_v29  ;;  %v4400_v29 = vld [vmem:[#allocation2 + $0x7a] sm:$0xff] }
 0x44b   :  { %13223 = vmatprep.mubr.f32.mxu0 %v17240_v35  ;;  %v4401_v35 = vld [vmem:[#allocation2 + $0x82] sm:$0xff] }
 0x44e   :  { %13224 = vmatmul.mubr.f32.gmra.mrb[40].mxu0 %v17244_v36  ;;  %v4402_v36 = vld [vmem:[#allocation2 + $0x92] sm:$0xff] }
 0x44f   :  { %13226 = vmatprep.mubr.f32.mxu0 %v17246_v37  ;;  %v4403_v37 = vld [vmem:[#allocation2 + $0x9a] sm:$0xff] }
 0x452   :  { %13227 = vmatmul.mubr.f32.gmra.mrb[42].mxu0 %v17250_v40  ;;  %v4404_v40 = vld [vmem:[#allocation2 + $0xaa] sm:$0xff] }
 0x453   :  { %13229 = vmatprep.mubr.f32.mxu0 %v17252_v42  ;;  %v4405_v42 = vld [vmem:[#allocation2 + $0xb2] sm:$0xff] }
 0x456   :  { %13230 = vmatmul.mubr.f32.gmra.mrb[44].mxu0 %v17256_v44  ;;  %v4406_v44 = vld [vmem:[#allocation2 + $0xc2] sm:$0xff] }
 0x457   :  { %13232 = vmatprep.mubr.f32.mxu0 %v17258_v51  ;;  %v4407_v51 = vld [vmem:[#allocation2 + $0xca] sm:$0xff] }
 0x45a   :  { %13233 = vmatmul.mubr.f32.gmra.mrb[46].mxu0 %v21468_v2  ;;  %v4441_v2 = vld [vmem:[#allocation2 + $0x292] sm:$0xff] }
 0x45b   :  { %13235 = vmatprep.mubr.f32.mxu0 %v21469_v62  ;;  %v4442_v62 = vld [vmem:[#allocation2 + $0x2a2] sm:$0xff] }
 0x45e   :  { %13236 = vmatmul.mubr.f32.gmra.mrb[48].mxu0 %v21470_v63  ;;  %v4443_v63 = vld [vmem:[#allocation2 + $0x2aa] sm:$0xff] }
 0x45f   :  { %13238 = vmatprep.mubr.f32.mxu0 %v21471_v4  ;;  %v4444_v4 = vld [vmem:[#allocation2 + $0x2ba] sm:$0xff] }
 0x462   :  { %13239 = vmatmul.mubr.f32.gmra.mrb[50].mxu0 %v21472_v6  ;;  %v4445_v6 = vld [vmem:[#allocation2 + $0x2c2] sm:$0xff] }
 0x463   :  { %13241 = vmatprep.mubr.f32.mxu0 %v21473_v8  ;;  %v4446_v8 = vld [vmem:[#allocation2 + $0x2d2] sm:$0xff] }
 0x466   :  { %13242 = vmatmul.mubr.f32.gmra.mrb[52].mxu0 %v21474_v12  ;;  %v4447_v12 = vld [vmem:[#allocation2 + $0x2da] sm:$0xff] }
 0x467   :  { %13244 = vmatprep.mubr.f32.mxu0 %v21475_v52  ;;  %v4448_v52 = vld [vmem:[#allocation2 + $0x2ea] sm:$0xff] }
 0x46a   :  { %13245 = vmatmul.mubr.f32.gmra.mrb[54].mxu0 %v21476_v10  ;;  %v4449_v10 = vld [vmem:[#allocation2 + $0x2f2] sm:$0xff] }
 0x46b   :  { %13247 = vmatprep.mubr.f32.mxu0 %v21477_v5  ;;  %v4450_v5 = vld [vmem:[#allocation2 + $0x302] sm:$0xff] }
 0x46e   :  { %13248 = vmatmul.mubr.f32.gmra.mrb[56].mxu0 %v21478_v34  ;;  %v4451_v34 = vld [vmem:[#allocation2 + $0x30a] sm:$0xff] }
 0x46f   :  { %13250 = vmatprep.mubr.f32.mxu0 %v21479_v33  ;;  %v4452_v33 = vld [vmem:[#allocation2 + $0x31a] sm:$0xff] }
 0x472   :  { %13251 = vmatmul.mubr.f32.gmra.mrb[58].mxu0 %v21480_v15  ;;  %v21483_v15 = vld [vmem:[#allocation25_spill] sm:$0xff] }
 0x473   :  { %13253 = vmatprep.mubr.f32.mxu0 %v3924_v14  ;;  %v4453_v14 = vld [vmem:[#allocation2 + $0x322] sm:$0xff] }
 0x476   :  { %13254 = vmatmul.mubr.f32.gmra.mrb[60].mxu0 %v3925_v22  ;;  %v4456_v22 = vld [vmem:[#allocation2 + $0x34a] sm:$0xff] }
 0x477   :  { %13256 = vmatprep.mubr.f32.mxu0 %v3926_v16  ;;  %v21484_v16 = vld [vmem:[#allocation26_spill] sm:$0xff] }
 0x47a   :  { %13257 = vmatmul.mubr.f32.gmra.mrb[62].mxu0 %v3927_v30  ;;  %v4457_v30 = vld [vmem:[#allocation2 + $0x352] sm:$0xff] }
 0x47b   :  { %13291 = vmatprep.mubr.f32.mxu0 %v4394_v23 }
 0x47e   :  { %13292 = vmatmul.mubr.f32.vlgmr.msra.gmra.mrb[0].mxu0 %v4395_v24 }
 0x47f   :  { %13294 = vmatprep.mubr.f32.mxu0 %v4396_v26 }
 0x482   :  { %13295 = vmatmul.mubr.f32.gmra.mrb[2].mxu0 %v4397_v21 }
 0x483   :  { %13297 = vmatprep.mubr.f32.mxu0 %v4398_v60 }
 0x486   :  { %13298 = vmatmul.mubr.f32.gmra.mrb[4].mxu0 %v4399_v28 }
 0x487   :  { %13300 = vmatprep.mubr.f32.mxu0 %v4400_v29 }
 0x48a   :  { %13301 = vmatmul.mubr.f32.gmra.mrb[6].mxu0 %v4401_v35 }
 0x48b   :  { %13303 = vmatprep.mubr.f32.mxu0 %v4402_v36 }
 0x48e   :  { %13304 = vmatmul.mubr.f32.gmra.mrb[8].mxu0 %v4403_v37 }
 0x48f   :  { %13306 = vmatprep.mubr.f32.mxu0 %v4404_v40 }
 0x492   :  { %13307 = vmatmul.mubr.f32.gmra.mrb[10].mxu0 %v4405_v42 }
 0x493   :  { %13309 = vmatprep.mubr.f32.mxu0 %v4406_v44 }
 0x496   :  { %13310 = vmatmul.mubr.f32.gmra.mrb[12].mxu0 %v4407_v51 }
 0x497   :  { %13312 = vmatprep.mubr.f32.mxu0 %v4408_v54 }
 0x49a   :  { %13313 = vmatmul.mubr.f32.gmra.mrb[14].mxu0 %v4409_v0 }
 0x49b   :  { %13315 = vmatprep.mubr.f32.mxu0 %v4410_v55 }
 0x49e   :  { %13316 = vmatmul.mubr.f32.gmra.mrb[16].mxu0 %v4411_v20 }
 0x49f   :  { %13318 = vmatprep.mubr.f32.mxu0 %v4412_v61 }
 0x4a2   :  { %13319 = vmatmul.mubr.f32.gmra.mrb[18].mxu0 %v4413_v49 }
 0x4a3   :  { %13321 = vmatprep.mubr.f32.mxu0 %v4414_v43 }
 0x4a6   :  { %13322 = vmatmul.mubr.f32.gmra.mrb[20].mxu0 %v4415_v19 }
 0x4a7   :  { %13324 = vmatprep.mubr.f32.mxu0 %v4416_v9 }
 0x4aa   :  { %13325 = vmatmul.mubr.f32.gmra.mrb[22].mxu0 %v4417_v48 }
 0x4ab   :  { %13327 = vmatprep.mubr.f32.mxu0 %v4418_v56 }
 0x4ae   :  { %13328 = vmatmul.mubr.f32.gmra.mrb[24].mxu0 %v4419_v7 }
 0x4af   :  { %13330 = vmatprep.mubr.f32.mxu0 %v4420_v27 }
 0x4b2   :  { %13331 = vmatmul.mubr.f32.gmra.mrb[26].mxu0 %v4421_v17 }
 0x4b3   :  { %13333 = vmatprep.mubr.f32.mxu0 %v21481_v45 }
 0x4b6   :  { %13334 = vmatmul.mubr.f32.gmra.mrb[28].mxu0 %v21482_v18 }
 0x4b7   :  { %13336 = vmatprep.mubr.f32.mxu0 %v4424_v1 }
 0x4ba   :  { %13337 = vmatmul.mubr.f32.gmra.mrb[30].mxu0 %v4425_v25 }
 0x4bb   :  { %13339 = vmatprep.mubr.f32.mxu0 %v4426_v11 }
 0x4be   :  { %13340 = vmatmul.mubr.f32.gmra.mrb[32].mxu0 %v4427_v31 }
 0x4bf   :  { %13342 = vmatprep.mubr.f32.mxu0 %v4428_v32 }
 0x4c2   :  { %13343 = vmatmul.mubr.f32.gmra.mrb[34].mxu0 %v4429_v53 }
 0x4c3   :  { %13345 = vmatprep.mubr.f32.mxu0 %v4430_v38 }
 0x4c6   :  { %13346 = vmatmul.mubr.f32.gmra.mrb[36].mxu0 %v4431_v39 }
 0x4c7   :  { %13348 = vmatprep.mubr.f32.mxu0 %v4432_v57 }
 0x4ca   :  { %13349 = vmatmul.mubr.f32.gmra.mrb[38].mxu0 %v4433_v46 }
 0x4cb   :  { %13351 = vmatprep.mubr.f32.mxu0 %v4434_v47 }
 0x4ce   :  { %13352 = vmatmul.mubr.f32.gmra.mrb[40].mxu0 %v4435_v3 }
 0x4cf   :  { %13354 = vmatprep.mubr.f32.mxu0 %v4436_v58 }
 0x4d2   :  { %13355 = vmatmul.mubr.f32.gmra.mrb[42].mxu0 %v4437_v59 }
 0x4d3   :  { %13357 = vmatprep.mubr.f32.mxu0 %v4438_v13 }
 0x4d6   :  { %13358 = vmatmul.mubr.f32.gmra.mrb[44].mxu0 %v4439_v41 }
 0x4d7   :  { %13360 = vmatprep.mubr.f32.mxu0 %v4440_v50 }
 0x4da   :  { %13361 = vmatmul.mubr.f32.gmra.mrb[46].mxu0 %v4441_v2 }
 0x4db   :  { %13363 = vmatprep.mubr.f32.mxu0 %v4442_v62 }
 0x4de   :  { %13364 = vmatmul.mubr.f32.gmra.mrb[48].mxu0 %v4443_v63 }
 0x4df   :  { %13366 = vmatprep.mubr.f32.mxu0 %v4444_v4 }
 0x4e2   :  { %13367 = vmatmul.mubr.f32.gmra.mrb[50].mxu0 %v4445_v6 }
 0x4e3   :  { %13369 = vmatprep.mubr.f32.mxu0 %v4446_v8 }
 0x4e6   :  { %13370 = vmatmul.mubr.f32.gmra.mrb[52].mxu0 %v4447_v12 }
 0x4e7   :  { %13372 = vmatprep.mubr.f32.mxu0 %v4448_v52 }
 0x4ea   :  { %13373 = vmatmul.mubr.f32.gmra.mrb[54].mxu0 %v4449_v10 }
 0x4eb   :  { %13375 = vmatprep.mubr.f32.mxu0 %v4450_v5 }
 0x4ee   :  { %13376 = vmatmul.mubr.f32.gmra.mrb[56].mxu0 %v4451_v34 }
 0x4ef   :  { %13378 = vmatprep.mubr.f32.mxu0 %v4452_v33 }
 0x4f2   :  { %13379 = vmatmul.mubr.f32.gmra.mrb[58].mxu0 %v4453_v14 }
 0x4f3   :  { %13381 = vmatprep.mubr.f32.mxu0 %v21483_v15 }
 0x4f6   :  { %13382 = vmatmul.mubr.f32.gmra.mrb[60].mxu0 %v21484_v16 }
 0x4f7   :  { %13384 = vmatprep.mubr.f32.mxu0 %v4456_v22 }
 0x4fa   :  { %13385 = vmatmul.mubr.f32.gmra.mrb[62].mxu0 %v4457_v30 }
 0x551   :  { %v17448_v23 = vpop.f32.mrb[0].mxu0 }
 0x552   :  { %v17450_v24 = vpop.f32.mrb[1].mxu0 }
 0x553   :  { %v4926_v26 = vadd.f32 %v17448_v23, %v17450_v24 }
 0x555   :  { %v17454_v21 = vpop.f32.mrb[2].mxu0 }
 0x556   :  { %v17456_v60 = vpop.f32.mrb[3].mxu0 }
 0x557   :  { %v4927_v28 = vadd.f32 %v4926_v26, %v17456_v60 }
 0x559   :  { %v4928_v29 = vadd.f32 %v17454_v21, %v4927_v28  ;;  %v17460_v35 = vpop.f32.mrb[4].mxu0 }
 0x55a   :  { %v17462_v36 = vpop.f32.mrb[5].mxu0 }
 0x55b   :  { %v4929_v37 = vadd.f32 %v4928_v29, %v17462_v36 }
 0x55d   :  { %v17465_v40 = vpop.f32.mrb[6].mxu0  ;;  %v4930_v42 = vadd.f32 %v17460_v35, %v4929_v37 }
 0x55e   :  { %v17468_v44 = vpop.f32.mrb[7].mxu0 }
 0x55f   :  { %v4931_v51 = vadd.f32 %v4930_v42, %v17468_v44 }
 0x561   :  { %v17471_v54 = vpop.f32.mrb[8].mxu0  ;;  %v4932_v0 = vadd.f32 %v17465_v40, %v4931_v51 }
 0x562   :  { %v17474_v55 = vpop.f32.mrb[9].mxu0 }
 0x563   :  { %v4933_v20 = vadd.f32 %v4932_v0, %v17474_v55 }
 0x565   :  { %v17477_v61 = vpop.f32.mrb[10].mxu0  ;;  %v4934_v49 = vadd.f32 %v17471_v54, %v4933_v20 }
 0x566   :  { %v17480_v43 = vpop.f32.mrb[11].mxu0 }
 0x567   :  { %v4935_v19 = vadd.f32 %v4934_v49, %v17480_v43 }
 0x569   :  { %v17483_v9 = vpop.f32.mrb[12].mxu0  ;;  %v4936_v48 = vadd.f32 %v17477_v61, %v4935_v19 }
 0x56a   :  { %v17486_v56 = vpop.f32.mrb[13].mxu0 }
 0x56b   :  { %v4937_v7 = vadd.f32 %v4936_v48, %v17486_v56 }
 0x56d   :  { %v17489_v27 = vpop.f32.mrb[14].mxu0  ;;  %v4938_v17 = vadd.f32 %v17483_v9, %v4937_v7 }
 0x56e   :  { %v17492_v45 = vpop.f32.mrb[15].mxu0 }
 0x56f   :  { %v4939_v1 = vadd.f32 %v4938_v17, %v17492_v45 }
 0x571   :  { %v17495_v18 = vpop.f32.mrb[16].mxu0  ;;  %v4940_v25 = vadd.f32 %v17489_v27, %v4939_v1 }
 0x572   :  { %v17498_v11 = vpop.f32.mrb[17].mxu0 }
 0x573   :  { %v4941_v31 = vadd.f32 %v4940_v25, %v17498_v11 }
 0x575   :  { %v17501_v32 = vpop.f32.mrb[18].mxu0  ;;  %v4942_v53 = vadd.f32 %v17495_v18, %v4941_v31 }
 0x576   :  { %v17504_v38 = vpop.f32.mrb[19].mxu0 }
 0x577   :  { %v4943_v39 = vadd.f32 %v4942_v53, %v17504_v38 }
 0x579   :  { %v17507_v57 = vpop.f32.mrb[20].mxu0  ;;  %v4944_v46 = vadd.f32 %v17501_v32, %v4943_v39 }
 0x57a   :  { %v17510_v47 = vpop.f32.mrb[21].mxu0 }
 0x57b   :  { %v4945_v3 = vadd.f32 %v4944_v46, %v17510_v47 }
 0x57d   :  { %v17513_v58 = vpop.f32.mrb[22].mxu0  ;;  %v4946_v59 = vadd.f32 %v17507_v57, %v4945_v3 }
 0x57e   :  { %v17516_v13 = vpop.f32.mrb[23].mxu0 }
 0x57f   :  { %v4947_v41 = vadd.f32 %v4946_v59, %v17516_v13 }
 0x581   :  { %v17519_v50 = vpop.f32.mrb[24].mxu0  ;;  %v4948_v2 = vadd.f32 %v17513_v58, %v4947_v41 }
 0x582   :  { %v17522_v62 = vpop.f32.mrb[25].mxu0 }
 0x583   :  { %v4949_v63 = vadd.f32 %v4948_v2, %v17522_v62 }
 0x585   :  { %v17525_v4 = vpop.f32.mrb[26].mxu0  ;;  %v4950_v6 = vadd.f32 %v17519_v50, %v4949_v63 }
 0x586   :  { %v17528_v8 = vpop.f32.mrb[27].mxu0 }
 0x587   :  { %v4951_v12 = vadd.f32 %v4950_v6, %v17528_v8 }
 0x589   :  { %v17531_v52 = vpop.f32.mrb[28].mxu0  ;;  %v4952_v10 = vadd.f32 %v17525_v4, %v4951_v12 }
 0x58a   :  { %v17534_v5 = vpop.f32.mrb[29].mxu0 }
 0x58b   :  { %v4953_v34 = vadd.f32 %v4952_v10, %v17534_v5 }
 0x58d   :  { %v17537_v33 = vpop.f32.mrb[30].mxu0  ;;  %v4954_v14 = vadd.f32 %v17531_v52, %v4953_v34 }
 0x58e   :  { %v17540_v15 = vpop.f32.mrb[31].mxu0 }
 0x58f   :  { %v4955_v22 = vadd.f32 %v4954_v14, %v17540_v15 }
 0x591   :  { %v17543_v16 = vpop.f32.mrb[32].mxu0  ;;  %v4956_v30 = vadd.f32 %v17537_v33, %v4955_v22 }
 0x592   :  { %v17546_v26 = vpop.f32.mrb[33].mxu0 }
 0x593   :  { %v4957_v28 = vadd.f32 %v4956_v30, %v17546_v26 }
 0x595   :  { %v17549_v29 = vpop.f32.mrb[34].mxu0  ;;  %v4958_v37 = vadd.f32 %v17543_v16, %v4957_v28 }
 0x596   :  { %v17552_v42 = vpop.f32.mrb[35].mxu0 }
 0x597   :  { %v4959_v51 = vadd.f32 %v4958_v37, %v17552_v42 }
 0x599   :  { %v17555_v0 = vpop.f32.mrb[36].mxu0  ;;  %v4960_v20 = vadd.f32 %v17549_v29, %v4959_v51 }
 0x59a   :  { %v17558_v49 = vpop.f32.mrb[37].mxu0 }
 0x59b   :  { %v4961_v19 = vadd.f32 %v4960_v20, %v17558_v49 }
 0x59d   :  { %v17561_v48 = vpop.f32.mrb[38].mxu0  ;;  %v4962_v7 = vadd.f32 %v17555_v0, %v4961_v19 }
 0x59e   :  { %v17564_v17 = vpop.f32.mrb[39].mxu0 }
 0x59f   :  { %v4963_v1 = vadd.f32 %v4962_v7, %v17564_v17 }
 0x5a1   :  { %v17567_v25 = vpop.f32.mrb[40].mxu0  ;;  %v4964_v31 = vadd.f32 %v17561_v48, %v4963_v1 }
 0x5a2   :  { %v17570_v53 = vpop.f32.mrb[41].mxu0 }
 0x5a3   :  { %v4965_v39 = vadd.f32 %v4964_v31, %v17570_v53 }
 0x5a5   :  { %v17573_v46 = vpop.f32.mrb[42].mxu0  ;;  %v4966_v3 = vadd.f32 %v17567_v25, %v4965_v39 }
 0x5a6   :  { %v17576_v59 = vpop.f32.mrb[43].mxu0 }
 0x5a7   :  { %v4967_v41 = vadd.f32 %v4966_v3, %v17576_v59 }
 0x5a9   :  { %v17579_v2 = vpop.f32.mrb[44].mxu0  ;;  %v4968_v63 = vadd.f32 %v17573_v46, %v4967_v41 }
 0x5aa   :  { %v17582_v6 = vpop.f32.mrb[45].mxu0 }
 0x5ab   :  { %v4969_v12 = vadd.f32 %v4968_v63, %v17582_v6 }
 0x5ad   :  { %v17585_v10 = vpop.f32.mrb[46].mxu0  ;;  %v4970_v34 = vadd.f32 %v17579_v2, %v4969_v12 }
 0x5ae   :  { %v17588_v14 = vpop.f32.mrb[47].mxu0 }
 0x5af   :  { %v4971_v22 = vadd.f32 %v4970_v34, %v17588_v14 }
 0x5b1   :  { %v17591_v30 = vpop.f32.mrb[48].mxu0  ;;  %v4972_v28 = vadd.f32 %v17585_v10, %v4971_v22 }
 0x5b2   :  { %21485 = vst [vmem:[#allocation27_spill] sm:$0xff] %v17591_v30  ;;  %v17594_v37 = vpop.f32.mrb[49].mxu0 }
 0x5b3   :  { %21486 = vst [vmem:[#allocation28_spill] sm:$0xff] %v17594_v37  ;;  %v4973_v51 = vadd.f32 %v4972_v28, %v17594_v37 }
 0x5b5   :  { %v17597_v20 = vpop.f32.mrb[50].mxu0  ;;  %v4974_v19 = vadd.f32 %v17591_v30, %v4973_v51 }
 0x5b6   :  { %21487 = vst [vmem:[#allocation29_spill] sm:$0xff] %v17597_v20  ;;  %v17600_v7 = vpop.f32.mrb[51].mxu0 }
 0x5b7   :  { %21488 = vst [vmem:[#allocation30_spill] sm:$0xff] %v17600_v7  ;;  %v4975_v1 = vadd.f32 %v4974_v19, %v17600_v7 }
 0x5b9   :  { %v17603_v31 = vpop.f32.mrb[52].mxu0  ;;  %v4976_v39 = vadd.f32 %v17597_v20, %v4975_v1 }
 0x5ba   :  { %21489 = vst [vmem:[#allocation31_spill] sm:$0xff] %v17603_v31  ;;  %v17606_v3 = vpop.f32.mrb[53].mxu0 }
 0x5bb   :  { %21490 = vst [vmem:[#allocation32_spill] sm:$0xff] %v17606_v3  ;;  %v4977_v41 = vadd.f32 %v4976_v39, %v17606_v3 }
 0x5bd   :  { %v17609_v63 = vpop.f32.mrb[54].mxu0  ;;  %v4978_v12 = vadd.f32 %v17603_v31, %v4977_v41 }
 0x5be   :  { %21491 = vst [vmem:[#allocation33_spill] sm:$0xff] %v17609_v63  ;;  %v17612_v34 = vpop.f32.mrb[55].mxu0 }
 0x5bf   :  { %21492 = vst [vmem:[#allocation34_spill] sm:$0xff] %v17612_v34  ;;  %v4979_v22 = vadd.f32 %v4978_v12, %v17612_v34 }
 0x5c1   :  { %v17615_v28 = vpop.f32.mrb[56].mxu0  ;;  %v4980_v51 = vadd.f32 %v17609_v63, %v4979_v22 }
 0x5c2   :  { %21493 = vst [vmem:[#allocation35_spill] sm:$0xff] %v17615_v28  ;;  %v17618_v19 = vpop.f32.mrb[57].mxu0 }
 0x5c3   :  { %21494 = vst [vmem:[#allocation36_spill] sm:$0xff] %v17618_v19  ;;  %v4981_v1 = vadd.f32 %v4980_v51, %v17618_v19 }
 0x5c5   :  { %v17621_v20 = vpop.f32.mrb[58].mxu0  ;;  %v4982_v39 = vadd.f32 %v17615_v28, %v4981_v1 }
 0x5c6   :  { %21495 = vst [vmem:[#allocation37_spill] sm:$0xff] %v17621_v20  ;;  %v17624_v3 = vpop.f32.mrb[59].mxu0 }
 0x5c7   :  { %21496 = vst [vmem:[#allocation38_spill] sm:$0xff] %v17624_v3  ;;  %v4983_v41 = vadd.f32 %v4982_v39, %v17624_v3 }
 0x5c9   :  { %v17627_v31 = vpop.f32.mrb[60].mxu0  ;;  %v4984_v12 = vadd.f32 %v17621_v20, %v4983_v41 }
 0x5ca   :  { %v17630_v34 = vpop.f32.mrb[61].mxu0 }
 0x5cb   :  { %v4985_v22 = vadd.f32 %v4984_v12, %v17630_v34 }
 0x5cd   :  { %v17633_v63 = vpop.f32.mrb[62].mxu0  ;;  %v4986_v51 = vadd.f32 %v17627_v31, %v4985_v22 }
 0x5ce   :  { %v17636_v19 = vpop.f32.mrb[63].mxu0 }
 0x5cf   :  { %v4987_v1 = vadd.f32 %v4986_v51, %v17636_v19 }
 0x5d1   :  { %v4988_v28 = vadd.f32 %v17633_v63, %v4987_v1  ;;  %v21511_v1 = vld [vmem:[#allocation29_spill] sm:$0xff] }
 0x5d3   :  { %v4989_v7 = vrot.slane %v4988_v28, 4 }
 0x5d5   :  { %v4990_v39 = vadd.f32 %v4989_v7, %v4988_v28  ;;  %v21509_v28 = vld [vmem:[#allocation30_spill] sm:$0xff] }
 0x5d7   :  { %v4991_v3 = vrot.slane %v4990_v39, 2 }
 0x5d9   :  { %v4992_v30 = vadd.f32 %v4991_v3, %v4990_v39  ;;  %v21507_v3 = vld [vmem:[#allocation27_spill] sm:$0xff]  ;;  %v21513_v39 = vld [vmem:[#allocation32_spill] sm:$0xff] }
 0x5db   :  { %v4993_v37 = vrot.slane %v4992_v30, 1 }
 0x5dd   :  { %v4994_v41 = vadd.f32 %v4993_v37, %v4992_v30  ;;  %v21505_v37 = vld [vmem:[#allocation28_spill] sm:$0xff] }
 0x5df   :  { %v17640_v20 = vmul.f32 0.001953125, %v4994_v41  ;;  %v21515_v41 = vld [vmem:[#allocation31_spill] sm:$0xff] }
 0x5e1   :  { %v17644_v12 = vsub.f32 %v17450_v24, %v17640_v20  ;;  %v17648_v22 = vsub.f32 %v17448_v23, %v17640_v20  ;;  %v17652_v51 = vsub.f32 %v17456_v60, %v17640_v20  ;;  %v17656_v7 = vsub.f32 %v17454_v21, %v17640_v20 }
 0x5e2   :  { %v17660_v30 = vsub.f32 %v17462_v36, %v17640_v20  ;;  %v17664_v24 = vsub.f32 %v17460_v35, %v17640_v20  ;;  %v17668_v23 = vsub.f32 %v17468_v44, %v17640_v20  ;;  %v17672_v60 = vsub.f32 %v17465_v40, %v17640_v20 }
 0x5e3   :  { %21497 = vst [vmem:[#allocation39_spill] sm:$0xff] %v17644_v12  ;;  %21498 = vst [vmem:[#allocation40_spill] sm:$0xff] %v17648_v22  ;;  %v17676_v21 = vsub.f32 %v17474_v55, %v17640_v20  ;;  %v17680_v36 = vsub.f32 %v17471_v54, %v17640_v20  ;;  %v17684_v35 = vsub.f32 %v17480_v43, %v17640_v20 }
 0x5e4   :  { %21499 = vst [vmem:[#allocation41_spill] sm:$0xff] %v17652_v51  ;;  %v17688_v44 = vsub.f32 %v17477_v61, %v17640_v20  ;;  %v17692_v40 = vsub.f32 %v17486_v56, %v17640_v20  ;;  %v17696_v55 = vsub.f32 %v17483_v9, %v17640_v20  ;;  %v17700_v54 = vsub.f32 %v17492_v45, %v17640_v20 }
 0x5e5   :  { %v17704_v43 = vsub.f32 %v17489_v27, %v17640_v20  ;;  %v17708_v61 = vsub.f32 %v17498_v11, %v17640_v20  ;;  %v17712_v56 = vsub.f32 %v17495_v18, %v17640_v20  ;;  %v17716_v9 = vsub.f32 %v17504_v38, %v17640_v20 }
 0x5e6   :  { %v17720_v45 = vsub.f32 %v17501_v32, %v17640_v20  ;;  %v17724_v27 = vsub.f32 %v17510_v47, %v17640_v20  ;;  %v17728_v11 = vsub.f32 %v17507_v57, %v17640_v20  ;;  %v17732_v18 = vsub.f32 %v17516_v13, %v17640_v20 }
 0x5e7   :  { %21500 = vst [vmem:[#allocation42_spill] sm:$0xff] %v17712_v56  ;;  %21501 = vst [vmem:[#allocation43_spill] sm:$0xff] %v17716_v9  ;;  %v17736_v38 = vsub.f32 %v17513_v58, %v17640_v20  ;;  %v17740_v32 = vsub.f32 %v17522_v62, %v17640_v20  ;;  %v17744_v47 = vsub.f32 %v17519_v50, %v17640_v20 }
 0x5e8   :  { %v17748_v57 = vsub.f32 %v17528_v8, %v17640_v20  ;;  %v17752_v13 = vsub.f32 %v17525_v4, %v17640_v20  ;;  %v17756_v58 = vsub.f32 %v17534_v5, %v17640_v20  ;;  %v17760_v62 = vsub.f32 %v17531_v52, %v17640_v20 }
 0x5e9   :  { %v17764_v50 = vsub.f32 %v17540_v15, %v17640_v20  ;;  %v17768_v8 = vsub.f32 %v17537_v33, %v17640_v20  ;;  %v17772_v4 = vsub.f32 %v17546_v26, %v17640_v20  ;;  %v17776_v5 = vsub.f32 %v17543_v16, %v17640_v20 }
 0x5ea   :  { %v17780_v52 = vsub.f32 %v17552_v42, %v17640_v20  ;;  %v17784_v15 = vsub.f32 %v17549_v29, %v17640_v20  ;;  %v17788_v33 = vsub.f32 %v17558_v49, %v17640_v20  ;;  %v17792_v26 = vsub.f32 %v17555_v0, %v17640_v20 }
 0x5eb   :  { %v17796_v16 = vsub.f32 %v17564_v17, %v17640_v20  ;;  %v17800_v42 = vsub.f32 %v17561_v48, %v17640_v20  ;;  %v17804_v29 = vsub.f32 %v17570_v53, %v17640_v20  ;;  %v17808_v49 = vsub.f32 %v17567_v25, %v17640_v20 }
 0x5ec   :  { %v17812_v0 = vsub.f32 %v17576_v59, %v17640_v20  ;;  %v17816_v17 = vsub.f32 %v17573_v46, %v17640_v20  ;;  %v17820_v48 = vsub.f32 %v17582_v6, %v17640_v20  ;;  %v17824_v53 = vsub.f32 %v17579_v2, %v17640_v20 }
 0x5ed   :  { %21502 = vst [vmem:[#allocation44_spill] sm:$0xff] %v17800_v42  ;;  %v17828_v25 = vsub.f32 %v17588_v14, %v17640_v20  ;;  %v17832_v59 = vsub.f32 %v17585_v10, %v17640_v20  ;;  %v17836_v46 = vsub.f32 %v21505_v37, %v17640_v20  ;;  %v17840_v6 = vsub.f32 %v21507_v3, %v17640_v20 }
 0x5ee   :  { %21503 = vst [vmem:[#allocation45_spill] sm:$0xff] %v17824_v53  ;;  %v17844_v2 = vsub.f32 %v21509_v28, %v17640_v20  ;;  %v17848_v14 = vsub.f32 %v21511_v1, %v17640_v20  ;;  %v17852_v10 = vsub.f32 %v21513_v39, %v17640_v20  ;;  %v17856_v37 = vsub.f32 %v21515_v41, %v17640_v20 }
 0x5ef   :  { %21504 = vst [vmem:[#allocation46_spill] sm:$0xff] %v17832_v59  ;;  %21506 = vst [vmem:[#allocation47_spill] sm:$0xff] %v17836_v46  ;;  %v21517_v46 = vld [vmem:[#allocation34_spill] sm:$0xff] }
 0x5f0   :  { %21508 = vst [vmem:[#allocation48_spill] sm:$0xff] %v17840_v6  ;;  %21510 = vst [vmem:[#allocation49_spill] sm:$0xff] %v17844_v2  ;;  %v17860_v3 = vsub.f32 %v21517_v46, %v17640_v20  ;;  %v21519_v6 = vld [vmem:[#allocation33_spill] sm:$0xff]  ;;  %v21521_v2 = vld [vmem:[#allocation36_spill] sm:$0xff] }
 0x5f1   :  { %21512 = vst [vmem:[#allocation50_spill] sm:$0xff] %v17848_v14  ;;  %21514 = vst [vmem:[#allocation51_spill] sm:$0xff] %v17852_v10  ;;  %v17864_v28 = vsub.f32 %v21519_v6, %v17640_v20  ;;  %v17868_v1 = vsub.f32 %v21521_v2, %v17640_v20  ;;  %v21523_v14 = vld [vmem:[#allocation35_spill] sm:$0xff]  ;;  %v21525_v10 = vld [vmem:[#allocation38_spill] sm:$0xff]  ;;  %v17884_v6 = vsub.f32 %v17630_v34, %v17640_v20 }
 0x5f2   :  { %21516 = vst [vmem:[#allocation52_spill] sm:$0xff] %v17856_v37  ;;  %21518 = vst [vmem:[#allocation53_spill] sm:$0xff] %v17860_v3  ;;  %v17872_v39 = vsub.f32 %v21523_v14, %v17640_v20  ;;  %v17876_v41 = vsub.f32 %v21525_v10, %v17640_v20  ;;  %v21527_v37 = vld [vmem:[#allocation37_spill] sm:$0xff]  ;;  %v17888_v2 = vsub.f32 %v17627_v31, %v17640_v20 }
 0x5f3   :  { %21520 = vst [vmem:[#allocation54_spill] sm:$0xff] %v17864_v28  ;;  %21522 = vst [vmem:[#allocation55_spill] sm:$0xff] %v17868_v1  ;;  %v17880_v46 = vsub.f32 %v21527_v37, %v17640_v20  ;;  %v17892_v14 = vsub.f32 %v17636_v19, %v17640_v20  ;;  %v17896_v10 = vsub.f32 %v17633_v63, %v17640_v20 }
 0x5f4   :  { %21524 = vst [vmem:[#allocation56_spill] sm:$0xff] %v17872_v39  ;;  %21526 = vst [vmem:[#allocation57_spill] sm:$0xff] %v17876_v41  ;;  %v5060_v37 = vmul.f32 %v17644_v12, %v17644_v12  ;;  %v5062_v34 = vmul.f32 %v17652_v51, %v17652_v51  ;;  %v5063_v31 = vmul.f32 %v17656_v7, %v17656_v7 }
 0x5f5   :  { %21528 = vst [vmem:[#allocation58_spill] sm:$0xff] %v17880_v46  ;;  %21529 = vst [vmem:[#allocation59_spill] sm:$0xff] %v17884_v6  ;;  %v5061_v46 = vmul.f32 %v17648_v22, %v17648_v22  ;;  %v5064_v19 = vmul.f32 %v17660_v30, %v17660_v30  ;;  %v5065_v20 = vmul.f32 %v17664_v24, %v17664_v24 }
 0x5f6   :  { %21530 = vst [vmem:[#allocation60_spill] sm:$0xff] %v17888_v2  ;;  %21531 = vst [vmem:[#allocation61_spill] sm:$0xff] %v17892_v14  ;;  %v5066_v12 = vmul.f32 %v17668_v23, %v17668_v23  ;;  %v5067_v51 = vmul.f32 %v17672_v60, %v17672_v60 }
 0x5f7   :  { %21532 = vst [vmem:[#allocation62_spill] sm:$0xff] %v17896_v10  ;;  %v5124_v6 = vadd.f32 %v5061_v46, %v5060_v37  ;;  %v5068_v37 = vmul.f32 %v17676_v21, %v17676_v21 }
 0x5f9   :  { %v5125_v2 = vadd.f32 %v5124_v6, %v5062_v34  ;;  %v5069_v34 = vmul.f32 %v17680_v36, %v17680_v36 }
 0x5fb   :  { %v5126_v14 = vadd.f32 %v5125_v2, %v5063_v31  ;;  %v5070_v31 = vmul.f32 %v17684_v35, %v17684_v35 }
 0x5fd   :  { %v5127_v63 = vadd.f32 %v5126_v14, %v5064_v19  ;;  %v5071_v19 = vmul.f32 %v17688_v44, %v17688_v44 }
 0x5ff   :  { %v5128_v22 = vadd.f32 %v5127_v63, %v5065_v20  ;;  %v5072_v63 = vmul.f32 %v17692_v40, %v17692_v40 }
 0x601   :  { %v5129_v46 = vadd.f32 %v5128_v22, %v5066_v12  ;;  %v5073_v22 = vmul.f32 %v17696_v55, %v17696_v55 }
 0x603   :  { %v5130_v6 = vadd.f32 %v5129_v46, %v5067_v51  ;;  %v5074_v46 = vmul.f32 %v17700_v54, %v17700_v54 }
 0x605   :  { %v5131_v2 = vadd.f32 %v5130_v6, %v5068_v37  ;;  %v5075_v6 = vmul.f32 %v17704_v43, %v17704_v43 }
 0x607   :  { %v5132_v14 = vadd.f32 %v5131_v2, %v5069_v34  ;;  %v5076_v2 = vmul.f32 %v17708_v61, %v17708_v61 }
 0x609   :  { %v5133_v20 = vadd.f32 %v5132_v14, %v5070_v31  ;;  %v5077_v14 = vmul.f32 %v17712_v56, %v17712_v56  ;;  %v5611_v56 = vld [vmem:[#allocation8 + $0x88] sm:$0xff] }
 0x60b   :  { %v5134_v12 = vadd.f32 %v5133_v20, %v5071_v19  ;;  %v5078_v20 = vmul.f32 %v17716_v9, %v17716_v9 }
 0x60d   :  { %v5135_v51 = vadd.f32 %v5134_v12, %v5072_v63  ;;  %v5079_v12 = vmul.f32 %v17720_v45, %v17720_v45 }
 0x60f   :  { %v5136_v37 = vadd.f32 %v5135_v51, %v5073_v22  ;;  %v5080_v51 = vmul.f32 %v17724_v27, %v17724_v27 }
 0x611   :  { %v5137_v34 = vadd.f32 %v5136_v37, %v5074_v46  ;;  %v5081_v37 = vmul.f32 %v17728_v11, %v17728_v11 }
 0x613   :  { %v5138_v31 = vadd.f32 %v5137_v34, %v5075_v6  ;;  %v5082_v34 = vmul.f32 %v17732_v18, %v17732_v18 }
 0x615   :  { %v5139_v19 = vadd.f32 %v5138_v31, %v5076_v2  ;;  %v5610_v31 = vld [vmem:[#allocation8 + $0x80] sm:$0xff] }
 0x616   :  { %v14827_v9 = vpack.c.bf16 %v5611_v56, %v5610_v31  ;;  %v5086_v56 = vmul.f32 %v17748_v57, %v17748_v57 }
 0x617   :  { %v5140_v63 = vadd.f32 %v5139_v19, %v5077_v14  ;;  %v5083_v14 = vmul.f32 %v17736_v38, %v17736_v38 }
 0x618   :  { %14828 = vmatprep.subr.bf16.mxu1 %v14827_v9 }
 0x619   :  { %v5141_v22 = vadd.f32 %v5140_v63, %v5078_v20  ;;  %v5084_v20 = vmul.f32 %v17740_v32, %v17740_v32  ;;  %14830 = vmatpush3.bf16.msra.mxu1 %v14827_v9 }
 0x61b   :  { %v5142_v46 = vadd.f32 %v5141_v22, %v5079_v12  ;;  %v5612_v12 = vld [vmem:[#allocation8 + $0x90] sm:$0xff]  ;;  %v5613_v22 = vld [vmem:[#allocation8 + $0x98] sm:$0xff] }
 0x61d   :  { %v5143_v6 = vadd.f32 %v5142_v46, %v5080_v51  ;;  %v14831_v51 = vpack.c.bf16 %v5613_v22, %v5612_v12  ;;  %v5085_v46 = vmul.f32 %v17744_v47, %v17744_v47 }
 0x61f   :  { %v5144_v2 = vadd.f32 %v5143_v6, %v5081_v37  ;;  %14832 = vmatprep.subr.bf16.mxu1 %v14831_v51 }
 0x620   :  { %14834 = vmatpush3.bf16.msra.mxu1 %v14831_v51 }
 0x621   :  { %v5145_v19 = vadd.f32 %v5144_v2, %v5082_v34  ;;  %v5614_v34 = vld [vmem:[#allocation8 + $0xa0] sm:$0xff]  ;;  %v5615_v2 = vld [vmem:[#allocation8 + $0xa8] sm:$0xff] }
 0x622   :  { %v14835_v31 = vpack.c.bf16 %v5615_v2, %v5614_v34 }
 0x623   :  { %v5146_v63 = vadd.f32 %v5145_v19, %v5083_v14  ;;  %v5087_v14 = vmul.f32 %v17752_v13, %v17752_v13  ;;  %v5088_v19 = vmul.f32 %v17756_v58, %v17756_v58 }
 0x624   :  { %14836 = vmatprep.subr.bf16.mxu1 %v14835_v31 }
 0x625   :  { %v5147_v37 = vadd.f32 %v5146_v63, %v5084_v20  ;;  %14838 = vmatpush3.bf16.msra.mxu1 %v14835_v31  ;;  %v5616_v20 = vld [vmem:[#allocation8 + $0xb0] sm:$0xff]  ;;  %v5617_v63 = vld [vmem:[#allocation8 + $0xb8] sm:$0xff] }
 0x626   :  { %v14839_v22 = vpack.c.bf16 %v5617_v63, %v5616_v20 }
 0x627   :  { %v5148_v6 = vadd.f32 %v5147_v37, %v5085_v46  ;;  %v5089_v46 = vmul.f32 %v17760_v62, %v17760_v62  ;;  %v5090_v37 = vmul.f32 %v17764_v50, %v17764_v50 }
 0x628   :  { %14840 = vmatprep.subr.bf16.mxu1 %v14839_v22 }
 0x629   :  { %v5149_v9 = vadd.f32 %v5148_v6, %v5086_v56  ;;  %14842 = vmatpush3.bf16.msra.mxu1 %v14839_v22  ;;  %v5618_v56 = vld [vmem:[#allocation8 + $0xc0] sm:$0xff]  ;;  %v5619_v6 = vld [vmem:[#allocation8 + $0xc8] sm:$0xff] }
 0x62a   :  { %v14843_v2 = vpack.c.bf16 %v5619_v6, %v5618_v56 }
 0x62b   :  { %v5150_v12 = vadd.f32 %v5149_v9, %v5087_v14  ;;  %v5091_v14 = vmul.f32 %v17768_v8, %v17768_v8  ;;  %v5092_v9 = vmul.f32 %v17772_v4, %v17772_v4 }
 0x62c   :  { %14844 = vmatprep.subr.bf16.mxu1 %v14843_v2 }
 0x62d   :  { %v5151_v51 = vadd.f32 %v5150_v12, %v5088_v19  ;;  %14846 = vmatpush3.bf16.msra.mxu1 %v14843_v2  ;;  %v5620_v19 = vld [vmem:[#allocation8 + $0xd0] sm:$0xff]  ;;  %v5621_v12 = vld [vmem:[#allocation8 + $0xd8] sm:$0xff] }
 0x62e   :  { %v14847_v63 = vpack.c.bf16 %v5621_v12, %v5620_v19 }
 0x62f   :  { %v5152_v34 = vadd.f32 %v5151_v51, %v5089_v46  ;;  %v5093_v46 = vmul.f32 %v17776_v5, %v17776_v5  ;;  %v5094_v51 = vmul.f32 %v17780_v52, %v17780_v52 }
 0x630   :  { %14848 = vmatprep.subr.bf16.mxu1 %v14847_v63 }
 0x631   :  { %v5153_v31 = vadd.f32 %v5152_v34, %v5090_v37  ;;  %14850 = vmatpush3.bf16.msra.mxu1 %v14847_v63  ;;  %v5622_v37 = vld [vmem:[#allocation8 + $0xe0] sm:$0xff]  ;;  %v5623_v34 = vld [vmem:[#allocation8 + $0xe8] sm:$0xff] }
 0x632   :  { %v14851_v6 = vpack.c.bf16 %v5623_v34, %v5622_v37 }
 0x633   :  { %v5154_v20 = vadd.f32 %v5153_v31, %v5091_v14  ;;  %v5095_v14 = vmul.f32 %v17784_v15, %v17784_v15  ;;  %v5096_v31 = vmul.f32 %v17788_v33, %v17788_v33 }
 0x634   :  { %14852 = vmatprep.subr.bf16.mxu1 %v14851_v6 }
 0x635   :  { %v5155_v22 = vadd.f32 %v5154_v20, %v5092_v9  ;;  %14854 = vmatpush3.bf16.msra.mxu1 %v14851_v6  ;;  %v5624_v9 = vld [vmem:[#allocation8 + $0xf0] sm:$0xff]  ;;  %v5625_v20 = vld [vmem:[#allocation8 + $0xf8] sm:$0xff] }
 0x636   :  { %v14855_v12 = vpack.c.bf16 %v5625_v20, %v5624_v9  ;;  %v5546_v6 = vld [vmem:[#allocation2 + $0x9] sm:$0xff]  ;;  %v5529_v9 = vld [vmem:[#allocation8] sm:$0xff] }
 0x637   :  { %v5156_v56 = vadd.f32 %v5155_v22, %v5093_v46  ;;  %v5097_v46 = vmul.f32 %v17792_v26, %v17792_v26  ;;  %v5098_v22 = vmul.f32 %v17796_v16, %v17796_v16  ;;  %v5530_v20 = vld [vmem:[#allocation8 + $0x8] sm:$0xff] }
 0x638   :  { %14856 = vmatprep.subr.bf16.mxu1 %v14855_v12 }
 0x639   :  { %v5157_v2 = vadd.f32 %v5156_v56, %v5094_v51  ;;  %14858 = vmatpush3.bf16.msra.mxu1 %v14855_v12  ;;  %v5545_v51 = vld [vmem:[#allocation2 + $0x1] sm:$0xff]  ;;  %v5099_v56 = vmul.f32 %v17800_v42, %v17800_v42  ;;  %v14859_v12 = vpack.c.bf16 %v5530_v20, %v5529_v9  ;;  %v5102_v42 = vmul.f32 %v17812_v0, %v17812_v0 }
 0x63a   :  { %13419 = vmatprep.mubr.f32.mxu1 %v5545_v51  ;;  %v5103_v51 = vmul.f32 %v17816_v17, %v17816_v17  ;;  %v5107_v9 = vmul.f32 %v17832_v59, %v17832_v59  ;;  %v21537_v59 = vld [vmem:[#allocation51_spill] sm:$0xff] }
 0x63b   :  { %v5158_v19 = vadd.f32 %v5157_v2, %v5095_v14  ;;  %v5100_v14 = vmul.f32 %v17804_v29, %v17804_v29  ;;  %14860 = vmatprep.subr.bf16.mxu1 %v14859_v12 }
 0x63c   :  { %13420 = vmatmul.mubr.f32.vlgmr.msra.gmra.mrb[0].mxu1 %v5546_v6 }
 0x63d   :  { %v5159_v63 = vadd.f32 %v5158_v19, %v5096_v31  ;;  %v5101_v31 = vmul.f32 %v17808_v49, %v17808_v49  ;;  %14862 = vmatpush3.bf16.msra.mxu1 %v14859_v12 }
 0x63f   :  { %v5160_v37 = vadd.f32 %v5159_v63, %v5097_v46  ;;  %v5531_v46 = vld [vmem:[#allocation8 + $0x10] sm:$0xff]  ;;  %v5532_v63 = vld [vmem:[#allocation8 + $0x18] sm:$0xff] }
 0x641   :  { %v5161_v34 = vadd.f32 %v5160_v37, %v5098_v22  ;;  %v14863_v37 = vpack.c.bf16 %v5532_v63, %v5531_v46  ;;  %v5533_v63 = vld [vmem:[#allocation8 + $0x20] sm:$0xff] }
 0x643   :  { %v5162_v2 = vadd.f32 %v5161_v34, %v5099_v56  ;;  %14864 = vmatprep.subr.bf16.mxu1 %v14863_v37  ;;  %v5104_v56 = vmul.f32 %v17820_v48, %v17820_v48 }
 0x644   :  { %14866 = vmatpush3.bf16.msra.mxu1 %v14863_v37  ;;  %v21535_v37 = vld [vmem:[#allocation49_spill] sm:$0xff] }
 0x645   :  { %v5163_v19 = vadd.f32 %v5162_v2, %v5100_v14  ;;  %v5105_v14 = vmul.f32 %v17824_v53, %v17824_v53 }
 0x647   :  { %v5164_v22 = vadd.f32 %v5163_v19, %v5101_v31  ;;  %v5106_v31 = vmul.f32 %v17828_v25, %v17828_v25 }
 0x649   :  { %v5165_v6 = vadd.f32 %v5164_v22, %v5102_v42  ;;  %v21533_v42 = vld [vmem:[#allocation47_spill] sm:$0xff]  ;;  %v5534_v22 = vld [vmem:[#allocation8 + $0x28] sm:$0xff] }
 0x64a   :  { %v5108_v46 = vmul.f32 %v21533_v42, %v21533_v42  ;;  %v21538_v42 = vld [vmem:[#allocation52_spill] sm:$0xff] }
 0x64b   :  { %v5166_v34 = vadd.f32 %v5165_v6, %v5103_v51  ;;  %v14867_v51 = vpack.c.bf16 %v5534_v22, %v5533_v63  ;;  %v21534_v6 = vld [vmem:[#allocation48_spill] sm:$0xff]  ;;  %v5113_v63 = vmul.f32 %v21538_v42, %v21538_v42 }
 0x64c   :  { %v5109_v53 = vmul.f32 %v21534_v6, %v21534_v6 }
 0x64d   :  { %v5167_v2 = vadd.f32 %v5166_v34, %v5104_v56  ;;  %14868 = vmatprep.subr.bf16.mxu1 %v14867_v51  ;;  %v5110_v34 = vmul.f32 %v21535_v37, %v21535_v37 }
 0x64e   :  { %14870 = vmatpush3.bf16.msra.mxu1 %v14867_v51 }
 0x64f   :  { %v5168_v19 = vadd.f32 %v5167_v2, %v5105_v14  ;;  %v21536_v2 = vld [vmem:[#allocation50_spill] sm:$0xff] }
 0x651   :  { %v5169_v20 = vadd.f32 %v5168_v19, %v5106_v31  ;;  %v5111_v31 = vmul.f32 %v21536_v2, %v21536_v2  ;;  %v5536_v2 = vld [vmem:[#allocation8 + $0x38] sm:$0xff] }
 0x653   :  { %v5170_v12 = vadd.f32 %v5169_v20, %v5107_v9  ;;  %v5112_v9 = vmul.f32 %v21537_v59, %v21537_v59 }
 0x655   :  { %v5171_v56 = vadd.f32 %v5170_v12, %v5108_v46  ;;  %v5114_v46 = vmul.f32 %v17860_v3, %v17860_v3  ;;  %v5539_v3 = vld [vmem:[#allocation8 + $0x50] sm:$0xff] }
 0x657   :  { %v5172_v14 = vadd.f32 %v5171_v56, %v5109_v53  ;;  %v5115_v53 = vmul.f32 %v17864_v28, %v17864_v28  ;;  %v5116_v56 = vmul.f32 %v17868_v1, %v17868_v1  ;;  %v21541_v1 = vld [vmem:[#allocation60_spill] sm:$0xff] }
 0x659   :  { %v5173_v19 = vadd.f32 %v5172_v14, %v5110_v34  ;;  %v5535_v14 = vld [vmem:[#allocation8 + $0x30] sm:$0xff] }
 0x65a   :  { %v14871_v59 = vpack.c.bf16 %v5536_v2, %v5535_v14  ;;  %v5121_v2 = vmul.f32 %v21541_v1, %v21541_v1 }
 0x65b   :  { %v5174_v20 = vadd.f32 %v5173_v19, %v5111_v31  ;;  %v5117_v31 = vmul.f32 %v17872_v39, %v17872_v39  ;;  %v21542_v39 = vld [vmem:[#allocation61_spill] sm:$0xff] }
 0x65c   :  { %14872 = vmatprep.subr.bf16.mxu1 %v14871_v59 }
 0x65d   :  { %v5175_v22 = vadd.f32 %v5174_v20, %v5112_v9  ;;  %v5118_v9 = vmul.f32 %v17876_v41, %v17876_v41  ;;  %14874 = vmatpush3.bf16.msra.mxu1 %v14871_v59  ;;  %v5537_v41 = vld [vmem:[#allocation8 + $0x40] sm:$0xff] }
 0x65f   :  { %v5176_v12 = vadd.f32 %v5175_v22, %v5113_v63  ;;  %v21539_v63 = vld [vmem:[#allocation58_spill] sm:$0xff] }
 0x660   :  { %v5119_v22 = vmul.f32 %v21539_v63, %v21539_v63  ;;  %v5538_v63 = vld [vmem:[#allocation8 + $0x48] sm:$0xff] }
 0x661   :  { %v5177_v51 = vadd.f32 %v5176_v12, %v5114_v46  ;;  %v21540_v12 = vld [vmem:[#allocation59_spill] sm:$0xff] }
 0x663   :  { %v5178_v34 = vadd.f32 %v5177_v51, %v5115_v53  ;;  %v5120_v53 = vmul.f32 %v21540_v12, %v21540_v12 }
 0x665   :  { %v5179_v19 = vadd.f32 %v5178_v34, %v5116_v56  ;;  %v5122_v56 = vmul.f32 %v21542_v39, %v21542_v39 }
 0x667   :  { %v5180_v20 = vadd.f32 %v5179_v19, %v5117_v31  ;;  %v5123_v31 = vmul.f32 %v17896_v10, %v17896_v10  ;;  %v5198_v10 = vlaneseq }
 0x669   :  { %v5181_v46 = vadd.f32 %v5180_v20, %v5118_v9  ;;  %v14875_v9 = vpack.c.bf16 %v5538_v63, %v5537_v41  ;;  %v4924_v41 = vld [vmem:[%s20986_s3] sm:$0x1] }
 0x66b   :  { %v5182_v51 = vadd.f32 %v5181_v46, %v5119_v22  ;;  %14876 = vmatprep.subr.bf16.mxu1 %v14875_v9 }
 0x66c   :  { %14878 = vmatpush3.bf16.msra.mxu1 %v14875_v9  ;;  %v21546_v9 = vld [vmem:[#allocation41_spill] sm:$0xff] }
 0x66d   :  { %v5183_v14 = vadd.f32 %v5182_v51, %v5120_v53 }
 0x66f   :  { %v5184_v34 = vadd.f32 %v5183_v14, %v5121_v2  ;;  %v5540_v2 = vld [vmem:[#allocation8 + $0x58] sm:$0xff] }
 0x670   :  { %v14879_v14 = vpack.c.bf16 %v5540_v2, %v5539_v3  ;;  %v18039_v3 = vld [vmem:[%s20987_s4] ss:$0 sm:$0xff] }
 0x671   :  { %v5185_v59 = vadd.f32 %v5184_v34, %v5122_v56  ;;  %v18026_v56 = vshrl.u32 %v5198_v10, 7  ;;  %v21544_v10 = vld [vmem:[#allocation39_spill] sm:$0xff] }
 0x672   :  { %14880 = vmatprep.subr.bf16.mxu1 %v14879_v14 }
 0x673   :  { %v5186_v19 = vadd.f32 %v5185_v59, %v5123_v31  ;;  %14882 = vmatpush3.bf16.msra.mxu1 %v14879_v14  ;;  %21543 = vst [vmem:[#allocation63_spill] sm:$0xff] %v18026_v56  ;;  %v21124_v63 = vsub.s32 0, %v18026_v56  ;;  %v21545_v59 = vld [vmem:[#allocation40_spill] sm:$0xff]  ;;  %v21562_v56 = vld [vmem:[#allocation55_spill] sm:$0xff] }
 0x675   :  { %v5187_v20 = vrot.slane %v5186_v19, 4 }
 0x677   :  { %v5188_v12 = vadd.f32 %v5187_v20, %v5186_v19 }
 0x679   :  { %v5189_v22 = vrot.slane %v5188_v12, 2 }
 0x67b   :  { %v5190_v46 = vadd.f32 %v5189_v22, %v5188_v12 }
 0x67d   :  { %v5191_v1 = vrot.slane %v5190_v46, 1 }
 0x67f   :  { %v5192_v53 = vadd.f32 %v5191_v1, %v5190_v46 }
 0x681   :  { %v5193_v51 = vmul.f32 0.001953125, %v5192_v53 }
 0x683   :  { %v5194_v28 = vadd.f32 1e-05, %v5193_v51 }
 0x685   :  { %16146 = vrsqrt.f32 %v5194_v28 }
 0x68f   :  { %v16147_v12 = vpop.eup %16146 }
 0x690   :  { %v5196_v34 = vmul.f32 %v16147_v12, %v4924_v41  ;;  %v21547_v41 = vld [vmem:[#allocation42_spill] sm:$0xff]  ;;  %v21548_v12 = vld [vmem:[#allocation43_spill] sm:$0xff] }
 0x692   :  { %v18034_v1 = vrot.slane %v5196_v34, %v21124_v63  ;;  %v21560_v63 = vld [vmem:[#allocation54_spill] sm:$0xff] }
 0x694   :  { %v5265_v28 = vmul.f32 %v18034_v1, %v21542_v39  ;;  %v18045_v31 = vmul.f32 %v18034_v1, %v21544_v10  ;;  %v18049_v19 = vmul.f32 %v18034_v1, %v21545_v59  ;;  %v18053_v20 = vmul.f32 %v18034_v1, %v21546_v9  ;;  %v21549_v10 = vld [vmem:[#allocation44_spill] sm:$0xff]  ;;  %v21550_v9 = vld [vmem:[#allocation45_spill] sm:$0xff] }
 0x695   :  { %v18057_v22 = vmul.f32 %v18034_v1, %v17656_v7  ;;  %v18061_v46 = vmul.f32 %v18034_v1, %v17660_v30  ;;  %v18065_v39 = vmul.f32 %v18034_v1, %v17664_v24  ;;  %v18069_v53 = vmul.f32 %v18034_v1, %v17668_v23 }
 0x696   :  { %v5335_v51 = vadd.f32 %v18039_v3, %v5265_v28  ;;  %v18074_v2 = vmul.f32 %v18034_v1, %v17672_v60  ;;  %v18078_v7 = vmul.f32 %v18034_v1, %v17676_v21  ;;  %v18082_v30 = vmul.f32 %v18034_v1, %v17680_v36 }
 0x697   :  { %v18086_v24 = vmul.f32 %v18034_v1, %v17684_v35  ;;  %v18090_v23 = vmul.f32 %v18034_v1, %v17688_v44  ;;  %v18094_v60 = vmul.f32 %v18034_v1, %v17692_v40  ;;  %v18098_v21 = vmul.f32 %v18034_v1, %v17696_v55 }
 0x698   :  { %v5399_v14 = vmax.f32 %v5335_v51, 0.0  ;;  %v18102_v36 = vmul.f32 %v18034_v1, %v17700_v54  ;;  %v18106_v35 = vmul.f32 %v18034_v1, %v17704_v43  ;;  %v18110_v44 = vmul.f32 %v18034_v1, %v17708_v61  ;;  %v21551_v51 = vld [vmem:[#allocation46_spill] sm:$0xff] }
 0x699   :  { %v18114_v40 = vmul.f32 %v18034_v1, %v21547_v41  ;;  %v18118_v55 = vmul.f32 %v18034_v1, %v21548_v12  ;;  %v18122_v54 = vmul.f32 %v18034_v1, %v17720_v45  ;;  %v18126_v43 = vmul.f32 %v18034_v1, %v17724_v27  ;;  %v21553_v12 = vld [vmem:[#allocation50_spill] sm:$0xff] }
 0x69a   :  { %v18130_v61 = vmul.f32 %v18034_v1, %v17728_v11  ;;  %v18134_v34 = vmul.f32 %v18034_v1, %v17732_v18  ;;  %v18138_v28 = vmul.f32 %v18034_v1, %v17736_v38  ;;  %v18142_v45 = vmul.f32 %v18034_v1, %v17740_v32  ;;  %5463 = vst [vmem:[#allocation2 + $0x331] sm:$0xff] %v5399_v14  ;;  %v21552_v14 = vld [vmem:[#allocation47_spill] sm:$0xff] }
 0x69b   :  { %v18146_v27 = vmul.f32 %v18034_v1, %v17744_v47  ;;  %v18150_v11 = vmul.f32 %v18034_v1, %v17748_v57  ;;  %v18154_v18 = vmul.f32 %v18034_v1, %v17752_v13  ;;  %v18158_v38 = vmul.f32 %v18034_v1, %v17756_v58 }
 0x69c   :  { %v18162_v32 = vmul.f32 %v18034_v1, %v17760_v62  ;;  %v18166_v47 = vmul.f32 %v18034_v1, %v17764_v50  ;;  %v18170_v57 = vmul.f32 %v18034_v1, %v17768_v8  ;;  %v18174_v13 = vmul.f32 %v18034_v1, %v17772_v4 }
 0x69d   :  { %v18178_v58 = vmul.f32 %v18034_v1, %v17776_v5  ;;  %v18182_v62 = vmul.f32 %v18034_v1, %v17780_v52  ;;  %v18186_v50 = vmul.f32 %v18034_v1, %v17784_v15  ;;  %v18190_v8 = vmul.f32 %v18034_v1, %v17788_v33 }
 0x69e   :  { %v18194_v4 = vmul.f32 %v18034_v1, %v17792_v26  ;;  %v18198_v5 = vmul.f32 %v18034_v1, %v17796_v16  ;;  %v18202_v52 = vmul.f32 %v18034_v1, %v21549_v10  ;;  %v18206_v15 = vmul.f32 %v18034_v1, %v17804_v29  ;;  %v21555_v10 = vld [vmem:[#allocation51_spill] sm:$0xff] }
 0x69f   :  { %v18210_v33 = vmul.f32 %v18034_v1, %v17808_v49  ;;  %v18214_v26 = vmul.f32 %v18034_v1, %v17812_v0  ;;  %v18218_v16 = vmul.f32 %v18034_v1, %v17816_v17  ;;  %v18222_v59 = vmul.f32 %v18034_v1, %v17820_v48 }
 0x6a0   :  { %v18226_v29 = vmul.f32 %v18034_v1, %v21550_v9  ;;  %v18230_v49 = vmul.f32 %v18034_v1, %v17828_v25  ;;  %v18234_v0 = vmul.f32 %v18034_v1, %v21551_v51  ;;  %v18238_v17 = vmul.f32 %v18034_v1, %v21552_v14  ;;  %v21558_v14 = vld [vmem:[#allocation53_spill] sm:$0xff] }
 0x6a1   :  { %v18242_v48 = vmul.f32 %v18034_v1, %v21534_v6  ;;  %v18246_v41 = vmul.f32 %v18034_v1, %v21535_v37  ;;  %v18250_v25 = vmul.f32 %v18034_v1, %v21553_v12  ;;  %v18254_v9 = vmul.f32 %v18034_v1, %v21555_v10 }
 0x6a2   :  { %v18258_v51 = vmul.f32 %v18034_v1, %v21538_v42  ;;  %v18262_v6 = vmul.f32 %v18034_v1, %v21558_v14  ;;  %v18266_v37 = vmul.f32 %v18034_v1, %v21560_v63  ;;  %v18270_v12 = vmul.f32 %v18034_v1, %v21562_v56 }
 0x6a3   :  { %21554 = vst [vmem:[#allocation64_spill] sm:$0xff] %v18250_v25  ;;  %21556 = vst [vmem:[#allocation65_spill] sm:$0xff] %v18254_v9  ;;  %v21564_v25 = vld [vmem:[#allocation56_spill] sm:$0xff]  ;;  %v21565_v9 = vld [vmem:[#allocation57_spill] sm:$0xff] }
 0x6a4   :  { %21557 = vst [vmem:[#allocation66_spill] sm:$0xff] %v18258_v51  ;;  %21559 = vst [vmem:[#allocation67_spill] sm:$0xff] %v18262_v6  ;;  %v18274_v10 = vmul.f32 %v18034_v1, %v21564_v25  ;;  %v18278_v42 = vmul.f32 %v18034_v1, %v21565_v9  ;;  %v21566_v51 = vld [vmem:[#allocation58_spill] sm:$0xff]  ;;  %v21567_v6 = vld [vmem:[#allocation59_spill] sm:$0xff]  ;;  %v18298_v9 = vadd.f32 %v18039_v3, %v18045_v31 }
 0x6a5   :  { %21561 = vst [vmem:[#allocation68_spill] sm:$0xff] %v18266_v37  ;;  %21563 = vst [vmem:[#allocation69_spill] sm:$0xff] %v18270_v12  ;;  %v18282_v14 = vmul.f32 %v18034_v1, %v21566_v51  ;;  %v18286_v63 = vmul.f32 %v18034_v1, %v21567_v6  ;;  %v21568_v37 = vld [vmem:[#allocation60_spill] sm:$0xff]  ;;  %v21569_v12 = vld [vmem:[#allocation62_spill] sm:$0xff]  ;;  %v18302_v51 = vadd.f32 %v18039_v3, %v18049_v19 }
 0x6a6   :  { %v18290_v56 = vmul.f32 %v18034_v1, %v21568_v37  ;;  %v18294_v25 = vmul.f32 %v18034_v1, %v21569_v12  ;;  %v18306_v6 = vadd.f32 %v18039_v3, %v18053_v20  ;;  %v18310_v37 = vadd.f32 %v18039_v3, %v18057_v22 }
 0x6a7   :  { %v18314_v1 = vadd.f32 %v18039_v3, %v18061_v46  ;;  %v18318_v31 = vadd.f32 %v18039_v3, %v18065_v39  ;;  %v18322_v19 = vadd.f32 %v18039_v3, %v18069_v53  ;;  %v18326_v20 = vadd.f32 %v18039_v3, %v18074_v2 }
 0x6a8   :  { %v18330_v22 = vadd.f32 %v18039_v3, %v18078_v7  ;;  %v18334_v46 = vadd.f32 %v18039_v3, %v18082_v30  ;;  %v18338_v39 = vadd.f32 %v18039_v3, %v18086_v24  ;;  %v18342_v53 = vadd.f32 %v18039_v3, %v18090_v23 }
 0x6a9   :  { %v18346_v2 = vadd.f32 %v18039_v3, %v18094_v60  ;;  %v18350_v7 = vadd.f32 %v18039_v3, %v18098_v21  ;;  %v18354_v30 = vadd.f32 %v18039_v3, %v18102_v36  ;;  %v18358_v24 = vadd.f32 %v18039_v3, %v18106_v35 }
 0x6aa   :  { %v18362_v23 = vadd.f32 %v18039_v3, %v18110_v44  ;;  %v18366_v60 = vadd.f32 %v18039_v3, %v18114_v40  ;;  %v18370_v21 = vadd.f32 %v18039_v3, %v18118_v55  ;;  %v18374_v36 = vadd.f32 %v18039_v3, %v18122_v54  ;;  %v21575_v12 = vld [vmem:[#allocation64_spill] sm:$0xff] }
 0x6ab   :  { %v18378_v35 = vadd.f32 %v18039_v3, %v18126_v43  ;;  %v18382_v44 = vadd.f32 %v18039_v3, %v18130_v61  ;;  %v18386_v40 = vadd.f32 %v18039_v3, %v18134_v34  ;;  %v18390_v55 = vadd.f32 %v18039_v3, %v18138_v28 }
 0x6ac   :  { %v18394_v54 = vadd.f32 %v18039_v3, %v18142_v45  ;;  %v18398_v43 = vadd.f32 %v18039_v3, %v18146_v27  ;;  %v18402_v61 = vadd.f32 %v18039_v3, %v18150_v11  ;;  %v18406_v34 = vadd.f32 %v18039_v3, %v18154_v18 }
 0x6ad   :  { %v18410_v28 = vadd.f32 %v18039_v3, %v18158_v38  ;;  %v18414_v45 = vadd.f32 %v18039_v3, %v18162_v32  ;;  %v18418_v27 = vadd.f32 %v18039_v3, %v18166_v47  ;;  %v18422_v11 = vadd.f32 %v18039_v3, %v18170_v57 }
 0x6ae   :  { %v18426_v18 = vadd.f32 %v18039_v3, %v18174_v13  ;;  %v18430_v38 = vadd.f32 %v18039_v3, %v18178_v58  ;;  %v18434_v32 = vadd.f32 %v18039_v3, %v18182_v62  ;;  %v18438_v47 = vadd.f32 %v18039_v3, %v18186_v50 }
 0x6af   :  { %v18442_v57 = vadd.f32 %v18039_v3, %v18190_v8  ;;  %v18446_v13 = vadd.f32 %v18039_v3, %v18194_v4  ;;  %v18450_v58 = vadd.f32 %v18039_v3, %v18198_v5  ;;  %v18454_v62 = vadd.f32 %v18039_v3, %v18202_v52 }
 0x6b0   :  { %v18458_v50 = vadd.f32 %v18039_v3, %v18206_v15  ;;  %v18462_v8 = vadd.f32 %v18039_v3, %v18210_v33  ;;  %v18466_v4 = vadd.f32 %v18039_v3, %v18214_v26  ;;  %v18470_v5 = vadd.f32 %v18039_v3, %v18218_v16 }
 0x6b1   :  { %v18474_v52 = vadd.f32 %v18039_v3, %v18222_v59  ;;  %v18478_v15 = vadd.f32 %v18039_v3, %v18226_v29  ;;  %v18482_v33 = vadd.f32 %v18039_v3, %v18230_v49  ;;  %v18486_v26 = vadd.f32 %v18039_v3, %v18234_v0 }
 0x6b2   :  { %v18490_v16 = vadd.f32 %v18039_v3, %v18238_v17  ;;  %v18494_v59 = vadd.f32 %v18039_v3, %v18242_v48  ;;  %v18498_v29 = vadd.f32 %v18039_v3, %v18246_v41  ;;  %v18502_v49 = vadd.f32 %v18039_v3, %v21575_v12 }
 0x6b3   :  { %21570 = vst [vmem:[#allocation70_spill] sm:$0xff] %v18482_v33  ;;  %21571 = vst [vmem:[#allocation71_spill] sm:$0xff] %v18486_v26  ;;  %v21576_v33 = vld [vmem:[#allocation65_spill] sm:$0xff]  ;;  %v21577_v26 = vld [vmem:[#allocation66_spill] sm:$0xff] }
 0x6b4   :  { %21572 = vst [vmem:[#allocation72_spill] sm:$0xff] %v18490_v16  ;;  %21573 = vst [vmem:[#allocation73_spill] sm:$0xff] %v18494_v59  ;;  %v18506_v0 = vadd.f32 %v18039_v3, %v21576_v33  ;;  %v18510_v17 = vadd.f32 %v18039_v3, %v21577_v26  ;;  %v21578_v16 = vld [vmem:[#allocation67_spill] sm:$0xff]  ;;  %v21579_v59 = vld [vmem:[#allocation68_spill] sm:$0xff]  ;;  %v18526_v33 = vadd.f32 %v18039_v3, %v18274_v10 }
 0x6b5   :  { %21574 = vst [vmem:[#allocation74_spill] sm:$0xff] %v18498_v29  ;;  %v18514_v48 = vadd.f32 %v18039_v3, %v21578_v16  ;;  %v18518_v41 = vadd.f32 %v18039_v3, %v21579_v59  ;;  %v21580_v29 = vld [vmem:[#allocation69_spill] sm:$0xff]  ;;  %v18530_v26 = vadd.f32 %v18039_v3, %v18278_v42  ;;  %v18534_v16 = vadd.f32 %v18039_v3, %v18282_v14 }
 0x6b6   :  { %v18522_v12 = vadd.f32 %v18039_v3, %v21580_v29  ;;  %21581 = vst [vmem:[#allocation75_spill] sm:$0xff] %v18526_v33  ;;  %v18538_v59 = vadd.f32 %v18039_v3, %v18286_v63  ;;  %v18542_v29 = vadd.f32 %v18039_v3, %v18290_v56  ;;  %v18546_v10 = vadd.f32 %v18039_v3, %v18294_v25 }
 0x6b7   :  { %21582 = vst [vmem:[#allocation76_spill] sm:$0xff] %v18530_v26  ;;  %21583 = vst [vmem:[#allocation77_spill] sm:$0xff] %v18534_v16  ;;  %v5337_v33 = vmax.f32 %v18298_v9, 0.0  ;;  %v5338_v42 = vmax.f32 %v18302_v51, 0.0  ;;  %v5339_v26 = vmax.f32 %v18306_v6, 0.0  ;;  %v5340_v14 = vmax.f32 %v18310_v37, 0.0 }
 0x6b8   :  { %21584 = vst [vmem:[#allocation78_spill] sm:$0xff] %v18538_v59  ;;  %21585 = vst [vmem:[#allocation79_spill] sm:$0xff] %v18542_v29  ;;  %v5341_v16 = vmax.f32 %v18314_v1, 0.0  ;;  %v21137_v63 = vmax.f32 %v18318_v31, 0.0  ;;  %v21136_v59 = vmax.f32 %v18322_v19, 0.0  ;;  %v21138_v56 = vmax.f32 %v18326_v20, 0.0 }
 0x6b9   :  { %v21139_v29 = vmax.f32 %v18330_v22, 0.0  ;;  %v21141_v3 = vmax.f32 %v18334_v46, 0.0  ;;  %v21140_v25 = vmax.f32 %v18338_v39, 0.0  ;;  %5401 = vst [vmem:[#allocation2 + $0x19] sm:$0xff] %v5337_v33  ;;  %5402 = vst [vmem:[#allocation2 + $0x21] sm:$0xff] %v5338_v42  ;;  %13422 = vmatprep.mubr.f32.mxu1 %v5337_v33  ;;  %v21143_v6 = vmax.f32 %v18350_v7, 0.0 }
 0x6ba   :  { %5403 = vst [vmem:[#allocation2 + $0x31] sm:$0xff] %v5339_v26  ;;  %v21142_v37 = vmax.f32 %v18354_v30, 0.0  ;;  %5404 = vst [vmem:[#allocation2 + $0x39] sm:$0xff] %v5340_v14  ;;  %13423 = vmatmul.mubr.f32.gmra.mrb[2].mxu1 %v5338_v42  ;;  %v21146_v1 = vmax.f32 %v18358_v24, 0.0  ;;  %v21145_v33 = vmax.f32 %v18362_v23, 0.0  ;;  %v21144_v9 = vmax.f32 %v18366_v60, 0.0 }
 0x6bb   :  { %5405 = vst [vmem:[#allocation2 + $0x49] sm:$0xff] %v5341_v16  ;;  %5406 = vst [vmem:[#allocation2 + $0x51] sm:$0xff] %v21137_v63  ;;  %13425 = vmatprep.mubr.f32.mxu1 %v5339_v26  ;;  %v21158_v42 = vmax.f32 %v18374_v36, 0.0  ;;  %v21147_v63 = vmax.f32 %v18382_v44, 0.0  ;;  %v21154_v26 = vmax.f32 %v18390_v55, 0.0  ;;  %v5367_v51 = vmax.f32 %v18418_v27, 0.0 }
 0x6bc   :  { %5407 = vst [vmem:[#allocation2 + $0x61] sm:$0xff] %v21136_v59  ;;  %5408 = vst [vmem:[#allocation2 + $0x69] sm:$0xff] %v21138_v56  ;;  %v21148_v59 = vmax.f32 %v18378_v35, 0.0  ;;  %v21586_v56 = vmax.f32 %v18342_v53, 0.0  ;;  %v21155_v27 = vmax.f32 %v18434_v32, 0.0 }
 0x6bd   :  { %5409 = vst [vmem:[#allocation2 + $0x79] sm:$0xff] %v21139_v29  ;;  %5410 = vst [vmem:[#allocation2 + $0x81] sm:$0xff] %v21141_v3  ;;  %v21587_v29 = vmax.f32 %v18346_v2, 0.0  ;;  %v21149_v3 = vmax.f32 %v18398_v43, 0.0 }
 0x6be   :  { %5411 = vst [vmem:[#allocation2 + $0x91] sm:$0xff] %v21140_v25  ;;  %5412 = vst [vmem:[#allocation2 + $0x99] sm:$0xff] %v21586_v56  ;;  %v21150_v25 = vmax.f32 %v18394_v54, 0.0  ;;  %v21153_v56 = vmax.f32 %v18406_v34, 0.0  ;;  %13426 = vmatmul.mubr.f32.gmra.mrb[4].mxu1 %v5340_v14  ;;  %v21166_v14 = vmax.f32 %v18442_v57, 0.0 }
 0x6bf   :  { %5413 = vst [vmem:[#allocation2 + $0xa9] sm:$0xff] %v21587_v29  ;;  %5414 = vst [vmem:[#allocation2 + $0xb1] sm:$0xff] %v21143_v6  ;;  %v21588_v29 = vmax.f32 %v18370_v21, 0.0  ;;  %v21151_v6 = vmax.f32 %v18414_v45, 0.0  ;;  %13428 = vmatprep.mubr.f32.mxu1 %v5341_v16  ;;  %v21162_v16 = vmax.f32 %v18454_v62, 0.0 }
 0x6c0   :  { %5415 = vst [vmem:[#allocation2 + $0xc1] sm:$0xff] %v21142_v37  ;;  %5416 = vst [vmem:[#allocation2 + $0xc9] sm:$0xff] %v21146_v1  ;;  %v21152_v37 = vmax.f32 %v18410_v28, 0.0  ;;  %v21156_v1 = vmax.f32 %v18430_v38, 0.0 }
 0x6c1   :  { %5417 = vst [vmem:[#allocation2 + $0xd9] sm:$0xff] %v21145_v33  ;;  %5418 = vst [vmem:[#allocation2 + $0xe1] sm:$0xff] %v21144_v9  ;;  %v21589_v9 = vmax.f32 %v18386_v40, 0.0  ;;  %v21157_v33 = vmax.f32 %v18426_v18, 0.0 }
 0x6c2   :  { %5419 = vst [vmem:[#allocation2 + $0xf1] sm:$0xff] %v21588_v29  ;;  %5420 = vst [vmem:[#allocation2 + $0xf9] sm:$0xff] %v21158_v42  ;;  %v5368_v29 = vmax.f32 %v18422_v11, 0.0  ;;  %v21159_v11 = vmax.f32 %v18438_v47, 0.0 }
 0x6c3   :  { %5421 = vst [vmem:[#allocation2 + $0x109] sm:$0xff] %v21148_v59  ;;  %5422 = vst [vmem:[#allocation2 + $0x111] sm:$0xff] %v21147_v63  ;;  %v21161_v63 = vmax.f32 %v18446_v13, 0.0  ;;  %v21160_v59 = vmax.f32 %v18450_v58, 0.0 }
 0x6c4   :  { %5423 = vst [vmem:[#allocation2 + $0x121] sm:$0xff] %v21589_v9  ;;  %5424 = vst [vmem:[#allocation2 + $0x129] sm:$0xff] %v21154_v26  ;;  %v21590_v9 = vmax.f32 %v18402_v61, 0.0  ;;  %v21595_v26 = vld [vmem:[#allocation73_spill] sm:$0xff] }
 0x6c5   :  { %5425 = vst [vmem:[#allocation2 + $0x139] sm:$0xff] %v21150_v25  ;;  %5426 = vst [vmem:[#allocation2 + $0x141] sm:$0xff] %v21149_v3  ;;  %v21164_v3 = vmax.f32 %v18462_v8, 0.0  ;;  %v21165_v25 = vmax.f32 %v18466_v4, 0.0 }
 0x6c6   :  { %5427 = vst [vmem:[#allocation2 + $0x151] sm:$0xff] %v21590_v9  ;;  %5428 = vst [vmem:[#allocation2 + $0x159] sm:$0xff] %v21153_v56  ;;  %v21163_v9 = vmax.f32 %v18458_v50, 0.0  ;;  %v21591_v56 = vld [vmem:[#allocation70_spill] sm:$0xff] }
 0x6c7   :  { %5429 = vst [vmem:[#allocation2 + $0x169] sm:$0xff] %v21152_v37  ;;  %5430 = vst [vmem:[#allocation2 + $0x171] sm:$0xff] %v21151_v6  ;;  %v21172_v37 = vmax.f32 %v21595_v26, 0.0  ;;  %v21596_v6 = vld [vmem:[#allocation74_spill] sm:$0xff] }
 0x6c8   :  { %5431 = vst [vmem:[#allocation2 + $0x181] sm:$0xff] %v5367_v51  ;;  %5432 = vst [vmem:[#allocation2 + $0x189] sm:$0xff] %v5368_v29  ;;  %v21167_v51 = vmax.f32 %v18470_v5, 0.0  ;;  %v21592_v29 = vmax.f32 %v18318_v31, 0.0  ;;  %v21597_v31 = vmax.f32 %v18322_v19, 0.0  ;;  %v21600_v19 = vmax.f32 %v21591_v56, 0.0 }
 0x6c9   :  { %5433 = vst [vmem:[#allocation2 + $0x1c9] sm:$0xff] %v21157_v33  ;;  %5434 = vst [vmem:[#allocation2 + $0x1d1] sm:$0xff] %v21156_v1  ;;  %v21594_v33 = vld [vmem:[#allocation72_spill] sm:$0xff]  ;;  %v21606_v56 = vld [vmem:[#allocation79_spill] sm:$0xff] }
 0x6ca   :  { %5435 = vst [vmem:[#allocation2 + $0x1e1] sm:$0xff] %v21155_v27  ;;  %5436 = vst [vmem:[#allocation2 + $0x1e9] sm:$0xff] %v21159_v11  ;;  %13429 = vmatmul.mubr.f32.gmra.mrb[6].mxu1 %v21592_v29  ;;  %v21593_v27 = vld [vmem:[#allocation71_spill] sm:$0xff]  ;;  %v21171_v42 = vmax.f32 %v21594_v33, 0.0  ;;  %v21602_v29 = vld [vmem:[#allocation76_spill] sm:$0xff] }
 0x6cb   :  { %5437 = vst [vmem:[#allocation2 + $0x1f9] sm:$0xff] %v21166_v14  ;;  %5438 = vst [vmem:[#allocation2 + $0x201] sm:$0xff] %v21161_v63  ;;  %v21170_v1 = vmax.f32 %v21593_v27, 0.0  ;;  %13431 = vmatprep.mubr.f32.mxu1 %v21597_v31  ;;  %v5541_v31 = vld [vmem:[#allocation8 + $0x60] sm:$0xff]  ;;  %v21605_v14 = vld [vmem:[#allocation78_spill] sm:$0xff]  ;;  %v5400_v27 = vmax.f32 %v18546_v10, 0.0 }
 0x6cc   :  { %5439 = vst [vmem:[#allocation2 + $0x211] sm:$0xff] %v21160_v59  ;;  %5440 = vst [vmem:[#allocation2 + $0x219] sm:$0xff] %v21162_v16  ;;  %v21601_v59 = vld [vmem:[#allocation75_spill] sm:$0xff]  ;;  %v21611_v63 = vmax.f32 %v18326_v20, 0.0  ;;  %v21612_v16 = vmax.f32 %v18518_v41, 0.0  ;;  %v21613_v10 = vmax.f32 %v18522_v12, 0.0 }
 0x6cd   :  { %5441 = vst [vmem:[#allocation2 + $0x229] sm:$0xff] %v21163_v9  ;;  %5442 = vst [vmem:[#allocation2 + $0x231] sm:$0xff] %v21164_v3  ;;  %v21598_v9 = vmax.f32 %v18474_v52, 0.0  ;;  %v21599_v3 = vmax.f32 %v18478_v15, 0.0  ;;  %v21618_v20 = vmax.f32 %v21605_v14, 0.0 }
 0x6ce   :  { %5443 = vst [vmem:[#allocation2 + $0x241] sm:$0xff] %v21165_v25  ;;  %5444 = vst [vmem:[#allocation2 + $0x249] sm:$0xff] %v21167_v51  ;;  %v5542_v25 = vld [vmem:[#allocation8 + $0x68] sm:$0xff]  ;;  %v21604_v51 = vld [vmem:[#allocation77_spill] sm:$0xff]  ;;  %13432 = vmatmul.mubr.f32.gmra.mrb[8].mxu1 %v21611_v63  ;;  %v21619_v63 = vmax.f32 %v21606_v56, 0.0 }
 0x6cf   :  { %5445 = vst [vmem:[#allocation2 + $0x259] sm:$0xff] %v21598_v9  ;;  %5446 = vst [vmem:[#allocation2 + $0x261] sm:$0xff] %v21599_v3  ;;  %v21603_v3 = vmax.f32 %v21596_v6, 0.0  ;;  %v5543_v9 = vld [vmem:[#allocation8 + $0x70] sm:$0xff]  ;;  %v14883_v11 = vpack.c.bf16 %v5542_v25, %v5541_v31  ;;  %v21622_v31 = vmax.f32 %v18342_v53, 0.0  ;;  %v21628_v53 = vmax.f32 %v18366_v60, 0.0 }
 0x6d0   :  { %5447 = vst [vmem:[#allocation2 + $0x271] sm:$0xff] %v21600_v19  ;;  %5448 = vst [vmem:[#allocation2 + $0x279] sm:$0xff] %v21170_v1  ;;  %v5544_v19 = vld [vmem:[#allocation8 + $0x78] sm:$0xff]  ;;  %v21607_v1 = vmax.f32 %v18502_v49, 0.0  ;;  %v21635_v60 = vmax.f32 %v18394_v54, 0.0  ;;  %v21641_v54 = vmax.f32 %v18426_v18, 0.0 }
 0x6d1   :  { %5449 = vst [vmem:[#allocation2 + $0x289] sm:$0xff] %v21171_v42  ;;  %5450 = vst [vmem:[#allocation2 + $0x291] sm:$0xff] %v21172_v37  ;;  %v21608_v42 = vmax.f32 %v18506_v0, 0.0  ;;  %v21609_v37 = vmax.f32 %v18510_v17, 0.0  ;;  %14884 = vmatprep.subr.bf16.mxu1 %v14883_v11  ;;  %v21648_v18 = vmax.f32 %v18454_v62, 0.0  ;;  %v21655_v62 = vld [vmem:[#allocation70_spill] sm:$0xff] }
 0x6d2   :  { %5451 = vst [vmem:[#allocation2 + $0x2a1] sm:$0xff] %v21603_v3  ;;  %5452 = vst [vmem:[#allocation2 + $0x2a9] sm:$0xff] %v21607_v1  ;;  %v21610_v3 = vmax.f32 %v18514_v48, 0.0  ;;  %v21614_v1 = vmax.f32 %v21601_v59, 0.0  ;;  %14886 = vmatpush3.bf16.msra.mxu1 %v14883_v11  ;;  %v21627_v11 = vmax.f32 %v18362_v23, 0.0  ;;  %v21634_v23 = vmax.f32 %v18390_v55, 0.0 }
 0x6d3   :  { %5453 = vst [vmem:[#allocation2 + $0x2b9] sm:$0xff] %v21608_v42  ;;  %5454 = vst [vmem:[#allocation2 + $0x2c1] sm:$0xff] %v21609_v37  ;;  %v21615_v42 = vmax.f32 %v21602_v29, 0.0  ;;  %v21616_v37 = vmax.f32 %v18330_v22, 0.0  ;;  %v21621_v22 = vmax.f32 %v18338_v39, 0.0  ;;  %v21626_v39 = vmax.f32 %v18358_v24, 0.0 }
 0x6d4   :  { %5455 = vst [vmem:[#allocation2 + $0x2d1] sm:$0xff] %v21610_v3  ;;  %5456 = vst [vmem:[#allocation2 + $0x2d9] sm:$0xff] %v21612_v16  ;;  %v21617_v3 = vmax.f32 %v21604_v51, 0.0  ;;  %v14887_v16 = vpack.c.bf16 %v5544_v19, %v5543_v9  ;;  %v21630_v9 = vmax.f32 %v18374_v36, 0.0  ;;  %v21633_v24 = vmax.f32 %v18386_v40, 0.0  ;;  %v5577_v40 = vld [vmem:[#allocation2 + $0x1b1] sm:$0xff] }
 0x6d5   :  { %5457 = vst [vmem:[#allocation2 + $0x2e9] sm:$0xff] %v21613_v10  ;;  %5458 = vst [vmem:[#allocation2 + $0x2f1] sm:$0xff] %v21614_v1  ;;  %13434 = vmatprep.mubr.f32.mxu1 %v21616_v37  ;;  %v6461_v10 = vld [vmem:[#allocation8 + $0x100] sm:$0xff]  ;;  %v6462_v1 = vld [vmem:[#allocation8 + $0x108] sm:$0xff]  ;;  %v21623_v37 = vmax.f32 %v18346_v2, 0.0  ;;  %v21629_v2 = vmax.f32 %v18370_v21, 0.0 }
 0x6d6   :  { %5459 = vst [vmem:[#allocation2 + $0x301] sm:$0xff] %v21615_v42  ;;  %5460 = vst [vmem:[#allocation2 + $0x309] sm:$0xff] %v21617_v3  ;;  %v21620_v42 = vmax.f32 %v18334_v46, 0.0  ;;  %14888 = vmatprep.subr.bf16.mxu1 %v14887_v16  ;;  %v18733_v25 = vpack.c.bf16 %v6462_v1, %v6461_v10  ;;  %v21625_v46 = vmax.f32 %v18354_v30, 0.0  ;;  %v21632_v30 = vmax.f32 %v18382_v44, 0.0  ;;  %v5578_v55 = vld [vmem:[#allocation2 + $0x1b9] sm:$0xff] }
 0x6d7   :  { %5461 = vst [vmem:[#allocation2 + $0x319] sm:$0xff] %v21618_v20  ;;  %5462 = vst [vmem:[#allocation2 + $0x321] sm:$0xff] %v21619_v63  ;;  %14890 = vmatpush3.bf16.msra.mxu1 %v14887_v16  ;;  %v21636_v21 = vmax.f32 %v18398_v43, 0.0  ;;  %v21637_v36 = vmax.f32 %v18402_v61, 0.0  ;;  %v21639_v44 = vmax.f32 %v18410_v28, 0.0  ;;  %v21640_v19 = vmax.f32 %v18414_v45, 0.0 }
 0x6d8   :  { %5464 = vst [vmem:[#allocation2 + $0x339] sm:$0xff] %v5400_v27  ;;  %13435 = vmatmul.mubr.f32.gmra.mrb[10].mxu1 %v21620_v42  ;;  %14892 = vmatprep.subr.bf16.mxu1 %v18733_v25  ;;  %v21624_v27 = vmax.f32 %v18350_v7, 0.0  ;;  %v21631_v7 = vmax.f32 %v18378_v35, 0.0  ;;  %v21638_v35 = vmax.f32 %v18406_v34, 0.0  ;;  %v21642_v43 = vmax.f32 %v18430_v38, 0.0  ;;  %v6463_v1 = vld [vmem:[#allocation8 + $0x110] sm:$0xff] }
 0x6d9   :  { %13437 = vmatprep.mubr.f32.mxu1 %v21621_v22  ;;  %v21643_v61 = vmax.f32 %v18434_v32, 0.0  ;;  %v21644_v34 = vmax.f32 %v18438_v47, 0.0  ;;  %v21645_v28 = vmax.f32 %v18442_v57, 0.0  ;;  %v21646_v45 = vmax.f32 %v18446_v13, 0.0  ;;  %v6464_v42 = vld [vmem:[#allocation8 + $0x118] sm:$0xff]  ;;  %v6465_v22 = vld [vmem:[#allocation8 + $0x120] sm:$0xff] }
 0x6da   :  { %v21647_v3 = vmax.f32 %v18450_v58, 0.0  ;;  %v21649_v38 = vmax.f32 %v18458_v50, 0.0  ;;  %v21650_v32 = vmax.f32 %v18462_v8, 0.0  ;;  %v21651_v47 = vmax.f32 %v18466_v4, 0.0  ;;  %v21657_v50 = vld [vmem:[#allocation71_spill] sm:$0xff] }
 0x6db   :  { %v21652_v57 = vmax.f32 %v18470_v5, 0.0  ;;  %v21653_v13 = vmax.f32 %v18474_v52, 0.0  ;;  %v21654_v58 = vmax.f32 %v18478_v15, 0.0  ;;  %v21656_v20 = vmax.f32 %v21655_v62, 0.0  ;;  %v18901_v62 = vld [vmem:[#allocation2 + $0x108] sm:$0xff] }
 0x6dc   :  { %13438 = vmatmul.mubr.f32.gmra.mrb[12].mxu1 %v21622_v31  ;;  %v21658_v63 = vmax.f32 %v21657_v50, 0.0  ;;  %v21659_v8 = vmax.f32 %v21594_v33, 0.0  ;;  %v21660_v4 = vmax.f32 %v21595_v26, 0.0  ;;  %v21661_v5 = vmax.f32 %v21596_v6, 0.0  ;;  %v18834_v31 = vld [vmem:[#allocation2 + $0x8] sm:$0xff]  ;;  %v18907_v50 = vld [vmem:[#allocation2 + $0x120] sm:$0xff] }
 0x6dd   :  { %13440 = vmatprep.mubr.f32.mxu1 %v21623_v37  ;;  %v21662_v52 = vmax.f32 %v18502_v49, 0.0  ;;  %v21663_v15 = vmax.f32 %v18506_v0, 0.0  ;;  %v21664_v16 = vmax.f32 %v18510_v17, 0.0  ;;  %v21665_v10 = vmax.f32 %v18514_v48, 0.0  ;;  %v5465_v48 = vld [vmem:[#allocation2] sm:$0xff]  ;;  %v6468_v37 = vld [vmem:[#allocation8 + $0x138] sm:$0xff] }
 0x6de   :  { %v21666_v33 = vmax.f32 %v18518_v41, 0.0  ;;  %v21667_v26 = vmax.f32 %v18522_v12, 0.0  ;;  %v21668_v6 = vmax.f32 %v21601_v59, 0.0  ;;  %v21669_v49 = vmax.f32 %v21602_v29, 0.0  ;;  %v6466_v59 = vld [vmem:[#allocation8 + $0x128] sm:$0xff]  ;;  %v18837_v29 = vld [vmem:[#allocation2 + $0x18] sm:$0xff] }
 0x6df   :  { %v21670_v0 = vmax.f32 %v21604_v51, 0.0  ;;  %v21671_v17 = vmax.f32 %v21605_v14, 0.0  ;;  %v21672_v41 = vmax.f32 %v21606_v56, 0.0  ;;  %v14895_v12 = vpack.c.bf16 %v6464_v42, %v6463_v1  ;;  %v18841_v51 = vld [vmem:[#allocation2 + $0x20] sm:$0xff]  ;;  %v6467_v56 = vld [vmem:[#allocation8 + $0x130] sm:$0xff]  ;;  %v18953_v1 = vld [vmem:[#allocation2 + $0x218] sm:$0xff] }
 0x6e0   :  { %13441 = vmatmul.mubr.f32.gmra.mrb[14].mxu1 %v21624_v27  ;;  %v14899_v14 = vpack.c.bf16 %v6466_v59, %v6465_v22  ;;  %v18844_v27 = vld [vmem:[#allocation2 + $0x30] sm:$0xff]  ;;  %v18956_v42 = vld [vmem:[#allocation2 + $0x228] sm:$0xff]  ;;  %v18968_v59 = vld [vmem:[#allocation2 + $0x258] sm:$0xff] }
 0x6e1   :  { %13443 = vmatprep.mubr.f32.mxu1 %v21625_v46  ;;  %v14903_v46 = vpack.c.bf16 %v6468_v37, %v6467_v56  ;;  %v18965_v22 = vld [vmem:[#allocation2 + $0x248] sm:$0xff]  ;;  %v18977_v56 = vld [vmem:[#allocation2 + $0x278] sm:$0xff] }
 0x6e2   :  { %v18980_v37 = vld [vmem:[#allocation2 + $0x288] sm:$0xff] }
 0x6e4   :  { %13444 = vmatmul.mubr.f32.gmra.mrb[16].mxu1 %v21626_v39  ;;  %v18847_v39 = vld [vmem:[#allocation2 + $0x38] sm:$0xff] }
 0x6e5   :  { %13446 = vmatprep.mubr.f32.mxu1 %v21627_v11  ;;  %v6469_v11 = vld [vmem:[#allocation8 + $0x140] sm:$0xff] }
 0x6e8   :  { %13447 = vmatmul.mubr.f32.gmra.mrb[18].mxu1 %v21628_v53  ;;  %v6470_v53 = vld [vmem:[#allocation8 + $0x148] sm:$0xff] }
 0x6e9   :  { %13449 = vmatprep.mubr.f32.mxu1 %v21629_v2  ;;  %v14907_v2 = vpack.c.bf16 %v6470_v53, %v6469_v11  ;;  %v18986_v11 = vld [vmem:[#allocation2 + $0x2a0] sm:$0xff]  ;;  %v18989_v53 = vld [vmem:[#allocation2 + $0x2a8] sm:$0xff] }
 0x6ec   :  { %13450 = vmatmul.mubr.f32.gmra.mrb[20].mxu1 %v21630_v9  ;;  %v18853_v9 = vld [vmem:[#allocation2 + $0x50] sm:$0xff] }
 0x6ed   :  { %13452 = vmatprep.mubr.f32.mxu1 %v21631_v7  ;;  %v6471_v7 = vld [vmem:[#allocation8 + $0x150] sm:$0xff] }
 0x6f0   :  { %13453 = vmatmul.mubr.f32.gmra.mrb[22].mxu1 %v21632_v30  ;;  %v6472_v30 = vld [vmem:[#allocation8 + $0x158] sm:$0xff] }
 0x6f1   :  { %13455 = vmatprep.mubr.f32.mxu1 %v21633_v24  ;;  %v18856_v24 = vld [vmem:[#allocation2 + $0x60] sm:$0xff] }
 0x6f4   :  { %13456 = vmatmul.mubr.f32.gmra.mrb[24].mxu1 %v21634_v23  ;;  %v14911_v23 = vpack.c.bf16 %v6472_v30, %v6471_v7  ;;  %v18995_v7 = vld [vmem:[#allocation2 + $0x2c0] sm:$0xff]  ;;  %v18998_v30 = vld [vmem:[#allocation2 + $0x2d0] sm:$0xff] }
 0x6f5   :  { %13458 = vmatprep.mubr.f32.mxu1 %v21635_v60  ;;  %v18859_v60 = vld [vmem:[#allocation2 + $0x68] sm:$0xff]  ;;  %21674 = vst [vmem:[#allocation81_spill] sm:$0xff] %v18995_v7  ;;  %21675 = vst [vmem:[#allocation13_spill] sm:$0xff] %v18998_v30 }
 0x6f8   :  { %13459 = vmatmul.mubr.f32.gmra.mrb[26].mxu1 %v21636_v21  ;;  %v6473_v21 = vld [vmem:[#allocation8 + $0x160] sm:$0xff] }
 0x6f9   :  { %13461 = vmatprep.mubr.f32.mxu1 %v21637_v36  ;;  %v6474_v36 = vld [vmem:[#allocation8 + $0x168] sm:$0xff] }
 0x6fc   :  { %13462 = vmatmul.mubr.f32.gmra.mrb[28].mxu1 %v21638_v35  ;;  %v18862_v35 = vld [vmem:[#allocation2 + $0x78] sm:$0xff] }
 0x6fd   :  { %13464 = vmatprep.mubr.f32.mxu1 %v21639_v44  ;;  %v14915_v44 = vpack.c.bf16 %v6474_v36, %v6473_v21  ;;  %v19004_v21 = vld [vmem:[#allocation2 + $0x2e8] sm:$0xff]  ;;  %v19007_v36 = vld [vmem:[#allocation2 + $0x2f0] sm:$0xff] }
 0x6fe   :  { %21677 = vst [vmem:[#allocation15_spill] sm:$0xff] %v19004_v21  ;;  %21678 = vst [vmem:[#allocation16_spill] sm:$0xff] %v19007_v36 }
 0x700   :  { %13465 = vmatmul.mubr.f32.gmra.mrb[30].mxu1 %v21640_v19  ;;  %v6475_v19 = vld [vmem:[#allocation8 + $0x170] sm:$0xff] }
 0x701   :  { %13467 = vmatprep.mubr.f32.mxu1 %v5577_v40  ;;  %v18865_v40 = vld [vmem:[#allocation2 + $0x80] sm:$0xff] }
 0x704   :  { %13468 = vmatmul.mubr.f32.gmra.mrb[32].mxu1 %v5578_v55  ;;  %v6476_v55 = vld [vmem:[#allocation8 + $0x178] sm:$0xff] }
 0x705   :  { %13470 = vmatprep.mubr.f32.mxu1 %v21641_v54  ;;  %v18868_v54 = vld [vmem:[#allocation2 + $0x90] sm:$0xff] }
 0x708   :  { %13471 = vmatmul.mubr.f32.gmra.mrb[34].mxu1 %v21642_v43  ;;  %v14919_v43 = vpack.c.bf16 %v6476_v55, %v6475_v19  ;;  %v19013_v19 = vld [vmem:[#allocation2 + $0x308] sm:$0xff]  ;;  %v19016_v55 = vld [vmem:[#allocation2 + $0x318] sm:$0xff] }
 0x709   :  { %13473 = vmatprep.mubr.f32.mxu1 %v21643_v61  ;;  %v18871_v61 = vld [vmem:[#allocation2 + $0x98] sm:$0xff]  ;;  %21680 = vst [vmem:[#allocation18_spill] sm:$0xff] %v19013_v19  ;;  %21681 = vst [vmem:[#allocation19_spill] sm:$0xff] %v19016_v55 }
 0x70c   :  { %13474 = vmatmul.mubr.f32.gmra.mrb[36].mxu1 %v21644_v34  ;;  %v6991_v34 = vld [vmem:[#allocation8 + $0x180] sm:$0xff] }
 0x70d   :  { %13476 = vmatprep.mubr.f32.mxu1 %v21645_v28  ;;  %v6992_v28 = vld [vmem:[#allocation8 + $0x188] sm:$0xff] }
 0x710   :  { %13477 = vmatmul.mubr.f32.gmra.mrb[38].mxu1 %v21646_v45  ;;  %v18874_v45 = vld [vmem:[#allocation2 + $0xa8] sm:$0xff] }
 0x711   :  { %13479 = vmatprep.mubr.f32.mxu1 %v21647_v3  ;;  %v18877_v3 = vpack.c.bf16 %v6992_v28, %v6991_v34  ;;  %v19019_v34 = vld [vmem:[#allocation2 + $0x320] sm:$0xff]  ;;  %v6993_v28 = vld [vmem:[#allocation8 + $0x190] sm:$0xff] }
 0x714   :  { %13480 = vmatmul.mubr.f32.gmra.mrb[40].mxu1 %v21648_v18  ;;  %v18879_v18 = vld [vmem:[#allocation2 + $0xb0] sm:$0xff] }
 0x715   :  { %13482 = vmatprep.mubr.f32.mxu1 %v21649_v38  ;;  %v18882_v38 = vld [vmem:[#allocation2 + $0xc0] sm:$0xff] }
 0x718   :  { %13483 = vmatmul.mubr.f32.gmra.mrb[42].mxu1 %v21650_v32  ;;  %v18886_v32 = vld [vmem:[#allocation2 + $0xc8] sm:$0xff] }
 0x719   :  { %13485 = vmatprep.mubr.f32.mxu1 %v21651_v47  ;;  %v18889_v47 = vld [vmem:[#allocation2 + $0xd8] sm:$0xff] }
 0x71c   :  { %13486 = vmatmul.mubr.f32.gmra.mrb[44].mxu1 %v21652_v57  ;;  %v18892_v57 = vld [vmem:[#allocation2 + $0xe0] sm:$0xff] }
 0x71d   :  { %13488 = vmatprep.mubr.f32.mxu1 %v21653_v13  ;;  %v18895_v13 = vld [vmem:[#allocation2 + $0xf0] sm:$0xff] }
 0x720   :  { %13489 = vmatmul.mubr.f32.gmra.mrb[46].mxu1 %v21654_v58  ;;  %v18898_v58 = vld [vmem:[#allocation2 + $0xf8] sm:$0xff] }
 0x721   :  { %13491 = vmatprep.mubr.f32.mxu1 %v21656_v20  ;;  %v18904_v20 = vld [vmem:[#allocation2 + $0x110] sm:$0xff] }
 0x724   :  { %13492 = vmatmul.mubr.f32.gmra.mrb[48].mxu1 %v21658_v63  ;;  %v18910_v63 = vld [vmem:[#allocation2 + $0x128] sm:$0xff] }
 0x725   :  { %13494 = vmatprep.mubr.f32.mxu1 %v21659_v8  ;;  %v18913_v8 = vld [vmem:[#allocation2 + $0x138] sm:$0xff] }
 0x728   :  { %13495 = vmatmul.mubr.f32.gmra.mrb[50].mxu1 %v21660_v4  ;;  %v18916_v4 = vld [vmem:[#allocation2 + $0x140] sm:$0xff] }
 0x729   :  { %13497 = vmatprep.mubr.f32.mxu1 %v21661_v5  ;;  %v18919_v5 = vld [vmem:[#allocation2 + $0x150] sm:$0xff] }
 0x72c   :  { %13498 = vmatmul.mubr.f32.gmra.mrb[52].mxu1 %v21662_v52  ;;  %v18922_v52 = vld [vmem:[#allocation2 + $0x158] sm:$0xff] }
 0x72d   :  { %13500 = vmatprep.mubr.f32.mxu1 %v21663_v15  ;;  %v18925_v15 = vld [vmem:[#allocation2 + $0x168] sm:$0xff] }
 0x730   :  { %13501 = vmatmul.mubr.f32.gmra.mrb[54].mxu1 %v21664_v16  ;;  %v5497_v16 = vld [vmem:[#allocation2 + $0x1b0] sm:$0xff] }
 0x731   :  { %13503 = vmatprep.mubr.f32.mxu1 %v21665_v10  ;;  %v18928_v10 = vld [vmem:[#allocation2 + $0x170] sm:$0xff] }
 0x734   :  { %13504 = vmatmul.mubr.f32.gmra.mrb[56].mxu1 %v21666_v33  ;;  %v18932_v33 = vld [vmem:[#allocation2 + $0x1c8] sm:$0xff] }
 0x735   :  { %13506 = vmatprep.mubr.f32.mxu1 %v21667_v26  ;;  %v18935_v26 = vld [vmem:[#allocation2 + $0x1d0] sm:$0xff] }
 0x738   :  { %13507 = vmatmul.mubr.f32.gmra.mrb[58].mxu1 %v21668_v6  ;;  %v18938_v6 = vld [vmem:[#allocation2 + $0x1e0] sm:$0xff] }
 0x739   :  { %13509 = vmatprep.mubr.f32.mxu1 %v21669_v49  ;;  %v18941_v49 = vld [vmem:[#allocation2 + $0x1e8] sm:$0xff] }
 0x73c   :  { %13510 = vmatmul.mubr.f32.gmra.mrb[60].mxu1 %v21670_v0  ;;  %v18944_v0 = vld [vmem:[#allocation2 + $0x1f8] sm:$0xff] }
 0x73d   :  { %13512 = vmatprep.mubr.f32.mxu1 %v21671_v17  ;;  %v18947_v17 = vld [vmem:[#allocation2 + $0x200] sm:$0xff] }
 0x740   :  { %13513 = vmatmul.mubr.f32.gmra.mrb[62].mxu1 %v21672_v41  ;;  %v18959_v41 = vld [vmem:[#allocation2 + $0x230] sm:$0xff] }
 0x741   :  { %13547 = vmatprep.mubr.f32.mxu1 %v5465_v48  ;;  %v18950_v48 = vld [vmem:[#allocation2 + $0x210] sm:$0xff] }
 0x744   :  { %13548 = vmatmul.mubr.f32.vlgmr.msra.gmra.mrb[0].mxu1 %v18834_v31 }
 0x745   :  { %13550 = vmatprep.mubr.f32.mxu1 %v18837_v29  ;;  %14894 = vmatpush3.bf16.msra.mxu1 %v18733_v25  ;;  %v18850_v25 = vld [vmem:[#allocation2 + $0x48] sm:$0xff] }
 0x746   :  { %14896 = vmatprep.subr.bf16.mxu1 %v14895_v12 }
 0x748   :  { %13551 = vmatmul.mubr.f32.gmra.mrb[2].mxu1 %v18841_v51 }
 0x749   :  { %13553 = vmatprep.mubr.f32.mxu1 %v18844_v27  ;;  %14898 = vmatpush3.bf16.msra.mxu1 %v14895_v12  ;;  %v18962_v12 = vld [vmem:[#allocation2 + $0x240] sm:$0xff] }
 0x74a   :  { %14900 = vmatprep.subr.bf16.mxu1 %v14899_v14 }
 0x74c   :  { %13554 = vmatmul.mubr.f32.gmra.mrb[4].mxu1 %v18847_v39 }
 0x74d   :  { %13556 = vmatprep.mubr.f32.mxu1 %v18850_v25  ;;  %14902 = vmatpush3.bf16.msra.mxu1 %v14899_v14  ;;  %v18974_v14 = vld [vmem:[#allocation2 + $0x270] sm:$0xff] }
 0x74e   :  { %14904 = vmatprep.subr.bf16.mxu1 %v14903_v46 }
 0x750   :  { %13557 = vmatmul.mubr.f32.gmra.mrb[6].mxu1 %v18853_v9 }
 0x751   :  { %13559 = vmatprep.mubr.f32.mxu1 %v18856_v24  ;;  %14906 = vmatpush3.bf16.msra.mxu1 %v14903_v46  ;;  %v18983_v46 = vld [vmem:[#allocation2 + $0x290] sm:$0xff] }
 0x752   :  { %14908 = vmatprep.subr.bf16.mxu1 %v14907_v2 }
 0x754   :  { %13560 = vmatmul.mubr.f32.gmra.mrb[8].mxu1 %v18859_v60 }
 0x755   :  { %13562 = vmatprep.mubr.f32.mxu1 %v18862_v35  ;;  %14910 = vmatpush3.bf16.msra.mxu1 %v14907_v2  ;;  %v18992_v2 = vld [vmem:[#allocation2 + $0x2b8] sm:$0xff] }
 0x756   :  { %14912 = vmatprep.subr.bf16.mxu1 %v14911_v23  ;;  %21673 = vst [vmem:[#allocation80_spill] sm:$0xff] %v18992_v2 }
 0x758   :  { %13563 = vmatmul.mubr.f32.gmra.mrb[10].mxu1 %v18865_v40 }
 0x759   :  { %13565 = vmatprep.mubr.f32.mxu1 %v18868_v54  ;;  %14914 = vmatpush3.bf16.msra.mxu1 %v14911_v23  ;;  %v19001_v23 = vld [vmem:[#allocation2 + $0x2d8] sm:$0xff] }
 0x75a   :  { %14916 = vmatprep.subr.bf16.mxu1 %v14915_v44  ;;  %21676 = vst [vmem:[#allocation14_spill] sm:$0xff] %v19001_v23 }
 0x75c   :  { %13566 = vmatmul.mubr.f32.gmra.mrb[12].mxu1 %v18871_v61 }
 0x75d   :  { %13568 = vmatprep.mubr.f32.mxu1 %v18874_v45  ;;  %14918 = vmatpush3.bf16.msra.mxu1 %v14915_v44  ;;  %v19010_v44 = vld [vmem:[#allocation2 + $0x300] sm:$0xff] }
 0x75e   :  { %14920 = vmatprep.subr.bf16.mxu1 %v14919_v43  ;;  %21679 = vst [vmem:[#allocation17_spill] sm:$0xff] %v19010_v44 }
 0x760   :  { %13569 = vmatmul.mubr.f32.gmra.mrb[14].mxu1 %v18879_v18 }
 0x761   :  { %13571 = vmatprep.mubr.f32.mxu1 %v18882_v38  ;;  %14922 = vmatpush3.bf16.msra.mxu1 %v14919_v43  ;;  %v6396_v43 = vld [vmem:[#allocation2 + $0x2] sm:$0xff] }
 0x762   :  { %14924 = vmatprep.subr.bf16.mxu1 %v18877_v3 }
 0x764   :  { %13572 = vmatmul.mubr.f32.gmra.mrb[16].mxu1 %v18886_v32 }
 0x765   :  { %13574 = vmatprep.mubr.f32.mxu1 %v18889_v47 }
 0x768   :  { %13575 = vmatmul.mubr.f32.gmra.mrb[18].mxu1 %v18892_v57 }
 0x769   :  { %13577 = vmatprep.mubr.f32.mxu1 %v18895_v13 }
 0x76c   :  { %13578 = vmatmul.mubr.f32.gmra.mrb[20].mxu1 %v18898_v58 }
 0x76d   :  { %13580 = vmatprep.mubr.f32.mxu1 %v18901_v62 }
 0x770   :  { %13581 = vmatmul.mubr.f32.gmra.mrb[22].mxu1 %v18904_v20 }
 0x771   :  { %13583 = vmatprep.mubr.f32.mxu1 %v18907_v50 }
 0x774   :  { %13584 = vmatmul.mubr.f32.gmra.mrb[24].mxu1 %v18910_v63 }
 0x775   :  { %13586 = vmatprep.mubr.f32.mxu1 %v18913_v8 }
 0x778   :  { %13587 = vmatmul.mubr.f32.gmra.mrb[26].mxu1 %v18916_v4 }
 0x779   :  { %13589 = vmatprep.mubr.f32.mxu1 %v18919_v5 }
 0x77c   :  { %13590 = vmatmul.mubr.f32.gmra.mrb[28].mxu1 %v18922_v52 }
 0x77d   :  { %13592 = vmatprep.mubr.f32.mxu1 %v18925_v15 }
 0x780   :  { %13593 = vmatmul.mubr.f32.gmra.mrb[30].mxu1 %v18928_v10 }
 0x781   :  { %13595 = vmatprep.mubr.f32.mxu1 %v5497_v16  ;;  %v6994_v16 = vld [vmem:[#allocation8 + $0x198] sm:$0xff] }
 0x784   :  { %13596 = vmatmul.mubr.f32.gmra.mrb[32].mxu1 %v18834_v31  ;;  %v18971_v31 = vld [vmem:[#allocation2 + $0x260] sm:$0xff] }
 0x785   :  { %13598 = vmatprep.mubr.f32.mxu1 %v18932_v33 }
 0x788   :  { %13599 = vmatmul.mubr.f32.gmra.mrb[34].mxu1 %v18935_v26 }
 0x789   :  { %13601 = vmatprep.mubr.f32.mxu1 %v18938_v6 }
 0x78c   :  { %13602 = vmatmul.mubr.f32.gmra.mrb[36].mxu1 %v18941_v49 }
 0x78d   :  { %13604 = vmatprep.mubr.f32.mxu1 %v18944_v0 }
 0x790   :  { %13605 = vmatmul.mubr.f32.gmra.mrb[38].mxu1 %v18947_v17 }
 0x791   :  { %13607 = vmatprep.mubr.f32.mxu1 %v18950_v48 }
 0x794   :  { %13608 = vmatmul.mubr.f32.gmra.mrb[40].mxu1 %v18953_v1 }
 0x795   :  { %13610 = vmatprep.mubr.f32.mxu1 %v18956_v42 }
 0x798   :  { %13611 = vmatmul.mubr.f32.gmra.mrb[42].mxu1 %v18959_v41 }
 0x799   :  { %13613 = vmatprep.mubr.f32.mxu1 %v18962_v12 }
 0x79c   :  { %13614 = vmatmul.mubr.f32.gmra.mrb[44].mxu1 %v18965_v22 }
 0x79d   :  { %13616 = vmatprep.mubr.f32.mxu1 %v18968_v59 }
 0x7a0   :  { %13617 = vmatmul.mubr.f32.gmra.mrb[46].mxu1 %v18971_v31 }
 0x7a1   :  { %13619 = vmatprep.mubr.f32.mxu1 %v18974_v14 }
 0x7a4   :  { %13620 = vmatmul.mubr.f32.gmra.mrb[48].mxu1 %v18977_v56 }
 0x7a5   :  { %13622 = vmatprep.mubr.f32.mxu1 %v18980_v37 }
 0x7a8   :  { %13623 = vmatmul.mubr.f32.gmra.mrb[50].mxu1 %v18983_v46 }
 0x7a9   :  { %13625 = vmatprep.mubr.f32.mxu1 %v18986_v11 }
 0x7ac   :  { %13626 = vmatmul.mubr.f32.gmra.mrb[52].mxu1 %v18989_v53 }
 0x7ad   :  { %13628 = vmatprep.mubr.f32.mxu1 %v18992_v2  ;;  %v6998_v2 = vld [vmem:[#allocation8 + $0x1b8] sm:$0xff] }
 0x7b0   :  { %13629 = vmatmul.mubr.f32.gmra.mrb[54].mxu1 %v18995_v7  ;;  %v6997_v7 = vld [vmem:[#allocation8 + $0x1b0] sm:$0xff] }
 0x7b1   :  { %13631 = vmatprep.mubr.f32.mxu1 %v18998_v30  ;;  %v19022_v30 = vld [vmem:[#allocation2 + $0x1a] sm:$0xff] }
 0x7b2   :  { %21682 = vst [vmem:[#allocation20_spill] sm:$0xff] %v19022_v30 }
 0x7b4   :  { %13632 = vmatmul.mubr.f32.gmra.mrb[56].mxu1 %v19001_v23  ;;  %v6995_v23 = vld [vmem:[#allocation8 + $0x1a0] sm:$0xff] }
 0x7b5   :  { %13634 = vmatprep.mubr.f32.mxu1 %v19004_v21  ;;  %v14927_v21 = vpack.c.bf16 %v6994_v16, %v6993_v28  ;;  %v19032_v28 = vld [vmem:[#allocation2 + $0x3a] sm:$0xff] }
 0x7b6   :  { %21685 = vst [vmem:[#allocation82_spill] sm:$0xff] %v19032_v28  ;;  %v6999_v16 = vld [vmem:[#allocation8 + $0x1c0] sm:$0xff] }
 0x7b8   :  { %13635 = vmatmul.mubr.f32.gmra.mrb[58].mxu1 %v19007_v36  ;;  %v6397_v36 = vld [vmem:[#allocation2 + $0xa] sm:$0xff] }
 0x7b9   :  { %13637 = vmatprep.mubr.f32.mxu1 %v19010_v44  ;;  %v6996_v44 = vld [vmem:[#allocation8 + $0x1a8] sm:$0xff] }
 0x7bc   :  { %13638 = vmatmul.mubr.f32.gmra.mrb[60].mxu1 %v19013_v19  ;;  %v19026_v19 = vld [vmem:[#allocation2 + $0x22] sm:$0xff] }
 0x7bd   :  { %13640 = vmatprep.mubr.f32.mxu1 %v19016_v55  ;;  %v14931_v55 = vpack.c.bf16 %v6996_v44, %v6995_v23  ;;  %21683 = vst [vmem:[#allocation21_spill] sm:$0xff] %v19026_v19  ;;  %v19038_v44 = vld [vmem:[#allocation2 + $0x52] sm:$0xff] }
 0x7be   :  { %21687 = vst [vmem:[#allocation84_spill] sm:$0xff] %v19038_v44 }
 0x7c0   :  { %13641 = vmatmul.mubr.f32.gmra.mrb[62].mxu1 %v19019_v34 }
 0x7c1   :  { %13675 = vmatprep.mubr.f32.mxu1 %v6396_v43  ;;  %v19029_v43 = vld [vmem:[#allocation2 + $0x32] sm:$0xff] }
 0x7c2   :  { %21684 = vst [vmem:[#allocation22_spill] sm:$0xff] %v19029_v43 }
 0x7c4   :  { %13676 = vmatmul.mubr.f32.vlgmr.msra.gmra.mrb[0].mxu1 %v6397_v36  ;;  %v14935_v36 = vpack.c.bf16 %v6998_v2, %v6997_v7  ;;  %v19041_v2 = vld [vmem:[#allocation2 + $0x62] sm:$0xff] }
 0x7c5   :  { %13678 = vmatprep.mubr.f32.mxu1 %v19022_v30  ;;  %14926 = vmatpush3.bf16.msra.mxu1 %v18877_v3  ;;  %v7000_v30 = vld [vmem:[#allocation8 + $0x1c8] sm:$0xff]  ;;  %21688 = vst [vmem:[#allocation23_spill] sm:$0xff] %v19041_v2 }
 0x7c6   :  { %14928 = vmatprep.subr.bf16.mxu1 %v14927_v21  ;;  %v19035_v3 = vld [vmem:[#allocation2 + $0x4a] sm:$0xff]  ;;  %v14939_v23 = vpack.c.bf16 %v7000_v30, %v6999_v16  ;;  %v19047_v30 = vld [vmem:[#allocation2 + $0x7a] sm:$0xff]  ;;  %v19050_v16 = vld [vmem:[#allocation2 + $0x82] sm:$0xff] }
 0x7c7   :  { %21686 = vst [vmem:[#allocation83_spill] sm:$0xff] %v19035_v3  ;;  %21690 = vst [vmem:[#allocation25_spill] sm:$0xff] %v19047_v30 }
 0x7c8   :  { %13679 = vmatmul.mubr.f32.gmra.mrb[2].mxu1 %v19026_v19  ;;  %v7001_v19 = vld [vmem:[#allocation8 + $0x1d0] sm:$0xff] }
 0x7c9   :  { %13681 = vmatprep.mubr.f32.mxu1 %v19029_v43  ;;  %14930 = vmatpush3.bf16.msra.mxu1 %v14927_v21  ;;  %v7002_v43 = vld [vmem:[#allocation8 + $0x1d8] sm:$0xff]  ;;  %v19044_v21 = vld [vmem:[#allocation2 + $0x6a] sm:$0xff] }
 0x7ca   :  { %14932 = vmatprep.subr.bf16.mxu1 %v14931_v55  ;;  %v14943_v7 = vpack.c.bf16 %v7002_v43, %v7001_v19  ;;  %21689 = vst [vmem:[#allocation24_spill] sm:$0xff] %v19044_v21  ;;  %v19053_v19 = vld [vmem:[#allocation2 + $0x92] sm:$0xff] }
 0x7cc   :  { %13682 = vmatmul.mubr.f32.gmra.mrb[4].mxu1 %v19032_v28  ;;  %v7003_v28 = vld [vmem:[#allocation8 + $0x1e0] sm:$0xff] }
 0x7cd   :  { %13684 = vmatprep.mubr.f32.mxu1 %v19035_v3  ;;  %14934 = vmatpush3.bf16.msra.mxu1 %v14931_v55  ;;  %v7004_v3 = vld [vmem:[#allocation8 + $0x1e8] sm:$0xff] }
 0x7ce   :  { %14936 = vmatprep.subr.bf16.mxu1 %v14935_v36  ;;  %v14947_v55 = vpack.c.bf16 %v7004_v3, %v7003_v28  ;;  %v19059_v28 = vld [vmem:[#allocation2 + $0xaa] sm:$0xff] }
 0x7cf   :  { %21691 = vst [vmem:[#allocation26_spill] sm:$0xff] %v19059_v28 }
 0x7d0   :  { %13685 = vmatmul.mubr.f32.gmra.mrb[6].mxu1 %v19038_v44  ;;  %v7005_v44 = vld [vmem:[#allocation8 + $0x1f0] sm:$0xff] }
 0x7d1   :  { %13687 = vmatprep.mubr.f32.mxu1 %v19041_v2  ;;  %14938 = vmatpush3.bf16.msra.mxu1 %v14935_v36  ;;  %v7006_v2 = vld [vmem:[#allocation8 + $0x1f8] sm:$0xff] }
 0x7d2   :  { %14940 = vmatprep.subr.bf16.mxu1 %v14939_v23  ;;  %v14951_v43 = vpack.c.bf16 %v7006_v2, %v7005_v44  ;;  %v19056_v36 = vld [vmem:[#allocation2 + $0x9a] sm:$0xff]  ;;  %v19071_v44 = vld [vmem:[#allocation2 + $0xca] sm:$0xff] }
 0x7d3   :  { %21694 = vst [vmem:[#allocation30_spill] sm:$0xff] %v19071_v44  ;;  %v19074_v2 = vld [vmem:[#allocation2 + $0xda] sm:$0xff] }
 0x7d4   :  { %13688 = vmatmul.mubr.f32.gmra.mrb[8].mxu1 %v19044_v21  ;;  %v7521_v21 = vld [vmem:[#allocation8 + $0x200] sm:$0xff]  ;;  %21695 = vst [vmem:[#allocation29_spill] sm:$0xff] %v19074_v2 }
 0x7d5   :  { %13690 = vmatprep.mubr.f32.mxu1 %v19047_v30  ;;  %14942 = vmatpush3.bf16.msra.mxu1 %v14939_v23  ;;  %v7522_v30 = vld [vmem:[#allocation8 + $0x208] sm:$0xff]  ;;  %v19064_v23 = vld [vmem:[#allocation2 + $0xb2] sm:$0xff] }
 0x7d6   :  { %14944 = vmatprep.subr.bf16.mxu1 %v14943_v7  ;;  %v19062_v3 = vpack.c.bf16 %v7522_v30, %v7521_v21  ;;  %21692 = vst [vmem:[#allocation28_spill] sm:$0xff] %v19064_v23  ;;  %v19077_v21 = vld [vmem:[#allocation2 + $0xe2] sm:$0xff]  ;;  %v19080_v30 = vld [vmem:[#allocation2 + $0xf2] sm:$0xff] }
 0x7d7   :  { %21696 = vst [vmem:[#allocation32_spill] sm:$0xff] %v19077_v21  ;;  %21697 = vst [vmem:[#allocation31_spill] sm:$0xff] %v19080_v30 }
 0x7d8   :  { %13691 = vmatmul.mubr.f32.gmra.mrb[10].mxu1 %v19050_v16 }
 0x7d9   :  { %13693 = vmatprep.mubr.f32.mxu1 %v19053_v19  ;;  %14946 = vmatpush3.bf16.msra.mxu1 %v14943_v7  ;;  %v19067_v7 = vld [vmem:[#allocation2 + $0xc2] sm:$0xff] }
 0x7da   :  { %14948 = vmatprep.subr.bf16.mxu1 %v14947_v55  ;;  %21693 = vst [vmem:[#allocation27_spill] sm:$0xff] %v19067_v7 }
 0x7dc   :  { %13694 = vmatmul.mubr.f32.gmra.mrb[12].mxu1 %v19056_v36 }
 0x7dd   :  { %13696 = vmatprep.mubr.f32.mxu1 %v19059_v28  ;;  %14950 = vmatpush3.bf16.msra.mxu1 %v14947_v55  ;;  %v19083_v55 = vld [vmem:[#allocation2 + $0xfa] sm:$0xff]  ;;  %v7526_v28 = vld [vmem:[#allocation8 + $0x228] sm:$0xff] }
 0x7de   :  { %14952 = vmatprep.subr.bf16.mxu1 %v14951_v43  ;;  %21698 = vst [vmem:[#allocation34_spill] sm:$0xff] %v19083_v55 }
 0x7e0   :  { %13697 = vmatmul.mubr.f32.gmra.mrb[14].mxu1 %v19064_v23  ;;  %v7525_v23 = vld [vmem:[#allocation8 + $0x220] sm:$0xff] }
 0x7e1   :  { %13699 = vmatprep.mubr.f32.mxu1 %v19067_v7  ;;  %14954 = vmatpush3.bf16.msra.mxu1 %v14951_v43  ;;  %v19086_v43 = vld [vmem:[#allocation2 + $0x10a] sm:$0xff]  ;;  %v19113_v7 = vld [vmem:[#allocation2 + $0x172] sm:$0xff] }
 0x7e2   :  { %14956 = vmatprep.subr.bf16.mxu1 %v19062_v3  ;;  %21699 = vst [vmem:[#allocation33_spill] sm:$0xff] %v19086_v43  ;;  %21708 = vst [vmem:[#allocation39_spill] sm:$0xff] %v19113_v7 }
 0x7e4   :  { %13700 = vmatmul.mubr.f32.gmra.mrb[16].mxu1 %v19071_v44  ;;  %v19089_v44 = vld [vmem:[#allocation2 + $0x112] sm:$0xff] }
 0x7e5   :  { %13702 = vmatprep.mubr.f32.mxu1 %v19074_v2  ;;  %21700 = vst [vmem:[#allocation36_spill] sm:$0xff] %v19089_v44  ;;  %v19092_v2 = vld [vmem:[#allocation2 + $0x122] sm:$0xff] }
 0x7e6   :  { %21701 = vst [vmem:[#allocation35_spill] sm:$0xff] %v19092_v2 }
 0x7e8   :  { %13703 = vmatmul.mubr.f32.gmra.mrb[18].mxu1 %v19077_v21  ;;  %v19095_v21 = vld [vmem:[#allocation2 + $0x12a] sm:$0xff] }
 0x7e9   :  { %13705 = vmatprep.mubr.f32.mxu1 %v19080_v30  ;;  %21702 = vst [vmem:[#allocation38_spill] sm:$0xff] %v19095_v21  ;;  %v19098_v30 = vld [vmem:[#allocation2 + $0x13a] sm:$0xff] }
 0x7ea   :  { %21703 = vst [vmem:[#allocation37_spill] sm:$0xff] %v19098_v30 }
 0x7ec   :  { %13706 = vmatmul.mubr.f32.gmra.mrb[20].mxu1 %v19083_v55  ;;  %v19101_v55 = vld [vmem:[#allocation2 + $0x142] sm:$0xff] }
 0x7ed   :  { %13708 = vmatprep.mubr.f32.mxu1 %v19086_v43  ;;  %21704 = vst [vmem:[#allocation48_spill] sm:$0xff] %v19101_v55  ;;  %v19104_v43 = vld [vmem:[#allocation2 + $0x152] sm:$0xff] }
 0x7ee   :  { %21705 = vst [vmem:[#allocation49_spill] sm:$0xff] %v19104_v43 }
 0x7f0   :  { %13709 = vmatmul.mubr.f32.gmra.mrb[22].mxu1 %v19089_v44  ;;  %v19107_v44 = vld [vmem:[#allocation2 + $0x15a] sm:$0xff] }
 0x7f1   :  { %13711 = vmatprep.mubr.f32.mxu1 %v19092_v2  ;;  %21706 = vst [vmem:[#allocation52_spill] sm:$0xff] %v19107_v44  ;;  %v19110_v2 = vld [vmem:[#allocation2 + $0x16a] sm:$0xff] }
 0x7f2   :  { %21707 = vst [vmem:[#allocation61_spill] sm:$0xff] %v19110_v2 }
 0x7f4   :  { %13712 = vmatmul.mubr.f32.gmra.mrb[24].mxu1 %v19095_v21  ;;  %v6428_v21 = vld [vmem:[#allocation2 + $0x1b2] sm:$0xff] }
 0x7f5   :  { %13714 = vmatprep.mubr.f32.mxu1 %v19098_v30  ;;  %v6429_v30 = vld [vmem:[#allocation2 + $0x1ba] sm:$0xff] }
 0x7f8   :  { %13715 = vmatmul.mubr.f32.gmra.mrb[26].mxu1 %v19101_v55  ;;  %v19116_v55 = vld [vmem:[#allocation2 + $0x1ca] sm:$0xff] }
 0x7f9   :  { %13717 = vmatprep.mubr.f32.mxu1 %v19104_v43  ;;  %21709 = vst [vmem:[#allocation40_spill] sm:$0xff] %v19116_v55  ;;  %v19119_v43 = vld [vmem:[#allocation2 + $0x1d2] sm:$0xff] }
 0x7fa   :  { %21710 = vst [vmem:[#allocation41_spill] sm:$0xff] %v19119_v43 }
 0x7fc   :  { %13718 = vmatmul.mubr.f32.gmra.mrb[28].mxu1 %v19107_v44  ;;  %v19122_v44 = vld [vmem:[#allocation2 + $0x1e2] sm:$0xff] }
 0x7fd   :  { %13720 = vmatprep.mubr.f32.mxu1 %v19110_v2  ;;  %21711 = vst [vmem:[#allocation42_spill] sm:$0xff] %v19122_v44  ;;  %v19125_v2 = vld [vmem:[#allocation2 + $0x1ea] sm:$0xff] }
 0x7fe   :  { %21712 = vst [vmem:[#allocation43_spill] sm:$0xff] %v19125_v2 }
 0x800   :  { %13721 = vmatmul.mubr.f32.gmra.mrb[30].mxu1 %v19113_v7  ;;  %v19128_v7 = vld [vmem:[#allocation2 + $0x1fa] sm:$0xff] }
 0x801   :  { %13723 = vmatprep.mubr.f32.mxu1 %v6428_v21  ;;  %21713 = vst [vmem:[#allocation44_spill] sm:$0xff] %v19128_v7  ;;  %v19131_v21 = vld [vmem:[#allocation2 + $0x202] sm:$0xff] }
 0x802   :  { %21714 = vst [vmem:[#allocation45_spill] sm:$0xff] %v19131_v21 }
 0x804   :  { %13724 = vmatmul.mubr.f32.gmra.mrb[32].mxu1 %v6429_v30  ;;  %v19134_v30 = vld [vmem:[#allocation2 + $0x212] sm:$0xff] }
 0x805   :  { %13726 = vmatprep.mubr.f32.mxu1 %v19116_v55  ;;  %21715 = vst [vmem:[#allocation46_spill] sm:$0xff] %v19134_v30  ;;  %v7523_v55 = vld [vmem:[#allocation8 + $0x210] sm:$0xff] }
 0x808   :  { %13727 = vmatmul.mubr.f32.gmra.mrb[34].mxu1 %v19119_v43  ;;  %v19137_v43 = vld [vmem:[#allocation2 + $0x21a] sm:$0xff] }
 0x809   :  { %13729 = vmatprep.mubr.f32.mxu1 %v19122_v44  ;;  %21716 = vst [vmem:[#allocation47_spill] sm:$0xff] %v19137_v43  ;;  %v19140_v44 = vld [vmem:[#allocation2 + $0x22a] sm:$0xff] }
 0x80a   :  { %21717 = vst [vmem:[#allocation50_spill] sm:$0xff] %v19140_v44 }
 0x80c   :  { %13730 = vmatmul.mubr.f32.gmra.mrb[36].mxu1 %v19125_v2  ;;  %v19143_v2 = vld [vmem:[#allocation2 + $0x232] sm:$0xff] }
 0x80d   :  { %13732 = vmatprep.mubr.f32.mxu1 %v19128_v7  ;;  %21718 = vst [vmem:[#allocation51_spill] sm:$0xff] %v19143_v2  ;;  %v19146_v7 = vld [vmem:[#allocation2 + $0x242] sm:$0xff] }
 0x80e   :  { %21719 = vst [vmem:[#allocation53_spill] sm:$0xff] %v19146_v7 }
 0x810   :  { %13733 = vmatmul.mubr.f32.gmra.mrb[38].mxu1 %v19131_v21  ;;  %v19149_v21 = vld [vmem:[#allocation2 + $0x24a] sm:$0xff] }
 0x811   :  { %13735 = vmatprep.mubr.f32.mxu1 %v19134_v30  ;;  %21720 = vst [vmem:[#allocation54_spill] sm:$0xff] %v19149_v21  ;;  %v19152_v30 = vld [vmem:[#allocation2 + $0x25a] sm:$0xff] }
 0x812   :  { %21721 = vst [vmem:[#allocation55_spill] sm:$0xff] %v19152_v30 }
 0x814   :  { %13736 = vmatmul.mubr.f32.gmra.mrb[40].mxu1 %v19137_v43  ;;  %v19155_v43 = vld [vmem:[#allocation2 + $0x262] sm:$0xff] }
 0x815   :  { %13738 = vmatprep.mubr.f32.mxu1 %v19140_v44  ;;  %21722 = vst [vmem:[#allocation56_spill] sm:$0xff] %v19155_v43  ;;  %v19158_v44 = vld [vmem:[#allocation2 + $0x272] sm:$0xff] }
 0x816   :  { %21723 = vst [vmem:[#allocation57_spill] sm:$0xff] %v19158_v44 }
 0x818   :  { %13739 = vmatmul.mubr.f32.gmra.mrb[42].mxu1 %v19143_v2  ;;  %v19161_v2 = vld [vmem:[#allocation2 + $0x27a] sm:$0xff] }
 0x819   :  { %13741 = vmatprep.mubr.f32.mxu1 %v19146_v7  ;;  %21724 = vst [vmem:[#allocation58_spill] sm:$0xff] %v19161_v2  ;;  %v19164_v7 = vld [vmem:[#allocation2 + $0x28a] sm:$0xff] }
 0x81a   :  { %21725 = vst [vmem:[#allocation59_spill] sm:$0xff] %v19164_v7 }
 0x81c   :  { %13742 = vmatmul.mubr.f32.gmra.mrb[44].mxu1 %v19149_v21  ;;  %v19167_v21 = vld [vmem:[#allocation2 + $0x292] sm:$0xff] }
 0x81d   :  { %13744 = vmatprep.mubr.f32.mxu1 %v19152_v30  ;;  %21726 = vst [vmem:[#allocation60_spill] sm:$0xff] %v19167_v21  ;;  %v19170_v30 = vld [vmem:[#allocation2 + $0x2a2] sm:$0xff] }
 0x81e   :  { %21727 = vst [vmem:[#allocation62_spill] sm:$0xff] %v19170_v30 }
 0x820   :  { %13745 = vmatmul.mubr.f32.gmra.mrb[46].mxu1 %v19155_v43  ;;  %v19173_v43 = vld [vmem:[#allocation2 + $0x2aa] sm:$0xff] }
 0x821   :  { %13747 = vmatprep.mubr.f32.mxu1 %v19158_v44  ;;  %21728 = vst [vmem:[#allocation64_spill] sm:$0xff] %v19173_v43  ;;  %v19176_v44 = vld [vmem:[#allocation2 + $0x2ba] sm:$0xff] }
 0x822   :  { %21729 = vst [vmem:[#allocation65_spill] sm:$0xff] %v19176_v44 }
 0x824   :  { %13748 = vmatmul.mubr.f32.gmra.mrb[48].mxu1 %v19161_v2  ;;  %v19179_v2 = vld [vmem:[#allocation2 + $0x2c2] sm:$0xff] }
 0x825   :  { %13750 = vmatprep.mubr.f32.mxu1 %v19164_v7  ;;  %21730 = vst [vmem:[#allocation66_spill] sm:$0xff] %v19179_v2  ;;  %v19182_v7 = vld [vmem:[#allocation2 + $0x2d2] sm:$0xff] }
 0x826   :  { %21731 = vst [vmem:[#allocation67_spill] sm:$0xff] %v19182_v7 }
 0x828   :  { %13751 = vmatmul.mubr.f32.gmra.mrb[50].mxu1 %v19167_v21  ;;  %v19185_v21 = vld [vmem:[#allocation2 + $0x2da] sm:$0xff] }
 0x829   :  { %13753 = vmatprep.mubr.f32.mxu1 %v19170_v30  ;;  %21732 = vst [vmem:[#allocation68_spill] sm:$0xff] %v19185_v21  ;;  %v19188_v30 = vld [vmem:[#allocation2 + $0x2ea] sm:$0xff] }
 0x82a   :  { %21733 = vst [vmem:[#allocation69_spill] sm:$0xff] %v19188_v30 }
 0x82c   :  { %13754 = vmatmul.mubr.f32.gmra.mrb[52].mxu1 %v19173_v43  ;;  %v19191_v43 = vld [vmem:[#allocation2 + $0x2f2] sm:$0xff] }
 0x82d   :  { %13756 = vmatprep.mubr.f32.mxu1 %v19176_v44  ;;  %21734 = vst [vmem:[#allocation72_spill] sm:$0xff] %v19191_v43  ;;  %v19194_v44 = vld [vmem:[#allocation2 + $0x302] sm:$0xff] }
 0x82e   :  { %21735 = vst [vmem:[#allocation73_spill] sm:$0xff] %v19194_v44 }
 0x830   :  { %13757 = vmatmul.mubr.f32.gmra.mrb[54].mxu1 %v19179_v2  ;;  %v19197_v2 = vld [vmem:[#allocation2 + $0x30a] sm:$0xff] }
 0x831   :  { %13759 = vmatprep.mubr.f32.mxu1 %v19182_v7  ;;  %21736 = vst [vmem:[#allocation74_spill] sm:$0xff] %v19197_v2  ;;  %v19200_v7 = vld [vmem:[#allocation2 + $0x31a] sm:$0xff] }
 0x832   :  { %21737 = vst [vmem:[#allocation75_spill] sm:$0xff] %v19200_v7 }
 0x834   :  { %13760 = vmatmul.mubr.f32.gmra.mrb[56].mxu1 %v19185_v21  ;;  %v19203_v21 = vld [vmem:[#allocation2 + $0x322] sm:$0xff] }
 0x835   :  { %13762 = vmatprep.mubr.f32.mxu1 %v19188_v30  ;;  %v7524_v30 = vld [vmem:[#allocation8 + $0x218] sm:$0xff] }
 0x838   :  { %13763 = vmatmul.mubr.f32.gmra.mrb[58].mxu1 %v19191_v43  ;;  %v14959_v43 = vpack.c.bf16 %v7524_v30, %v7523_v55  ;;  %v7529_v55 = vld [vmem:[#allocation8 + $0x240] sm:$0xff]  ;;  %v7530_v30 = vld [vmem:[#allocation8 + $0x248] sm:$0xff] }
 0x839   :  { %13765 = vmatprep.mubr.f32.mxu1 %v19194_v44  ;;  %v7528_v44 = vld [vmem:[#allocation8 + $0x238] sm:$0xff] }
 0x83c   :  { %13766 = vmatmul.mubr.f32.gmra.mrb[60].mxu1 %v19197_v2  ;;  %v14963_v2 = vpack.c.bf16 %v7526_v28, %v7525_v23  ;;  %v7532_v28 = vld [vmem:[#allocation8 + $0x258] sm:$0xff] }
 0x83d   :  { %13768 = vmatprep.mubr.f32.mxu1 %v19200_v7  ;;  %v7527_v7 = vld [vmem:[#allocation8 + $0x230] sm:$0xff]  ;;  %v7536_v23 = vld [vmem:[#allocation8 + $0x278] sm:$0xff] }
 0x840   :  { %13769 = vmatmul.mubr.f32.gmra.mrb[62].mxu1 %v19203_v21 }
 0x841   :  { %13803 = vmatprep.mubr.f32.mxu1 %v18837_v29  ;;  %v14967_v29 = vpack.c.bf16 %v7528_v44, %v7527_v7  ;;  %v8052_v7 = vld [vmem:[#allocation8 + $0x288] sm:$0xff] }
 0x844   :  { %13804 = vmatmul.mubr.f32.vlgmr.msra.gmra.mrb[0].mxu1 %v18841_v51  ;;  %v14971_v51 = vpack.c.bf16 %v7530_v30, %v7529_v55  ;;  %v19313_v55 = vld [vmem:[#allocation2 + $0xa9] sm:$0xff] }
 0x845   :  { %13806 = vmatprep.mubr.f32.mxu1 %v18844_v27  ;;  %14958 = vmatpush3.bf16.msra.mxu1 %v19062_v3  ;;  %v7531_v27 = vld [vmem:[#allocation8 + $0x250] sm:$0xff]  ;;  %v7534_v3 = vld [vmem:[#allocation8 + $0x268] sm:$0xff] }
 0x846   :  { %14960 = vmatprep.subr.bf16.mxu1 %v14959_v43 }
 0x848   :  { %13807 = vmatmul.mubr.f32.gmra.mrb[2].mxu1 %v18847_v39  ;;  %v14975_v39 = vpack.c.bf16 %v7532_v28, %v7531_v27  ;;  %v8581_v27 = vld [vmem:[#allocation8 + $0x300] sm:$0xff]  ;;  %v8582_v28 = vld [vmem:[#allocation8 + $0x308] sm:$0xff] }
 0x849   :  { %13809 = vmatprep.mubr.f32.mxu1 %v18850_v25  ;;  %14962 = vmatpush3.bf16.msra.mxu1 %v14959_v43  ;;  %v7533_v25 = vld [vmem:[#allocation8 + $0x260] sm:$0xff]  ;;  %v8065_v43 = vld [vmem:[#allocation8 + $0x2f0] sm:$0xff] }
 0x84a   :  { %14964 = vmatprep.subr.bf16.mxu1 %v14963_v2 }
 0x84c   :  { %13810 = vmatmul.mubr.f32.gmra.mrb[4].mxu1 %v18853_v9  ;;  %v14979_v9 = vpack.c.bf16 %v7534_v3, %v7533_v25  ;;  %v19322_v25 = vpack.c.bf16 %v8582_v28, %v8581_v27  ;;  %v19324_v3 = vld [vmem:[#allocation2 + $0xc9] sm:$0xff]  ;;  %v19439_v27 = vld [vmem:[#allocation2 + $0x2d9] sm:$0xff] }
 0x84d   :  { %13812 = vmatprep.mubr.f32.mxu1 %v18856_v24  ;;  %14966 = vmatpush3.bf16.msra.mxu1 %v14963_v2  ;;  %v7535_v24 = vld [vmem:[#allocation8 + $0x270] sm:$0xff]  ;;  %v19310_v2 = vld [vmem:[#allocation2 + $0x99] sm:$0xff] }
 0x84e   :  { %14968 = vmatprep.subr.bf16.mxu1 %v14967_v29  ;;  %v19442_v28 = vld [vmem:[#allocation2 + $0x2e9] sm:$0xff] }
 0x850   :  { %13813 = vmatmul.mubr.f32.gmra.mrb[6].mxu1 %v18859_v60  ;;  %v14983_v60 = vpack.c.bf16 %v7536_v23, %v7535_v24  ;;  %v19331_v24 = vld [vmem:[#allocation2 + $0xe1] sm:$0xff]  ;;  %v19334_v23 = vld [vmem:[#allocation2 + $0xf1] sm:$0xff] }
 0x851   :  { %13815 = vmatprep.mubr.f32.mxu1 %v18862_v35  ;;  %14970 = vmatpush3.bf16.msra.mxu1 %v14967_v29  ;;  %v8051_v35 = vld [vmem:[#allocation8 + $0x280] sm:$0xff]  ;;  %v8066_v29 = vld [vmem:[#allocation8 + $0x2f8] sm:$0xff] }
 0x852   :  { %14972 = vmatprep.subr.bf16.mxu1 %v14971_v51  ;;  %v15015_v30 = vpack.c.bf16 %v8066_v29, %v8065_v43  ;;  %v19430_v43 = vld [vmem:[#allocation2 + $0x2b9] sm:$0xff]  ;;  %v19433_v29 = vld [vmem:[#allocation2 + $0x2c1] sm:$0xff] }
 0x854   :  { %13816 = vmatmul.mubr.f32.gmra.mrb[8].mxu1 %v18865_v40  ;;  %v19222_v40 = vpack.c.bf16 %v8052_v7, %v8051_v35  ;;  %v19340_v35 = vld [vmem:[#allocation2 + $0x109] sm:$0xff]  ;;  %v19343_v7 = vld [vmem:[#allocation2 + $0x111] sm:$0xff] }
 0x855   :  { %13818 = vmatprep.mubr.f32.mxu1 %v18868_v54  ;;  %14974 = vmatpush3.bf16.msra.mxu1 %v14971_v51  ;;  %v19240_v54 = vld [vmem:[#allocation2 + $0x180] sm:$0xff]  ;;  %v19316_v51 = vld [vmem:[#allocation2 + $0xb1] sm:$0xff] }
 0x856   :  { %14976 = vmatprep.subr.bf16.mxu1 %v14975_v39 }
 0x858   :  { %13819 = vmatmul.mubr.f32.gmra.mrb[10].mxu1 %v18871_v61  ;;  %v19243_v61 = vld [vmem:[#allocation2 + $0x188] sm:$0xff] }
 0x859   :  { %13821 = vmatprep.mubr.f32.mxu1 %v18874_v45  ;;  %14978 = vmatpush3.bf16.msra.mxu1 %v14975_v39  ;;  %v21738_v45 = vld [vmem:[#allocation80_spill] sm:$0xff]  ;;  %v19319_v39 = vld [vmem:[#allocation2 + $0xc1] sm:$0xff] }
 0x85a   :  { %14980 = vmatprep.subr.bf16.mxu1 %v14979_v9 }
 0x85c   :  { %13822 = vmatmul.mubr.f32.gmra.mrb[12].mxu1 %v18879_v18  ;;  %v21739_v18 = vld [vmem:[#allocation81_spill] sm:$0xff] }
 0x85d   :  { %13824 = vmatprep.mubr.f32.mxu1 %v18882_v38  ;;  %14982 = vmatpush3.bf16.msra.mxu1 %v14979_v9  ;;  %v21740_v38 = vld [vmem:[#allocation13_spill] sm:$0xff] }
 0x85e   :  { %14984 = vmatprep.subr.bf16.mxu1 %v14983_v60  ;;  %v19327_v9 = vld [vmem:[#allocation2 + $0xd9] sm:$0xff]  ;;  %21755 = vst [vmem:[#allocation13_spill] sm:$0xff] %v19430_v43 }
 0x860   :  { %13825 = vmatmul.mubr.f32.gmra.mrb[14].mxu1 %v18886_v32  ;;  %v21741_v32 = vld [vmem:[#allocation14_spill] sm:$0xff] }
 0x861   :  { %13827 = vmatprep.mubr.f32.mxu1 %v18889_v47  ;;  %14986 = vmatpush3.bf16.msra.mxu1 %v14983_v60  ;;  %v21742_v47 = vld [vmem:[#allocation15_spill] sm:$0xff]  ;;  %v19337_v60 = vld [vmem:[#allocation2 + $0xf9] sm:$0xff]  ;;  %21756 = vst [vmem:[#allocation14_spill] sm:$0xff] %v19433_v29 }
 0x862   :  { %14988 = vmatprep.subr.bf16.mxu1 %v19222_v40 }
 0x864   :  { %13828 = vmatmul.mubr.f32.gmra.mrb[16].mxu1 %v18892_v57  ;;  %v21743_v57 = vld [vmem:[#allocation16_spill] sm:$0xff] }
 0x865   :  { %13830 = vmatprep.mubr.f32.mxu1 %v18895_v13  ;;  %v21744_v13 = vld [vmem:[#allocation17_spill] sm:$0xff]  ;;  %21758 = vst [vmem:[#allocation16_spill] sm:$0xff] %v19439_v27 }
 0x866   :  { %21759 = vst [vmem:[#allocation17_spill] sm:$0xff] %v19442_v28 }
 0x868   :  { %13831 = vmatmul.mubr.f32.gmra.mrb[18].mxu1 %v18898_v58  ;;  %v21745_v58 = vld [vmem:[#allocation18_spill] sm:$0xff] }
 0x869   :  { %13833 = vmatprep.mubr.f32.mxu1 %v18901_v62  ;;  %v21746_v62 = vld [vmem:[#allocation19_spill] sm:$0xff] }
 0x86c   :  { %13834 = vmatmul.mubr.f32.gmra.mrb[20].mxu1 %v18904_v20  ;;  %v19276_v20 = vld [vmem:[#allocation2 + $0x330] sm:$0xff] }
 0x86d   :  { %13836 = vmatprep.mubr.f32.mxu1 %v18907_v50  ;;  %v19279_v50 = vld [vmem:[#allocation2 + $0x338] sm:$0xff] }
 0x870   :  { %13837 = vmatmul.mubr.f32.gmra.mrb[22].mxu1 %v18910_v63  ;;  %v8053_v63 = vld [vmem:[#allocation8 + $0x290] sm:$0xff] }
 0x871   :  { %13839 = vmatprep.mubr.f32.mxu1 %v18913_v8  ;;  %v8054_v8 = vld [vmem:[#allocation8 + $0x298] sm:$0xff] }
 0x874   :  { %13840 = vmatmul.mubr.f32.gmra.mrb[24].mxu1 %v18916_v4  ;;  %v7456_v4 = vld [vmem:[#allocation2 + $0x19] sm:$0xff] }
 0x875   :  { %13842 = vmatprep.mubr.f32.mxu1 %v18919_v5  ;;  %v14991_v5 = vpack.c.bf16 %v8054_v8, %v8053_v63  ;;  %v7488_v63 = vld [vmem:[#allocation2 + $0x1c9] sm:$0xff]  ;;  %v7489_v8 = vld [vmem:[#allocation2 + $0x1d1] sm:$0xff] }
 0x878   :  { %13843 = vmatmul.mubr.f32.gmra.mrb[26].mxu1 %v18922_v52  ;;  %v7457_v52 = vld [vmem:[#allocation2 + $0x21] sm:$0xff] }
 0x879   :  { %13845 = vmatprep.mubr.f32.mxu1 %v18925_v15  ;;  %v8055_v15 = vld [vmem:[#allocation8 + $0x2a0] sm:$0xff] }
 0x87c   :  { %13846 = vmatmul.mubr.f32.gmra.mrb[28].mxu1 %v18928_v10  ;;  %v8056_v10 = vld [vmem:[#allocation8 + $0x2a8] sm:$0xff] }
 0x87d   :  { %13848 = vmatprep.mubr.f32.mxu1 %v19240_v54 }
 0x880   :  { %13849 = vmatmul.mubr.f32.gmra.mrb[30].mxu1 %v19243_v61 }
 0x881   :  { %13851 = vmatprep.mubr.f32.mxu1 %v18932_v33  ;;  %v19282_v33 = vld [vmem:[#allocation2 + $0x31] sm:$0xff] }
 0x884   :  { %13852 = vmatmul.mubr.f32.gmra.mrb[32].mxu1 %v18935_v26  ;;  %v14995_v26 = vpack.c.bf16 %v8056_v10, %v8055_v15  ;;  %v19385_v15 = vld [vmem:[#allocation2 + $0x201] sm:$0xff]  ;;  %v19388_v10 = vld [vmem:[#allocation2 + $0x211] sm:$0xff] }
 0x885   :  { %13854 = vmatprep.mubr.f32.mxu1 %v18938_v6  ;;  %v19286_v6 = vld [vmem:[#allocation2 + $0x39] sm:$0xff] }
 0x888   :  { %13855 = vmatmul.mubr.f32.gmra.mrb[34].mxu1 %v18941_v49  ;;  %v8057_v49 = vld [vmem:[#allocation8 + $0x2b0] sm:$0xff] }
 0x889   :  { %13857 = vmatprep.mubr.f32.mxu1 %v18944_v0  ;;  %v8058_v0 = vld [vmem:[#allocation8 + $0x2b8] sm:$0xff] }
 0x88c   :  { %13858 = vmatmul.mubr.f32.gmra.mrb[36].mxu1 %v18947_v17  ;;  %v19289_v17 = vld [vmem:[#allocation2 + $0x49] sm:$0xff] }
 0x88d   :  { %13860 = vmatprep.mubr.f32.mxu1 %v18950_v48  ;;  %v14999_v48 = vpack.c.bf16 %v8058_v0, %v8057_v49  ;;  %v19394_v49 = vld [vmem:[#allocation2 + $0x229] sm:$0xff]  ;;  %v19397_v0 = vld [vmem:[#allocation2 + $0x231] sm:$0xff] }
 0x890   :  { %13861 = vmatmul.mubr.f32.gmra.mrb[38].mxu1 %v18953_v1  ;;  %v19292_v1 = vld [vmem:[#allocation2 + $0x51] sm:$0xff] }
 0x891   :  { %13863 = vmatprep.mubr.f32.mxu1 %v18956_v42  ;;  %v8059_v42 = vld [vmem:[#allocation8 + $0x2c0] sm:$0xff] }
 0x894   :  { %13864 = vmatmul.mubr.f32.gmra.mrb[40].mxu1 %v18959_v41  ;;  %v8060_v41 = vld [vmem:[#allocation8 + $0x2c8] sm:$0xff] }
 0x895   :  { %13866 = vmatprep.mubr.f32.mxu1 %v18962_v12  ;;  %v19295_v12 = vld [vmem:[#allocation2 + $0x61] sm:$0xff] }
 0x898   :  { %13867 = vmatmul.mubr.f32.gmra.mrb[42].mxu1 %v18965_v22  ;;  %v15003_v22 = vpack.c.bf16 %v8060_v41, %v8059_v42  ;;  %v19403_v42 = vld [vmem:[#allocation2 + $0x249] sm:$0xff]  ;;  %v19406_v41 = vld [vmem:[#allocation2 + $0x259] sm:$0xff] }
 0x899   :  { %13869 = vmatprep.mubr.f32.mxu1 %v18968_v59  ;;  %v19298_v59 = vld [vmem:[#allocation2 + $0x69] sm:$0xff]  ;;  %21747 = vst [vmem:[#allocation76_spill] sm:$0xff] %v19406_v41 }
 0x89c   :  { %13870 = vmatmul.mubr.f32.gmra.mrb[44].mxu1 %v18971_v31  ;;  %v8061_v31 = vld [vmem:[#allocation8 + $0x2d0] sm:$0xff] }
 0x89d   :  { %13872 = vmatprep.mubr.f32.mxu1 %v18974_v14  ;;  %v8062_v14 = vld [vmem:[#allocation8 + $0x2d8] sm:$0xff] }
 0x8a0   :  { %13873 = vmatmul.mubr.f32.gmra.mrb[46].mxu1 %v18977_v56  ;;  %v19301_v56 = vld [vmem:[#allocation2 + $0x79] sm:$0xff] }
 0x8a1   :  { %13875 = vmatprep.mubr.f32.mxu1 %v18980_v37  ;;  %v15007_v37 = vpack.c.bf16 %v8062_v14, %v8061_v31  ;;  %v19412_v31 = vld [vmem:[#allocation2 + $0x271] sm:$0xff]  ;;  %v19415_v14 = vld [vmem:[#allocation2 + $0x279] sm:$0xff] }
 0x8a2   :  { %21749 = vst [vmem:[#allocation78_spill] sm:$0xff] %v19412_v31  ;;  %21750 = vst [vmem:[#allocation79_spill] sm:$0xff] %v19415_v14 }
 0x8a4   :  { %13876 = vmatmul.mubr.f32.gmra.mrb[48].mxu1 %v18983_v46  ;;  %v19304_v46 = vld [vmem:[#allocation2 + $0x81] sm:$0xff] }
 0x8a5   :  { %13878 = vmatprep.mubr.f32.mxu1 %v18986_v11  ;;  %v8063_v11 = vld [vmem:[#allocation8 + $0x2e0] sm:$0xff] }
 0x8a8   :  { %13879 = vmatmul.mubr.f32.gmra.mrb[50].mxu1 %v18989_v53  ;;  %v8064_v53 = vld [vmem:[#allocation8 + $0x2e8] sm:$0xff] }
 0x8a9   :  { %13881 = vmatprep.mubr.f32.mxu1 %v21738_v45  ;;  %v15011_v44 = vpack.c.bf16 %v8064_v53, %v8063_v11  ;;  %v19349_v45 = vld [vmem:[#allocation2 + $0x129] sm:$0xff]  ;;  %v19421_v11 = vld [vmem:[#allocation2 + $0x291] sm:$0xff]  ;;  %v19424_v53 = vld [vmem:[#allocation2 + $0x2a1] sm:$0xff] }
 0x8aa   :  { %21752 = vst [vmem:[#allocation71_spill] sm:$0xff] %v19421_v11  ;;  %21753 = vst [vmem:[#allocation80_spill] sm:$0xff] %v19424_v53 }
 0x8ac   :  { %13882 = vmatmul.mubr.f32.gmra.mrb[52].mxu1 %v21739_v18  ;;  %v19352_v18 = vld [vmem:[#allocation2 + $0x139] sm:$0xff] }
 0x8ad   :  { %13884 = vmatprep.mubr.f32.mxu1 %v21740_v38  ;;  %v19355_v38 = vld [vmem:[#allocation2 + $0x141] sm:$0xff] }
 0x8b0   :  { %13885 = vmatmul.mubr.f32.gmra.mrb[54].mxu1 %v21741_v32  ;;  %v19358_v32 = vld [vmem:[#allocation2 + $0x151] sm:$0xff] }
 0x8b1   :  { %13887 = vmatprep.mubr.f32.mxu1 %v21742_v47  ;;  %v19361_v47 = vld [vmem:[#allocation2 + $0x159] sm:$0xff] }
 0x8b4   :  { %13888 = vmatmul.mubr.f32.gmra.mrb[56].mxu1 %v21743_v57  ;;  %v19364_v57 = vld [vmem:[#allocation2 + $0x169] sm:$0xff] }
 0x8b5   :  { %13890 = vmatprep.mubr.f32.mxu1 %v21744_v13  ;;  %v19367_v13 = vld [vmem:[#allocation2 + $0x171] sm:$0xff] }
 0x8b8   :  { %13891 = vmatmul.mubr.f32.gmra.mrb[58].mxu1 %v21745_v58  ;;  %v19370_v58 = vld [vmem:[#allocation2 + $0x181] sm:$0xff] }
 0x8b9   :  { %13893 = vmatprep.mubr.f32.mxu1 %v21746_v62  ;;  %v19373_v62 = vld [vmem:[#allocation2 + $0x189] sm:$0xff] }
 0x8bc   :  { %13894 = vmatmul.mubr.f32.gmra.mrb[60].mxu1 %v19019_v34  ;;  %v19307_v34 = vld [vmem:[#allocation2 + $0x91] sm:$0xff] }
 0x8bd   :  { %13896 = vmatprep.mubr.f32.mxu1 %v19276_v20 }
 0x8c0   :  { %13897 = vmatmul.mubr.f32.gmra.mrb[62].mxu1 %v19279_v50 }
 0x8c1   :  { %13931 = vmatprep.mubr.f32.mxu1 %v7456_v4  ;;  %v19376_v4 = vld [vmem:[#allocation2 + $0x1e1] sm:$0xff] }
 0x8c4   :  { %13932 = vmatmul.mubr.f32.vlgmr.msra.gmra.mrb[0].mxu1 %v7457_v52  ;;  %v19382_v52 = vld [vmem:[#allocation2 + $0x1f9] sm:$0xff] }
 0x8c5   :  { %13934 = vmatprep.mubr.f32.mxu1 %v19282_v33  ;;  %14990 = vmatpush3.bf16.msra.mxu1 %v19222_v40  ;;  %v19346_v40 = vld [vmem:[#allocation2 + $0x121] sm:$0xff] }
 0x8c6   :  { %14992 = vmatprep.subr.bf16.mxu1 %v14991_v5 }
 0x8c8   :  { %13935 = vmatmul.mubr.f32.gmra.mrb[2].mxu1 %v19286_v6 }
 0x8c9   :  { %13937 = vmatprep.mubr.f32.mxu1 %v19289_v17  ;;  %14994 = vmatpush3.bf16.msra.mxu1 %v14991_v5  ;;  %v19379_v5 = vld [vmem:[#allocation2 + $0x1e9] sm:$0xff] }
 0x8ca   :  { %14996 = vmatprep.subr.bf16.mxu1 %v14995_v26 }
 0x8cc   :  { %13938 = vmatmul.mubr.f32.gmra.mrb[4].mxu1 %v19292_v1 }
 0x8cd   :  { %13940 = vmatprep.mubr.f32.mxu1 %v19295_v12  ;;  %14998 = vmatpush3.bf16.msra.mxu1 %v14995_v26  ;;  %v19391_v26 = vld [vmem:[#allocation2 + $0x219] sm:$0xff] }
 0x8ce   :  { %15000 = vmatprep.subr.bf16.mxu1 %v14999_v48 }
 0x8d0   :  { %13941 = vmatmul.mubr.f32.gmra.mrb[6].mxu1 %v19298_v59 }
 0x8d1   :  { %13943 = vmatprep.mubr.f32.mxu1 %v19301_v56  ;;  %15002 = vmatpush3.bf16.msra.mxu1 %v14999_v48  ;;  %v19400_v48 = vld [vmem:[#allocation2 + $0x241] sm:$0xff] }
 0x8d2   :  { %15004 = vmatprep.subr.bf16.mxu1 %v15003_v22 }
 0x8d4   :  { %13944 = vmatmul.mubr.f32.gmra.mrb[8].mxu1 %v19304_v46 }
 0x8d5   :  { %13946 = vmatprep.mubr.f32.mxu1 %v19307_v34  ;;  %15006 = vmatpush3.bf16.msra.mxu1 %v15003_v22  ;;  %v19409_v22 = vld [vmem:[#allocation2 + $0x261] sm:$0xff] }
 0x8d6   :  { %15008 = vmatprep.subr.bf16.mxu1 %v15007_v37  ;;  %21748 = vst [vmem:[#allocation77_spill] sm:$0xff] %v19409_v22 }
 0x8d8   :  { %13947 = vmatmul.mubr.f32.gmra.mrb[10].mxu1 %v19310_v2 }
 0x8d9   :  { %13949 = vmatprep.mubr.f32.mxu1 %v19313_v55  ;;  %15010 = vmatpush3.bf16.msra.mxu1 %v15007_v37  ;;  %v19418_v37 = vld [vmem:[#allocation2 + $0x289] sm:$0xff] }
 0x8da   :  { %15012 = vmatprep.subr.bf16.mxu1 %v15011_v44  ;;  %21751 = vst [vmem:[#allocation70_spill] sm:$0xff] %v19418_v37 }
 0x8dc   :  { %13950 = vmatmul.mubr.f32.gmra.mrb[12].mxu1 %v19316_v51 }
 0x8dd   :  { %13952 = vmatprep.mubr.f32.mxu1 %v19319_v39  ;;  %15014 = vmatpush3.bf16.msra.mxu1 %v15011_v44  ;;  %v19427_v44 = vld [vmem:[#allocation2 + $0x2a9] sm:$0xff] }
 0x8de   :  { %15016 = vmatprep.subr.bf16.mxu1 %v15015_v30  ;;  %21754 = vst [vmem:[#allocation81_spill] sm:$0xff] %v19427_v44 }
 0x8e0   :  { %13953 = vmatmul.mubr.f32.gmra.mrb[14].mxu1 %v19324_v3 }
 0x8e1   :  { %13955 = vmatprep.mubr.f32.mxu1 %v19327_v9  ;;  %15018 = vmatpush3.bf16.msra.mxu1 %v15015_v30  ;;  %v19436_v30 = vld [vmem:[#allocation2 + $0x2d1] sm:$0xff] }
 0x8e2   :  { %15020 = vmatprep.subr.bf16.mxu1 %v19322_v25  ;;  %21757 = vst [vmem:[#allocation15_spill] sm:$0xff] %v19436_v30 }
 0x8e4   :  { %13956 = vmatmul.mubr.f32.gmra.mrb[16].mxu1 %v19331_v24 }
 0x8e5   :  { %13958 = vmatprep.mubr.f32.mxu1 %v19334_v23 }
 0x8e8   :  { %13959 = vmatmul.mubr.f32.gmra.mrb[18].mxu1 %v19337_v60 }
 0x8e9   :  { %13961 = vmatprep.mubr.f32.mxu1 %v19340_v35 }
 0x8ec   :  { %13962 = vmatmul.mubr.f32.gmra.mrb[20].mxu1 %v19343_v7 }
 0x8ed   :  { %13964 = vmatprep.mubr.f32.mxu1 %v19346_v40 }
 0x8f0   :  { %13965 = vmatmul.mubr.f32.gmra.mrb[22].mxu1 %v19349_v45 }
 0x8f1   :  { %13967 = vmatprep.mubr.f32.mxu1 %v19352_v18 }
 0x8f4   :  { %13968 = vmatmul.mubr.f32.gmra.mrb[24].mxu1 %v19355_v38 }
 0x8f5   :  { %13970 = vmatprep.mubr.f32.mxu1 %v19358_v32 }
 0x8f8   :  { %13971 = vmatmul.mubr.f32.gmra.mrb[26].mxu1 %v19361_v47 }
 0x8f9   :  { %13973 = vmatprep.mubr.f32.mxu1 %v19364_v57 }
 0x8fc   :  { %13974 = vmatmul.mubr.f32.gmra.mrb[28].mxu1 %v19367_v13 }
 0x8fd   :  { %13976 = vmatprep.mubr.f32.mxu1 %v19370_v58 }
 0x900   :  { %13977 = vmatmul.mubr.f32.gmra.mrb[30].mxu1 %v19373_v62 }
 0x901   :  { %13979 = vmatprep.mubr.f32.mxu1 %v7488_v63  ;;  %v19445_v63 = vld [vmem:[#allocation2 + $0x2f1] sm:$0xff] }
 0x902   :  { %21760 = vst [vmem:[#allocation18_spill] sm:$0xff] %v19445_v63 }
 0x904   :  { %13980 = vmatmul.mubr.f32.gmra.mrb[32].mxu1 %v7489_v8  ;;  %v19448_v8 = vld [vmem:[#allocation2 + $0x301] sm:$0xff] }
 0x905   :  { %13982 = vmatprep.mubr.f32.mxu1 %v19376_v4  ;;  %21761 = vst [vmem:[#allocation19_spill] sm:$0xff] %v19448_v8 }
 0x908   :  { %13983 = vmatmul.mubr.f32.gmra.mrb[34].mxu1 %v19379_v5 }
 0x909   :  { %13985 = vmatprep.mubr.f32.mxu1 %v19382_v52 }
 0x90c   :  { %13986 = vmatmul.mubr.f32.gmra.mrb[36].mxu1 %v19385_v15 }
 0x90d   :  { %13988 = vmatprep.mubr.f32.mxu1 %v19388_v10 }
 0x910   :  { %13989 = vmatmul.mubr.f32.gmra.mrb[38].mxu1 %v19391_v26 }
 0x911   :  { %13991 = vmatprep.mubr.f32.mxu1 %v19394_v49 }
 0x914   :  { %13992 = vmatmul.mubr.f32.gmra.mrb[40].mxu1 %v19397_v0 }
 0x915   :  { %13994 = vmatprep.mubr.f32.mxu1 %v19400_v48 }
 0x918   :  { %13995 = vmatmul.mubr.f32.gmra.mrb[42].mxu1 %v19403_v42 }
 0x919   :  { %13997 = vmatprep.mubr.f32.mxu1 %v19406_v41  ;;  %v21775_v41 = vld [vmem:[#allocation25_spill] sm:$0xff] }
 0x91c   :  { %13998 = vmatmul.mubr.f32.gmra.mrb[44].mxu1 %v19409_v22  ;;  %v21771_v22 = vld [vmem:[#allocation83_spill] sm:$0xff] }
 0x91d   :  { %14000 = vmatprep.mubr.f32.mxu1 %v19412_v31  ;;  %v21770_v31 = vld [vmem:[#allocation82_spill] sm:$0xff] }
 0x920   :  { %14001 = vmatmul.mubr.f32.gmra.mrb[46].mxu1 %v19415_v14  ;;  %v8588_v14 = vld [vmem:[#allocation8 + $0x338] sm:$0xff] }
 0x921   :  { %14003 = vmatprep.mubr.f32.mxu1 %v19418_v37  ;;  %v21769_v37 = vld [vmem:[#allocation22_spill] sm:$0xff] }
 0x924   :  { %14004 = vmatmul.mubr.f32.gmra.mrb[48].mxu1 %v19421_v11  ;;  %v8586_v11 = vld [vmem:[#allocation8 + $0x328] sm:$0xff] }
 0x925   :  { %14006 = vmatprep.mubr.f32.mxu1 %v19424_v53  ;;  %v8585_v53 = vld [vmem:[#allocation8 + $0x320] sm:$0xff] }
 0x928   :  { %14007 = vmatmul.mubr.f32.gmra.mrb[50].mxu1 %v19427_v44  ;;  %v21767_v44 = vld [vmem:[#allocation20_spill] sm:$0xff] }
 0x929   :  { %14009 = vmatprep.mubr.f32.mxu1 %v19430_v43  ;;  %v8583_v43 = vld [vmem:[#allocation8 + $0x310] sm:$0xff] }
 0x92c   :  { %14010 = vmatmul.mubr.f32.gmra.mrb[52].mxu1 %v19433_v29  ;;  %v19451_v29 = vld [vmem:[#allocation2 + $0x309] sm:$0xff] }
 0x92d   :  { %14012 = vmatprep.mubr.f32.mxu1 %v19436_v30  ;;  %21762 = vst [vmem:[#allocation85_spill] sm:$0xff] %v19451_v29  ;;  %v19454_v30 = vld [vmem:[#allocation2 + $0x319] sm:$0xff] }
 0x92e   :  { %21763 = vst [vmem:[#allocation86_spill] sm:$0xff] %v19454_v30 }
 0x930   :  { %14013 = vmatmul.mubr.f32.gmra.mrb[54].mxu1 %v19439_v27  ;;  %v19457_v27 = vld [vmem:[#allocation2 + $0x321] sm:$0xff] }
 0x931   :  { %14015 = vmatprep.mubr.f32.mxu1 %v19442_v28  ;;  %21764 = vst [vmem:[#allocation87_spill] sm:$0xff] %v19457_v27  ;;  %v19460_v28 = vld [vmem:[#allocation2 + $0x331] sm:$0xff] }
 0x932   :  { %21765 = vst [vmem:[#allocation88_spill] sm:$0xff] %v19460_v28 }
 0x934   :  { %14016 = vmatmul.mubr.f32.gmra.mrb[56].mxu1 %v19445_v63  ;;  %v19463_v63 = vld [vmem:[#allocation2 + $0x339] sm:$0xff] }
 0x935   :  { %14018 = vmatprep.mubr.f32.mxu1 %v19448_v8  ;;  %21766 = vst [vmem:[#allocation89_spill] sm:$0xff] %v19463_v63  ;;  %v8584_v8 = vld [vmem:[#allocation8 + $0x318] sm:$0xff] }
 0x938   :  { %14019 = vmatmul.mubr.f32.gmra.mrb[58].mxu1 %v19451_v29  ;;  %v15023_v29 = vpack.c.bf16 %v8584_v8, %v8583_v43  ;;  %v8589_v43 = vld [vmem:[#allocation8 + $0x340] sm:$0xff]  ;;  %v8590_v8 = vld [vmem:[#allocation8 + $0x348] sm:$0xff] }
 0x939   :  { %14021 = vmatprep.mubr.f32.mxu1 %v19454_v30  ;;  %v21768_v30 = vld [vmem:[#allocation21_spill] sm:$0xff] }
 0x93c   :  { %14022 = vmatmul.mubr.f32.gmra.mrb[60].mxu1 %v19457_v27  ;;  %v15027_v27 = vpack.c.bf16 %v8586_v11, %v8585_v53  ;;  %v8592_v11 = vld [vmem:[#allocation8 + $0x358] sm:$0xff] }
 0x93d   :  { %14024 = vmatprep.mubr.f32.mxu1 %v19460_v28  ;;  %v8587_v28 = vld [vmem:[#allocation8 + $0x330] sm:$0xff]  ;;  %v21774_v53 = vld [vmem:[#allocation24_spill] sm:$0xff] }
 0x940   :  { %14025 = vmatmul.mubr.f32.gmra.mrb[62].mxu1 %v19463_v63  ;;  %v21772_v63 = vld [vmem:[#allocation84_spill] sm:$0xff] }
 0x941   :  { %14059 = vmatprep.mubr.f32.mxu1 %v21767_v44  ;;  %v15031_v44 = vpack.c.bf16 %v8588_v14, %v8587_v28  ;;  %v8594_v14 = vld [vmem:[#allocation8 + $0x368] sm:$0xff]  ;;  %v8596_v28 = vld [vmem:[#allocation8 + $0x378] sm:$0xff] }
 0x944   :  { %14060 = vmatmul.mubr.f32.vlgmr.msra.gmra.mrb[0].mxu1 %v21768_v30  ;;  %v21773_v30 = vld [vmem:[#allocation23_spill] sm:$0xff] }
 0x945   :  { %14062 = vmatprep.mubr.f32.mxu1 %v21769_v37  ;;  %15022 = vmatpush3.bf16.msra.mxu1 %v19322_v25  ;;  %v15035_v25 = vpack.c.bf16 %v8590_v8, %v8589_v43  ;;  %v8591_v37 = vld [vmem:[#allocation8 + $0x350] sm:$0xff]  ;;  %v9112_v43 = vld [vmem:[#allocation8 + $0x388] sm:$0xff]  ;;  %v21777_v8 = vld [vmem:[#allocation28_spill] sm:$0xff] }
 0x946   :  { %15024 = vmatprep.subr.bf16.mxu1 %v15023_v29 }
 0x948   :  { %14063 = vmatmul.mubr.f32.gmra.mrb[2].mxu1 %v21770_v31  ;;  %v8593_v31 = vld [vmem:[#allocation8 + $0x360] sm:$0xff] }
 0x949   :  { %14065 = vmatprep.mubr.f32.mxu1 %v21771_v22  ;;  %15026 = vmatpush3.bf16.msra.mxu1 %v15023_v29  ;;  %v15039_v22 = vpack.c.bf16 %v8592_v11, %v8591_v37  ;;  %v15043_v29 = vpack.c.bf16 %v8594_v14, %v8593_v31  ;;  %v21782_v37 = vld [vmem:[#allocation31_spill] sm:$0xff]  ;;  %v21783_v11 = vld [vmem:[#allocation34_spill] sm:$0xff] }
 0x94a   :  { %15028 = vmatprep.subr.bf16.mxu1 %v15027_v27  ;;  %v21786_v31 = vld [vmem:[#allocation35_spill] sm:$0xff]  ;;  %v21787_v14 = vld [vmem:[#allocation38_spill] sm:$0xff] }
 0x94c   :  { %14066 = vmatmul.mubr.f32.gmra.mrb[4].mxu1 %v21772_v63  ;;  %v21776_v63 = vld [vmem:[#allocation26_spill] sm:$0xff] }
 0x94d   :  { %14068 = vmatprep.mubr.f32.mxu1 %v21773_v30  ;;  %15030 = vmatpush3.bf16.msra.mxu1 %v15027_v27  ;;  %v8595_v27 = vld [vmem:[#allocation8 + $0x370] sm:$0xff] }
 0x94e   :  { %15032 = vmatprep.subr.bf16.mxu1 %v15031_v44  ;;  %v21778_v30 = vld [vmem:[#allocation27_spill] sm:$0xff] }
 0x950   :  { %14069 = vmatmul.mubr.f32.gmra.mrb[6].mxu1 %v21774_v53  ;;  %v21784_v53 = vld [vmem:[#allocation33_spill] sm:$0xff] }
 0x951   :  { %14071 = vmatprep.mubr.f32.mxu1 %v21775_v41  ;;  %15034 = vmatpush3.bf16.msra.mxu1 %v15031_v44  ;;  %v15047_v41 = vpack.c.bf16 %v8596_v28, %v8595_v27  ;;  %v9111_v44 = vld [vmem:[#allocation8 + $0x380] sm:$0xff]  ;;  %v21789_v27 = vld [vmem:[#allocation48_spill] sm:$0xff] }
 0x952   :  { %15036 = vmatprep.subr.bf16.mxu1 %v15035_v25  ;;  %v21790_v28 = vld [vmem:[#allocation49_spill] sm:$0xff] }
 0x954   :  { %14072 = vmatmul.mubr.f32.gmra.mrb[8].mxu1 %v19050_v16  ;;  %v19482_v16 = vpack.c.bf16 %v9112_v43, %v9111_v44  ;;  %v21793_v44 = vld [vmem:[#allocation39_spill] sm:$0xff]  ;;  %v19500_v43 = vld [vmem:[#allocation2 + $0x182] sm:$0xff] }
 0x955   :  { %14074 = vmatprep.mubr.f32.mxu1 %v19053_v19  ;;  %15038 = vmatpush3.bf16.msra.mxu1 %v15035_v25  ;;  %v21779_v19 = vld [vmem:[#allocation30_spill] sm:$0xff]  ;;  %v21780_v25 = vld [vmem:[#allocation29_spill] sm:$0xff] }
 0x956   :  { %15040 = vmatprep.subr.bf16.mxu1 %v15039_v22 }
 0x958   :  { %14075 = vmatmul.mubr.f32.gmra.mrb[10].mxu1 %v19056_v36  ;;  %v21781_v36 = vld [vmem:[#allocation32_spill] sm:$0xff] }
 0x959   :  { %14077 = vmatprep.mubr.f32.mxu1 %v21776_v63  ;;  %15042 = vmatpush3.bf16.msra.mxu1 %v15039_v22  ;;  %v21785_v22 = vld [vmem:[#allocation36_spill] sm:$0xff] }
 0x95a   :  { %15044 = vmatprep.subr.bf16.mxu1 %v15043_v29  ;;  %v21791_v63 = vld [vmem:[#allocation52_spill] sm:$0xff] }
 0x95c   :  { %14078 = vmatmul.mubr.f32.gmra.mrb[12].mxu1 %v21777_v8  ;;  %v19503_v8 = vld [vmem:[#allocation2 + $0x18a] sm:$0xff] }
 0x95d   :  { %14080 = vmatprep.mubr.f32.mxu1 %v21778_v30  ;;  %15046 = vmatpush3.bf16.msra.mxu1 %v15043_v29  ;;  %v21788_v29 = vld [vmem:[#allocation37_spill] sm:$0xff]  ;;  %v21794_v30 = vld [vmem:[#allocation40_spill] sm:$0xff] }
 0x95e   :  { %15048 = vmatprep.subr.bf16.mxu1 %v15047_v41 }
 0x960   :  { %14081 = vmatmul.mubr.f32.gmra.mrb[14].mxu1 %v21779_v19  ;;  %v21795_v19 = vld [vmem:[#allocation41_spill] sm:$0xff] }
 0x961   :  { %14083 = vmatprep.mubr.f32.mxu1 %v21780_v25  ;;  %15050 = vmatpush3.bf16.msra.mxu1 %v15047_v41  ;;  %v21792_v41 = vld [vmem:[#allocation61_spill] sm:$0xff]  ;;  %v21796_v25 = vld [vmem:[#allocation42_spill] sm:$0xff] }
 0x962   :  { %15052 = vmatprep.subr.bf16.mxu1 %v19482_v16 }
 0x964   :  { %14084 = vmatmul.mubr.f32.gmra.mrb[16].mxu1 %v21781_v36  ;;  %v21797_v36 = vld [vmem:[#allocation43_spill] sm:$0xff] }
 0x965   :  { %14086 = vmatprep.mubr.f32.mxu1 %v21782_v37  ;;  %v21798_v37 = vld [vmem:[#allocation44_spill] sm:$0xff] }
 0x968   :  { %14087 = vmatmul.mubr.f32.gmra.mrb[18].mxu1 %v21783_v11  ;;  %v21799_v11 = vld [vmem:[#allocation45_spill] sm:$0xff] }
 0x969   :  { %14089 = vmatprep.mubr.f32.mxu1 %v21784_v53  ;;  %v21800_v53 = vld [vmem:[#allocation46_spill] sm:$0xff] }
 0x96c   :  { %14090 = vmatmul.mubr.f32.gmra.mrb[20].mxu1 %v21785_v22  ;;  %v21801_v22 = vld [vmem:[#allocation47_spill] sm:$0xff] }
 0x96d   :  { %14092 = vmatprep.mubr.f32.mxu1 %v21786_v31  ;;  %v21802_v31 = vld [vmem:[#allocation50_spill] sm:$0xff] }
 0x970   :  { %14093 = vmatmul.mubr.f32.gmra.mrb[22].mxu1 %v21787_v14  ;;  %v21803_v14 = vld [vmem:[#allocation51_spill] sm:$0xff] }
 0x971   :  { %14095 = vmatprep.mubr.f32.mxu1 %v21788_v29  ;;  %v21804_v29 = vld [vmem:[#allocation53_spill] sm:$0xff] }
 0x974   :  { %14096 = vmatmul.mubr.f32.gmra.mrb[24].mxu1 %v21789_v27  ;;  %v21805_v27 = vld [vmem:[#allocation54_spill] sm:$0xff] }
 0x975   :  { %14098 = vmatprep.mubr.f32.mxu1 %v21790_v28  ;;  %v21806_v28 = vld [vmem:[#allocation55_spill] sm:$0xff] }
 0x978   :  { %14099 = vmatmul.mubr.f32.gmra.mrb[26].mxu1 %v21791_v63  ;;  %v21807_v63 = vld [vmem:[#allocation56_spill] sm:$0xff] }
 0x979   :  { %14101 = vmatprep.mubr.f32.mxu1 %v21792_v41  ;;  %v21808_v41 = vld [vmem:[#allocation57_spill] sm:$0xff] }
 0x97c   :  { %14102 = vmatmul.mubr.f32.gmra.mrb[28].mxu1 %v21793_v44  ;;  %v21809_v44 = vld [vmem:[#allocation58_spill] sm:$0xff] }
 0x97d   :  { %14104 = vmatprep.mubr.f32.mxu1 %v19500_v43 }
 0x980   :  { %14105 = vmatmul.mubr.f32.gmra.mrb[30].mxu1 %v19503_v8 }
 0x981   :  { %14107 = vmatprep.mubr.f32.mxu1 %v21794_v30  ;;  %v21810_v30 = vld [vmem:[#allocation59_spill] sm:$0xff] }
 0x984   :  { %14108 = vmatmul.mubr.f32.gmra.mrb[32].mxu1 %v21795_v19  ;;  %v21811_v19 = vld [vmem:[#allocation60_spill] sm:$0xff] }
 0x985   :  { %14110 = vmatprep.mubr.f32.mxu1 %v21796_v25  ;;  %v21812_v25 = vld [vmem:[#allocation62_spill] sm:$0xff] }
 0x988   :  { %14111 = vmatmul.mubr.f32.gmra.mrb[34].mxu1 %v21797_v36  ;;  %v21813_v36 = vld [vmem:[#allocation64_spill] sm:$0xff] }
 0x989   :  { %14113 = vmatprep.mubr.f32.mxu1 %v21798_v37  ;;  %v21814_v37 = vld [vmem:[#allocation65_spill] sm:$0xff] }
 0x98c   :  { %14114 = vmatmul.mubr.f32.gmra.mrb[36].mxu1 %v21799_v11  ;;  %v21815_v11 = vld [vmem:[#allocation66_spill] sm:$0xff] }
 0x98d   :  { %14116 = vmatprep.mubr.f32.mxu1 %v21800_v53  ;;  %v21816_v53 = vld [vmem:[#allocation67_spill] sm:$0xff] }
 0x990   :  { %14117 = vmatmul.mubr.f32.gmra.mrb[38].mxu1 %v21801_v22  ;;  %v21817_v22 = vld [vmem:[#allocation68_spill] sm:$0xff] }
 0x991   :  { %14119 = vmatprep.mubr.f32.mxu1 %v21802_v31  ;;  %v21818_v31 = vld [vmem:[#allocation69_spill] sm:$0xff] }
 0x994   :  { %14120 = vmatmul.mubr.f32.gmra.mrb[40].mxu1 %v21803_v14  ;;  %v21819_v14 = vld [vmem:[#allocation72_spill] sm:$0xff] }
 0x995   :  { %14122 = vmatprep.mubr.f32.mxu1 %v21804_v29  ;;  %v21820_v29 = vld [vmem:[#allocation73_spill] sm:$0xff] }
 0x998   :  { %14123 = vmatmul.mubr.f32.gmra.mrb[42].mxu1 %v21805_v27  ;;  %v21821_v27 = vld [vmem:[#allocation74_spill] sm:$0xff] }
 0x999   :  { %14125 = vmatprep.mubr.f32.mxu1 %v21806_v28  ;;  %v21822_v28 = vld [vmem:[#allocation75_spill] sm:$0xff] }
 0x99c   :  { %14126 = vmatmul.mubr.f32.gmra.mrb[44].mxu1 %v21807_v63  ;;  %v19536_v63 = vld [vmem:[#allocation2 + $0x332] sm:$0xff] }
 0x99d   :  { %14128 = vmatprep.mubr.f32.mxu1 %v21808_v41  ;;  %v19539_v41 = vld [vmem:[#allocation2 + $0x33a] sm:$0xff] }
 0x9a0   :  { %14129 = vmatmul.mubr.f32.gmra.mrb[46].mxu1 %v21809_v44  ;;  %v9113_v44 = vld [vmem:[#allocation8 + $0x390] sm:$0xff] }
 0x9a1   :  { %14131 = vmatprep.mubr.f32.mxu1 %v21810_v30  ;;  %v9114_v30 = vld [vmem:[#allocation8 + $0x398] sm:$0xff] }
 0x9a4   :  { %14132 = vmatmul.mubr.f32.gmra.mrb[48].mxu1 %v21811_v19  ;;  %v8516_v19 = vld [vmem:[#allocation2 + $0x30] sm:$0xff] }
 0x9a5   :  { %14134 = vmatprep.mubr.f32.mxu1 %v21812_v25  ;;  %v15055_v25 = vpack.c.bf16 %v9114_v30, %v9113_v44  ;;  %v9119_v44 = vld [vmem:[#allocation8 + $0x3c0] sm:$0xff]  ;;  %v9120_v30 = vld [vmem:[#allocation8 + $0x3c8] sm:$0xff] }
 0x9a8   :  { %14135 = vmatmul.mubr.f32.gmra.mrb[50].mxu1 %v21813_v36  ;;  %v8517_v36 = vld [vmem:[#allocation2 + $0x38] sm:$0xff] }
 0x9a9   :  { %14137 = vmatprep.mubr.f32.mxu1 %v21814_v37  ;;  %v9115_v37 = vld [vmem:[#allocation8 + $0x3a0] sm:$0xff] }
 0x9ac   :  { %14138 = vmatmul.mubr.f32.gmra.mrb[52].mxu1 %v21815_v11  ;;  %v9116_v11 = vld [vmem:[#allocation8 + $0x3a8] sm:$0xff] }
 0x9ad   :  { %14140 = vmatprep.mubr.f32.mxu1 %v21816_v53  ;;  %v8518_v53 = vld [vmem:[#allocation2 + $0x48] sm:$0xff] }
 0x9b0   :  { %14141 = vmatmul.mubr.f32.gmra.mrb[54].mxu1 %v21817_v22  ;;  %v8519_v22 = vld [vmem:[#allocation2 + $0x50] sm:$0xff] }
 0x9b1   :  { %14143 = vmatprep.mubr.f32.mxu1 %v21818_v31  ;;  %v9117_v31 = vld [vmem:[#allocation8 + $0x3b0] sm:$0xff] }
 0x9b4   :  { %14144 = vmatmul.mubr.f32.gmra.mrb[56].mxu1 %v21819_v14  ;;  %v9118_v14 = vld [vmem:[#allocation8 + $0x3b8] sm:$0xff] }
 0x9b5   :  { %14146 = vmatprep.mubr.f32.mxu1 %v21820_v29  ;;  %v8520_v29 = vld [vmem:[#allocation2 + $0x60] sm:$0xff] }
 0x9b8   :  { %14147 = vmatmul.mubr.f32.gmra.mrb[58].mxu1 %v21821_v27  ;;  %v15063_v27 = vpack.c.bf16 %v9118_v14, %v9117_v31  ;;  %v9123_v31 = vld [vmem:[#allocation8 + $0x3e0] sm:$0xff]  ;;  %v9124_v14 = vld [vmem:[#allocation8 + $0x3e8] sm:$0xff] }
 0x9b9   :  { %14149 = vmatprep.mubr.f32.mxu1 %v21822_v28  ;;  %v8521_v28 = vld [vmem:[#allocation2 + $0x68] sm:$0xff] }
 0x9bc   :  { %14150 = vmatmul.mubr.f32.gmra.mrb[60].mxu1 %v19203_v21  ;;  %v15059_v21 = vpack.c.bf16 %v9116_v11, %v9115_v37  ;;  %v9121_v37 = vld [vmem:[#allocation8 + $0x3d0] sm:$0xff]  ;;  %v9122_v11 = vld [vmem:[#allocation8 + $0x3d8] sm:$0xff] }
 0x9bd   :  { %14152 = vmatprep.mubr.f32.mxu1 %v19536_v63 }
 0x9c0   :  { %14153 = vmatmul.mubr.f32.gmra.mrb[62].mxu1 %v19539_v41 }
 0x9c1   :  { %14187 = vmatprep.mubr.f32.mxu1 %v8516_v19  ;;  %v8522_v19 = vld [vmem:[#allocation2 + $0x78] sm:$0xff] }
 0x9c4   :  { %14188 = vmatmul.mubr.f32.vlgmr.msra.gmra.mrb[0].mxu1 %v8517_v36  ;;  %v8523_v36 = vld [vmem:[#allocation2 + $0x80] sm:$0xff] }
 0x9c5   :  { %14190 = vmatprep.mubr.f32.mxu1 %v8518_v53  ;;  %15054 = vmatpush3.bf16.msra.mxu1 %v19482_v16  ;;  %v15067_v16 = vpack.c.bf16 %v9120_v30, %v9119_v44  ;;  %v8524_v53 = vld [vmem:[#allocation2 + $0x90] sm:$0xff]  ;;  %v9126_v30 = vld [vmem:[#allocation8 + $0x3f8] sm:$0xff] }
 0x9c6   :  { %15056 = vmatprep.subr.bf16.mxu1 %v15055_v25  ;;  %v9125_v44 = vld [vmem:[#allocation8 + $0x3f0] sm:$0xff] }
 0x9c8   :  { %14191 = vmatmul.mubr.f32.gmra.mrb[2].mxu1 %v8519_v22  ;;  %v8525_v22 = vld [vmem:[#allocation2 + $0x98] sm:$0xff] }
 0x9c9   :  { %14193 = vmatprep.mubr.f32.mxu1 %v8520_v29  ;;  %15058 = vmatpush3.bf16.msra.mxu1 %v15055_v25  ;;  %v15071_v25 = vpack.c.bf16 %v9122_v11, %v9121_v37  ;;  %v8526_v29 = vld [vmem:[#allocation2 + $0xa8] sm:$0xff]  ;;  %v9641_v37 = vld [vmem:[#allocation8 + $0x400] sm:$0xff] }
 0x9ca   :  { %15060 = vmatprep.subr.bf16.mxu1 %v15059_v21  ;;  %v9642_v11 = vld [vmem:[#allocation8 + $0x408] sm:$0xff] }
 0x9cc   :  { %14194 = vmatmul.mubr.f32.gmra.mrb[4].mxu1 %v8521_v28  ;;  %v8527_v28 = vld [vmem:[#allocation2 + $0xb0] sm:$0xff] }
 0x9cd   :  { %14196 = vmatprep.mubr.f32.mxu1 %v8522_v19  ;;  %15062 = vmatpush3.bf16.msra.mxu1 %v15059_v21  ;;  %v15075_v21 = vpack.c.bf16 %v9124_v14, %v9123_v31  ;;  %v8528_v19 = vld [vmem:[#allocation2 + $0xc0] sm:$0xff]  ;;  %v8532_v31 = vld [vmem:[#allocation2 + $0xf0] sm:$0xff]  ;;  %v8534_v14 = vld [vmem:[#allocation2 + $0x108] sm:$0xff] }
 0x9ce   :  { %15064 = vmatprep.subr.bf16.mxu1 %v15063_v27 }
 0x9d0   :  { %14197 = vmatmul.mubr.f32.gmra.mrb[6].mxu1 %v8523_v36  ;;  %v8529_v36 = vld [vmem:[#allocation2 + $0xc8] sm:$0xff] }
 0x9d1   :  { %14199 = vmatprep.mubr.f32.mxu1 %v8524_v53  ;;  %15066 = vmatpush3.bf16.msra.mxu1 %v15063_v27  ;;  %v15079_v27 = vpack.c.bf16 %v9126_v30, %v9125_v44  ;;  %v8530_v53 = vld [vmem:[#allocation2 + $0xd8] sm:$0xff]  ;;  %v8537_v44 = vld [vmem:[#allocation2 + $0x128] sm:$0xff]  ;;  %v8539_v30 = vld [vmem:[#allocation2 + $0x140] sm:$0xff] }
 0x9d2   :  { %15068 = vmatprep.subr.bf16.mxu1 %v15067_v16 }
 0x9d4   :  { %14200 = vmatmul.mubr.f32.gmra.mrb[8].mxu1 %v8525_v22  ;;  %v8531_v22 = vld [vmem:[#allocation2 + $0xe0] sm:$0xff] }
 0x9d5   :  { %14202 = vmatprep.mubr.f32.mxu1 %v8526_v29  ;;  %15070 = vmatpush3.bf16.msra.mxu1 %v15067_v16  ;;  %v19543_v16 = vpack.c.bf16 %v9642_v11, %v9641_v37  ;;  %v8535_v29 = vld [vmem:[#allocation2 + $0x110] sm:$0xff]  ;;  %v8546_v11 = vld [vmem:[#allocation2 + $0x198] sm:$0xff] }
 0x9d6   :  { %15072 = vmatprep.subr.bf16.mxu1 %v15071_v25  ;;  %v8543_v37 = vld [vmem:[#allocation2 + $0x170] sm:$0xff] }
 0x9d8   :  { %14203 = vmatmul.mubr.f32.gmra.mrb[10].mxu1 %v8527_v28  ;;  %v8536_v28 = vld [vmem:[#allocation2 + $0x120] sm:$0xff] }
 0x9d9   :  { %14205 = vmatprep.mubr.f32.mxu1 %v8528_v19  ;;  %15074 = vmatpush3.bf16.msra.mxu1 %v15071_v25  ;;  %v8533_v25 = vld [vmem:[#allocation2 + $0xf8] sm:$0xff]  ;;  %v8540_v19 = vld [vmem:[#allocation2 + $0x150] sm:$0xff] }
 0x9da   :  { %15076 = vmatprep.subr.bf16.mxu1 %v15075_v21 }
 0x9dc   :  { %14206 = vmatmul.mubr.f32.gmra.mrb[12].mxu1 %v8529_v36  ;;  %v8541_v36 = vld [vmem:[#allocation2 + $0x158] sm:$0xff] }
 0x9dd   :  { %14208 = vmatprep.mubr.f32.mxu1 %v8530_v53  ;;  %15078 = vmatpush3.bf16.msra.mxu1 %v15075_v21  ;;  %v8538_v21 = vld [vmem:[#allocation2 + $0x138] sm:$0xff]  ;;  %v19548_v53 = vld [vmem:[#allocation2 + $0x8] sm:$0xff] }
 0x9de   :  { %15080 = vmatprep.subr.bf16.mxu1 %v15079_v27 }
 0x9e0   :  { %14209 = vmatmul.mubr.f32.gmra.mrb[14].mxu1 %v8531_v22  ;;  %v8548_v22 = vld [vmem:[#allocation2 + $0x1e0] sm:$0xff] }
 0x9e1   :  { %14211 = vmatprep.mubr.f32.mxu1 %v8532_v31  ;;  %15082 = vmatpush3.bf16.msra.mxu1 %v15079_v27  ;;  %v8542_v27 = vld [vmem:[#allocation2 + $0x168] sm:$0xff] }
 0x9e2   :  { %15084 = vmatprep.subr.bf16.mxu1 %v19543_v16  ;;  %v8549_v31 = vld [vmem:[#allocation2 + $0x1e8] sm:$0xff] }
 0x9e4   :  { %14212 = vmatmul.mubr.f32.gmra.mrb[16].mxu1 %v8533_v25  ;;  %v8550_v25 = vld [vmem:[#allocation2 + $0x1f8] sm:$0xff] }
 0x9e5   :  { %14214 = vmatprep.mubr.f32.mxu1 %v8534_v14  ;;  %v8551_v14 = vld [vmem:[#allocation2 + $0x200] sm:$0xff] }
 0x9e8   :  { %14215 = vmatmul.mubr.f32.gmra.mrb[18].mxu1 %v8535_v29  ;;  %v8552_v29 = vld [vmem:[#allocation2 + $0x210] sm:$0xff] }
 0x9e9   :  { %14217 = vmatprep.mubr.f32.mxu1 %v8536_v28  ;;  %v8553_v28 = vld [vmem:[#allocation2 + $0x218] sm:$0xff] }
 0x9ec   :  { %14218 = vmatmul.mubr.f32.gmra.mrb[20].mxu1 %v8537_v44  ;;  %v8556_v44 = vld [vmem:[#allocation2 + $0x240] sm:$0xff] }
 0x9ed   :  { %14220 = vmatprep.mubr.f32.mxu1 %v8538_v21  ;;  %v8557_v21 = vld [vmem:[#allocation2 + $0x248] sm:$0xff] }
 0x9f0   :  { %14221 = vmatmul.mubr.f32.gmra.mrb[22].mxu1 %v8539_v30  ;;  %v8558_v30 = vld [vmem:[#allocation2 + $0x258] sm:$0xff] }
 0x9f1   :  { %14223 = vmatprep.mubr.f32.mxu1 %v8540_v19  ;;  %v8559_v19 = vld [vmem:[#allocation2 + $0x260] sm:$0xff] }
 0x9f4   :  { %14224 = vmatmul.mubr.f32.gmra.mrb[24].mxu1 %v8541_v36  ;;  %v8560_v36 = vld [vmem:[#allocation2 + $0x270] sm:$0xff] }
 0x9f5   :  { %14226 = vmatprep.mubr.f32.mxu1 %v8542_v27  ;;  %v8561_v27 = vld [vmem:[#allocation2 + $0x278] sm:$0xff] }
 0x9f8   :  { %14227 = vmatmul.mubr.f32.gmra.mrb[26].mxu1 %v8543_v37  ;;  %v8562_v37 = vld [vmem:[#allocation2 + $0x288] sm:$0xff] }
 0x9f9   :  { %14229 = vmatprep.mubr.f32.mxu1 %v19240_v54  ;;  %v8554_v54 = vld [vmem:[#allocation2 + $0x228] sm:$0xff] }
 0x9fc   :  { %14230 = vmatmul.mubr.f32.gmra.mrb[28].mxu1 %v19243_v61  ;;  %v8555_v61 = vld [vmem:[#allocation2 + $0x230] sm:$0xff] }
 0x9fd   :  { %14232 = vmatprep.mubr.f32.mxu1 %v8546_v11  ;;  %v8563_v11 = vld [vmem:[#allocation2 + $0x290] sm:$0xff] }
 0xa00   :  { %14233 = vmatmul.mubr.f32.gmra.mrb[30].mxu1 %v19548_v53 }
 0xa01   :  { %14235 = vmatprep.mubr.f32.mxu1 %v8548_v22  ;;  %v8564_v22 = vld [vmem:[#allocation2 + $0x2a0] sm:$0xff] }
 0xa04   :  { %14236 = vmatmul.mubr.f32.gmra.mrb[32].mxu1 %v8549_v31  ;;  %v8565_v31 = vld [vmem:[#allocation2 + $0x2a8] sm:$0xff] }
 0xa05   :  { %14238 = vmatprep.mubr.f32.mxu1 %v8550_v25  ;;  %v8566_v25 = vld [vmem:[#allocation2 + $0x2b8] sm:$0xff] }
 0xa08   :  { %14239 = vmatmul.mubr.f32.gmra.mrb[34].mxu1 %v8551_v14  ;;  %v8567_v14 = vld [vmem:[#allocation2 + $0x2c0] sm:$0xff] }
 0xa09   :  { %14241 = vmatprep.mubr.f32.mxu1 %v8552_v29  ;;  %v8568_v29 = vld [vmem:[#allocation2 + $0x2d0] sm:$0xff] }
 0xa0c   :  { %14242 = vmatmul.mubr.f32.gmra.mrb[36].mxu1 %v8553_v28  ;;  %v8569_v28 = vld [vmem:[#allocation2 + $0x2d8] sm:$0xff] }
 0xa0d   :  { %14244 = vmatprep.mubr.f32.mxu1 %v8554_v54  ;;  %v8570_v54 = vld [vmem:[#allocation2 + $0x2e8] sm:$0xff] }
 0xa10   :  { %14245 = vmatmul.mubr.f32.gmra.mrb[38].mxu1 %v8555_v61  ;;  %v8571_v61 = vld [vmem:[#allocation2 + $0x2f0] sm:$0xff] }
 0xa11   :  { %14247 = vmatprep.mubr.f32.mxu1 %v8556_v44  ;;  %v8572_v44 = vld [vmem:[#allocation2 + $0x300] sm:$0xff] }
 0xa14   :  { %14248 = vmatmul.mubr.f32.gmra.mrb[40].mxu1 %v8557_v21  ;;  %v8573_v21 = vld [vmem:[#allocation2 + $0x308] sm:$0xff] }
 0xa15   :  { %14250 = vmatprep.mubr.f32.mxu1 %v8558_v30  ;;  %v8574_v30 = vld [vmem:[#allocation2 + $0x318] sm:$0xff] }
 0xa18   :  { %14251 = vmatmul.mubr.f32.gmra.mrb[42].mxu1 %v8559_v19  ;;  %v8575_v19 = vld [vmem:[#allocation2 + $0x320] sm:$0xff] }
 0xa19   :  { %14253 = vmatprep.mubr.f32.mxu1 %v8560_v36  ;;  %v8578_v36 = vld [vmem:[#allocation2 + $0x348] sm:$0xff] }
 0xa1c   :  { %14254 = vmatmul.mubr.f32.gmra.mrb[44].mxu1 %v8561_v27  ;;  %v9643_v27 = vld [vmem:[#allocation8 + $0x410] sm:$0xff] }
 0xa1d   :  { %14256 = vmatprep.mubr.f32.mxu1 %v8562_v37  ;;  %v9644_v37 = vld [vmem:[#allocation8 + $0x418] sm:$0xff] }
 0xa20   :  { %14257 = vmatmul.mubr.f32.gmra.mrb[46].mxu1 %v8563_v11  ;;  %v15087_v11 = vpack.c.bf16 %v9644_v37, %v9643_v27  ;;  %v9591_v27 = vld [vmem:[#allocation2 + $0xe2] sm:$0xff]  ;;  %v9592_v37 = vld [vmem:[#allocation2 + $0xf2] sm:$0xff] }
 0xa21   :  { %14259 = vmatprep.mubr.f32.mxu1 %v8564_v22  ;;  %v9645_v22 = vld [vmem:[#allocation8 + $0x420] sm:$0xff] }
 0xa24   :  { %14260 = vmatmul.mubr.f32.gmra.mrb[48].mxu1 %v8565_v31  ;;  %v9646_v31 = vld [vmem:[#allocation8 + $0x428] sm:$0xff] }
 0xa25   :  { %14262 = vmatprep.mubr.f32.mxu1 %v8566_v25  ;;  %v9647_v25 = vld [vmem:[#allocation8 + $0x430] sm:$0xff] }
 0xa28   :  { %14263 = vmatmul.mubr.f32.gmra.mrb[50].mxu1 %v8567_v14  ;;  %v9650_v14 = vld [vmem:[#allocation8 + $0x448] sm:$0xff] }
 0xa29   :  { %14265 = vmatprep.mubr.f32.mxu1 %v8568_v29  ;;  %v9654_v29 = vld [vmem:[#allocation8 + $0x468] sm:$0xff] }
 0xa2c   :  { %14266 = vmatmul.mubr.f32.gmra.mrb[52].mxu1 %v8569_v28  ;;  %v9656_v28 = vld [vmem:[#allocation8 + $0x478] sm:$0xff] }
 0xa2d   :  { %14268 = vmatprep.mubr.f32.mxu1 %v8570_v54  ;;  %v9584_v54 = vld [vmem:[#allocation2 + $0x92] sm:$0xff] }
 0xa30   :  { %14269 = vmatmul.mubr.f32.gmra.mrb[54].mxu1 %v8571_v61  ;;  %v9585_v61 = vld [vmem:[#allocation2 + $0x9a] sm:$0xff] }
 0xa31   :  { %14271 = vmatprep.mubr.f32.mxu1 %v8572_v44  ;;  %v9586_v44 = vld [vmem:[#allocation2 + $0xaa] sm:$0xff] }
 0xa34   :  { %14272 = vmatmul.mubr.f32.gmra.mrb[56].mxu1 %v8573_v21  ;;  %v9587_v21 = vld [vmem:[#allocation2 + $0xb2] sm:$0xff] }
 0xa35   :  { %14274 = vmatprep.mubr.f32.mxu1 %v8574_v30  ;;  %v9588_v30 = vld [vmem:[#allocation2 + $0xc2] sm:$0xff] }
 0xa38   :  { %14275 = vmatmul.mubr.f32.gmra.mrb[58].mxu1 %v8575_v19  ;;  %v9589_v19 = vld [vmem:[#allocation2 + $0xca] sm:$0xff] }
 0xa39   :  { %14277 = vmatprep.mubr.f32.mxu1 %v19276_v20  ;;  %v15091_v20 = vpack.c.bf16 %v9646_v31, %v9645_v22  ;;  %v9594_v22 = vld [vmem:[#allocation2 + $0x10a] sm:$0xff]  ;;  %v9595_v31 = vld [vmem:[#allocation2 + $0x112] sm:$0xff] }
 0xa3c   :  { %14278 = vmatmul.mubr.f32.gmra.mrb[60].mxu1 %v19279_v50  ;;  %v9648_v50 = vld [vmem:[#allocation8 + $0x438] sm:$0xff] }
 0xa3d   :  { %14280 = vmatprep.mubr.f32.mxu1 %v8578_v36  ;;  %v9590_v36 = vld [vmem:[#allocation2 + $0xda] sm:$0xff] }
 0xa40   :  { %14281 = vmatmul.mubr.f32.gmra.mrb[62].mxu1 %v19548_v53  ;;  %v9649_v53 = vld [vmem:[#allocation8 + $0x440] sm:$0xff] }
 0xa41   :  { %14315 = vmatprep.mubr.f32.mxu1 %v19282_v33  ;;  %v15095_v33 = vpack.c.bf16 %v9648_v50, %v9647_v25  ;;  %v9597_v25 = vld [vmem:[#allocation2 + $0x12a] sm:$0xff]  ;;  %v9598_v50 = vld [vmem:[#allocation2 + $0x13a] sm:$0xff] }
 0xa44   :  { %14316 = vmatmul.mubr.f32.vlgmr.msra.gmra.mrb[0].mxu1 %v19286_v6  ;;  %v15099_v6 = vpack.c.bf16 %v9650_v14, %v9649_v53  ;;  %v9600_v53 = vld [vmem:[#allocation2 + $0x152] sm:$0xff]  ;;  %v9601_v14 = vld [vmem:[#allocation2 + $0x15a] sm:$0xff] }
 0xa45   :  { %14318 = vmatprep.mubr.f32.mxu1 %v19289_v17  ;;  %15086 = vmatpush3.bf16.msra.mxu1 %v19543_v16  ;;  %v9651_v17 = vld [vmem:[#allocation8 + $0x450] sm:$0xff]  ;;  %v9652_v16 = vld [vmem:[#allocation8 + $0x458] sm:$0xff] }
 0xa46   :  { %15088 = vmatprep.subr.bf16.mxu1 %v15087_v11 }
 0xa48   :  { %14319 = vmatmul.mubr.f32.gmra.mrb[2].mxu1 %v19292_v1  ;;  %v15103_v1 = vpack.c.bf16 %v9652_v16, %v9651_v17  ;;  %v9603_v17 = vld [vmem:[#allocation2 + $0x172] sm:$0xff]  ;;  %v9606_v16 = vld [vmem:[#allocation2 + $0x19a] sm:$0xff] }
 0xa49   :  { %14321 = vmatprep.mubr.f32.mxu1 %v19295_v12  ;;  %15090 = vmatpush3.bf16.msra.mxu1 %v15087_v11  ;;  %v9653_v12 = vld [vmem:[#allocation8 + $0x460] sm:$0xff] }
 0xa4a   :  { %15092 = vmatprep.subr.bf16.mxu1 %v15091_v20  ;;  %v9593_v11 = vld [vmem:[#allocation2 + $0xfa] sm:$0xff] }
 0xa4c   :  { %14322 = vmatmul.mubr.f32.gmra.mrb[4].mxu1 %v19298_v59  ;;  %v15107_v59 = vpack.c.bf16 %v9654_v29, %v9653_v12  ;;  %v9608_v12 = vld [vmem:[#allocation2 + $0x1e2] sm:$0xff]  ;;  %v9609_v29 = vld [vmem:[#allocation2 + $0x1ea] sm:$0xff] }
 0xa4d   :  { %14324 = vmatprep.mubr.f32.mxu1 %v19301_v56  ;;  %15094 = vmatpush3.bf16.msra.mxu1 %v15091_v20  ;;  %v9655_v56 = vld [vmem:[#allocation8 + $0x470] sm:$0xff]  ;;  %v9596_v20 = vld [vmem:[#allocation2 + $0x122] sm:$0xff] }
 0xa4e   :  { %15096 = vmatprep.subr.bf16.mxu1 %v15095_v33 }
 0xa50   :  { %14325 = vmatmul.mubr.f32.gmra.mrb[6].mxu1 %v19304_v46  ;;  %v15111_v46 = vpack.c.bf16 %v9656_v28, %v9655_v56  ;;  %v9611_v56 = vld [vmem:[#allocation2 + $0x202] sm:$0xff]  ;;  %v9612_v28 = vld [vmem:[#allocation2 + $0x212] sm:$0xff] }
 0xa51   :  { %14327 = vmatprep.mubr.f32.mxu1 %v19307_v34  ;;  %15098 = vmatpush3.bf16.msra.mxu1 %v15095_v33  ;;  %v9076_v34 = vld [vmem:[#allocation2 + $0x199] sm:$0xff]  ;;  %v9599_v33 = vld [vmem:[#allocation2 + $0x142] sm:$0xff] }
 0xa52   :  { %15100 = vmatprep.subr.bf16.mxu1 %v15099_v6 }
 0xa54   :  { %14328 = vmatmul.mubr.f32.gmra.mrb[8].mxu1 %v19310_v2  ;;  %v9077_v2 = vld [vmem:[#allocation2 + $0x1a1] sm:$0xff] }
 0xa55   :  { %14330 = vmatprep.mubr.f32.mxu1 %v19313_v55  ;;  %15102 = vmatpush3.bf16.msra.mxu1 %v15099_v6  ;;  %v21823_v55 = vld [vmem:[#allocation76_spill] sm:$0xff]  ;;  %v9602_v6 = vld [vmem:[#allocation2 + $0x16a] sm:$0xff] }
 0xa56   :  { %15104 = vmatprep.subr.bf16.mxu1 %v15103_v1 }
 0xa58   :  { %14331 = vmatmul.mubr.f32.gmra.mrb[10].mxu1 %v19316_v51  ;;  %v21824_v51 = vld [vmem:[#allocation77_spill] sm:$0xff] }
 0xa59   :  { %14333 = vmatprep.mubr.f32.mxu1 %v19319_v39  ;;  %15106 = vmatpush3.bf16.msra.mxu1 %v15103_v1  ;;  %v21825_v39 = vld [vmem:[#allocation78_spill] sm:$0xff] }
 0xa5a   :  { %15108 = vmatprep.subr.bf16.mxu1 %v15107_v59  ;;  %v9607_v1 = vld [vmem:[#allocation2 + $0x1a2] sm:$0xff] }
 0xa5c   :  { %14334 = vmatmul.mubr.f32.gmra.mrb[12].mxu1 %v19324_v3  ;;  %v21826_v3 = vld [vmem:[#allocation79_spill] sm:$0xff] }
 0xa5d   :  { %14336 = vmatprep.mubr.f32.mxu1 %v19327_v9  ;;  %15110 = vmatpush3.bf16.msra.mxu1 %v15107_v59  ;;  %v21827_v9 = vld [vmem:[#allocation70_spill] sm:$0xff]  ;;  %v9610_v59 = vld [vmem:[#allocation2 + $0x1fa] sm:$0xff] }
 0xa5e   :  { %15112 = vmatprep.subr.bf16.mxu1 %v15111_v46 }
 0xa60   :  { %14337 = vmatmul.mubr.f32.gmra.mrb[14].mxu1 %v19331_v24  ;;  %v21828_v24 = vld [vmem:[#allocation71_spill] sm:$0xff] }
 0xa61   :  { %14339 = vmatprep.mubr.f32.mxu1 %v19334_v23  ;;  %15114 = vmatpush3.bf16.msra.mxu1 %v15111_v46  ;;  %v21829_v23 = vld [vmem:[#allocation80_spill] sm:$0xff] }
 0xa62   :  { %v9613_v46 = vld [vmem:[#allocation2 + $0x21a] sm:$0xff] }
 0xa64   :  { %14340 = vmatmul.mubr.f32.gmra.mrb[16].mxu1 %v19337_v60  ;;  %v21830_v60 = vld [vmem:[#allocation81_spill] sm:$0xff] }
 0xa65   :  { %14342 = vmatprep.mubr.f32.mxu1 %v19340_v35  ;;  %v21831_v35 = vld [vmem:[#allocation13_spill] sm:$0xff] }
 0xa68   :  { %14343 = vmatmul.mubr.f32.gmra.mrb[18].mxu1 %v19343_v7  ;;  %v21832_v7 = vld [vmem:[#allocation14_spill] sm:$0xff] }
 0xa69   :  { %14345 = vmatprep.mubr.f32.mxu1 %v19346_v40  ;;  %v21833_v40 = vld [vmem:[#allocation15_spill] sm:$0xff] }
 0xa6c   :  { %14346 = vmatmul.mubr.f32.gmra.mrb[20].mxu1 %v19349_v45  ;;  %v21834_v45 = vld [vmem:[#allocation16_spill] sm:$0xff] }
 0xa6d   :  { %14348 = vmatprep.mubr.f32.mxu1 %v19352_v18  ;;  %v21835_v18 = vld [vmem:[#allocation17_spill] sm:$0xff] }
 0xa70   :  { %14349 = vmatmul.mubr.f32.gmra.mrb[22].mxu1 %v19355_v38  ;;  %v21836_v38 = vld [vmem:[#allocation18_spill] sm:$0xff] }
 0xa71   :  { %14351 = vmatprep.mubr.f32.mxu1 %v19358_v32  ;;  %v21837_v32 = vld [vmem:[#allocation19_spill] sm:$0xff] }
 0xa74   :  { %14352 = vmatmul.mubr.f32.gmra.mrb[24].mxu1 %v19361_v47  ;;  %v21838_v47 = vld [vmem:[#allocation85_spill] sm:$0xff] }
 0xa75   :  { %14354 = vmatprep.mubr.f32.mxu1 %v19364_v57  ;;  %v21839_v57 = vld [vmem:[#allocation86_spill] sm:$0xff] }
 0xa78   :  { %14355 = vmatmul.mubr.f32.gmra.mrb[26].mxu1 %v19367_v13  ;;  %v21840_v13 = vld [vmem:[#allocation87_spill] sm:$0xff] }
 0xa79   :  { %14357 = vmatprep.mubr.f32.mxu1 %v19370_v58  ;;  %v21841_v58 = vld [vmem:[#allocation88_spill] sm:$0xff] }
 0xa7c   :  { %14358 = vmatmul.mubr.f32.gmra.mrb[28].mxu1 %v19373_v62  ;;  %v9108_v62 = vld [vmem:[#allocation2 + $0x349] sm:$0xff] }
 0xa7d   :  { %14360 = vmatprep.mubr.f32.mxu1 %v9076_v34  ;;  %v9614_v34 = vld [vmem:[#allocation2 + $0x22a] sm:$0xff] }
 0xa80   :  { %14361 = vmatmul.mubr.f32.gmra.mrb[30].mxu1 %v9077_v2  ;;  %v9617_v2 = vld [vmem:[#allocation2 + $0x24a] sm:$0xff] }
 0xa81   :  { %14363 = vmatprep.mubr.f32.mxu1 %v19376_v4  ;;  %v21842_v4 = vld [vmem:[#allocation89_spill] sm:$0xff] }
 0xa84   :  { %14364 = vmatmul.mubr.f32.gmra.mrb[32].mxu1 %v19379_v5  ;;  %v9109_v5 = vld [vmem:[#allocation2 + $0x351] sm:$0xff] }
 0xa85   :  { %14366 = vmatprep.mubr.f32.mxu1 %v19382_v52  ;;  %v9576_v52 = vld [vmem:[#allocation2 + $0x32] sm:$0xff] }
 0xa88   :  { %14367 = vmatmul.mubr.f32.gmra.mrb[34].mxu1 %v19385_v15  ;;  %v9577_v15 = vld [vmem:[#allocation2 + $0x3a] sm:$0xff] }
 0xa89   :  { %14369 = vmatprep.mubr.f32.mxu1 %v19388_v10  ;;  %v9578_v10 = vld [vmem:[#allocation2 + $0x4a] sm:$0xff] }
 0xa8c   :  { %14370 = vmatmul.mubr.f32.gmra.mrb[36].mxu1 %v19391_v26  ;;  %v9579_v26 = vld [vmem:[#allocation2 + $0x52] sm:$0xff] }
 0xa8d   :  { %14372 = vmatprep.mubr.f32.mxu1 %v19394_v49  ;;  %v9580_v49 = vld [vmem:[#allocation2 + $0x62] sm:$0xff] }
 0xa90   :  { %14373 = vmatmul.mubr.f32.gmra.mrb[38].mxu1 %v19397_v0  ;;  %v9581_v0 = vld [vmem:[#allocation2 + $0x6a] sm:$0xff] }
 0xa91   :  { %14375 = vmatprep.mubr.f32.mxu1 %v19400_v48  ;;  %v9582_v48 = vld [vmem:[#allocation2 + $0x7a] sm:$0xff] }
 0xa94   :  { %14376 = vmatmul.mubr.f32.gmra.mrb[40].mxu1 %v19403_v42  ;;  %v9583_v42 = vld [vmem:[#allocation2 + $0x82] sm:$0xff] }
 0xa95   :  { %14378 = vmatprep.mubr.f32.mxu1 %v21823_v55  ;;  %v9618_v55 = vld [vmem:[#allocation2 + $0x25a] sm:$0xff] }
 0xa98   :  { %14379 = vmatmul.mubr.f32.gmra.mrb[42].mxu1 %v21824_v51  ;;  %v9619_v51 = vld [vmem:[#allocation2 + $0x262] sm:$0xff] }
 0xa99   :  { %14381 = vmatprep.mubr.f32.mxu1 %v21825_v39  ;;  %v9620_v39 = vld [vmem:[#allocation2 + $0x272] sm:$0xff] }
 0xa9c   :  { %14382 = vmatmul.mubr.f32.gmra.mrb[44].mxu1 %v21826_v3  ;;  %v9621_v3 = vld [vmem:[#allocation2 + $0x27a] sm:$0xff] }
 0xa9d   :  { %14384 = vmatprep.mubr.f32.mxu1 %v21827_v9  ;;  %v9622_v9 = vld [vmem:[#allocation2 + $0x28a] sm:$0xff] }
 0xaa0   :  { %14385 = vmatmul.mubr.f32.gmra.mrb[46].mxu1 %v21828_v24  ;;  %v9623_v24 = vld [vmem:[#allocation2 + $0x292] sm:$0xff] }
 0xaa1   :  { %14387 = vmatprep.mubr.f32.mxu1 %v21829_v23  ;;  %v9624_v23 = vld [vmem:[#allocation2 + $0x2a2] sm:$0xff] }
 0xaa4   :  { %14388 = vmatmul.mubr.f32.gmra.mrb[48].mxu1 %v21830_v60  ;;  %v9625_v60 = vld [vmem:[#allocation2 + $0x2aa] sm:$0xff] }
 0xaa5   :  { %14390 = vmatprep.mubr.f32.mxu1 %v21831_v35  ;;  %v9626_v35 = vld [vmem:[#allocation2 + $0x2ba] sm:$0xff] }
 0xaa8   :  { %14391 = vmatmul.mubr.f32.gmra.mrb[50].mxu1 %v21832_v7  ;;  %v9627_v7 = vld [vmem:[#allocation2 + $0x2c2] sm:$0xff] }
 0xaa9   :  { %14393 = vmatprep.mubr.f32.mxu1 %v21833_v40  ;;  %v9628_v40 = vld [vmem:[#allocation2 + $0x2d2] sm:$0xff] }
 0xaac   :  { %14394 = vmatmul.mubr.f32.gmra.mrb[52].mxu1 %v21834_v45  ;;  %v9629_v45 = vld [vmem:[#allocation2 + $0x2da] sm:$0xff] }
 0xaad   :  { %14396 = vmatprep.mubr.f32.mxu1 %v21835_v18  ;;  %v9630_v18 = vld [vmem:[#allocation2 + $0x2ea] sm:$0xff] }
 0xab0   :  { %14397 = vmatmul.mubr.f32.gmra.mrb[54].mxu1 %v21836_v38  ;;  %v9631_v38 = vld [vmem:[#allocation2 + $0x2f2] sm:$0xff] }
 0xab1   :  { %14399 = vmatprep.mubr.f32.mxu1 %v21837_v32  ;;  %v9632_v32 = vld [vmem:[#allocation2 + $0x302] sm:$0xff] }
 0xab4   :  { %14400 = vmatmul.mubr.f32.gmra.mrb[56].mxu1 %v21838_v47  ;;  %v9633_v47 = vld [vmem:[#allocation2 + $0x30a] sm:$0xff] }
 0xab5   :  { %14402 = vmatprep.mubr.f32.mxu1 %v21839_v57  ;;  %v9634_v57 = vld [vmem:[#allocation2 + $0x31a] sm:$0xff] }
 0xab8   :  { %14403 = vmatmul.mubr.f32.gmra.mrb[58].mxu1 %v21840_v13  ;;  %v9635_v13 = vld [vmem:[#allocation2 + $0x322] sm:$0xff] }
 0xab9   :  { %14405 = vmatprep.mubr.f32.mxu1 %v21841_v58  ;;  %v9638_v58 = vld [vmem:[#allocation2 + $0x34a] sm:$0xff] }
 0xabc   :  { %14406 = vmatmul.mubr.f32.gmra.mrb[60].mxu1 %v21842_v4 }
 0xabd   :  { %14408 = vmatprep.mubr.f32.mxu1 %v9108_v62  ;;  %v9639_v62 = vld [vmem:[#allocation2 + $0x352] sm:$0xff] }
 0xac0   :  { %14409 = vmatmul.mubr.f32.gmra.mrb[62].mxu1 %v9109_v5 }
 0xac1   :  { %14443 = vmatprep.mubr.f32.mxu1 %v9576_v52 }
 0xac4   :  { %14444 = vmatmul.mubr.f32.vlgmr.msra.gmra.mrb[0].mxu1 %v9577_v15 }
 0xac5   :  { %14446 = vmatprep.mubr.f32.mxu1 %v9578_v10 }
 0xac8   :  { %14447 = vmatmul.mubr.f32.gmra.mrb[2].mxu1 %v9579_v26 }
 0xac9   :  { %14449 = vmatprep.mubr.f32.mxu1 %v9580_v49 }
 0xacc   :  { %14450 = vmatmul.mubr.f32.gmra.mrb[4].mxu1 %v9581_v0 }
 0xacd   :  { %14452 = vmatprep.mubr.f32.mxu1 %v9582_v48 }
 0xad0   :  { %14453 = vmatmul.mubr.f32.gmra.mrb[6].mxu1 %v9583_v42 }
 0xad1   :  { %14455 = vmatprep.mubr.f32.mxu1 %v9584_v54 }
 0xad4   :  { %14456 = vmatmul.mubr.f32.gmra.mrb[8].mxu1 %v9585_v61 }
 0xad5   :  { %14458 = vmatprep.mubr.f32.mxu1 %v9586_v44 }
 0xad8   :  { %14459 = vmatmul.mubr.f32.gmra.mrb[10].mxu1 %v9587_v21 }
 0xad9   :  { %14461 = vmatprep.mubr.f32.mxu1 %v9588_v30 }
 0xadc   :  { %14462 = vmatmul.mubr.f32.gmra.mrb[12].mxu1 %v9589_v19 }
 0xadd   :  { %14464 = vmatprep.mubr.f32.mxu1 %v9590_v36 }
 0xae0   :  { %14465 = vmatmul.mubr.f32.gmra.mrb[14].mxu1 %v9591_v27 }
 0xae1   :  { %14467 = vmatprep.mubr.f32.mxu1 %v9592_v37 }
 0xae4   :  { %14468 = vmatmul.mubr.f32.gmra.mrb[16].mxu1 %v9593_v11 }
 0xae5   :  { %14470 = vmatprep.mubr.f32.mxu1 %v9594_v22 }
 0xae8   :  { %14471 = vmatmul.mubr.f32.gmra.mrb[18].mxu1 %v9595_v31 }
 0xae9   :  { %14473 = vmatprep.mubr.f32.mxu1 %v9596_v20 }
 0xaec   :  { %14474 = vmatmul.mubr.f32.gmra.mrb[20].mxu1 %v9597_v25 }
 0xaed   :  { %14476 = vmatprep.mubr.f32.mxu1 %v9598_v50 }
 0xaf0   :  { %14477 = vmatmul.mubr.f32.gmra.mrb[22].mxu1 %v9599_v33 }
 0xaf1   :  { %14479 = vmatprep.mubr.f32.mxu1 %v9600_v53 }
 0xaf4   :  { %14480 = vmatmul.mubr.f32.gmra.mrb[24].mxu1 %v9601_v14 }
 0xaf5   :  { %14482 = vmatprep.mubr.f32.mxu1 %v9602_v6 }
 0xaf8   :  { %14483 = vmatmul.mubr.f32.gmra.mrb[26].mxu1 %v9603_v17 }
 0xaf9   :  { %14485 = vmatprep.mubr.f32.mxu1 %v19500_v43  ;;  %v9615_v43 = vld [vmem:[#allocation2 + $0x232] sm:$0xff] }
 0xafc   :  { %14486 = vmatmul.mubr.f32.gmra.mrb[28].mxu1 %v19503_v8  ;;  %v9616_v8 = vld [vmem:[#allocation2 + $0x242] sm:$0xff] }
 0xafd   :  { %14488 = vmatprep.mubr.f32.mxu1 %v9606_v16 }
 0xb00   :  { %14489 = vmatmul.mubr.f32.gmra.mrb[30].mxu1 %v9607_v1 }
 0xb01   :  { %14491 = vmatprep.mubr.f32.mxu1 %v9608_v12 }
 0xb04   :  { %14492 = vmatmul.mubr.f32.gmra.mrb[32].mxu1 %v9609_v29 }
 0xb05   :  { %14494 = vmatprep.mubr.f32.mxu1 %v9610_v59 }
 0xb08   :  { %14495 = vmatmul.mubr.f32.gmra.mrb[34].mxu1 %v9611_v56 }
 0xb09   :  { %14497 = vmatprep.mubr.f32.mxu1 %v9612_v28 }
 0xb0c   :  { %14498 = vmatmul.mubr.f32.gmra.mrb[36].mxu1 %v9613_v46 }
 0xb0d   :  { %14500 = vmatprep.mubr.f32.mxu1 %v9614_v34 }
 0xb10   :  { %14501 = vmatmul.mubr.f32.gmra.mrb[38].mxu1 %v9615_v43 }
 0xb11   :  { %14503 = vmatprep.mubr.f32.mxu1 %v9616_v8 }
 0xb14   :  { %14504 = vmatmul.mubr.f32.gmra.mrb[40].mxu1 %v9617_v2 }
 0xb15   :  { %14506 = vmatprep.mubr.f32.mxu1 %v9618_v55 }
 0xb18   :  { %14507 = vmatmul.mubr.f32.gmra.mrb[42].mxu1 %v9619_v51 }
 0xb19   :  { %14509 = vmatprep.mubr.f32.mxu1 %v9620_v39 }
 0xb1c   :  { %14510 = vmatmul.mubr.f32.gmra.mrb[44].mxu1 %v9621_v3 }
 0xb1d   :  { %14512 = vmatprep.mubr.f32.mxu1 %v9622_v9 }
 0xb20   :  { %14513 = vmatmul.mubr.f32.gmra.mrb[46].mxu1 %v9623_v24 }
 0xb21   :  { %14515 = vmatprep.mubr.f32.mxu1 %v9624_v23 }
 0xb24   :  { %14516 = vmatmul.mubr.f32.gmra.mrb[48].mxu1 %v9625_v60 }
 0xb25   :  { %14518 = vmatprep.mubr.f32.mxu1 %v9626_v35 }
 0xb28   :  { %14519 = vmatmul.mubr.f32.gmra.mrb[50].mxu1 %v9627_v7 }
 0xb29   :  { %14521 = vmatprep.mubr.f32.mxu1 %v9628_v40 }
 0xb2c   :  { %14522 = vmatmul.mubr.f32.gmra.mrb[52].mxu1 %v9629_v45 }
 0xb2d   :  { %14524 = vmatprep.mubr.f32.mxu1 %v9630_v18 }
 0xb30   :  { %14525 = vmatmul.mubr.f32.gmra.mrb[54].mxu1 %v9631_v38 }
 0xb31   :  { %14527 = vmatprep.mubr.f32.mxu1 %v9632_v32 }
 0xb34   :  { %14528 = vmatmul.mubr.f32.gmra.mrb[56].mxu1 %v9633_v47 }
 0xb35   :  { %14530 = vmatprep.mubr.f32.mxu1 %v9634_v57 }
 0xb38   :  { %14531 = vmatmul.mubr.f32.gmra.mrb[58].mxu1 %v9635_v13 }
 0xb39   :  { %14533 = vmatprep.mubr.f32.mxu1 %v19536_v63 }
 0xb3c   :  { %14534 = vmatmul.mubr.f32.gmra.mrb[60].mxu1 %v19539_v41 }
 0xb3d   :  { %14536 = vmatprep.mubr.f32.mxu1 %v9638_v58 }
 0xb40   :  { %14537 = vmatmul.mubr.f32.gmra.mrb[62].mxu1 %v9639_v62 }
 0xb97   :  { %v19619_v4 = vpop.f32.mrb[0].mxu1 }
 0xb98   :  { %v19621_v5 = vpop.f32.mrb[1].mxu1 }
 0xb99   :  { %v10108_v52 = vadd.f32 %v19619_v4, %v19621_v5 }
 0xb9b   :  { %v19625_v15 = vpop.f32.mrb[2].mxu1 }
 0xb9c   :  { %v19627_v10 = vpop.f32.mrb[3].mxu1 }
 0xb9d   :  { %v10109_v26 = vadd.f32 %v10108_v52, %v19627_v10 }
 0xb9f   :  { %v10110_v63 = vadd.f32 %v19625_v15, %v10109_v26  ;;  %v19631_v49 = vpop.f32.mrb[4].mxu1 }
 0xba0   :  { %v19633_v41 = vpop.f32.mrb[5].mxu1 }
 0xba1   :  { %v10111_v0 = vadd.f32 %v10110_v63, %v19633_v41 }
 0xba3   :  { %v19636_v48 = vpop.f32.mrb[6].mxu1  ;;  %v10112_v42 = vadd.f32 %v19631_v49, %v10111_v0 }
 0xba4   :  { %v19639_v54 = vpop.f32.mrb[7].mxu1 }
 0xba5   :  { %v10113_v61 = vadd.f32 %v10112_v42, %v19639_v54 }
 0xba7   :  { %v19642_v44 = vpop.f32.mrb[8].mxu1  ;;  %v10114_v21 = vadd.f32 %v19636_v48, %v10113_v61 }
 0xba8   :  { %v19645_v30 = vpop.f32.mrb[9].mxu1 }
 0xba9   :  { %v10115_v19 = vadd.f32 %v10114_v21, %v19645_v30 }
 0xbab   :  { %v19648_v36 = vpop.f32.mrb[10].mxu1  ;;  %v10116_v27 = vadd.f32 %v19642_v44, %v10115_v19 }
 0xbac   :  { %v19651_v37 = vpop.f32.mrb[11].mxu1 }
 0xbad   :  { %v10117_v11 = vadd.f32 %v10116_v27, %v19651_v37 }
 0xbaf   :  { %v19654_v22 = vpop.f32.mrb[12].mxu1  ;;  %v10118_v31 = vadd.f32 %v19648_v36, %v10117_v11 }
 0xbb0   :  { %v19657_v20 = vpop.f32.mrb[13].mxu1 }
 0xbb1   :  { %v10119_v25 = vadd.f32 %v10118_v31, %v19657_v20 }
 0xbb3   :  { %v19660_v50 = vpop.f32.mrb[14].mxu1  ;;  %v10120_v33 = vadd.f32 %v19654_v22, %v10119_v25 }
 0xbb4   :  { %v19663_v53 = vpop.f32.mrb[15].mxu1 }
 0xbb5   :  { %v10121_v14 = vadd.f32 %v10120_v33, %v19663_v53 }
 0xbb7   :  { %v19666_v6 = vpop.f32.mrb[16].mxu1  ;;  %v10122_v17 = vadd.f32 %v19660_v50, %v10121_v14 }
 0xbb8   :  { %v19669_v16 = vpop.f32.mrb[17].mxu1 }
 0xbb9   :  { %v10123_v1 = vadd.f32 %v10122_v17, %v19669_v16 }
 0xbbb   :  { %v19672_v12 = vpop.f32.mrb[18].mxu1  ;;  %v10124_v29 = vadd.f32 %v19666_v6, %v10123_v1 }
 0xbbc   :  { %v19675_v59 = vpop.f32.mrb[19].mxu1 }
 0xbbd   :  { %v10125_v56 = vadd.f32 %v10124_v29, %v19675_v59 }
 0xbbf   :  { %v19678_v28 = vpop.f32.mrb[20].mxu1  ;;  %v10126_v46 = vadd.f32 %v19672_v12, %v10125_v56 }
 0xbc0   :  { %v19681_v34 = vpop.f32.mrb[21].mxu1 }
 0xbc1   :  { %v10127_v43 = vadd.f32 %v10126_v46, %v19681_v34 }
 0xbc3   :  { %v19684_v8 = vpop.f32.mrb[22].mxu1  ;;  %v10128_v2 = vadd.f32 %v19678_v28, %v10127_v43 }
 0xbc4   :  { %v19687_v55 = vpop.f32.mrb[23].mxu1 }
 0xbc5   :  { %v10129_v51 = vadd.f32 %v10128_v2, %v19687_v55 }
 0xbc7   :  { %v19690_v39 = vpop.f32.mrb[24].mxu1  ;;  %v10130_v3 = vadd.f32 %v19684_v8, %v10129_v51 }
 0xbc8   :  { %v19693_v9 = vpop.f32.mrb[25].mxu1 }
 0xbc9   :  { %v10131_v24 = vadd.f32 %v10130_v3, %v19693_v9 }
 0xbcb   :  { %v19696_v23 = vpop.f32.mrb[26].mxu1  ;;  %v10132_v60 = vadd.f32 %v19690_v39, %v10131_v24 }
 0xbcc   :  { %v19699_v35 = vpop.f32.mrb[27].mxu1 }
 0xbcd   :  { %v10133_v7 = vadd.f32 %v10132_v60, %v19699_v35 }
 0xbcf   :  { %v19702_v40 = vpop.f32.mrb[28].mxu1  ;;  %v10134_v45 = vadd.f32 %v19696_v23, %v10133_v7 }
 0xbd0   :  { %v19705_v18 = vpop.f32.mrb[29].mxu1 }
 0xbd1   :  { %v10135_v38 = vadd.f32 %v10134_v45, %v19705_v18 }
 0xbd3   :  { %v19708_v32 = vpop.f32.mrb[30].mxu1  ;;  %v10136_v47 = vadd.f32 %v19702_v40, %v10135_v38 }
 0xbd4   :  { %v19711_v57 = vpop.f32.mrb[31].mxu1 }
 0xbd5   :  { %v10137_v13 = vadd.f32 %v10136_v47, %v19711_v57 }
 0xbd7   :  { %v19714_v58 = vpop.f32.mrb[32].mxu1  ;;  %v10138_v62 = vadd.f32 %v19708_v32, %v10137_v13 }
 0xbd8   :  { %v19717_v52 = vpop.f32.mrb[33].mxu1 }
 0xbd9   :  { %v10139_v26 = vadd.f32 %v10138_v62, %v19717_v52 }
 0xbdb   :  { %v19720_v63 = vpop.f32.mrb[34].mxu1  ;;  %v10140_v0 = vadd.f32 %v19714_v58, %v10139_v26 }
 0xbdc   :  { %v19723_v42 = vpop.f32.mrb[35].mxu1 }
 0xbdd   :  { %v10141_v61 = vadd.f32 %v10140_v0, %v19723_v42 }
 0xbdf   :  { %v19726_v21 = vpop.f32.mrb[36].mxu1  ;;  %v10142_v19 = vadd.f32 %v19720_v63, %v10141_v61 }
 0xbe0   :  { %v19729_v27 = vpop.f32.mrb[37].mxu1 }
 0xbe1   :  { %v10143_v11 = vadd.f32 %v10142_v19, %v19729_v27 }
 0xbe3   :  { %v19732_v31 = vpop.f32.mrb[38].mxu1  ;;  %v10144_v25 = vadd.f32 %v19726_v21, %v10143_v11 }
 0xbe4   :  { %v19735_v33 = vpop.f32.mrb[39].mxu1 }
 0xbe5   :  { %v10145_v14 = vadd.f32 %v10144_v25, %v19735_v33 }
 0xbe7   :  { %v19738_v17 = vpop.f32.mrb[40].mxu1  ;;  %v10146_v1 = vadd.f32 %v19732_v31, %v10145_v14 }
 0xbe8   :  { %v19741_v29 = vpop.f32.mrb[41].mxu1 }
 0xbe9   :  { %v10147_v56 = vadd.f32 %v10146_v1, %v19741_v29 }
 0xbeb   :  { %v19744_v46 = vpop.f32.mrb[42].mxu1  ;;  %v10148_v43 = vadd.f32 %v19738_v17, %v10147_v56 }
 0xbec   :  { %v19747_v2 = vpop.f32.mrb[43].mxu1 }
 0xbed   :  { %v10149_v51 = vadd.f32 %v10148_v43, %v19747_v2 }
 0xbef   :  { %v19750_v3 = vpop.f32.mrb[44].mxu1  ;;  %v10150_v24 = vadd.f32 %v19744_v46, %v10149_v51 }
 0xbf0   :  { %v19753_v60 = vpop.f32.mrb[45].mxu1 }
 0xbf1   :  { %v10151_v7 = vadd.f32 %v10150_v24, %v19753_v60 }
 0xbf3   :  { %v19756_v45 = vpop.f32.mrb[46].mxu1  ;;  %v10152_v38 = vadd.f32 %v19750_v3, %v10151_v7 }
 0xbf4   :  { %v19759_v47 = vpop.f32.mrb[47].mxu1 }
 0xbf5   :  { %v10153_v13 = vadd.f32 %v10152_v38, %v19759_v47 }
 0xbf7   :  { %v19762_v62 = vpop.f32.mrb[48].mxu1  ;;  %v10154_v26 = vadd.f32 %v19756_v45, %v10153_v13 }
 0xbf8   :  { %21843 = vst [vmem:[#allocation20_spill] sm:$0xff] %v19762_v62  ;;  %v19765_v0 = vpop.f32.mrb[49].mxu1 }
 0xbf9   :  { %21844 = vst [vmem:[#allocation21_spill] sm:$0xff] %v19765_v0  ;;  %v10155_v61 = vadd.f32 %v10154_v26, %v19765_v0 }
 0xbfb   :  { %v19768_v19 = vpop.f32.mrb[50].mxu1  ;;  %v10156_v11 = vadd.f32 %v19762_v62, %v10155_v61 }
 0xbfc   :  { %21845 = vst [vmem:[#allocation22_spill] sm:$0xff] %v19768_v19  ;;  %v19771_v25 = vpop.f32.mrb[51].mxu1 }
 0xbfd   :  { %21846 = vst [vmem:[#allocation82_spill] sm:$0xff] %v19771_v25  ;;  %v10157_v14 = vadd.f32 %v10156_v11, %v19771_v25 }
 0xbff   :  { %v19774_v1 = vpop.f32.mrb[52].mxu1  ;;  %v10158_v56 = vadd.f32 %v19768_v19, %v10157_v14 }
 0xc00   :  { %21847 = vst [vmem:[#allocation83_spill] sm:$0xff] %v19774_v1  ;;  %v19777_v43 = vpop.f32.mrb[53].mxu1 }
 0xc01   :  { %21848 = vst [vmem:[#allocation84_spill] sm:$0xff] %v19777_v43  ;;  %v10159_v51 = vadd.f32 %v10158_v56, %v19777_v43 }
 0xc03   :  { %v19780_v24 = vpop.f32.mrb[54].mxu1  ;;  %v10160_v7 = vadd.f32 %v19774_v1, %v10159_v51 }
 0xc04   :  { %21849 = vst [vmem:[#allocation23_spill] sm:$0xff] %v19780_v24  ;;  %v19783_v38 = vpop.f32.mrb[55].mxu1 }
 0xc05   :  { %21850 = vst [vmem:[#allocation24_spill] sm:$0xff] %v19783_v38  ;;  %v10161_v13 = vadd.f32 %v10160_v7, %v19783_v38 }
 0xc07   :  { %v19786_v26 = vpop.f32.mrb[56].mxu1  ;;  %v10162_v61 = vadd.f32 %v19780_v24, %v10161_v13 }
 0xc08   :  { %21851 = vst [vmem:[#allocation25_spill] sm:$0xff] %v19786_v26  ;;  %v19789_v11 = vpop.f32.mrb[57].mxu1 }
 0xc09   :  { %21852 = vst [vmem:[#allocation26_spill] sm:$0xff] %v19789_v11  ;;  %v10163_v14 = vadd.f32 %v10162_v61, %v19789_v11 }
 0xc0b   :  { %v19792_v19 = vpop.f32.mrb[58].mxu1  ;;  %v10164_v56 = vadd.f32 %v19786_v26, %v10163_v14 }
 0xc0c   :  { %21853 = vst [vmem:[#allocation28_spill] sm:$0xff] %v19792_v19  ;;  %v19795_v43 = vpop.f32.mrb[59].mxu1 }
 0xc0d   :  { %21854 = vst [vmem:[#allocation27_spill] sm:$0xff] %v19795_v43  ;;  %v10165_v51 = vadd.f32 %v10164_v56, %v19795_v43 }
 0xc0f   :  { %v19798_v1 = vpop.f32.mrb[60].mxu1  ;;  %v10166_v7 = vadd.f32 %v19792_v19, %v10165_v51 }
 0xc10   :  { %v19801_v38 = vpop.f32.mrb[61].mxu1 }
 0xc11   :  { %v10167_v13 = vadd.f32 %v10166_v7, %v19801_v38 }
 0xc13   :  { %v19804_v24 = vpop.f32.mrb[62].mxu1  ;;  %v10168_v61 = vadd.f32 %v19798_v1, %v10167_v13 }
 0xc14   :  { %v19807_v11 = vpop.f32.mrb[63].mxu1 }
 0xc15   :  { %v10169_v14 = vadd.f32 %v10168_v61, %v19807_v11 }
 0xc17   :  { %v10170_v26 = vadd.f32 %v19804_v24, %v10169_v14  ;;  %v21869_v14 = vld [vmem:[#allocation22_spill] sm:$0xff] }
 0xc19   :  { %v10171_v25 = vrot.slane %v10170_v26, 4 }
 0xc1b   :  { %v10172_v56 = vadd.f32 %v10171_v25, %v10170_v26  ;;  %v21867_v26 = vld [vmem:[#allocation82_spill] sm:$0xff] }
 0xc1d   :  { %v10173_v43 = vrot.slane %v10172_v56, 2 }
 0xc1f   :  { %v10174_v62 = vadd.f32 %v10173_v43, %v10172_v56  ;;  %v21865_v43 = vld [vmem:[#allocation20_spill] sm:$0xff] }
 0xc20   :  { %v21871_v56 = vld [vmem:[#allocation84_spill] sm:$0xff] }
 0xc21   :  { %v10175_v0 = vrot.slane %v10174_v62, 1 }
 0xc23   :  { %v10176_v51 = vadd.f32 %v10175_v0, %v10174_v62  ;;  %v21863_v0 = vld [vmem:[#allocation21_spill] sm:$0xff] }
 0xc25   :  { %v19811_v19 = vmul.f32 0.001953125, %v10176_v51  ;;  %v21873_v51 = vld [vmem:[#allocation83_spill] sm:$0xff] }
 0xc27   :  { %v19815_v7 = vsub.f32 %v19621_v5, %v19811_v19  ;;  %v19819_v13 = vsub.f32 %v19619_v4, %v19811_v19  ;;  %v19823_v61 = vsub.f32 %v19627_v10, %v19811_v19  ;;  %v19827_v25 = vsub.f32 %v19625_v15, %v19811_v19 }
 0xc28   :  { %v19831_v62 = vsub.f32 %v19633_v41, %v19811_v19  ;;  %v19835_v5 = vsub.f32 %v19631_v49, %v19811_v19  ;;  %v19839_v4 = vsub.f32 %v19639_v54, %v19811_v19  ;;  %v19843_v10 = vsub.f32 %v19636_v48, %v19811_v19 }
 0xc29   :  { %21855 = vst [vmem:[#allocation30_spill] sm:$0xff] %v19815_v7  ;;  %21856 = vst [vmem:[#allocation29_spill] sm:$0xff] %v19819_v13  ;;  %v19847_v15 = vsub.f32 %v19645_v30, %v19811_v19  ;;  %v19851_v41 = vsub.f32 %v19642_v44, %v19811_v19  ;;  %v19855_v49 = vsub.f32 %v19651_v37, %v19811_v19 }
 0xc2a   :  { %21857 = vst [vmem:[#allocation32_spill] sm:$0xff] %v19823_v61  ;;  %v19859_v54 = vsub.f32 %v19648_v36, %v19811_v19  ;;  %v19863_v48 = vsub.f32 %v19657_v20, %v19811_v19  ;;  %v19867_v30 = vsub.f32 %v19654_v22, %v19811_v19  ;;  %v19871_v44 = vsub.f32 %v19663_v53, %v19811_v19 }
 0xc2b   :  { %v19875_v37 = vsub.f32 %v19660_v50, %v19811_v19  ;;  %v19879_v36 = vsub.f32 %v19669_v16, %v19811_v19  ;;  %v19883_v20 = vsub.f32 %v19666_v6, %v19811_v19  ;;  %v19887_v22 = vsub.f32 %v19675_v59, %v19811_v19 }
 0xc2c   :  { %v19891_v53 = vsub.f32 %v19672_v12, %v19811_v19  ;;  %v19895_v50 = vsub.f32 %v19681_v34, %v19811_v19  ;;  %v19899_v16 = vsub.f32 %v19678_v28, %v19811_v19  ;;  %v19903_v6 = vsub.f32 %v19687_v55, %v19811_v19 }
 0xc2d   :  { %v19907_v59 = vsub.f32 %v19684_v8, %v19811_v19  ;;  %v19911_v12 = vsub.f32 %v19693_v9, %v19811_v19  ;;  %v19915_v34 = vsub.f32 %v19690_v39, %v19811_v19  ;;  %v19919_v28 = vsub.f32 %v19699_v35, %v19811_v19 }
 0xc2e   :  { %v19923_v55 = vsub.f32 %v19696_v23, %v19811_v19  ;;  %v19927_v8 = vsub.f32 %v19705_v18, %v19811_v19  ;;  %v19931_v9 = vsub.f32 %v19702_v40, %v19811_v19  ;;  %v19935_v39 = vsub.f32 %v19711_v57, %v19811_v19 }
 0xc2f   :  { %v19939_v35 = vsub.f32 %v19708_v32, %v19811_v19  ;;  %v19943_v23 = vsub.f32 %v19717_v52, %v19811_v19  ;;  %v19947_v18 = vsub.f32 %v19714_v58, %v19811_v19  ;;  %v19951_v40 = vsub.f32 %v19723_v42, %v19811_v19 }
 0xc30   :  { %v19955_v57 = vsub.f32 %v19720_v63, %v19811_v19  ;;  %v19959_v32 = vsub.f32 %v19729_v27, %v19811_v19  ;;  %v19963_v52 = vsub.f32 %v19726_v21, %v19811_v19  ;;  %v19967_v58 = vsub.f32 %v19735_v33, %v19811_v19 }
 0xc31   :  { %v19971_v42 = vsub.f32 %v19732_v31, %v19811_v19  ;;  %v19975_v63 = vsub.f32 %v19741_v29, %v19811_v19  ;;  %v19979_v27 = vsub.f32 %v19738_v17, %v19811_v19  ;;  %v19983_v21 = vsub.f32 %v19747_v2, %v19811_v19 }
 0xc32   :  { %v19987_v33 = vsub.f32 %v19744_v46, %v19811_v19  ;;  %v19991_v31 = vsub.f32 %v19753_v60, %v19811_v19  ;;  %v19995_v29 = vsub.f32 %v19750_v3, %v19811_v19  ;;  %v19999_v17 = vsub.f32 %v19759_v47, %v19811_v19 }
 0xc33   :  { %v20003_v2 = vsub.f32 %v19756_v45, %v19811_v19  ;;  %v20007_v46 = vsub.f32 %v21863_v0, %v19811_v19  ;;  %v20011_v60 = vsub.f32 %v21865_v43, %v19811_v19  ;;  %v20015_v3 = vsub.f32 %v21867_v26, %v19811_v19 }
 0xc34   :  { %21858 = vst [vmem:[#allocation31_spill] sm:$0xff] %v19987_v33  ;;  %21859 = vst [vmem:[#allocation34_spill] sm:$0xff] %v19991_v31  ;;  %v20019_v47 = vsub.f32 %v21869_v14, %v19811_v19  ;;  %v20023_v45 = vsub.f32 %v21871_v56, %v19811_v19  ;;  %v20027_v0 = vsub.f32 %v21873_v51, %v19811_v19 }
 0xc35   :  { %21860 = vst [vmem:[#allocation33_spill] sm:$0xff] %v19995_v29  ;;  %21861 = vst [vmem:[#allocation36_spill] sm:$0xff] %v19999_v17 }
 0xc36   :  { %21862 = vst [vmem:[#allocation35_spill] sm:$0xff] %v20003_v2  ;;  %21864 = vst [vmem:[#allocation38_spill] sm:$0xff] %v20007_v46  ;;  %v21875_v46 = vld [vmem:[#allocation24_spill] sm:$0xff] }
 0xc37   :  { %21866 = vst [vmem:[#allocation37_spill] sm:$0xff] %v20011_v60  ;;  %21868 = vst [vmem:[#allocation48_spill] sm:$0xff] %v20015_v3  ;;  %v20031_v43 = vsub.f32 %v21875_v46, %v19811_v19  ;;  %v21877_v60 = vld [vmem:[#allocation23_spill] sm:$0xff]  ;;  %v21879_v3 = vld [vmem:[#allocation26_spill] sm:$0xff] }
 0xc38   :  { %21870 = vst [vmem:[#allocation49_spill] sm:$0xff] %v20019_v47  ;;  %21872 = vst [vmem:[#allocation52_spill] sm:$0xff] %v20023_v45  ;;  %v20035_v26 = vsub.f32 %v21877_v60, %v19811_v19  ;;  %v20039_v14 = vsub.f32 %v21879_v3, %v19811_v19  ;;  %v21881_v47 = vld [vmem:[#allocation25_spill] sm:$0xff]  ;;  %v21883_v45 = vld [vmem:[#allocation27_spill] sm:$0xff]  ;;  %v20055_v60 = vsub.f32 %v19801_v38, %v19811_v19 }
 0xc39   :  { %21874 = vst [vmem:[#allocation61_spill] sm:$0xff] %v20027_v0  ;;  %21876 = vst [vmem:[#allocation39_spill] sm:$0xff] %v20031_v43  ;;  %v20043_v56 = vsub.f32 %v21881_v47, %v19811_v19  ;;  %v20047_v51 = vsub.f32 %v21883_v45, %v19811_v19  ;;  %v21885_v0 = vld [vmem:[#allocation28_spill] sm:$0xff]  ;;  %v20059_v3 = vsub.f32 %v19798_v1, %v19811_v19 }
 0xc3a   :  { %21878 = vst [vmem:[#allocation40_spill] sm:$0xff] %v20035_v26  ;;  %21880 = vst [vmem:[#allocation41_spill] sm:$0xff] %v20039_v14  ;;  %v20051_v46 = vsub.f32 %v21885_v0, %v19811_v19  ;;  %v20063_v47 = vsub.f32 %v19807_v11, %v19811_v19  ;;  %v20067_v45 = vsub.f32 %v19804_v24, %v19811_v19 }
 0xc3b   :  { %21882 = vst [vmem:[#allocation42_spill] sm:$0xff] %v20043_v56  ;;  %21884 = vst [vmem:[#allocation43_spill] sm:$0xff] %v20047_v51  ;;  %v10242_v0 = vmul.f32 %v19815_v7, %v19815_v7  ;;  %v10244_v38 = vmul.f32 %v19823_v61, %v19823_v61  ;;  %v10245_v1 = vmul.f32 %v19827_v25, %v19827_v25 }
 0xc3c   :  { %21886 = vst [vmem:[#allocation44_spill] sm:$0xff] %v20051_v46  ;;  %21887 = vst [vmem:[#allocation45_spill] sm:$0xff] %v20055_v60  ;;  %v10243_v46 = vmul.f32 %v19819_v13, %v19819_v13  ;;  %v10246_v11 = vmul.f32 %v19831_v62, %v19831_v62  ;;  %v10247_v19 = vmul.f32 %v19835_v5, %v19835_v5 }
 0xc3d   :  { %21888 = vst [vmem:[#allocation46_spill] sm:$0xff] %v20059_v3  ;;  %21889 = vst [vmem:[#allocation47_spill] sm:$0xff] %v20063_v47  ;;  %v10248_v7 = vmul.f32 %v19839_v4, %v19839_v4  ;;  %v10249_v61 = vmul.f32 %v19843_v10, %v19843_v10 }
 0xc3e   :  { %21890 = vst [vmem:[#allocation50_spill] sm:$0xff] %v20067_v45  ;;  %v10306_v60 = vadd.f32 %v10243_v46, %v10242_v0  ;;  %v10250_v0 = vmul.f32 %v19847_v15, %v19847_v15 }
 0xc40   :  { %v10307_v3 = vadd.f32 %v10306_v60, %v10244_v38  ;;  %v10251_v38 = vmul.f32 %v19851_v41, %v19851_v41 }
 0xc42   :  { %v10308_v47 = vadd.f32 %v10307_v3, %v10245_v1  ;;  %v10252_v1 = vmul.f32 %v19855_v49, %v19855_v49 }
 0xc44   :  { %v10309_v24 = vadd.f32 %v10308_v47, %v10246_v11  ;;  %v10253_v11 = vmul.f32 %v19859_v54, %v19859_v54 }
 0xc46   :  { %v10310_v13 = vadd.f32 %v10309_v24, %v10247_v19  ;;  %v10254_v24 = vmul.f32 %v19863_v48, %v19863_v48 }
 0xc48   :  { %v10311_v46 = vadd.f32 %v10310_v13, %v10248_v7  ;;  %v10255_v13 = vmul.f32 %v19867_v30, %v19867_v30 }
 0xc4a   :  { %v10312_v60 = vadd.f32 %v10311_v46, %v10249_v61  ;;  %v10256_v46 = vmul.f32 %v19871_v44, %v19871_v44 }
 0xc4c   :  { %v10313_v3 = vadd.f32 %v10312_v60, %v10250_v0  ;;  %v10257_v60 = vmul.f32 %v19875_v37, %v19875_v37 }
 0xc4e   :  { %v10314_v47 = vadd.f32 %v10313_v3, %v10251_v38  ;;  %v10258_v3 = vmul.f32 %v19879_v36, %v19879_v36 }
 0xc50   :  { %v10315_v19 = vadd.f32 %v10314_v47, %v10252_v1  ;;  %v10259_v47 = vmul.f32 %v19883_v20, %v19883_v20 }
 0xc52   :  { %v10316_v7 = vadd.f32 %v10315_v19, %v10253_v11  ;;  %v10260_v19 = vmul.f32 %v19887_v22, %v19887_v22 }
 0xc54   :  { %v10317_v61 = vadd.f32 %v10316_v7, %v10254_v24  ;;  %v10261_v7 = vmul.f32 %v19891_v53, %v19891_v53 }
 0xc56   :  { %v10318_v0 = vadd.f32 %v10317_v61, %v10255_v13  ;;  %v10262_v61 = vmul.f32 %v19895_v50, %v19895_v50 }
 0xc58   :  { %v10319_v38 = vadd.f32 %v10318_v0, %v10256_v46  ;;  %v10263_v0 = vmul.f32 %v19899_v16, %v19899_v16 }
 0xc5a   :  { %v10320_v1 = vadd.f32 %v10319_v38, %v10257_v60  ;;  %v10264_v38 = vmul.f32 %v19903_v6, %v19903_v6 }
 0xc5c   :  { %v10321_v11 = vadd.f32 %v10320_v1, %v10258_v3  ;;  %v10265_v1 = vmul.f32 %v19907_v59, %v19907_v59 }
 0xc5e   :  { %v10322_v24 = vadd.f32 %v10321_v11, %v10259_v47  ;;  %v10266_v11 = vmul.f32 %v19911_v12, %v19911_v12 }
 0xc60   :  { %v10323_v13 = vadd.f32 %v10322_v24, %v10260_v19  ;;  %v10267_v24 = vmul.f32 %v19915_v34, %v19915_v34 }
 0xc62   :  { %v10324_v46 = vadd.f32 %v10323_v13, %v10261_v7  ;;  %v10268_v13 = vmul.f32 %v19919_v28, %v19919_v28 }
 0xc64   :  { %v10325_v60 = vadd.f32 %v10324_v46, %v10262_v61  ;;  %v10269_v46 = vmul.f32 %v19923_v55, %v19923_v55 }
 0xc66   :  { %v10326_v3 = vadd.f32 %v10325_v60, %v10263_v0  ;;  %v10270_v60 = vmul.f32 %v19927_v8, %v19927_v8 }
 0xc68   :  { %v10327_v47 = vadd.f32 %v10326_v3, %v10264_v38  ;;  %v10271_v3 = vmul.f32 %v19931_v9, %v19931_v9 }
 0xc6a   :  { %v10328_v19 = vadd.f32 %v10327_v47, %v10265_v1  ;;  %v10272_v47 = vmul.f32 %v19935_v39, %v19935_v39 }
 0xc6c   :  { %v10329_v7 = vadd.f32 %v10328_v19, %v10266_v11  ;;  %v10273_v19 = vmul.f32 %v19939_v35, %v19939_v35 }
 0xc6e   :  { %v10330_v61 = vadd.f32 %v10329_v7, %v10267_v24  ;;  %v10274_v7 = vmul.f32 %v19943_v23, %v19943_v23 }
 0xc70   :  { %v10331_v0 = vadd.f32 %v10330_v61, %v10268_v13  ;;  %v10275_v61 = vmul.f32 %v19947_v18, %v19947_v18 }
 0xc72   :  { %v10332_v38 = vadd.f32 %v10331_v0, %v10269_v46  ;;  %v10276_v0 = vmul.f32 %v19951_v40, %v19951_v40 }
 0xc74   :  { %v10333_v1 = vadd.f32 %v10332_v38, %v10270_v60  ;;  %v10277_v38 = vmul.f32 %v19955_v57, %v19955_v57 }
 0xc76   :  { %v10334_v11 = vadd.f32 %v10333_v1, %v10271_v3  ;;  %v10278_v1 = vmul.f32 %v19959_v32, %v19959_v32 }
 0xc78   :  { %v10335_v24 = vadd.f32 %v10334_v11, %v10272_v47  ;;  %v10279_v11 = vmul.f32 %v19963_v52, %v19963_v52 }
 0xc7a   :  { %v10336_v13 = vadd.f32 %v10335_v24, %v10273_v19  ;;  %v10280_v24 = vmul.f32 %v19967_v58, %v19967_v58 }
 0xc7c   :  { %v10337_v46 = vadd.f32 %v10336_v13, %v10274_v7  ;;  %v10281_v13 = vmul.f32 %v19971_v42, %v19971_v42 }
 0xc7e   :  { %v10338_v60 = vadd.f32 %v10337_v46, %v10275_v61  ;;  %v10282_v46 = vmul.f32 %v19975_v63, %v19975_v63 }
 0xc80   :  { %v10339_v3 = vadd.f32 %v10338_v60, %v10276_v0  ;;  %v10283_v60 = vmul.f32 %v19979_v27, %v19979_v27 }
 0xc82   :  { %v10340_v47 = vadd.f32 %v10339_v3, %v10277_v38  ;;  %v10284_v3 = vmul.f32 %v19983_v21, %v19983_v21 }
 0xc84   :  { %v10341_v19 = vadd.f32 %v10340_v47, %v10278_v1  ;;  %v10285_v47 = vmul.f32 %v19987_v33, %v19987_v33 }
 0xc86   :  { %v10342_v7 = vadd.f32 %v10341_v19, %v10279_v11  ;;  %v10286_v19 = vmul.f32 %v19991_v31, %v19991_v31 }
 0xc88   :  { %v10343_v61 = vadd.f32 %v10342_v7, %v10280_v24  ;;  %v10287_v7 = vmul.f32 %v19995_v29, %v19995_v29 }
 0xc8a   :  { %v10344_v0 = vadd.f32 %v10343_v61, %v10281_v13  ;;  %v10288_v61 = vmul.f32 %v19999_v17, %v19999_v17 }
 0xc8c   :  { %v10345_v38 = vadd.f32 %v10344_v0, %v10282_v46  ;;  %v10289_v0 = vmul.f32 %v20003_v2, %v20003_v2 }
 0xc8e   :  { %v10346_v1 = vadd.f32 %v10345_v38, %v10283_v60  ;;  %v21891_v38 = vld [vmem:[#allocation38_spill] sm:$0xff] }
 0xc8f   :  { %v10290_v33 = vmul.f32 %v21891_v38, %v21891_v38 }
 0xc90   :  { %v10347_v11 = vadd.f32 %v10346_v1, %v10284_v3  ;;  %v21892_v1 = vld [vmem:[#allocation37_spill] sm:$0xff] }
 0xc91   :  { %v10291_v31 = vmul.f32 %v21892_v1, %v21892_v1 }
 0xc92   :  { %v10348_v24 = vadd.f32 %v10347_v11, %v10285_v47  ;;  %v21893_v11 = vld [vmem:[#allocation48_spill] sm:$0xff] }
 0xc93   :  { %v10292_v29 = vmul.f32 %v21893_v11, %v21893_v11 }
 0xc94   :  { %v10349_v13 = vadd.f32 %v10348_v24, %v10286_v19  ;;  %v21894_v24 = vld [vmem:[#allocation49_spill] sm:$0xff] }
 0xc95   :  { %v10293_v17 = vmul.f32 %v21894_v24, %v21894_v24 }
 0xc96   :  { %v10350_v46 = vadd.f32 %v10349_v13, %v10287_v7  ;;  %v21895_v13 = vld [vmem:[#allocation52_spill] sm:$0xff] }
 0xc97   :  { %v10294_v2 = vmul.f32 %v21895_v13, %v21895_v13 }
 0xc98   :  { %v10351_v60 = vadd.f32 %v10350_v46, %v10288_v61  ;;  %v21896_v46 = vld [vmem:[#allocation61_spill] sm:$0xff] }
 0xc99   :  { %v10295_v38 = vmul.f32 %v21896_v46, %v21896_v46 }
 0xc9a   :  { %v10352_v3 = vadd.f32 %v10351_v60, %v10289_v0  ;;  %v10296_v60 = vmul.f32 %v20031_v43, %v20031_v43 }
 0xc9c   :  { %v10353_v47 = vadd.f32 %v10352_v3, %v10290_v33  ;;  %v10297_v3 = vmul.f32 %v20035_v26, %v20035_v26 }
 0xc9e   :  { %v10354_v19 = vadd.f32 %v10353_v47, %v10291_v31  ;;  %v10298_v47 = vmul.f32 %v20039_v14, %v20039_v14 }
 0xca0   :  { %v10355_v7 = vadd.f32 %v10354_v19, %v10292_v29  ;;  %v10299_v19 = vmul.f32 %v20043_v56, %v20043_v56 }
 0xca2   :  { %v10356_v61 = vadd.f32 %v10355_v7, %v10293_v17  ;;  %v10300_v7 = vmul.f32 %v20047_v51, %v20047_v51 }
 0xca4   :  { %v10357_v0 = vadd.f32 %v10356_v61, %v10294_v2  ;;  %v21897_v61 = vld [vmem:[#allocation44_spill] sm:$0xff] }
 0xca5   :  { %v10301_v43 = vmul.f32 %v21897_v61, %v21897_v61 }
 0xca6   :  { %v10358_v33 = vadd.f32 %v10357_v0, %v10295_v38  ;;  %v21898_v0 = vld [vmem:[#allocation45_spill] sm:$0xff] }
 0xca7   :  { %v10302_v26 = vmul.f32 %v21898_v0, %v21898_v0 }
 0xca8   :  { %v10359_v31 = vadd.f32 %v10358_v33, %v10296_v60  ;;  %v21899_v33 = vld [vmem:[#allocation46_spill] sm:$0xff] }
 0xca9   :  { %v10303_v14 = vmul.f32 %v21899_v33, %v21899_v33 }
 0xcaa   :  { %v10360_v29 = vadd.f32 %v10359_v31, %v10297_v3  ;;  %v21900_v31 = vld [vmem:[#allocation47_spill] sm:$0xff] }
 0xcab   :  { %v10304_v56 = vmul.f32 %v21900_v31, %v21900_v31 }
 0xcac   :  { %v10361_v17 = vadd.f32 %v10360_v29, %v10298_v47  ;;  %v10305_v29 = vmul.f32 %v20067_v45, %v20067_v45 }
 0xcae   :  { %v10362_v2 = vadd.f32 %v10361_v17, %v10299_v19 }
 0xcb0   :  { %v10363_v38 = vadd.f32 %v10362_v2, %v10300_v7 }
 0xcb2   :  { %v10364_v60 = vadd.f32 %v10363_v38, %v10301_v43 }
 0xcb4   :  { %v10365_v3 = vadd.f32 %v10364_v60, %v10302_v26  ;;  %v10106_v26 = vld [vmem:[%s20988_s5] sm:$0x1]  ;;  %s16253_s5 = smov [#allocation9]  }
 0xcb6   :  { %v10366_v47 = vadd.f32 %v10365_v3, %v10303_v14  ;;  %v21901_v3 = vld [vmem:[#allocation63_spill] sm:$0xff] }
 0xcb7   :  { %v21902_v33 = vsub.s32 0, %v21901_v3  ;;  %v21907_v3 = vld [vmem:[#allocation34_spill] sm:$0xff] }
 0xcb8   :  { %v10367_v19 = vadd.f32 %v10366_v47, %v10304_v56  ;;  %v20207_v56 = vld [vmem:[%s20989_s6] ss:$0 sm:$0xff]  ;;  %s10780_s6 = sshll.u32 %s16253_s5, 4  ;;  %s10781_s6 = int_to_ptr.vmem [resolvable:$true] %s10780_s6 }
 0xcb9   :  { %s16219_s21 = scalar_lea.vmem %s10781_s6, 8192  ;;  %p16224_p11 = scmp.lt.s32.totalorder %s10781_s6, %s10781_s6 }
 0xcba   :  { %v10368_v17 = vadd.f32 %v10367_v19, %v10305_v29  ;;  %v21905_v29 = vld [vmem:[#allocation32_spill] sm:$0xff]  ;;  %v10581_v19 = vld [vmem:[#allocation3 + $0x1f0] sm:$0xff]  ;;  %p16220_p10 = scmp.ne.s32.totalorder %s10781_s6, %s16219_s21  ;;  %p16225_p12 = scmp.lt.s32.totalorder %s16219_s21, %s16219_s21 }
 0xcbc   :  { %v10369_v51 = vrot.slane %v10368_v17, 4  ;;  %p16226_p13 = por %p16225_p12, %p16224_p11 }
 0xcbe   :  { %v10370_v61 = vadd.f32 %v10369_v51, %v10368_v17  ;;  %p16227_p0 = pnand %p16226_p13, %p16220_p10 }
 0xcc0   :  { %v10371_v7 = vrot.slane %v10370_v61, 2 }
 0xcc2   :  { %v10372_v2 = vadd.f32 %v10371_v7, %v10370_v61 }
 0xcc4   :  { %v10373_v46 = vrot.slane %v10372_v2, 1 }
 0xcc6   :  { %v10374_v0 = vadd.f32 %v10373_v46, %v10372_v2  ;;  %v21903_v46 = vld [vmem:[#allocation30_spill] sm:$0xff] }
 0xcc8   :  { %v10375_v43 = vmul.f32 0.001953125, %v10374_v0  ;;  %v21904_v0 = vld [vmem:[#allocation29_spill] sm:$0xff] }
 0xcca   :  { %v10376_v38 = vadd.f32 1e-05, %v10375_v43 }
 0xccc   :  { %16148 = vrsqrt.f32 %v10376_v38 }
 0xcd6   :  { %v16149_v60 = vpop.eup %16148 }
 0xcd7   :  { %v10378_v14 = vmul.f32 %v16149_v60, %v10106_v26 }
 0xcd9   :  { %v20202_v45 = vrot.slane %v10378_v14, %v21902_v33  ;;  %v21906_v14 = vld [vmem:[#allocation31_spill] sm:$0xff] }
 0xcdb   :  { %v10447_v51 = vmul.f32 %v20202_v45, %v21900_v31  ;;  %v20213_v61 = vmul.f32 %v20202_v45, %v21903_v46  ;;  %v20217_v47 = vmul.f32 %v20202_v45, %v21904_v0  ;;  %v20221_v33 = vmul.f32 %v20202_v45, %v21905_v29  ;;  %v21909_v46 = vld [vmem:[#allocation36_spill] sm:$0xff]  ;;  %v21910_v0 = vld [vmem:[#allocation35_spill] sm:$0xff]  ;;  %v21911_v29 = vld [vmem:[#allocation38_spill] sm:$0xff] }
 0xcdc   :  { %v20225_v17 = vmul.f32 %v20202_v45, %v19827_v25  ;;  %v20229_v31 = vmul.f32 %v20202_v45, %v19831_v62  ;;  %v20233_v7 = vmul.f32 %v20202_v45, %v19835_v5  ;;  %v20237_v2 = vmul.f32 %v20202_v45, %v19839_v4 }
 0xcdd   :  { %v10517_v43 = vadd.f32 %v20207_v56, %v10447_v51  ;;  %v20242_v38 = vmul.f32 %v20202_v45, %v19843_v10  ;;  %v20246_v25 = vmul.f32 %v20202_v45, %v19847_v15  ;;  %v20250_v62 = vmul.f32 %v20202_v45, %v19851_v41  ;;  %v21908_v51 = vld [vmem:[#allocation33_spill] sm:$0xff] }
 0xcde   :  { %v20254_v5 = vmul.f32 %v20202_v45, %v19855_v49  ;;  %v20258_v4 = vmul.f32 %v20202_v45, %v19859_v54  ;;  %v20262_v10 = vmul.f32 %v20202_v45, %v19863_v48  ;;  %v20266_v15 = vmul.f32 %v20202_v45, %v19867_v30 }
 0xcdf   :  { %v10645_v26 = vadd.f32 %v10581_v19, %v10517_v43  ;;  %v20270_v41 = vmul.f32 %v20202_v45, %v19871_v44  ;;  %v20274_v49 = vmul.f32 %v20202_v45, %v19875_v37  ;;  %v20278_v54 = vmul.f32 %v20202_v45, %v19879_v36 }
 0xce0   :  { %v20282_v48 = vmul.f32 %v20202_v45, %v19883_v20  ;;  %v20286_v30 = vmul.f32 %v20202_v45, %v19887_v22  ;;  %v20290_v44 = vmul.f32 %v20202_v45, %v19891_v53  ;;  %v20294_v37 = vmul.f32 %v20202_v45, %v19895_v50 }
 0xce1   :  { %v10709_v60 = vmax.f32 %v10645_v26, 0.0  ;;  %v20298_v36 = vmul.f32 %v20202_v45, %v19899_v16  ;;  %v20302_v20 = vmul.f32 %v20202_v45, %v19903_v6  ;;  %v20306_v22 = vmul.f32 %v20202_v45, %v19907_v59 }
 0xce2   :  { %v20310_v53 = vmul.f32 %v20202_v45, %v19911_v12  ;;  %v20314_v50 = vmul.f32 %v20202_v45, %v19915_v34  ;;  %v20318_v16 = vmul.f32 %v20202_v45, %v19919_v28  ;;  %v20322_v6 = vmul.f32 %v20202_v45, %v19923_v55 }
 0xce3   :  { %10773 = vst [vmem:[#allocation9 + $0x1f0] sm:$0xff] %v10709_v60  ;;  %v20326_v59 = vmul.f32 %v20202_v45, %v19927_v8  ;;  %v20330_v12 = vmul.f32 %v20202_v45, %v19931_v9  ;;  %v20334_v34 = vmul.f32 %v20202_v45, %v19935_v39  ;;  %v20338_v28 = vmul.f32 %v20202_v45, %v19939_v35 }
 0xce4   :  { %v20342_v55 = vmul.f32 %v20202_v45, %v19943_v23  ;;  %v20346_v8 = vmul.f32 %v20202_v45, %v19947_v18  ;;  %v20350_v9 = vmul.f32 %v20202_v45, %v19951_v40  ;;  %v20354_v39 = vmul.f32 %v20202_v45, %v19955_v57 }
 0xce5   :  { %v20358_v35 = vmul.f32 %v20202_v45, %v19959_v32  ;;  %v20362_v23 = vmul.f32 %v20202_v45, %v19963_v52  ;;  %v20366_v18 = vmul.f32 %v20202_v45, %v19967_v58  ;;  %v20370_v40 = vmul.f32 %v20202_v45, %v19971_v42 }
 0xce6   :  { %v20374_v57 = vmul.f32 %v20202_v45, %v19975_v63  ;;  %v20378_v32 = vmul.f32 %v20202_v45, %v19979_v27  ;;  %v20382_v52 = vmul.f32 %v20202_v45, %v19983_v21  ;;  %v20386_v58 = vmul.f32 %v20202_v45, %v21906_v14 }
 0xce7   :  { %v20390_v42 = vmul.f32 %v20202_v45, %v21907_v3  ;;  %v20394_v63 = vmul.f32 %v20202_v45, %v21908_v51  ;;  %v20398_v27 = vmul.f32 %v20202_v45, %v21909_v46  ;;  %v20402_v21 = vmul.f32 %v20202_v45, %v21910_v0  ;;  %v21914_v3 = vld [vmem:[#allocation61_spill] sm:$0xff]  ;;  %v21916_v46 = vld [vmem:[#allocation39_spill] sm:$0xff]  ;;  %v21918_v0 = vld [vmem:[#allocation40_spill] sm:$0xff] }
 0xce8   :  { %v20406_v19 = vmul.f32 %v20202_v45, %v21911_v29  ;;  %v20410_v43 = vmul.f32 %v20202_v45, %v21892_v1  ;;  %v20414_v26 = vmul.f32 %v20202_v45, %v21893_v11  ;;  %v20418_v60 = vmul.f32 %v20202_v45, %v21894_v24  ;;  %v21920_v29 = vld [vmem:[#allocation41_spill] sm:$0xff] }
 0xce9   :  { %v20422_v14 = vmul.f32 %v20202_v45, %v21895_v13  ;;  %v20426_v51 = vmul.f32 %v20202_v45, %v21914_v3  ;;  %v20430_v1 = vmul.f32 %v20202_v45, %v21916_v46  ;;  %v20434_v11 = vmul.f32 %v20202_v45, %v21918_v0 }
 0xcea   :  { %21912 = vst [vmem:[#allocation51_spill] sm:$0xff] %v20418_v60  ;;  %v20438_v24 = vmul.f32 %v20202_v45, %v21920_v29  ;;  %v21922_v60 = vld [vmem:[#allocation42_spill] sm:$0xff] }
 0xceb   :  { %21913 = vst [vmem:[#allocation53_spill] sm:$0xff] %v20422_v14  ;;  %21915 = vst [vmem:[#allocation54_spill] sm:$0xff] %v20426_v51  ;;  %v20442_v13 = vmul.f32 %v20202_v45, %v21922_v60  ;;  %v21923_v14 = vld [vmem:[#allocation43_spill] sm:$0xff]  ;;  %v21924_v51 = vld [vmem:[#allocation44_spill] sm:$0xff] }
 0xcec   :  { %21917 = vst [vmem:[#allocation55_spill] sm:$0xff] %v20430_v1  ;;  %21919 = vst [vmem:[#allocation56_spill] sm:$0xff] %v20434_v11  ;;  %v20446_v3 = vmul.f32 %v20202_v45, %v21923_v14  ;;  %v20450_v46 = vmul.f32 %v20202_v45, %v21924_v51  ;;  %v21925_v1 = vld [vmem:[#allocation45_spill] sm:$0xff]  ;;  %v21926_v11 = vld [vmem:[#allocation46_spill] sm:$0xff]  ;;  %v20466_v14 = vadd.f32 %v20207_v56, %v20213_v61 }
 0xced   :  { %21921 = vst [vmem:[#allocation57_spill] sm:$0xff] %v20438_v24  ;;  %v20454_v0 = vmul.f32 %v20202_v45, %v21925_v1  ;;  %v20458_v29 = vmul.f32 %v20202_v45, %v21926_v11  ;;  %v21927_v24 = vld [vmem:[#allocation50_spill] sm:$0xff]  ;;  %v20470_v51 = vadd.f32 %v20207_v56, %v20217_v47  ;;  %v20474_v1 = vadd.f32 %v20207_v56, %v20221_v33 }
 0xcee   :  { %v20462_v60 = vmul.f32 %v20202_v45, %v21927_v24  ;;  %v20478_v11 = vadd.f32 %v20207_v56, %v20225_v17  ;;  %v20482_v45 = vadd.f32 %v20207_v56, %v20229_v31  ;;  %v20486_v61 = vadd.f32 %v20207_v56, %v20233_v7  ;;  %v10520_v24 = vld [vmem:[#allocation3 + $0x8] sm:$0xff] }
 0xcef   :  { %v20490_v47 = vadd.f32 %v20207_v56, %v20237_v2  ;;  %v20494_v33 = vadd.f32 %v20207_v56, %v20242_v38  ;;  %v20498_v17 = vadd.f32 %v20207_v56, %v20246_v25  ;;  %v20502_v31 = vadd.f32 %v20207_v56, %v20250_v62 }
 0xcf0   :  { %v20506_v7 = vadd.f32 %v20207_v56, %v20254_v5  ;;  %v20510_v2 = vadd.f32 %v20207_v56, %v20258_v4  ;;  %v20514_v38 = vadd.f32 %v20207_v56, %v20262_v10  ;;  %v20518_v25 = vadd.f32 %v20207_v56, %v20266_v15 }
 0xcf1   :  { %v20522_v62 = vadd.f32 %v20207_v56, %v20270_v41  ;;  %v20526_v5 = vadd.f32 %v20207_v56, %v20274_v49  ;;  %v20530_v4 = vadd.f32 %v20207_v56, %v20278_v54  ;;  %v20534_v10 = vadd.f32 %v20207_v56, %v20282_v48 }
 0xcf2   :  { %v20538_v15 = vadd.f32 %v20207_v56, %v20286_v30  ;;  %v20542_v41 = vadd.f32 %v20207_v56, %v20290_v44  ;;  %v20546_v49 = vadd.f32 %v20207_v56, %v20294_v37  ;;  %v20550_v54 = vadd.f32 %v20207_v56, %v20298_v36 }
 0xcf3   :  { %v20554_v48 = vadd.f32 %v20207_v56, %v20302_v20  ;;  %v20558_v30 = vadd.f32 %v20207_v56, %v20306_v22  ;;  %v20562_v44 = vadd.f32 %v20207_v56, %v20310_v53  ;;  %v20566_v37 = vadd.f32 %v20207_v56, %v20314_v50 }
 0xcf4   :  { %v20570_v36 = vadd.f32 %v20207_v56, %v20318_v16  ;;  %v20574_v20 = vadd.f32 %v20207_v56, %v20322_v6  ;;  %v20578_v22 = vadd.f32 %v20207_v56, %v20326_v59  ;;  %v20582_v53 = vadd.f32 %v20207_v56, %v20330_v12 }
 0xcf5   :  { %v20586_v50 = vadd.f32 %v20207_v56, %v20334_v34  ;;  %v20590_v16 = vadd.f32 %v20207_v56, %v20338_v28  ;;  %v20594_v6 = vadd.f32 %v20207_v56, %v20342_v55  ;;  %v20598_v59 = vadd.f32 %v20207_v56, %v20346_v8 }
 0xcf6   :  { %v20602_v12 = vadd.f32 %v20207_v56, %v20350_v9  ;;  %v20606_v34 = vadd.f32 %v20207_v56, %v20354_v39  ;;  %v20610_v28 = vadd.f32 %v20207_v56, %v20358_v35  ;;  %v20614_v55 = vadd.f32 %v20207_v56, %v20362_v23 }
 0xcf7   :  { %21928 = vst [vmem:[#allocation58_spill] sm:$0xff] %v20586_v50  ;;  %21929 = vst [vmem:[#allocation59_spill] sm:$0xff] %v20590_v16  ;;  %v20618_v8 = vadd.f32 %v20207_v56, %v20366_v18  ;;  %v20622_v9 = vadd.f32 %v20207_v56, %v20370_v40  ;;  %v20626_v39 = vadd.f32 %v20207_v56, %v20374_v57  ;;  %v10522_v57 = vld [vmem:[#allocation3 + $0x18] sm:$0xff]  ;;  %v10535_v16 = vld [vmem:[#allocation3 + $0x80] sm:$0xff] }
 0xcf8   :  { %21930 = vst [vmem:[#allocation60_spill] sm:$0xff] %v20594_v6  ;;  %21931 = vst [vmem:[#allocation62_spill] sm:$0xff] %v20598_v59  ;;  %v20630_v35 = vadd.f32 %v20207_v56, %v20378_v32  ;;  %v20634_v23 = vadd.f32 %v20207_v56, %v20382_v52  ;;  %v20638_v18 = vadd.f32 %v20207_v56, %v20386_v58  ;;  %v10533_v59 = vld [vmem:[#allocation3 + $0x70] sm:$0xff]  ;;  %v10536_v6 = vld [vmem:[#allocation3 + $0x88] sm:$0xff] }
 0xcf9   :  { %21932 = vst [vmem:[#allocation64_spill] sm:$0xff] %v20602_v12  ;;  %21933 = vst [vmem:[#allocation65_spill] sm:$0xff] %v20606_v34  ;;  %v10519_v34 = vld [vmem:[#allocation3] sm:$0xff]  ;;  %v20642_v40 = vadd.f32 %v20207_v56, %v20390_v42  ;;  %v20646_v32 = vadd.f32 %v20207_v56, %v20394_v63  ;;  %v20650_v52 = vadd.f32 %v20207_v56, %v20398_v27  ;;  %v21953_v12 = vld [vmem:[#allocation54_spill] sm:$0xff] }
 0xcfa   :  { %21934 = vst [vmem:[#allocation66_spill] sm:$0xff] %v20610_v28  ;;  %21935 = vst [vmem:[#allocation67_spill] sm:$0xff] %v20614_v55  ;;  %v20654_v58 = vadd.f32 %v20207_v56, %v20402_v21  ;;  %v20658_v42 = vadd.f32 %v20207_v56, %v20406_v19  ;;  %v20662_v63 = vadd.f32 %v20207_v56, %v20410_v43  ;;  %v10532_v55 = vld [vmem:[#allocation3 + $0x68] sm:$0xff]  ;;  %v10531_v28 = vld [vmem:[#allocation3 + $0x60] sm:$0xff] }
 0xcfb   :  { %21936 = vst [vmem:[#allocation68_spill] sm:$0xff] %v20618_v8  ;;  %21937 = vst [vmem:[#allocation69_spill] sm:$0xff] %v20622_v9  ;;  %v10524_v9 = vld [vmem:[#allocation3 + $0x28] sm:$0xff]  ;;  %v10523_v8 = vld [vmem:[#allocation3 + $0x20] sm:$0xff]  ;;  %v20666_v27 = vadd.f32 %v20207_v56, %v20414_v26  ;;  %v20678_v43 = vadd.f32 %v20207_v56, %v21953_v12  ;;  %v20694_v12 = vadd.f32 %v20207_v56, %v20442_v13 }
 0xcfc   :  { %21938 = vst [vmem:[#allocation72_spill] sm:$0xff] %v20626_v39  ;;  %21939 = vst [vmem:[#allocation73_spill] sm:$0xff] %v20630_v35  ;;  %v10521_v39 = vld [vmem:[#allocation3 + $0x10] sm:$0xff]  ;;  %v10527_v35 = vld [vmem:[#allocation3 + $0x40] sm:$0xff]  ;;  %v20710_v13 = vadd.f32 %v20207_v56, %v20458_v29  ;;  %v20726_v29 = vadd.f32 %v10522_v57, %v20478_v11 }
 0xcfd   :  { %21940 = vst [vmem:[#allocation74_spill] sm:$0xff] %v20634_v23  ;;  %21941 = vst [vmem:[#allocation75_spill] sm:$0xff] %v20638_v18  ;;  %v10525_v18 = vld [vmem:[#allocation3 + $0x30] sm:$0xff]  ;;  %v10528_v23 = vld [vmem:[#allocation3 + $0x48] sm:$0xff]  ;;  %v20723_v50 = vadd.f32 %v10521_v39, %v20474_v1  ;;  %v20741_v1 = vadd.f32 %v10527_v35, %v20498_v17 }
 0xcfe   :  { %21942 = vst [vmem:[#allocation76_spill] sm:$0xff] %v20642_v40  ;;  %21943 = vst [vmem:[#allocation77_spill] sm:$0xff] %v20646_v32  ;;  %v10526_v40 = vld [vmem:[#allocation3 + $0x38] sm:$0xff]  ;;  %v10529_v32 = vld [vmem:[#allocation3 + $0x50] sm:$0xff]  ;;  %v20744_v11 = vadd.f32 %v10528_v23, %v20502_v31 }
 0xcff   :  { %21944 = vst [vmem:[#allocation78_spill] sm:$0xff] %v20650_v52  ;;  %21945 = vst [vmem:[#allocation79_spill] sm:$0xff] %v20654_v58  ;;  %v21949_v52 = vld [vmem:[#allocation51_spill] sm:$0xff]  ;;  %v21951_v58 = vld [vmem:[#allocation53_spill] sm:$0xff]  ;;  %v20747_v39 = vadd.f32 %v10529_v32, %v20506_v7  ;;  %v20765_v7 = vadd.f32 %v10535_v16, %v20530_v4 }
 0xd00   :  { %21946 = vst [vmem:[#allocation70_spill] sm:$0xff] %v20658_v42  ;;  %21947 = vst [vmem:[#allocation71_spill] sm:$0xff] %v20662_v63  ;;  %v20670_v21 = vadd.f32 %v20207_v56, %v21949_v52  ;;  %v20674_v19 = vadd.f32 %v20207_v56, %v21951_v58  ;;  %v10530_v42 = vld [vmem:[#allocation3 + $0x58] sm:$0xff]  ;;  %v21955_v63 = vld [vmem:[#allocation55_spill] sm:$0xff] }
 0xd01   :  { %21948 = vst [vmem:[#allocation80_spill] sm:$0xff] %v20666_v27  ;;  %21954 = vst [vmem:[#allocation14_spill] sm:$0xff] %v20678_v43  ;;  %v20682_v26 = vadd.f32 %v20207_v56, %v21955_v63  ;;  %v21957_v27 = vld [vmem:[#allocation56_spill] sm:$0xff]  ;;  %v20698_v63 = vadd.f32 %v20207_v56, %v20446_v3  ;;  %v10539_v43 = vld [vmem:[#allocation3 + $0xa0] sm:$0xff]  ;;  %v20714_v3 = vadd.f32 %v20207_v56, %v20462_v60 }
 0xd02   :  { %21950 = vst [vmem:[#allocation81_spill] sm:$0xff] %v20670_v21  ;;  %21952 = vst [vmem:[#allocation13_spill] sm:$0xff] %v20674_v19  ;;  %v20686_v52 = vadd.f32 %v20207_v56, %v21957_v27  ;;  %v21959_v21 = vld [vmem:[#allocation57_spill] sm:$0xff]  ;;  %v10534_v19 = vld [vmem:[#allocation3 + $0x78] sm:$0xff]  ;;  %v20702_v27 = vadd.f32 %v20207_v56, %v20450_v46  ;;  %v20720_v46 = vadd.f32 %v10520_v24, %v20470_v51 }
 0xd03   :  { %21956 = vst [vmem:[#allocation15_spill] sm:$0xff] %v20682_v26  ;;  %v20690_v58 = vadd.f32 %v20207_v56, %v21959_v21  ;;  %21961 = vst [vmem:[#allocation18_spill] sm:$0xff] %v20694_v12  ;;  %v20706_v21 = vadd.f32 %v20207_v56, %v20454_v0  ;;  %v10540_v26 = vld [vmem:[#allocation3 + $0xa8] sm:$0xff]  ;;  %v10542_v0 = vld [vmem:[#allocation3 + $0xb8] sm:$0xff]  ;;  %v20732_v56 = vadd.f32 %v10524_v9, %v20486_v61 }
 0xd04   :  { %21958 = vst [vmem:[#allocation16_spill] sm:$0xff] %v20686_v52  ;;  %21962 = vst [vmem:[#allocation19_spill] sm:$0xff] %v20698_v63  ;;  %v10537_v52 = vld [vmem:[#allocation3 + $0x90] sm:$0xff]  ;;  %v20717_v63 = vadd.f32 %v10519_v34, %v20466_v14  ;;  %v10543_v12 = vld [vmem:[#allocation3 + $0xc0] sm:$0xff]  ;;  %v20735_v24 = vadd.f32 %v10525_v18, %v20490_v47  ;;  %v20750_v57 = vadd.f32 %v10530_v42, %v20510_v2 }
 0xd05   :  { %21960 = vst [vmem:[#allocation17_spill] sm:$0xff] %v20690_v58  ;;  %21963 = vst [vmem:[#allocation85_spill] sm:$0xff] %v20702_v27  ;;  %v10538_v58 = vld [vmem:[#allocation3 + $0x98] sm:$0xff]  ;;  %v10544_v27 = vld [vmem:[#allocation3 + $0xc8] sm:$0xff]  ;;  %v20753_v47 = vadd.f32 %v10531_v28, %v20514_v38  ;;  %v20759_v18 = vadd.f32 %v10533_v59, %v20522_v62  ;;  %v20768_v2 = vadd.f32 %v10536_v6, %v20534_v10 }
 0xd06   :  { %21964 = vst [vmem:[#allocation86_spill] sm:$0xff] %v20706_v21  ;;  %21965 = vst [vmem:[#allocation87_spill] sm:$0xff] %v20710_v13  ;;  %v10541_v21 = vld [vmem:[#allocation3 + $0xb0] sm:$0xff]  ;;  %v20729_v13 = vadd.f32 %v10523_v8, %v20482_v45  ;;  %v10546_v60 = vld [vmem:[#allocation3 + $0xd8] sm:$0xff]  ;;  %v20774_v32 = vadd.f32 %v10538_v58, %v20542_v41  ;;  %v20777_v62 = vadd.f32 %v10539_v43, %v20546_v49 }
 0xd07   :  { %21966 = vst [vmem:[#allocation88_spill] sm:$0xff] %v20720_v46  ;;  %v10545_v14 = vld [vmem:[#allocation3 + $0xd0] sm:$0xff]  ;;  %v10548_v51 = vld [vmem:[#allocation3 + $0xe8] sm:$0xff]  ;;  %v10547_v34 = vld [vmem:[#allocation3 + $0xe0] sm:$0xff]  ;;  %v20738_v46 = vadd.f32 %v10526_v40, %v20494_v33  ;;  %v20756_v33 = vadd.f32 %v10532_v55, %v20518_v25  ;;  %v20762_v40 = vadd.f32 %v10534_v19, %v20526_v5  ;;  %v20771_v55 = vadd.f32 %v10537_v52, %v20538_v15 }
 0xd08   :  { %v10550_v45 = vld [vmem:[#allocation3 + $0xf8] sm:$0xff]  ;;  %v10549_v8 = vld [vmem:[#allocation3 + $0xf0] sm:$0xff]  ;;  %v10552_v61 = vld [vmem:[#allocation3 + $0x108] sm:$0xff]  ;;  %v20780_v5 = vadd.f32 %v10540_v26, %v20550_v54  ;;  %v20783_v10 = vadd.f32 %v10541_v21, %v20554_v48  ;;  %v20786_v6 = vadd.f32 %v10542_v0, %v20558_v30  ;;  %v20789_v15 = vadd.f32 %v10543_v12, %v20562_v44 }
 0xd09   :  { %v10551_v9 = vld [vmem:[#allocation3 + $0x100] sm:$0xff]  ;;  %v10554_v17 = vld [vmem:[#allocation3 + $0x118] sm:$0xff]  ;;  %v10553_v35 = vld [vmem:[#allocation3 + $0x110] sm:$0xff]  ;;  %v20792_v41 = vadd.f32 %v10544_v27, %v20566_v37  ;;  %v20795_v54 = vadd.f32 %v10545_v14, %v20570_v36  ;;  %v20798_v43 = vadd.f32 %v10546_v60, %v20574_v20  ;;  %v20801_v48 = vadd.f32 %v10547_v34, %v20578_v22 }
 0xd0a   :  { %v10556_v31 = vld [vmem:[#allocation3 + $0x128] sm:$0xff]  ;;  %v10555_v23 = vld [vmem:[#allocation3 + $0x120] sm:$0xff]  ;;  %v10558_v38 = vld [vmem:[#allocation3 + $0x138] sm:$0xff]  ;;  %v20804_v30 = vadd.f32 %v10548_v51, %v20582_v53 }
 0xd0b   :  { %v10557_v28 = vld [vmem:[#allocation3 + $0x130] sm:$0xff]  ;;  %v10560_v25 = vld [vmem:[#allocation3 + $0x148] sm:$0xff]  ;;  %v10559_v4 = vld [vmem:[#allocation3 + $0x140] sm:$0xff] }
 0xd0c   :  { %v10562_v16 = vld [vmem:[#allocation3 + $0x158] sm:$0xff]  ;;  %v10561_v59 = vld [vmem:[#allocation3 + $0x150] sm:$0xff]  ;;  %v10564_v49 = vld [vmem:[#allocation3 + $0x168] sm:$0xff]  ;;  %21967 = vst [vmem:[#allocation89_spill] sm:$0xff] %v20804_v30 }
 0xd0d   :  { %v10563_v42 = vld [vmem:[#allocation3 + $0x160] sm:$0xff]  ;;  %v10566_v19 = vld [vmem:[#allocation3 + $0x178] sm:$0xff]  ;;  %v10565_v44 = vld [vmem:[#allocation3 + $0x170] sm:$0xff] }
 0xd0e   :  { %v10568_v26 = vld [vmem:[#allocation3 + $0x188] sm:$0xff]  ;;  %v10567_v52 = vld [vmem:[#allocation3 + $0x180] sm:$0xff]  ;;  %v21969_v12 = vld [vmem:[#allocation59_spill] sm:$0xff] }
 0xd0f   :  { %v21968_v37 = vld [vmem:[#allocation58_spill] sm:$0xff]  ;;  %v20810_v27 = vadd.f32 %v10550_v45, %v21969_v12  ;;  %v21971_v36 = vld [vmem:[#allocation60_spill] sm:$0xff]  ;;  %v10569_v60 = vld [vmem:[#allocation3 + $0x190] sm:$0xff] }
 0xd10   :  { %v20807_v58 = vadd.f32 %v10549_v8, %v21968_v37  ;;  %v20813_v21 = vadd.f32 %v10551_v9, %v21971_v36  ;;  %v21973_v20 = vld [vmem:[#allocation62_spill] sm:$0xff]  ;;  %v10570_v22 = vld [vmem:[#allocation3 + $0x198] sm:$0xff]  ;;  %v21976_v34 = vld [vmem:[#allocation65_spill] sm:$0xff] }
 0xd11   :  { %21970 = vst [vmem:[#allocation21_spill] sm:$0xff] %v20810_v27  ;;  %v20816_v0 = vadd.f32 %v10552_v61, %v21973_v20  ;;  %v10572_v14 = vld [vmem:[#allocation3 + $0x1a8] sm:$0xff]  ;;  %v21975_v53 = vld [vmem:[#allocation64_spill] sm:$0xff]  ;;  %v20822_v30 = vadd.f32 %v10554_v17, %v21976_v34  ;;  %v21980_v45 = vld [vmem:[#allocation67_spill] sm:$0xff] }
 0xd12   :  { %21972 = vst [vmem:[#allocation20_spill] sm:$0xff] %v20813_v21  ;;  %v20819_v51 = vadd.f32 %v10553_v35, %v21975_v53  ;;  %v21978_v8 = vld [vmem:[#allocation66_spill] sm:$0xff]  ;;  %v20828_v12 = vadd.f32 %v10556_v31, %v21980_v45  ;;  %v10571_v9 = vld [vmem:[#allocation3 + $0x1a0] sm:$0xff]  ;;  %v10574_v36 = vld [vmem:[#allocation3 + $0x1b8] sm:$0xff] }
 0xd13   :  { %21974 = vst [vmem:[#allocation82_spill] sm:$0xff] %v20816_v0  ;;  %21977 = vst [vmem:[#allocation22_spill] sm:$0xff] %v20822_v30  ;;  %v20825_v37 = vadd.f32 %v10555_v23, %v21978_v8  ;;  %v10573_v21 = vld [vmem:[#allocation3 + $0x1b0] sm:$0xff]  ;;  %v21982_v61 = vld [vmem:[#allocation68_spill] sm:$0xff] }
 0xd14   :  { %21981 = vst [vmem:[#allocation83_spill] sm:$0xff] %v20828_v12  ;;  %v20831_v20 = vadd.f32 %v10557_v28, %v21982_v61  ;;  %v21983_v0 = vld [vmem:[#allocation69_spill] sm:$0xff]  ;;  %v21985_v35 = vld [vmem:[#allocation72_spill] sm:$0xff]  ;;  %v10576_v23 = vld [vmem:[#allocation3 + $0x1c8] sm:$0xff] }
 0xd15   :  { %21979 = vst [vmem:[#allocation84_spill] sm:$0xff] %v20825_v37  ;;  %v20834_v27 = vadd.f32 %v10558_v38, %v21983_v0  ;;  %v20837_v53 = vadd.f32 %v10559_v4, %v21985_v35  ;;  %v21987_v17 = vld [vmem:[#allocation73_spill] sm:$0xff]  ;;  %v10578_v37 = vld [vmem:[#allocation3 + $0x1d8] sm:$0xff]  ;;  %v21989_v31 = vld [vmem:[#allocation74_spill] sm:$0xff] }
 0xd16   :  { %v20840_v34 = vadd.f32 %v10560_v25, %v21987_v17  ;;  %v10575_v8 = vld [vmem:[#allocation3 + $0x1c0] sm:$0xff]  ;;  %v20843_v45 = vadd.f32 %v10561_v59, %v21989_v31  ;;  %v21990_v12 = vld [vmem:[#allocation75_spill] sm:$0xff]  ;;  %v21992_v28 = vld [vmem:[#allocation76_spill] sm:$0xff] }
 0xd17   :  { %21984 = vst [vmem:[#allocation24_spill] sm:$0xff] %v20834_v27  ;;  %21986 = vst [vmem:[#allocation23_spill] sm:$0xff] %v20837_v53  ;;  %v20846_v30 = vadd.f32 %v10562_v16, %v21990_v12  ;;  %v20849_v61 = vadd.f32 %v10563_v42, %v21992_v28  ;;  %v21994_v38 = vld [vmem:[#allocation77_spill] sm:$0xff]  ;;  %v10577_v4 = vld [vmem:[#allocation3 + $0x1d0] sm:$0xff] }
 0xd18   :  { %21988 = vst [vmem:[#allocation26_spill] sm:$0xff] %v20840_v34  ;;  %v20852_v0 = vadd.f32 %v10564_v49, %v21994_v38  ;;  %v10580_v35 = vld [vmem:[#allocation3 + $0x1e8] sm:$0xff]  ;;  %v10579_v53 = vld [vmem:[#allocation3 + $0x1e0] sm:$0xff]  ;;  %v21997_v34 = vld [vmem:[#allocation79_spill] sm:$0xff] }
 0xd19   :  { %21991 = vst [vmem:[#allocation25_spill] sm:$0xff] %v20846_v30  ;;  %21993 = vst [vmem:[#allocation27_spill] sm:$0xff] %v20849_v61  ;;  %v21996_v25 = vld [vmem:[#allocation78_spill] sm:$0xff]  ;;  %v20858_v27 = vadd.f32 %v10566_v19, %v21997_v34  ;;  %v21999_v16 = vld [vmem:[#allocation71_spill] sm:$0xff] }
 0xd1a   :  { %21995 = vst [vmem:[#allocation28_spill] sm:$0xff] %v20852_v0  ;;  %v20855_v17 = vadd.f32 %v10565_v44, %v21996_v25  ;;  %v21998_v59 = vld [vmem:[#allocation70_spill] sm:$0xff]  ;;  %v20864_v12 = vadd.f32 %v10568_v26, %v21999_v16  ;;  %v10582_v42 = vld [vmem:[#allocation3 + $0x1f8] sm:$0xff]  ;;  %v22001_v49 = vld [vmem:[#allocation81_spill] sm:$0xff] }
 0xd1b   :  { %v20861_v31 = vadd.f32 %v10567_v52, %v21998_v59  ;;  %v22000_v28 = vld [vmem:[#allocation80_spill] sm:$0xff]  ;;  %v20870_v38 = vadd.f32 %v10570_v22, %v22001_v49  ;;  %v22002_v0 = vld [vmem:[#allocation13_spill] sm:$0xff]  ;;  %v22003_v44 = vld [vmem:[#allocation14_spill] sm:$0xff] }
 0xd1c   :  { %v20867_v61 = vadd.f32 %v10569_v60, %v22000_v28  ;;  %v20873_v30 = vadd.f32 %v10571_v9, %v22002_v0  ;;  %v20876_v25 = vadd.f32 %v10572_v14, %v22003_v44  ;;  %v22004_v19 = vld [vmem:[#allocation15_spill] sm:$0xff]  ;;  %v22005_v52 = vld [vmem:[#allocation16_spill] sm:$0xff]  ;;  %v22006_v26 = vld [vmem:[#allocation17_spill] sm:$0xff] }
 0xd1d   :  { %v20879_v34 = vadd.f32 %v10573_v21, %v22004_v19  ;;  %v20882_v59 = vadd.f32 %v10574_v36, %v22005_v52  ;;  %v20885_v16 = vadd.f32 %v10575_v8, %v22006_v26  ;;  %v22007_v60 = vld [vmem:[#allocation18_spill] sm:$0xff]  ;;  %v22008_v22 = vld [vmem:[#allocation19_spill] sm:$0xff]  ;;  %v22009_v9 = vld [vmem:[#allocation85_spill] sm:$0xff]  ;;  %v20903_v36 = vadd.f32 %v10582_v42, %v20714_v3 }
 0xd1e   :  { %v20888_v28 = vadd.f32 %v10576_v23, %v22007_v60  ;;  %v20891_v49 = vadd.f32 %v10577_v4, %v22008_v22  ;;  %v20894_v0 = vadd.f32 %v10578_v37, %v22009_v9  ;;  %v22010_v14 = vld [vmem:[#allocation86_spill] sm:$0xff]  ;;  %v22011_v21 = vld [vmem:[#allocation87_spill] sm:$0xff]  ;;  %v10647_v8 = vmax.f32 %v20717_v63, 0.0  ;;  %v22012_v52 = vld [vmem:[#allocation88_spill] sm:$0xff] }
 0xd1f   :  { %v20897_v44 = vadd.f32 %v10579_v53, %v22010_v14  ;;  %v20900_v19 = vadd.f32 %v10580_v35, %v22011_v21  ;;  %v10648_v23 = vmax.f32 %v22012_v52, 0.0  ;;  %v10649_v26 = vmax.f32 %v20723_v50, 0.0  ;;  %v22016_v42 = vld [vmem:[#allocation82_spill] sm:$0xff]  ;;  %v22018_v21 = vld [vmem:[#allocation84_spill] sm:$0xff] }
 0xd20   :  { %v10650_v4 = vmax.f32 %v20726_v29, 0.0  ;;  %v10651_v37 = vmax.f32 %v20729_v13, 0.0  ;;  %v10652_v60 = vmax.f32 %v20732_v56, 0.0  ;;  %v10653_v53 = vmax.f32 %v20735_v24, 0.0  ;;  %10711 = vst [vmem:[#allocation9] sm:$0xff] %v10647_v8  ;;  %v22019_v8 = vld [vmem:[#allocation83_spill] sm:$0xff] }
 0xd21   :  { %v10654_v35 = vmax.f32 %v20738_v46, 0.0  ;;  %v10655_v22 = vmax.f32 %v20741_v1, 0.0  ;;  %v10656_v3 = vmax.f32 %v20744_v11, 0.0  ;;  %v10657_v63 = vmax.f32 %v20747_v39, 0.0  ;;  %10712 = vst [vmem:[#allocation9 + $0x8] sm:$0xff] %v10648_v23  ;;  %10713 = vst [vmem:[#allocation9 + $0x10] sm:$0xff] %v10649_v26 }
 0xd22   :  { %v10658_v50 = vmax.f32 %v20750_v57, 0.0  ;;  %v10659_v29 = vmax.f32 %v20753_v47, 0.0  ;;  %v10660_v13 = vmax.f32 %v20756_v33, 0.0  ;;  %v10661_v56 = vmax.f32 %v20759_v18, 0.0  ;;  %10714 = vst [vmem:[#allocation9 + $0x18] sm:$0xff] %v10650_v4  ;;  %10715 = vst [vmem:[#allocation9 + $0x20] sm:$0xff] %v10651_v37 }
 0xd23   :  { %10716 = vst [vmem:[#allocation9 + $0x28] sm:$0xff] %v10652_v60  ;;  %10717 = vst [vmem:[#allocation9 + $0x30] sm:$0xff] %v10653_v53  ;;  %v10662_v46 = vmax.f32 %v20762_v40, 0.0  ;;  %v10663_v24 = vmax.f32 %v20765_v7, 0.0  ;;  %v10664_v1 = vmax.f32 %v20768_v2, 0.0  ;;  %v10665_v11 = vmax.f32 %v20771_v55, 0.0 }
 0xd24   :  { %10718 = vst [vmem:[#allocation9 + $0x38] sm:$0xff] %v10654_v35  ;;  %10719 = vst [vmem:[#allocation9 + $0x40] sm:$0xff] %v10655_v22  ;;  %v10666_v39 = vmax.f32 %v20774_v32, 0.0  ;;  %v10667_v57 = vmax.f32 %v20777_v62, 0.0  ;;  %v10668_v47 = vmax.f32 %v20780_v5, 0.0  ;;  %v10669_v33 = vmax.f32 %v20783_v10, 0.0 }
 0xd25   :  { %10720 = vst [vmem:[#allocation9 + $0x48] sm:$0xff] %v10656_v3  ;;  %10721 = vst [vmem:[#allocation9 + $0x50] sm:$0xff] %v10657_v63  ;;  %v10670_v18 = vmax.f32 %v20786_v6, 0.0  ;;  %v10671_v40 = vmax.f32 %v20789_v15, 0.0  ;;  %v10672_v7 = vmax.f32 %v20792_v41, 0.0  ;;  %v10673_v2 = vmax.f32 %v20795_v54, 0.0 }
 0xd26   :  { %10722 = vst [vmem:[#allocation9 + $0x58] sm:$0xff] %v10658_v50  ;;  %10723 = vst [vmem:[#allocation9 + $0x60] sm:$0xff] %v10659_v29  ;;  %v10674_v55 = vmax.f32 %v20798_v43, 0.0  ;;  %v10675_v32 = vmax.f32 %v20801_v48, 0.0  ;;  %v22013_v62 = vld [vmem:[#allocation89_spill] sm:$0xff]  ;;  %v10677_v10 = vmax.f32 %v20807_v58, 0.0 }
 0xd27   :  { %10724 = vst [vmem:[#allocation9 + $0x68] sm:$0xff] %v10660_v13  ;;  %10725 = vst [vmem:[#allocation9 + $0x70] sm:$0xff] %v10661_v56  ;;  %v10676_v5 = vmax.f32 %v22013_v62, 0.0  ;;  %v22014_v6 = vld [vmem:[#allocation21_spill] sm:$0xff]  ;;  %v22015_v41 = vld [vmem:[#allocation20_spill] sm:$0xff]  ;;  %v10680_v9 = vmax.f32 %v22016_v42, 0.0 }
 0xd28   :  { %10726 = vst [vmem:[#allocation9 + $0x78] sm:$0xff] %v10662_v46  ;;  %10727 = vst [vmem:[#allocation9 + $0x80] sm:$0xff] %v10663_v24  ;;  %v10678_v15 = vmax.f32 %v22014_v6, 0.0  ;;  %v10679_v54 = vmax.f32 %v22015_v41, 0.0  ;;  %v10681_v14 = vmax.f32 %v20819_v51, 0.0  ;;  %v22017_v43 = vld [vmem:[#allocation22_spill] sm:$0xff] }
 0xd29   :  { %10728 = vst [vmem:[#allocation9 + $0x88] sm:$0xff] %v10664_v1  ;;  %10729 = vst [vmem:[#allocation9 + $0x90] sm:$0xff] %v10665_v11  ;;  %v10682_v48 = vmax.f32 %v22017_v43, 0.0  ;;  %v10683_v58 = vmax.f32 %v22018_v21, 0.0  ;;  %v10684_v52 = vmax.f32 %v22019_v8, 0.0  ;;  %v10685_v23 = vmax.f32 %v20831_v20, 0.0 }
 0xd2a   :  { %10730 = vst [vmem:[#allocation9 + $0x98] sm:$0xff] %v10666_v39  ;;  %10731 = vst [vmem:[#allocation9 + $0xa0] sm:$0xff] %v10667_v57  ;;  %v22020_v26 = vld [vmem:[#allocation24_spill] sm:$0xff]  ;;  %v22021_v37 = vld [vmem:[#allocation23_spill] sm:$0xff]  ;;  %v10689_v35 = vmax.f32 %v20843_v45, 0.0  ;;  %v10693_v13 = vmax.f32 %v20855_v17, 0.0 }
 0xd2b   :  { %10732 = vst [vmem:[#allocation9 + $0xa8] sm:$0xff] %v10668_v47  ;;  %10733 = vst [vmem:[#allocation9 + $0xb0] sm:$0xff] %v10669_v33  ;;  %v10686_v4 = vmax.f32 %v22020_v26, 0.0  ;;  %v10687_v51 = vmax.f32 %v22021_v37, 0.0  ;;  %v22022_v60 = vld [vmem:[#allocation26_spill] sm:$0xff]  ;;  %v22023_v22 = vld [vmem:[#allocation25_spill] sm:$0xff] }
 0xd2c   :  { %10734 = vst [vmem:[#allocation9 + $0xb8] sm:$0xff] %v10670_v18  ;;  %10735 = vst [vmem:[#allocation9 + $0xc0] sm:$0xff] %v10671_v40  ;;  %v10688_v53 = vmax.f32 %v22022_v60, 0.0  ;;  %v10690_v3 = vmax.f32 %v22023_v22, 0.0  ;;  %v22024_v63 = vld [vmem:[#allocation27_spill] sm:$0xff]  ;;  %v22025_v50 = vld [vmem:[#allocation28_spill] sm:$0xff] }
 0xd2d   :  { %10736 = vst [vmem:[#allocation9 + $0xc8] sm:$0xff] %v10672_v7  ;;  %10737 = vst [vmem:[#allocation9 + $0xd0] sm:$0xff] %v10673_v2  ;;  %v10691_v20 = vmax.f32 %v22024_v63, 0.0  ;;  %v10692_v29 = vmax.f32 %v22025_v50, 0.0  ;;  %v10694_v56 = vmax.f32 %v20858_v27, 0.0  ;;  %v10695_v45 = vmax.f32 %v20861_v31, 0.0 }
 0xd2e   :  { %10738 = vst [vmem:[#allocation9 + $0xd8] sm:$0xff] %v10674_v55  ;;  %10739 = vst [vmem:[#allocation9 + $0xe0] sm:$0xff] %v10675_v32  ;;  %v10696_v46 = vmax.f32 %v20864_v12, 0.0  ;;  %v10697_v24 = vmax.f32 %v20867_v61, 0.0  ;;  %v10698_v17 = vmax.f32 %v20870_v38, 0.0  ;;  %v10699_v1 = vmax.f32 %v20873_v30, 0.0 }
 0xd2f   :  { %10740 = vst [vmem:[#allocation9 + $0xe8] sm:$0xff] %v10676_v5  ;;  %10741 = vst [vmem:[#allocation9 + $0xf0] sm:$0xff] %v10677_v10  ;;  %v10700_v11 = vmax.f32 %v20876_v25, 0.0  ;;  %v10701_v27 = vmax.f32 %v20879_v34, 0.0  ;;  %v10702_v61 = vmax.f32 %v20882_v59, 0.0  ;;  %v10703_v31 = vmax.f32 %v20885_v16, 0.0 }
 0xd30   :  { %10742 = vst [vmem:[#allocation9 + $0xf8] sm:$0xff] %v10678_v15  ;;  %10743 = vst [vmem:[#allocation9 + $0x100] sm:$0xff] %v10679_v54  ;;  %v10704_v12 = vmax.f32 %v20888_v28, 0.0  ;;  %v10705_v39 = vmax.f32 %v20891_v49, 0.0  ;;  %v10706_v30 = vmax.f32 %v20894_v0, 0.0  ;;  %v10707_v38 = vmax.f32 %v20897_v44, 0.0 }
 0xd31   :  { %10744 = vst [vmem:[#allocation9 + $0x108] sm:$0xff] %v10680_v9  ;;  %10745 = vst [vmem:[#allocation9 + $0x110] sm:$0xff] %v10681_v14  ;;  %v10708_v25 = vmax.f32 %v20900_v19, 0.0  ;;  %v10710_v34 = vmax.f32 %v20903_v36, 0.0 }
 0xd32   :  { %10746 = vst [vmem:[#allocation9 + $0x118] sm:$0xff] %v10682_v48  ;;  %10747 = vst [vmem:[#allocation9 + $0x120] sm:$0xff] %v10683_v58 }
 0xd33   :  { %10748 = vst [vmem:[#allocation9 + $0x128] sm:$0xff] %v10684_v52  ;;  %10749 = vst [vmem:[#allocation9 + $0x130] sm:$0xff] %v10685_v23 }
 0xd34   :  { %10750 = vst [vmem:[#allocation9 + $0x138] sm:$0xff] %v10686_v4  ;;  %10751 = vst [vmem:[#allocation9 + $0x140] sm:$0xff] %v10687_v51 }
 0xd35   :  { %10752 = vst [vmem:[#allocation9 + $0x148] sm:$0xff] %v10688_v53  ;;  %10753 = vst [vmem:[#allocation9 + $0x150] sm:$0xff] %v10689_v35 }
 0xd36   :  { %10754 = vst [vmem:[#allocation9 + $0x158] sm:$0xff] %v10690_v3  ;;  %10755 = vst [vmem:[#allocation9 + $0x160] sm:$0xff] %v10691_v20 }
 0xd37   :  { %10756 = vst [vmem:[#allocation9 + $0x168] sm:$0xff] %v10692_v29  ;;  %10757 = vst [vmem:[#allocation9 + $0x170] sm:$0xff] %v10693_v13 }
 0xd38   :  { %10758 = vst [vmem:[#allocation9 + $0x178] sm:$0xff] %v10694_v56  ;;  %10759 = vst [vmem:[#allocation9 + $0x180] sm:$0xff] %v10695_v45 }
 0xd39   :  { %10760 = vst [vmem:[#allocation9 + $0x188] sm:$0xff] %v10696_v46  ;;  %10761 = vst [vmem:[#allocation9 + $0x190] sm:$0xff] %v10697_v24 }
 0xd3a   :  { %10762 = vst [vmem:[#allocation9 + $0x198] sm:$0xff] %v10698_v17  ;;  %10763 = vst [vmem:[#allocation9 + $0x1a0] sm:$0xff] %v10699_v1 }
 0xd3b   :  { %10764 = vst [vmem:[#allocation9 + $0x1a8] sm:$0xff] %v10700_v11  ;;  %10765 = vst [vmem:[#allocation9 + $0x1b0] sm:$0xff] %v10701_v27 }
 0xd3c   :  { %10766 = vst [vmem:[#allocation9 + $0x1b8] sm:$0xff] %v10702_v61  ;;  %10767 = vst [vmem:[#allocation9 + $0x1c0] sm:$0xff] %v10703_v31 }
 0xd3d   :  { %10768 = vst [vmem:[#allocation9 + $0x1c8] sm:$0xff] %v10704_v12  ;;  %10769 = vst [vmem:[#allocation9 + $0x1d0] sm:$0xff] %v10705_v39 }
 0xd3e   :  { %10770 = vst [vmem:[#allocation9 + $0x1d8] sm:$0xff] %v10706_v30  ;;  %10771 = vst [vmem:[#allocation9 + $0x1e0] sm:$0xff] %v10707_v38 }
 0xd3f   :  { %10772 = vst [vmem:[#allocation9 + $0x1e8] sm:$0xff] %v10708_v25  ;;  %10774 = vst [vmem:[#allocation9 + $0x1f8] sm:$0xff] %v10710_v34 }
 0xd40   :  { %16230 = shalt.err (!%p16227_p0)
}
 0xd41   :  { %s16231_s24 = scalar_lea.hbm %s20990_s7, 8192 }
 0xd42   :  { %p16232_p1 = scmp.ne.s32.totalorder %s20990_s7, %s16231_s24  ;;  %p16235_p2 = scmp.lt.u32.totalorder %s16231_s24, %s20990_s7 }
 0xd44   :  { %p16237_p3 = pnand %p16235_p2, %p16232_p1 }
 0xd46   :  { %16240 = shalt.err (!%p16237_p3)
}
 0xd47   :  { %10786 = dma.vmem_to_hbm [thread:$0]  %s10781_s6, 8192, %s20990_s7, [#allocation5], %s16249_s13, %s16249_s13, %s16250_s14  }
 0xd48   :  { %16245 = dma.done.wait [#allocation5], 8192  }
 0xd49   :  { %16246 = vsyncadd [#allocation5], 4294959104 }
 0xd4a   :  { %10790 = vsyncpa [#allocation4], 1 }
 0xd4b   :  { %10791 = vsyncpa [#allocation7], 1 }
 0xd4c   :  { %10792 = vsyncpa [#allocation5], 1 }

</bundles_post_ra>
